<compile_context>
chip_gen: v7x
topology: tpu7x:2x2x1
jax: 0.10.0
libtpu: 0.0.40
codegen_flags: <defaults>
</compile_context>

<pallas_src>
import functools

import jax
import jax.numpy as jnp
from jax.experimental import pallas as pl
from jax.experimental.pallas import tpu as pltpu

# Small-but-faithful config: hidden kept at 768 so the classifier head matches
# nn.Linear(768, 15); depth / vocab / seq shrunk for a quick synthetic run.
HIDDEN = 768
N_LAYERS = 2
N_HEADS = 12
HEAD_DIM = HIDDEN // N_HEADS
INTERMEDIATE = 3072
VOCAB = 128
TYPE_VOCAB = 2
MAX_POS = 32
N_LABELS = 15
N_LABELS_PAD = 128          # classifier head padded to a lane-dense width
LN_EPS = 1e-12


def _pick_tile(dim, candidates):
    """Largest candidate tile that divides `dim`; falls back to full dim."""
    for t in candidates:
        if t <= dim and dim % t == 0:
            return t
    return dim


def _pick_tm(m):
    """Row tile for kernels whose ONLY parallel grid axis is the row axis.

    Prefer >=2 row blocks (so v7x's second TensorCore gets work) while keeping
    tiles a multiple of 16 sublanes so bf16 input blocks stay tile-aligned.
    """
    tm = _pick_tile(m, (256, 128, 64, 32, 16, 8))
    if m // tm < 2:
        for cand in (128, 64, 32, 16):
            if cand < tm and m % cand == 0:
                return cand
    return tm


def _gelu(x):
    # TODO(synk): exact BERT uses the erf-based GELU; tanh approximation here.
    c = 0.7978845608028654  # sqrt(2/pi)
    return 0.5 * x * (1.0 + jnp.tanh(c * (x + 0.044715 * x * x * x)))


def _layernorm(y, gamma, beta, eps):
    mean = jnp.mean(y, axis=-1, keepdims=True)
    var = jnp.mean((y - mean) ** 2, axis=-1, keepdims=True)
    y = (y - mean) * jax.lax.rsqrt(var + eps)
    return y * gamma + beta


# --------------------- tiled dense (bias + activation) --------------------- #

def _dense_fullk_kernel(x_ref, w_ref, b_ref, o_ref, *, activation):
    # Full K per step: no accumulator, no reduction grid axis.
    y = jnp.dot(x_ref[...].astype(jnp.bfloat16),
                w_ref[...].astype(jnp.bfloat16),
                preferred_element_type=jnp.float32) + b_ref[...]
    if activation == "tanh":
        y = jnp.tanh(y)
    elif activation == "relu":
        y = jnp.maximum(y, 0.0)
    elif activation == "gelu":
        y = _gelu(y)
    o_ref[...] = y.astype(o_ref.dtype)


def _dense_acc_kernel(x_ref, w_ref, b_ref, o_ref, acc_ref, *, activation):
    # Fallback path for K that does not fit in one tile (unused at HIDDEN=768).
    @pl.when(pl.program_id(2) == 0)
    def _():
        acc_ref[...] = jnp.zeros_like(acc_ref)

    acc_ref[...] += jnp.dot(x_ref[...].astype(jnp.bfloat16),
                            w_ref[...].astype(jnp.bfloat16),
                            preferred_element_type=jnp.float32)

    @pl.when(pl.program_id(2) == pl.num_programs(2) - 1)
    def _():
        y = acc_ref[...] + b_ref[...]
        if activation == "tanh":
            y = jnp.tanh(y)
        elif activation == "relu":
            y = jnp.maximum(y, 0.0)
        elif activation == "gelu":
            y = _gelu(y)
        o_ref[...] = y.astype(o_ref.dtype)


def dense(x, w, b, activation="none", out_dtype=jnp.float32):
    m, kdim = x.shape
    n = w.shape[1]
    tm = _pick_tile(m, (256, 128, 64, 32, 16, 8))
    tn = _pick_tile(n, (768, 512, 256, 128))
    tk = _pick_tile(kdim, (768, 512, 256, 128))
    if tk == kdim:
        return pl.pallas_call(
            functools.partial(_dense_fullk_kernel, activation=activation),
            out_shape=jax.ShapeDtypeStruct((m, n), out_dtype),
            grid=(m // tm, n // tn),
            in_specs=[
                pl.BlockSpec((tm, kdim), lambda i, j: (i, 0)),
                pl.BlockSpec((kdim, tn), lambda i, j: (0, j)),
                pl.BlockSpec((1, tn), lambda i, j: (0, j)),
            ],
            out_specs=pl.BlockSpec((tm, tn), lambda i, j: (i, j)),
            compiler_params=pltpu.CompilerParams(
                dimension_semantics=("parallel", "parallel")),
        )(x, w, b.reshape(1, n))

    grid = (m // tm, n // tn, kdim // tk)
    return pl.pallas_call(
        functools.partial(_dense_acc_kernel, activation=activation),
        out_shape=jax.ShapeDtypeStruct((m, n), out_dtype),
        grid=grid,
        in_specs=[
            pl.BlockSpec((tm, tk), lambda i, j, k: (i, k)),
            pl.BlockSpec((tk, tn), lambda i, j, k: (k, j)),
            pl.BlockSpec((1, tn), lambda i, j, k: (0, j)),
        ],
        out_specs=pl.BlockSpec((tm, tn), lambda i, j, k: (i, j)),
        scratch_shapes=[pltpu.VMEM((tm, tn), jnp.float32)],
        compiler_params=pltpu.CompilerParams(
            dimension_semantics=("parallel", "parallel", "arbitrary")),
    )(x, w, b.reshape(1, n))


# ------------- dense + bias + residual + LayerNorm (attn output) ----------- #
# Full K=768 per step -> single parallel grid axis, no accumulator scratch.

def _dense_add_ln_kernel(x_ref, w_ref, b_ref, r_ref, g_ref, be_ref, o_ref, *, eps):
    y = jnp.dot(x_ref[...].astype(jnp.bfloat16),
                w_ref[...].astype(jnp.bfloat16),
                preferred_element_type=jnp.float32)
    y = y + b_ref[...] + r_ref[...]
    o_ref[...] = _layernorm(y, g_ref[...], be_ref[...], eps).astype(o_ref.dtype)


def dense_add_layernorm(x, w, b, residual, gamma, beta):
    m, kdim = x.shape
    n = w.shape[1]                      # full hidden so LN sees the whole row
    tm = _pick_tm(m)
    return pl.pallas_call(
        functools.partial(_dense_add_ln_kernel, eps=LN_EPS),
        out_shape=jax.ShapeDtypeStruct((m, n), jnp.float32),
        grid=(m // tm,),
        in_specs=[
            pl.BlockSpec((tm, kdim), lambda i: (i, 0)),
            pl.BlockSpec((kdim, n), lambda i: (0, 0)),
            pl.BlockSpec((1, n), lambda i: (0, 0)),
            pl.BlockSpec((tm, n), lambda i: (i, 0)),
            pl.BlockSpec((1, n), lambda i: (0, 0)),
            pl.BlockSpec((1, n), lambda i: (0, 0)),
        ],
        out_specs=pl.BlockSpec((tm, n), lambda i: (i, 0)),
        compiler_params=pltpu.CompilerParams(dimension_semantics=("parallel",)),
    )(x, w, b.reshape(1, n), residual, gamma.reshape(1, n), beta.reshape(1, n))


# ---- fused FFN: gelu(x@W1+b1) chunk -> @W2 accumulate -> +res -> LN -------- #

def _ffn_kernel(x_ref, w1_ref, b1_ref, w2_ref, b2_ref, r_ref, g_ref, be_ref,
                o_ref, acc_ref, *, eps):
    @pl.when(pl.program_id(1) == 0)
    def _():
        acc_ref[...] = jnp.zeros_like(acc_ref)

    # Chunk of the (M, 3072) intermediate lives only in VMEM/registers.
    h = jnp.dot(x_ref[...].astype(jnp.bfloat16),
                w1_ref[...].astype(jnp.bfloat16),
                preferred_element_type=jnp.float32) + b1_ref[...]
    h = _gelu(h)
    acc_ref[...] += jnp.dot(h.astype(jnp.bfloat16),
                            w2_ref[...].astype(jnp.bfloat16),
                            preferred_element_type=jnp.float32)

    @pl.when(pl.program_id(1) == pl.num_programs(1) - 1)
    def _():
        y = acc_ref[...] + b2_ref[...] + r_ref[...]
        o_ref[...] = _layernorm(y, g_ref[...], be_ref[...], eps).astype(o_ref.dtype)


def ffn_fused(x, w1, b1, w2, b2, residual, gamma, beta):
    m, h = x.shape
    inter = w1.shape[1]
    tm = _pick_tm(m)
    # tj=512 sits safely under v5e's 16 MiB scoped-VMEM default; on v6e it can
    # be raised to 1024/1536 (with vmem_limit_bytes) for fewer acc passes.
    tj = _pick_tile(inter, (512, 256, 128))
    grid = (m // tm, inter // tj)
    return pl.pallas_call(
        functools.partial(_ffn_kernel, eps=LN_EPS),
        out_shape=jax.ShapeDtypeStruct((m, h), jnp.float32),
        grid=grid,
        in_specs=[
            pl.BlockSpec((tm, h), lambda i, j: (i, 0)),     # x
            pl.BlockSpec((h, tj), lambda i, j: (0, j)),     # w1 chunk
            pl.BlockSpec((1, tj), lambda i, j: (0, j)),     # b1 chunk
            pl.BlockSpec((tj, h), lambda i, j: (j, 0)),     # w2 chunk
            pl.BlockSpec((1, h), lambda i, j: (0, 0)),      # b2
            pl.BlockSpec((tm, h), lambda i, j: (i, 0)),     # residual
            pl.BlockSpec((1, h), lambda i, j: (0, 0)),      # gamma
            pl.BlockSpec((1, h), lambda i, j: (0, 0)),      # beta
        ],
        out_specs=pl.BlockSpec((tm, h), lambda i, j: (i, 0)),
        scratch_shapes=[pltpu.VMEM((tm, h), jnp.float32)],
        compiler_params=pltpu.CompilerParams(
            dimension_semantics=("parallel", "arbitrary")),
    )(x, w1, b1.reshape(1, inter), w2, b2.reshape(1, h),
      residual, gamma.reshape(1, h), beta.reshape(1, h))


# ------------------- attention, gridded over (batch, heads) ---------------- #
# Reads Q/K/V head-slices directly from the [B*S, 3*HIDDEN] QKV matrix via
# column-offset index_maps, and writes a head-merged lane-dense [B*S, HIDDEN]
# bf16 context block — no JAX split/merge transposes, no 64-lane stores.
# Assumes S is a multiple of 16 (bf16 sublane tile).

def _attn_kernel(q_ref, k_ref, v_ref, m_ref, o_ref, *, gh, head_dim, scale):
    mask = m_ref[0]                                  # (1, S) additive mask
    qb = q_ref[...].astype(jnp.bfloat16)             # (S, gh*D)
    kb = k_ref[...].astype(jnp.bfloat16)
    vb = v_ref[...].astype(jnp.bfloat16)
    ctxs = []
    for h in range(gh):                              # static unroll over heads
        sl = slice(h * head_dim, (h + 1) * head_dim)
        q, k, v = qb[:, sl], kb[:, sl], vb[:, sl]
        s = jax.lax.dot_general(q, k, (((1,), (1,)), ((), ())),
                                preferred_element_type=jnp.float32) * scale
        s = s + mask                                 # broadcast over queries
        s_max = jnp.max(s, axis=-1, keepdims=True)
        p = jnp.exp(s - s_max)
        denom = jnp.sum(p, axis=-1, keepdims=True)
        p = p * pl.reciprocal(denom, approx=True)    # EUP, not VALU divide
        ctxs.append(jnp.dot(p.astype(jnp.bfloat16), v,
                            preferred_element_type=jnp.float32))
    o_ref[...] = jnp.concatenate(ctxs, axis=-1).astype(o_ref.dtype)


def attention(qkv, add_mask, B, S):
    rows, width = qkv.shape
    assert rows == B * S and width == 3 * HIDDEN
    # gh*HEAD_DIM must be a multiple of 128 (lane tile); take the biggest gh
    # that still leaves >=2 total grid steps (v7x megacore).
    gh = 2
    for cand in (12, 6, 4, 2):
        if N_HEADS % cand == 0 and (cand * HEAD_DIM) % 128 == 0:
            if B * (N_HEADS // cand) >= 2 or cand == 2:
                gh = cand
                break
    nblk = N_HEADS // gh
    scale = 1.0 / (HEAD_DIM ** 0.5)
    blk = (S, gh * HEAD_DIM)
    return pl.pallas_call(
        functools.partial(_attn_kernel, gh=gh, head_dim=HEAD_DIM, scale=scale),
        out_shape=jax.ShapeDtypeStruct((B * S, HIDDEN), jnp.bfloat16),
        grid=(B, nblk),
        in_specs=[
            pl.BlockSpec(blk, lambda bi, gi: (bi, gi)),              # Q cols
            pl.BlockSpec(blk, lambda bi, gi: (bi, nblk + gi)),       # K cols
            pl.BlockSpec(blk, lambda bi, gi: (bi, 2 * nblk + gi)),   # V cols
            pl.BlockSpec((1, 1, S), lambda bi, gi: (bi, 0, 0)),      # mask
        ],
        out_specs=pl.BlockSpec(blk, lambda bi, gi: (bi, gi)),
        compiler_params=pltpu.CompilerParams(
            dimension_semantics=("parallel", "parallel")),
    )(qkv, qkv, qkv, add_mask)


# ------------------------ embedding LayerNorm ------------------------------ #

def _ln_kernel(x_ref, g_ref, b_ref, o_ref, *, eps):
    o_ref[...] = _layernorm(x_ref[...], g_ref[...], b_ref[...], eps).astype(o_ref.dtype)


def layernorm(x, gamma, beta):
    m, h = x.shape
    tm = _pick_tm(m)
    return pl.pallas_call(
        functools.partial(_ln_kernel, eps=LN_EPS),
        out_shape=jax.ShapeDtypeStruct((m, h), jnp.float32),
        grid=(m // tm,),
        in_specs=[pl.BlockSpec((tm, h), lambda i: (i, 0)),
                  pl.BlockSpec((1, h), lambda i: (0, 0)),
                  pl.BlockSpec((1, h), lambda i: (0, 0))],
        out_specs=pl.BlockSpec((tm, h), lambda i: (i, 0)),
        compiler_params=pltpu.CompilerParams(dimension_semantics=("parallel",)),
    )(x, gamma.reshape(1, h), beta.reshape(1, h))


# ------------- fused pooler (tanh) + classifier (Linear + ReLU) ------------- #
# Classifier output padded to 128 lanes so stores are lane-dense; sliced back
# to 15 labels outside.  Tiny problem -> single block is intentional.

def _head_kernel(x_ref, pw_ref, pb_ref, cw_ref, cb_ref, o_ref):
    x = x_ref[...].astype(jnp.bfloat16)
    pooled = jnp.tanh(
        jnp.dot(x, pw_ref[...].astype(jnp.bfloat16),
                preferred_element_type=jnp.float32) + pb_ref[...])
    logits = jnp.dot(pooled.astype(jnp.bfloat16),
                     cw_ref[...].astype(jnp.bfloat16),
                     preferred_element_type=jnp.float32) + cb_ref[...]
    o_ref[...] = jnp.maximum(logits, 0.0).astype(o_ref.dtype)


def pooler_classifier(cls_tok, pool_w, pool_b, cls_w_pad, cls_b_pad):
    bsz, h = cls_tok.shape
    npad = cls_w_pad.shape[1]
    return pl.pallas_call(
        _head_kernel,
        out_shape=jax.ShapeDtypeStruct((bsz, npad), jnp.float32),
        grid=(1,),
        in_specs=[pl.BlockSpec((bsz, h), lambda i: (0, 0)),
                  pl.BlockSpec((h, h), lambda i: (0, 0)),
                  pl.BlockSpec((1, h), lambda i: (0, 0)),
                  pl.BlockSpec((h, npad), lambda i: (0, 0)),
                  pl.BlockSpec((1, npad), lambda i: (0, 0))],
        out_specs=pl.BlockSpec((bsz, npad), lambda i: (0, 0)),
    )(cls_tok, pool_w, pool_b.reshape(1, h), cls_w_pad, cls_b_pad.reshape(1, npad))


# ----------------------------- Model forward ------------------------------- #

def bert_layer(x, p, add_mask, B, S):
    # Fused Q/K/V projection; bf16 output since it only feeds the attention
    # matmuls (halves the [B*S, 2304] intermediate's HBM traffic).
    qkv = dense(x, p["qkv_w"], p["qkv_b"], out_dtype=jnp.bfloat16)
    # Head split/merge folded into the attention BlockSpecs; ctx is bf16 and
    # already laid out as [B*S, HIDDEN].
    ctx = attention(qkv, add_mask, B, S)
    # attention output projection + residual + LayerNorm, one kernel
    x = dense_add_layernorm(ctx, p["ao_w"], p["ao_b"], x, p["ln1_g"], p["ln1_b"])
    # FFN (gelu -> proj) + residual + LayerNorm, one kernel
    x = ffn_fused(x, p["ff1_w"], p["ff1_b"], p["ff2_w"], p["ff2_b"],
                  x, p["ln2_g"], p["ln2_b"])
    return x


def bert_classifier_forward(params, input_id, mask):
    B, S = input_id.shape
    # Embeddings (gather is plain-JAX glue); token_type_ids default to 0 as in
    # the HF BertModel call inside BertClassifier.forward.
    emb = (params["word_emb"][input_id]
           + params["pos_emb"][:S][None, :, :]
           + params["type_emb"][0][None, None, :])
    x = layernorm(emb.reshape(B * S, HIDDEN).astype(jnp.float32),
                  params["emb_ln_g"], params["emb_ln_b"])

    # Additive attention mask: 0 where attended, -1e9 where masked.  [B, 1, S]
    add_mask = ((1.0 - mask.astype(jnp.float32)) * -1e9)[:, None, :]

    for lp in params["layers"]:
        x = bert_layer(x, lp, add_mask, B, S)

    cls = x.reshape(B, S, HIDDEN)[:, 0, :]                   # [CLS] token
    logits_pad = pooler_classifier(cls, params["pool_w"], params["pool_b"],
                                   params["cls_w_pad"], params["cls_b_pad"])
    return logits_pad[:, :N_LABELS]


# ----------------------------- Param init ---------------------------------- #

def init_params(key):
    keys = iter(jax.random.split(key, 64))

    def nrm(shape, dtype=jnp.bfloat16):
        # Matmul weights stored bf16 (halves weight DMA; MXU is a bf16 engine).
        return (0.02 * jax.random.normal(next(keys), shape, jnp.float32)).astype(dtype)

    def zeros(shape):
        return jnp.zeros(shape, jnp.float32)

    def ones(shape):
        return jnp.ones(shape, jnp.float32)

    cls_w = nrm((HIDDEN, N_LABELS), jnp.float32)
    cls_w_pad = jnp.pad(cls_w, ((0, 0), (0, N_LABELS_PAD - N_LABELS))).astype(jnp.bfloat16)

    params = {
        "word_emb": nrm((VOCAB, HIDDEN), jnp.float32),
        "pos_emb": nrm((MAX_POS, HIDDEN), jnp.float32),
        "type_emb": nrm((TYPE_VOCAB, HIDDEN), jnp.float32),
        "emb_ln_g": ones((HIDDEN,)),
        "emb_ln_b": zeros((HIDDEN,)),
        "pool_w": nrm((HIDDEN, HIDDEN)),
        "pool_b": zeros((HIDDEN,)),
        "cls_w_pad": cls_w_pad,
        "cls_b_pad": zeros((N_LABELS_PAD,)),
        "layers": [],
    }
    for _ in range(N_LAYERS):
        params["layers"].append({
            # QKV column convention: [0:768]=Q, [768:1536]=K, [1536:2304]=V,
            # head h occupying columns [h*64:(h+1)*64] within each third.
            "qkv_w": nrm((HIDDEN, 3 * HIDDEN)), "qkv_b": zeros((3 * HIDDEN,)),
            "ao_w": nrm((HIDDEN, HIDDEN)), "ao_b": zeros((HIDDEN,)),
            "ln1_g": ones((HIDDEN,)), "ln1_b": zeros((HIDDEN,)),
            "ff1_w": nrm((HIDDEN, INTERMEDIATE)), "ff1_b": zeros((INTERMEDIATE,)),
            "ff2_w": nrm((INTERMEDIATE, HIDDEN)), "ff2_b": zeros((HIDDEN,)),
            "ln2_g": ones((HIDDEN,)), "ln2_b": zeros((HIDDEN,)),
        })
    return params


if __name__ == "__main__":
    key = jax.random.PRNGKey(0)
    pkey, ikey = jax.random.split(key)
    params = init_params(pkey)

    B, S = 2, 16      # S multiple of 16 so bf16 activation blocks tile cleanly
    input_id = jax.random.randint(ikey, (B, S), 0, VOCAB, dtype=jnp.int32)
    mask = jnp.ones((B, S), dtype=jnp.int32).at[1, -1].set(0)  # one padded token

    fwd = jax.jit(functools.partial(bert_classifier_forward, params))
    out = fwd(input_id, mask)
    jax.block_until_ready(out)
    assert out.shape == (B, N_LABELS), out.shape
    assert bool(jnp.all(jnp.isfinite(out)))
    assert bool(jnp.all(out >= 0.0))  # ReLU output is non-negative
    print("KERNEL_OK")
</pallas_src>

<mosaic_0001>
module attributes {stable_mosaic.version = 11 : i64} {
  func.func @_dense_fullk_kernel(%arg0: i32, %arg1: i32, %arg2: memref<32x768xf32, #tpu.memory_space<vmem>>, %arg3: memref<768x768xbf16, #tpu.memory_space<vmem>>, %arg4: memref<1x768xf32, #tpu.memory_space<vmem>>, %arg5: memref<32x768xbf16, #tpu.memory_space<vmem>>) attributes {dimension_semantics = [#tpu.dimension_semantics<parallel>, #tpu.dimension_semantics<parallel>], iteration_bounds = array<i64: 1, 3>, scalar_prefetch = 0 : i64, scratch_operands = 0 : i64, tpu.core_type = #tpu.core_type<tc>, window_params = [{transform_indices = @transform_0, window_bounds = array<i64: 32, 768>}, {transform_indices = @transform_1, window_bounds = array<i64: 768, 768>}, {transform_indices = @transform_2, window_bounds = array<i64: 1, 768>}, {transform_indices = @transform_3, window_bounds = array<i64: 32, 768>}]} {
    %c0 = arith.constant 0 : index
    %c0_0 = arith.constant 0 : index
    %0 = vector.load %arg2[%c0, %c0_0] : memref<32x768xf32, #tpu.memory_space<vmem>>, vector<32x768xf32>
    %1 = arith.truncf %0 : vector<32x768xf32> to vector<32x768xbf16>
    %c0_1 = arith.constant 0 : index
    %c0_2 = arith.constant 0 : index
    %2 = vector.load %arg3[%c0_1, %c0_2] : memref<768x768xbf16, #tpu.memory_space<vmem>>, vector<768x768xbf16>
    %cst = arith.constant dense<0.000000e+00> : vector<32x768xf32>
    %3 = tpu.matmul %1, %2, %cst {dimension_numbers = #tpu.dot_dimension_numbers<[1], [0], [0], [1], [0, 0, 1, 1], [], []>} : vector<32x768xbf16>, vector<768x768xbf16>, vector<32x768xf32> -> vector<32x768xf32>
    %c0_3 = arith.constant 0 : index
    %c0_4 = arith.constant 0 : index
    %4 = vector.load %arg4[%c0_3, %c0_4] : memref<1x768xf32, #tpu.memory_space<vmem>>, vector<1x768xf32>
    %5 = vector.broadcast %4 : vector<1x768xf32> to vector<32x768xf32>
    %6 = arith.addf %3, %5 : vector<32x768xf32>
    %7 = arith.truncf %6 : vector<32x768xf32> to vector<32x768xbf16>
    %c0_5 = arith.constant 0 : index
    %c0_6 = arith.constant 0 : index
    %8 = vector.load %arg5[%c0_5, %c0_6] : memref<32x768xbf16, #tpu.memory_space<vmem>>, vector<32x768xbf16>
    tpu.vector_store %arg5[%c0_5, %c0_6], %7 {strides = array<i32>} : memref<32x768xbf16, #tpu.memory_space<vmem>>, vector<32x768xbf16>,
    return
  }
  func.func @transform_0(%arg0: i32, %arg1: i32) -> (i32, i32) {
    %c0_i32 = arith.constant 0 : i32
    %c0_i32_0 = arith.constant 0 : i32
    return %arg0, %c0_i32 : i32, i32
  }
  func.func @transform_1(%arg0: i32, %arg1: i32) -> (i32, i32) {
    %c0_i32 = arith.constant 0 : i32
    %c0_i32_0 = arith.constant 0 : i32
    return %c0_i32, %arg1 : i32, i32
  }
  func.func @transform_2(%arg0: i32, %arg1: i32) -> (i32, i32) {
    %c0_i32 = arith.constant 0 : i32
    %c0_i32_0 = arith.constant 0 : i32
    return %c0_i32, %arg1 : i32, i32
  }
  func.func @transform_3(%arg0: i32, %arg1: i32) -> (i32, i32) {
    %c0_i32 = arith.constant 0 : i32
    return %arg0, %arg1 : i32, i32
  }
}

module attributes {stable_mosaic.version = 11 : i64} {
  func.func @_ln_kernel(%arg0: i32, %arg1: memref<16x768xf32, #tpu.memory_space<vmem>>, %arg2: memref<1x768xf32, #tpu.memory_space<vmem>>, %arg3: memref<1x768xf32, #tpu.memory_space<vmem>>, %arg4: memref<16x768xf32, #tpu.memory_space<vmem>>) attributes {dimension_semantics = [#tpu.dimension_semantics<parallel>], iteration_bounds = array<i64: 2>, scalar_prefetch = 0 : i64, scratch_operands = 0 : i64, tpu.core_type = #tpu.core_type<tc>, window_params = [{transform_indices = @transform_0, window_bounds = array<i64: 16, 768>}, {pipeline_mode = #tpu.pipeline_mode<synchronous>, transform_indices = @transform_1, window_bounds = array<i64: 1, 768>}, {pipeline_mode = #tpu.pipeline_mode<synchronous>, transform_indices = @transform_2, window_bounds = array<i64: 1, 768>}, {transform_indices = @transform_3, window_bounds = array<i64: 16, 768>}]} {
    %c0 = arith.constant 0 : index
    %c0_0 = arith.constant 0 : index
    %0 = vector.load %arg1[%c0, %c0_0] : memref<16x768xf32, #tpu.memory_space<vmem>>, vector<16x768xf32>
    %c0_1 = arith.constant 0 : index
    %c0_2 = arith.constant 0 : index
    %1 = vector.load %arg2[%c0_1, %c0_2] : memref<1x768xf32, #tpu.memory_space<vmem>>, vector<1x768xf32>
    %c0_3 = arith.constant 0 : index
    %c0_4 = arith.constant 0 : index
    %2 = vector.load %arg3[%c0_3, %c0_4] : memref<1x768xf32, #tpu.memory_space<vmem>>, vector<1x768xf32>
    %cst = arith.constant dense<0.000000e+00> : vector<16xf32>
    %3 = vector.multi_reduction <add>, %0, %cst [1] : vector<16x768xf32> to vector<16xf32>
    %4 = vector.shape_cast %3 : vector<16xf32> to vector<16x1xf32>
    %cst_5 = arith.constant 7.680000e+02 : f32
    %5 = vector.broadcast %cst_5 : f32 to vector<16x1xf32>
    %6 = arith.divf %4, %5 : vector<16x1xf32>
    %7 = vector.broadcast %6 : vector<16x1xf32> to vector<16x768xf32>
    %8 = arith.subf %0, %7 : vector<16x768xf32>
    %9 = arith.mulf %8, %8 : vector<16x768xf32>
    %cst_6 = arith.constant dense<0.000000e+00> : vector<16xf32>
    %10 = vector.multi_reduction <add>, %9, %cst_6 [1] : vector<16x768xf32> to vector<16xf32>
    %11 = vector.shape_cast %10 : vector<16xf32> to vector<16x1xf32>
    %cst_7 = arith.constant 7.680000e+02 : f32
    %12 = vector.broadcast %cst_7 : f32 to vector<16x1xf32>
    %13 = arith.divf %11, %12 : vector<16x1xf32>
    %14 = vector.broadcast %6 : vector<16x1xf32> to vector<16x768xf32>
    %15 = arith.subf %0, %14 : vector<16x768xf32>
    %cst_8 = arith.constant 9.99999996E-13 : f32
    %16 = vector.broadcast %cst_8 : f32 to vector<16x1xf32>
    %17 = arith.addf %13, %16 : vector<16x1xf32>
    %18 = math.rsqrt %17 : vector<16x1xf32>
    %19 = vector.broadcast %18 : vector<16x1xf32> to vector<16x768xf32>
    %20 = arith.mulf %15, %19 : vector<16x768xf32>
    %21 = vector.broadcast %1 : vector<1x768xf32> to vector<16x768xf32>
    %22 = arith.mulf %20, %21 : vector<16x768xf32>
    %23 = vector.broadcast %2 : vector<1x768xf32> to vector<16x768xf32>
    %24 = arith.addf %22, %23 : vector<16x768xf32>
    %c0_9 = arith.constant 0 : index
    %c0_10 = arith.constant 0 : index
    %25 = vector.load %arg4[%c0_9, %c0_10] : memref<16x768xf32, #tpu.memory_space<vmem>>, vector<16x768xf32>
    tpu.vector_store %arg4[%c0_9, %c0_10], %24 {strides = array<i32>} : memref<16x768xf32, #tpu.memory_space<vmem>>, vector<16x768xf32>,
    return
  }
  func.func @transform_0(%arg0: i32) -> (i32, i32) {
    %c0_i32 = arith.constant 0 : i32
    %c0_i32_0 = arith.constant 0 : i32
    return %arg0, %c0_i32 : i32, i32
  }
  func.func @transform_1(%arg0: i32) -> (i32, i32) {
    %c0_i32 = arith.constant 0 : i32
    %c0_i32_0 = arith.constant 0 : i32
    %c0_i32_1 = arith.constant 0 : i32
    return %c0_i32, %c0_i32_0 : i32, i32
  }
  func.func @transform_2(%arg0: i32) -> (i32, i32) {
    %c0_i32 = arith.constant 0 : i32
    %c0_i32_0 = arith.constant 0 : i32
    %c0_i32_1 = arith.constant 0 : i32
    return %c0_i32, %c0_i32_0 : i32, i32
  }
  func.func @transform_3(%arg0: i32) -> (i32, i32) {
    %c0_i32 = arith.constant 0 : i32
    %c0_i32_0 = arith.constant 0 : i32
    return %arg0, %c0_i32 : i32, i32
  }
}

module attributes {stable_mosaic.version = 11 : i64} {
  func.func @_attn_kernel(%arg0: i32, %arg1: i32, %arg2: memref<16x768xbf16, #tpu.memory_space<vmem>>, %arg3: memref<16x768xbf16, #tpu.memory_space<vmem>>, %arg4: memref<16x768xbf16, #tpu.memory_space<vmem>>, %arg5: memref<1x1x16xf32, #tpu.memory_space<vmem>>, %arg6: memref<16x768xbf16, #tpu.memory_space<vmem>>) attributes {dimension_semantics = [#tpu.dimension_semantics<parallel>, #tpu.dimension_semantics<parallel>], iteration_bounds = array<i64: 2, 1>, scalar_prefetch = 0 : i64, scratch_operands = 0 : i64, tpu.core_type = #tpu.core_type<tc>, window_params = [{transform_indices = @transform_0, window_bounds = array<i64: 16, 768>}, {transform_indices = @transform_1, window_bounds = array<i64: 16, 768>}, {transform_indices = @transform_2, window_bounds = array<i64: 16, 768>}, {transform_indices = @transform_3, window_bounds = array<i64: 1, 1, 16>}, {transform_indices = @transform_4, window_bounds = array<i64: 16, 768>}]} {
    %c0 = arith.constant 0 : index
    %c0_0 = arith.constant 0 : index
    %c0_1 = arith.constant 0 : index
    %0 = vector.load %arg5[%c0, %c0_0, %c0_1] : memref<1x1x16xf32, #tpu.memory_space<vmem>>, vector<1x1x16xf32>
    %1 = vector.shape_cast %0 : vector<1x1x16xf32> to vector<1x16xf32>
    %c0_2 = arith.constant 0 : index
    %c0_3 = arith.constant 0 : index
    %2 = vector.load %arg2[%c0_2, %c0_3] : memref<16x768xbf16, #tpu.memory_space<vmem>>, vector<16x768xbf16>
    %c0_4 = arith.constant 0 : index
    %c0_5 = arith.constant 0 : index
    %3 = vector.load %arg3[%c0_4, %c0_5] : memref<16x768xbf16, #tpu.memory_space<vmem>>, vector<16x768xbf16>
    %c0_6 = arith.constant 0 : index
    %c0_7 = arith.constant 0 : index
    %4 = vector.load %arg4[%c0_6, %c0_7] : memref<16x768xbf16, #tpu.memory_space<vmem>>, vector<16x768xbf16>
    %5 = vector.extract_strided_slice %2 {offsets = [0, 0], sizes = [16, 64], strides = [1, 1]} : vector<16x768xbf16> to vector<16x64xbf16>
    %6 = vector.extract_strided_slice %3 {offsets = [0, 0], sizes = [16, 64], strides = [1, 1]} : vector<16x768xbf16> to vector<16x64xbf16>
    %7 = vector.extract_strided_slice %4 {offsets = [0, 0], sizes = [16, 64], strides = [1, 1]} : vector<16x768xbf16> to vector<16x64xbf16>
    %cst = arith.constant dense<0.000000e+00> : vector<16x16xf32>
    %8 = tpu.matmul %5, %6, %cst {dimension_numbers = #tpu.dot_dimension_numbers<[1], [1], [0], [0], [0, 0, 1, 0], [], []>} : vector<16x64xbf16>, vector<16x64xbf16>, vector<16x16xf32> -> vector<16x16xf32>
    %cst_8 = arith.constant 1.250000e-01 : f32
    %9 = vector.broadcast %cst_8 : f32 to vector<16x16xf32>
    %10 = arith.mulf %8, %9 : vector<16x16xf32>
    %11 = vector.broadcast %1 : vector<1x16xf32> to vector<16x16xf32>
    %12 = arith.addf %10, %11 : vector<16x16xf32>
    %cst_9 = arith.constant dense<0xFF800000> : vector<16xf32>
    %13 = vector.multi_reduction <maximumf>, %12, %cst_9 [1] : vector<16x16xf32> to vector<16xf32>
    %14 = vector.shape_cast %13 : vector<16xf32> to vector<16x1xf32>
    %15 = vector.broadcast %14 : vector<16x1xf32> to vector<16x16xf32>
    %16 = arith.subf %12, %15 : vector<16x16xf32>
    %17 = math.exp %16 : vector<16x16xf32>
    %cst_10 = arith.constant dense<0.000000e+00> : vector<16xf32>
    %18 = vector.multi_reduction <add>, %17, %cst_10 [1] : vector<16x16xf32> to vector<16xf32>
    %19 = vector.shape_cast %18 : vector<16xf32> to vector<16x1xf32>
    %20 = tpu.reciprocal %19 {approx = true} : vector<16x1xf32> -> vector<16x1xf32>
    %21 = vector.broadcast %20 : vector<16x1xf32> to vector<16x16xf32>
    %22 = arith.mulf %17, %21 : vector<16x16xf32>
    %23 = arith.truncf %22 : vector<16x16xf32> to vector<16x16xbf16>
    %cst_11 = arith.constant dense<0.000000e+00> : vector<16x64xf32>
    %24 = tpu.matmul %23, %7, %cst_11 {dimension_numbers = #tpu.dot_dimension_numbers<[1], [0], [0], [1], [0, 0, 1, 1], [], []>} : vector<16x16xbf16>, vector<16x64xbf16>, vector<16x64xf32> -> vector<16x64xf32>
    %25 = vector.extract_strided_slice %2 {offsets = [0, 64], sizes = [16, 64], strides = [1, 1]} : vector<16x768xbf16> to vector<16x64xbf16>
    %26 = vector.extract_strided_slice %3 {offsets = [0, 64], sizes = [16, 64], strides = [1, 1]} : vector<16x768xbf16> to vector<16x64xbf16>
    %27 = vector.extract_strided_slice %4 {offsets = [0, 64], sizes = [16, 64], strides = [1, 1]} : vector<16x768xbf16> to vector<16x64xbf16>
    %cst_12 = arith.constant dense<0.000000e+00> : vector<16x16xf32>
    %28 = tpu.matmul %25, %26, %cst_12 {dimension_numbers = #tpu.dot_dimension_numbers<[1], [1], [0], [0], [0, 0, 1, 0], [], []>} : vector<16x64xbf16>, vector<16x64xbf16>, vector<16x16xf32> -> vector<16x16xf32>
    %cst_13 = arith.constant 1.250000e-01 : f32
    %29 = vector.broadcast %cst_13 : f32 to vector<16x16xf32>
    %30 = arith.mulf %28, %29 : vector<16x16xf32>
    %31 = vector.broadcast %1 : vector<1x16xf32> to vector<16x16xf32>
    %32 = arith.addf %30, %31 : vector<16x16xf32>
    %cst_14 = arith.constant dense<0xFF800000> : vector<16xf32>
    %33 = vector.multi_reduction <maximumf>, %32, %cst_14 [1] : vector<16x16xf32> to vector<16xf32>
    %34 = vector.shape_cast %33 : vector<16xf32> to vector<16x1xf32>
    %35 = vector.broadcast %34 : vector<16x1xf32> to vector<16x16xf32>
    %36 = arith.subf %32, %35 : vector<16x16xf32>
    %37 = math.exp %36 : vector<16x16xf32>
    %cst_15 = arith.constant dense<0.000000e+00> : vector<16xf32>
    %38 = vector.multi_reduction <add>, %37, %cst_15 [1] : vector<16x16xf32> to vector<16xf32>
    %39 = vector.shape_cast %38 : vector<16xf32> to vector<16x1xf32>
    %40 = tpu.reciprocal %39 {approx = true} : vector<16x1xf32> -> vector<16x1xf32>
    %41 = vector.broadcast %40 : vector<16x1xf32> to vector<16x16xf32>
    %42 = arith.mulf %37, %41 : vector<16x16xf32>
    %43 = arith.truncf %42 : vector<16x16xf32> to vector<16x16xbf16>
    %cst_16 = arith.constant dense<0.000000e+00> : vector<16x64xf32>
    %44 = tpu.matmul %43, %27, %cst_16 {dimension_numbers = #tpu.dot_dimension_numbers<[1], [0], [0], [1], [0, 0, 1, 1], [], []>} : vector<16x16xbf16>, vector<16x64xbf16>, vector<16x64xf32> -> vector<16x64xf32>
    %45 = vector.extract_strided_slice %2 {offsets = [0, 128], sizes = [16, 64], strides = [1, 1]} : vector<16x768xbf16> to vector<16x64xbf16>
    %46 = vector.extract_strided_slice %3 {offsets = [0, 128], sizes = [16, 64], strides = [1, 1]} : vector<16x768xbf16> to vector<16x64xbf16>
    %47 = vector.extract_strided_slice %4 {offsets = [0, 128], sizes = [16, 64], strides = [1, 1]} : vector<16x768xbf16> to vector<16x64xbf16>
    %cst_17 = arith.constant dense<0.000000e+00> : vector<16x16xf32>
    %48 = tpu.matmul %45, %46, %cst_17 {dimension_numbers = #tpu.dot_dimension_numbers<[1], [1], [0], [0], [0, 0, 1, 0], [], []>} : vector<16x64xbf16>, vector<16x64xbf16>, vector<16x16xf32> -> vector<16x16xf32>
    %cst_18 = arith.constant 1.250000e-01 : f32
    %49 = vector.broadcast %cst_18 : f32 to vector<16x16xf32>
    %50 = arith.mulf %48, %49 : vector<16x16xf32>
    %51 = vector.broadcast %1 : vector<1x16xf32> to vector<16x16xf32>
    %52 = arith.addf %50, %51 : vector<16x16xf32>
    %cst_19 = arith.constant dense<0xFF800000> : vector<16xf32>
    %53 = vector.multi_reduction <maximumf>, %52, %cst_19 [1] : vector<16x16xf32> to vector<16xf32>
    %54 = vector.shape_cast %53 : vector<16xf32> to vector<16x1xf32>
    %55 = vector.broadcast %54 : vector<16x1xf32> to vector<16x16xf32>
    %56 = arith.subf %52, %55 : vector<16x16xf32>
    %57 = math.exp %56 : vector<16x16xf32>
    %cst_20 = arith.constant dense<0.000000e+00> : vector<16xf32>
    %58 = vector.multi_reduction <add>, %57, %cst_20 [1] : vector<16x16xf32> to vector<16xf32>
    %59 = vector.shape_cast %58 : vector<16xf32> to vector<16x1xf32>
    %60 = tpu.reciprocal %59 {approx = true} : vector<16x1xf32> -> vector<16x1xf32>
    %61 = vector.broadcast %60 : vector<16x1xf32> to vector<16x16xf32>
    %62 = arith.mulf %57, %61 : vector<16x16xf32>
    %63 = arith.truncf %62 : vector<16x16xf32> to vector<16x16xbf16>
    %cst_21 = arith.constant dense<0.000000e+00> : vector<16x64xf32>
    %64 = tpu.matmul %63, %47, %cst_21 {dimension_numbers = #tpu.dot_dimension_numbers<[1], [0], [0], [1], [0, 0, 1, 1], [], []>} : vector<16x16xbf16>, vector<16x64xbf16>, vector<16x64xf32> -> vector<16x64xf32>
    %65 = vector.extract_strided_slice %2 {offsets = [0, 192], sizes = [16, 64], strides = [1, 1]} : vector<16x768xbf16> to vector<16x64xbf16>
    %66 = vector.extract_strided_slice %3 {offsets = [0, 192], sizes = [16, 64], strides = [1, 1]} : vector<16x768xbf16> to vector<16x64xbf16>
    %67 = vector.extract_strided_slice %4 {offsets = [0, 192], sizes = [16, 64], strides = [1, 1]} : vector<16x768xbf16> to vector<16x64xbf16>
    %cst_22 = arith.constant dense<0.000000e+00> : vector<16x16xf32>
    %68 = tpu.matmul %65, %66, %cst_22 {dimension_numbers = #tpu.dot_dimension_numbers<[1], [1], [0], [0], [0, 0, 1, 0], [], []>} : vector<16x64xbf16>, vector<16x64xbf16>, vector<16x16xf32> -> vector<16x16xf32>
    %cst_23 = arith.constant 1.250000e-01 : f32
    %69 = vector.broadcast %cst_23 : f32 to vector<16x16xf32>
    %70 = arith.mulf %68, %69 : vector<16x16xf32>
    %71 = vector.broadcast %1 : vector<1x16xf32> to vector<16x16xf32>
    %72 = arith.addf %70, %71 : vector<16x16xf32>
    %cst_24 = arith.constant dense<0xFF800000> : vector<16xf32>
    %73 = vector.multi_reduction <maximumf>, %72, %cst_24 [1] : vector<16x16xf32> to vector<16xf32>
    %74 = vector.shape_cast %73 : vector<16xf32> to vector<16x1xf32>
    %75 = vector.broadcast %74 : vector<16x1xf32> to vector<16x16xf32>
    %76 = arith.subf %72, %75 : vector<16x16xf32>
    %77 = math.exp %76 : vector<16x16xf32>
    %cst_25 = arith.constant dense<0.000000e+00> : vector<16xf32>
    %78 = vector.multi_reduction <add>, %77, %cst_25 [1] : vector<16x16xf32> to vector<16xf32>
    %79 = vector.shape_cast %78 : vector<16xf32> to vector<16x1xf32>
    %80 = tpu.reciprocal %79 {approx = true} : vector<16x1xf32> -> vector<16x1xf32>
    %81 = vector.broadcast %80 : vector<16x1xf32> to vector<16x16xf32>
    %82 = arith.mulf %77, %81 : vector<16x16xf32>
    %83 = arith.truncf %82 : vector<16x16xf32> to vector<16x16xbf16>
    %cst_26 = arith.constant dense<0.000000e+00> : vector<16x64xf32>
    %84 = tpu.matmul %83, %67, %cst_26 {dimension_numbers = #tpu.dot_dimension_numbers<[1], [0], [0], [1], [0, 0, 1, 1], [], []>} : vector<16x16xbf16>, vector<16x64xbf16>, vector<16x64xf32> -> vector<16x64xf32>
    %85 = vector.extract_strided_slice %2 {offsets = [0, 256], sizes = [16, 64], strides = [1, 1]} : vector<16x768xbf16> to vector<16x64xbf16>
    %86 = vector.extract_strided_slice %3 {offsets = [0, 256], sizes = [16, 64], strides = [1, 1]} : vector<16x768xbf16> to vector<16x64xbf16>
    %87 = vector.extract_strided_slice %4 {offsets = [0, 256], sizes = [16, 64], strides = [1, 1]} : vector<16x768xbf16> to vector<16x64xbf16>
    %cst_27 = arith.constant dense<0.000000e+00> : vector<16x16xf32>
    %88 = tpu.matmul %85, %86, %cst_27 {dimension_numbers = #tpu.dot_dimension_numbers<[1], [1], [0], [0], [0, 0, 1, 0], [], []>} : vector<16x64xbf16>, vector<16x64xbf16>, vector<16x16xf32> -> vector<16x16xf32>
    %cst_28 = arith.constant 1.250000e-01 : f32
    %89 = vector.broadcast %cst_28 : f32 to vector<16x16xf32>
    %90 = arith.mulf %88, %89 : vector<16x16xf32>
    %91 = vector.broadcast %1 : vector<1x16xf32> to vector<16x16xf32>
    %92 = arith.addf %90, %91 : vector<16x16xf32>
    %cst_29 = arith.constant dense<0xFF800000> : vector<16xf32>
    %93 = vector.multi_reduction <maximumf>, %92, %cst_29 [1] : vector<16x16xf32> to vector<16xf32>
    %94 = vector.shape_cast %93 : vector<16xf32> to vector<16x1xf32>
    %95 = vector.broadcast %94 : vector<16x1xf32> to vector<16x16xf32>
    %96 = arith.subf %92, %95 : vector<16x16xf32>
    %97 = math.exp %96 : vector<16x16xf32>
    %cst_30 = arith.constant dense<0.000000e+00> : vector<16xf32>
    %98 = vector.multi_reduction <add>, %97, %cst_30 [1] : vector<16x16xf32> to vector<16xf32>
    %99 = vector.shape_cast %98 : vector<16xf32> to vector<16x1xf32>
    %100 = tpu.reciprocal %99 {approx = true} : vector<16x1xf32> -> vector<16x1xf32>
    %101 = vector.broadcast %100 : vector<16x1xf32> to vector<16x16xf32>
    %102 = arith.mulf %97, %101 : vector<16x16xf32>
    %103 = arith.truncf %102 : vector<16x16xf32> to vector<16x16xbf16>
    %cst_31 = arith.constant dense<0.000000e+00> : vector<16x64xf32>
    %104 = tpu.matmul %103, %87, %cst_31 {dimension_numbers = #tpu.dot_dimension_numbers<[1], [0], [0], [1], [0, 0, 1, 1], [], []>} : vector<16x16xbf16>, vector<16x64xbf16>, vector<16x64xf32> -> vector<16x64xf32>
    %105 = vector.extract_strided_slice %2 {offsets = [0, 320], sizes = [16, 64], strides = [1, 1]} : vector<16x768xbf16> to vector<16x64xbf16>
    %106 = vector.extract_strided_slice %3 {offsets = [0, 320], sizes = [16, 64], strides = [1, 1]} : vector<16x768xbf16> to vector<16x64xbf16>
    %107 = vector.extract_strided_slice %4 {offsets = [0, 320], sizes = [16, 64], strides = [1, 1]} : vector<16x768xbf16> to vector<16x64xbf16>
    %cst_32 = arith.constant dense<0.000000e+00> : vector<16x16xf32>
    %108 = tpu.matmul %105, %106, %cst_32 {dimension_numbers = #tpu.dot_dimension_numbers<[1], [1], [0], [0], [0, 0, 1, 0], [], []>} : vector<16x64xbf16>, vector<16x64xbf16>, vector<16x16xf32> -> vector<16x16xf32>
    %cst_33 = arith.constant 1.250000e-01 : f32
    %109 = vector.broadcast %cst_33 : f32 to vector<16x16xf32>
    %110 = arith.mulf %108, %109 : vector<16x16xf32>
    %111 = vector.broadcast %1 : vector<1x16xf32> to vector<16x16xf32>
    %112 = arith.addf %110, %111 : vector<16x16xf32>
    %cst_34 = arith.constant dense<0xFF800000> : vector<16xf32>
    %113 = vector.multi_reduction <maximumf>, %112, %cst_34 [1] : vector<16x16xf32> to vector<16xf32>
    %114 = vector.shape_cast %113 : vector<16xf32> to vector<16x1xf32>
    %115 = vector.broadcast %114 : vector<16x1xf32> to vector<16x16xf32>
    %116 = arith.subf %112, %115 : vector<16x16xf32>
    %117 = math.exp %116 : vector<16x16xf32>
    %cst_35 = arith.constant dense<0.000000e+00> : vector<16xf32>
    %118 = vector.multi_reduction <add>, %117, %cst_35 [1] : vector<16x16xf32> to vector<16xf32>
    %119 = vector.shape_cast %118 : vector<16xf32> to vector<16x1xf32>
    %120 = tpu.reciprocal %119 {approx = true} : vector<16x1xf32> -> vector<16x1xf32>
    %121 = vector.broadcast %120 : vector<16x1xf32> to vector<16x16xf32>
    %122 = arith.mulf %117, %121 : vector<16x16xf32>
    %123 = arith.truncf %122 : vector<16x16xf32> to vector<16x16xbf16>
    %cst_36 = arith.constant dense<0.000000e+00> : vector<16x64xf32>
    %124 = tpu.matmul %123, %107, %cst_36 {dimension_numbers = #tpu.dot_dimension_numbers<[1], [0], [0], [1], [0, 0, 1, 1], [], []>} : vector<16x16xbf16>, vector<16x64xbf16>, vector<16x64xf32> -> vector<16x64xf32>
    %125 = vector.extract_strided_slice %2 {offsets = [0, 384], sizes = [16, 64], strides = [1, 1]} : vector<16x768xbf16> to vector<16x64xbf16>
    %126 = vector.extract_strided_slice %3 {offsets = [0, 384], sizes = [16, 64], strides = [1, 1]} : vector<16x768xbf16> to vector<16x64xbf16>
    %127 = vector.extract_strided_slice %4 {offsets = [0, 384], sizes = [16, 64], strides = [1, 1]} : vector<16x768xbf16> to vector<16x64xbf16>
    %cst_37 = arith.constant dense<0.000000e+00> : vector<16x16xf32>
    %128 = tpu.matmul %125, %126, %cst_37 {dimension_numbers = #tpu.dot_dimension_numbers<[1], [1], [0], [0], [0, 0, 1, 0], [], []>} : vector<16x64xbf16>, vector<16x64xbf16>, vector<16x16xf32> -> vector<16x16xf32>
    %cst_38 = arith.constant 1.250000e-01 : f32
    %129 = vector.broadcast %cst_38 : f32 to vector<16x16xf32>
    %130 = arith.mulf %128, %129 : vector<16x16xf32>
    %131 = vector.broadcast %1 : vector<1x16xf32> to vector<16x16xf32>
    %132 = arith.addf %130, %131 : vector<16x16xf32>
    %cst_39 = arith.constant dense<0xFF800000> : vector<16xf32>
    %133 = vector.multi_reduction <maximumf>, %132, %cst_39 [1] : vector<16x16xf32> to vector<16xf32>
    %134 = vector.shape_cast %133 : vector<16xf32> to vector<16x1xf32>
    %135 = vector.broadcast %134 : vector<16x1xf32> to vector<16x16xf32>
    %136 = arith.subf %132, %135 : vector<16x16xf32>
    %137 = math.exp %136 : vector<16x16xf32>
    %cst_40 = arith.constant dense<0.000000e+00> : vector<16xf32>
    %138 = vector.multi_reduction <add>, %137, %cst_40 [1] : vector<16x16xf32> to vector<16xf32>
    %139 = vector.shape_cast %138 : vector<16xf32> to vector<16x1xf32>
    %140 = tpu.reciprocal %139 {approx = true} : vector<16x1xf32> -> vector<16x1xf32>
    %141 = vector.broadcast %140 : vector<16x1xf32> to vector<16x16xf32>
    %142 = arith.mulf %137, %141 : vector<16x16xf32>
    %143 = arith.truncf %142 : vector<16x16xf32> to vector<16x16xbf16>
    %cst_41 = arith.constant dense<0.000000e+00> : vector<16x64xf32>
    %144 = tpu.matmul %143, %127, %cst_41 {dimension_numbers = #tpu.dot_dimension_numbers<[1], [0], [0], [1], [0, 0, 1, 1], [], []>} : vector<16x16xbf16>, vector<16x64xbf16>, vector<16x64xf32> -> vector<16x64xf32>
    %145 = vector.extract_strided_slice %2 {offsets = [0, 448], sizes = [16, 64], strides = [1, 1]} : vector<16x768xbf16> to vector<16x64xbf16>
    %146 = vector.extract_strided_slice %3 {offsets = [0, 448], sizes = [16, 64], strides = [1, 1]} : vector<16x768xbf16> to vector<16x64xbf16>
    %147 = vector.extract_strided_slice %4 {offsets = [0, 448], sizes = [16, 64], strides = [1, 1]} : vector<16x768xbf16> to vector<16x64xbf16>
    %cst_42 = arith.constant dense<0.000000e+00> : vector<16x16xf32>
    %148 = tpu.matmul %145, %146, %cst_42 {dimension_numbers = #tpu.dot_dimension_numbers<[1], [1], [0], [0], [0, 0, 1, 0], [], []>} : vector<16x64xbf16>, vector<16x64xbf16>, vector<16x16xf32> -> vector<16x16xf32>
    %cst_43 = arith.constant 1.250000e-01 : f32
    %149 = vector.broadcast %cst_43 : f32 to vector<16x16xf32>
    %150 = arith.mulf %148, %149 : vector<16x16xf32>
    %151 = vector.broadcast %1 : vector<1x16xf32> to vector<16x16xf32>
    %152 = arith.addf %150, %151 : vector<16x16xf32>
    %cst_44 = arith.constant dense<0xFF800000> : vector<16xf32>
    %153 = vector.multi_reduction <maximumf>, %152, %cst_44 [1] : vector<16x16xf32> to vector<16xf32>
    %154 = vector.shape_cast %153 : vector<16xf32> to vector<16x1xf32>
    %155 = vector.broadcast %154 : vector<16x1xf32> to vector<16x16xf32>
    %156 = arith.subf %152, %155 : vector<16x16xf32>
    %157 = math.exp %156 : vector<16x16xf32>
    %cst_45 = arith.constant dense<0.000000e+00> : vector<16xf32>
    %158 = vector.multi_reduction <add>, %157, %cst_45 [1] : vector<16x16xf32> to vector<16xf32>
    %159 = vector.shape_cast %158 : vector<16xf32> to vector<16x1xf32>
    %160 = tpu.reciprocal %159 {approx = true} : vector<16x1xf32> -> vector<16x1xf32>
    %161 = vector.broadcast %160 : vector<16x1xf32> to vector<16x16xf32>
    %162 = arith.mulf %157, %161 : vector<16x16xf32>
    %163 = arith.truncf %162 : vector<16x16xf32> to vector<16x16xbf16>
    %cst_46 = arith.constant dense<0.000000e+00> : vector<16x64xf32>
    %164 = tpu.matmul %163, %147, %cst_46 {dimension_numbers = #tpu.dot_dimension_numbers<[1], [0], [0], [1], [0, 0, 1, 1], [], []>} : vector<16x16xbf16>, vector<16x64xbf16>, vector<16x64xf32> -> vector<16x64xf32>
    %165 = vector.extract_strided_slice %2 {offsets = [0, 512], sizes = [16, 64], strides = [1, 1]} : vector<16x768xbf16> to vector<16x64xbf16>
    %166 = vector.extract_strided_slice %3 {offsets = [0, 512], sizes = [16, 64], strides = [1, 1]} : vector<16x768xbf16> to vector<16x64xbf16>
    %167 = vector.extract_strided_slice %4 {offsets = [0, 512], sizes = [16, 64], strides = [1, 1]} : vector<16x768xbf16> to vector<16x64xbf16>
    %cst_47 = arith.constant dense<0.000000e+00> : vector<16x16xf32>
    %168 = tpu.matmul %165, %166, %cst_47 {dimension_numbers = #tpu.dot_dimension_numbers<[1], [1], [0], [0], [0, 0, 1, 0], [], []>} : vector<16x64xbf16>, vector<16x64xbf16>, vector<16x16xf32> -> vector<16x16xf32>
    %cst_48 = arith.constant 1.250000e-01 : f32
    %169 = vector.broadcast %cst_48 : f32 to vector<16x16xf32>
    %170 = arith.mulf %168, %169 : vector<16x16xf32>
    %171 = vector.broadcast %1 : vector<1x16xf32> to vector<16x16xf32>
    %172 = arith.addf %170, %171 : vector<16x16xf32>
    %cst_49 = arith.constant dense<0xFF800000> : vector<16xf32>
    %173 = vector.multi_reduction <maximumf>, %172, %cst_49 [1] : vector<16x16xf32> to vector<16xf32>
    %174 = vector.shape_cast %173 : vector<16xf32> to vector<16x1xf32>
    %175 = vector.broadcast %174 : vector<16x1xf32> to vector<16x16xf32>
    %176 = arith.subf %172, %175 : vector<16x16xf32>
    %177 = math.exp %176 : vector<16x16xf32>
    %cst_50 = arith.constant dense<0.000000e+00> : vector<16xf32>
    %178 = vector.multi_reduction <add>, %177, %cst_50 [1] : vector<16x16xf32> to vector<16xf32>
    %179 = vector.shape_cast %178 : vector<16xf32> to vector<16x1xf32>
    %180 = tpu.reciprocal %179 {approx = true} : vector<16x1xf32> -> vector<16x1xf32>
    %181 = vector.broadcast %180 : vector<16x1xf32> to vector<16x16xf32>
    %182 = arith.mulf %177, %181 : vector<16x16xf32>
    %183 = arith.truncf %182 : vector<16x16xf32> to vector<16x16xbf16>
    %cst_51 = arith.constant dense<0.000000e+00> : vector<16x64xf32>
    %184 = tpu.matmul %183, %167, %cst_51 {dimension_numbers = #tpu.dot_dimension_numbers<[1], [0], [0], [1], [0, 0, 1, 1], [], []>} : vector<16x16xbf16>, vector<16x64xbf16>, vector<16x64xf32> -> vector<16x64xf32>
    %185 = vector.extract_strided_slice %2 {offsets = [0, 576], sizes = [16, 64], strides = [1, 1]} : vector<16x768xbf16> to vector<16x64xbf16>
    %186 = vector.extract_strided_slice %3 {offsets = [0, 576], sizes = [16, 64], strides = [1, 1]} : vector<16x768xbf16> to vector<16x64xbf16>
    %187 = vector.extract_strided_slice %4 {offsets = [0, 576], sizes = [16, 64], strides = [1, 1]} : vector<16x768xbf16> to vector<16x64xbf16>
    %cst_52 = arith.constant dense<0.000000e+00> : vector<16x16xf32>
    %188 = tpu.matmul %185, %186, %cst_52 {dimension_numbers = #tpu.dot_dimension_numbers<[1], [1], [0], [0], [0, 0, 1, 0], [], []>} : vector<16x64xbf16>, vector<16x64xbf16>, vector<16x16xf32> -> vector<16x16xf32>
    %cst_53 = arith.constant 1.250000e-01 : f32
    %189 = vector.broadcast %cst_53 : f32 to vector<16x16xf32>
    %190 = arith.mulf %188, %189 : vector<16x16xf32>
    %191 = vector.broadcast %1 : vector<1x16xf32> to vector<16x16xf32>
    %192 = arith.addf %190, %191 : vector<16x16xf32>
    %cst_54 = arith.constant dense<0xFF800000> : vector<16xf32>
    %193 = vector.multi_reduction <maximumf>, %192, %cst_54 [1] : vector<16x16xf32> to vector<16xf32>
    %194 = vector.shape_cast %193 : vector<16xf32> to vector<16x1xf32>
    %195 = vector.broadcast %194 : vector<16x1xf32> to vector<16x16xf32>
    %196 = arith.subf %192, %195 : vector<16x16xf32>
    %197 = math.exp %196 : vector<16x16xf32>
    %cst_55 = arith.constant dense<0.000000e+00> : vector<16xf32>
    %198 = vector.multi_reduction <add>, %197, %cst_55 [1] : vector<16x16xf32> to vector<16xf32>
    %199 = vector.shape_cast %198 : vector<16xf32> to vector<16x1xf32>
    %200 = tpu.reciprocal %199 {approx = true} : vector<16x1xf32> -> vector<16x1xf32>
    %201 = vector.broadcast %200 : vector<16x1xf32> to vector<16x16xf32>
    %202 = arith.mulf %197, %201 : vector<16x16xf32>
    %203 = arith.truncf %202 : vector<16x16xf32> to vector<16x16xbf16>
    %cst_56 = arith.constant dense<0.000000e+00> : vector<16x64xf32>
    %204 = tpu.matmul %203, %187, %cst_56 {dimension_numbers = #tpu.dot_dimension_numbers<[1], [0], [0], [1], [0, 0, 1, 1], [], []>} : vector<16x16xbf16>, vector<16x64xbf16>, vector<16x64xf32> -> vector<16x64xf32>
    %205 = vector.extract_strided_slice %2 {offsets = [0, 640], sizes = [16, 64], strides = [1, 1]} : vector<16x768xbf16> to vector<16x64xbf16>
    %206 = vector.extract_strided_slice %3 {offsets = [0, 640], sizes = [16, 64], strides = [1, 1]} : vector<16x768xbf16> to vector<16x64xbf16>
    %207 = vector.extract_strided_slice %4 {offsets = [0, 640], sizes = [16, 64], strides = [1, 1]} : vector<16x768xbf16> to vector<16x64xbf16>
    %cst_57 = arith.constant dense<0.000000e+00> : vector<16x16xf32>
    %208 = tpu.matmul %205, %206, %cst_57 {dimension_numbers = #tpu.dot_dimension_numbers<[1], [1], [0], [0], [0, 0, 1, 0], [], []>} : vector<16x64xbf16>, vector<16x64xbf16>, vector<16x16xf32> -> vector<16x16xf32>
    %cst_58 = arith.constant 1.250000e-01 : f32
    %209 = vector.broadcast %cst_58 : f32 to vector<16x16xf32>
    %210 = arith.mulf %208, %209 : vector<16x16xf32>
    %211 = vector.broadcast %1 : vector<1x16xf32> to vector<16x16xf32>
    %212 = arith.addf %210, %211 : vector<16x16xf32>
    %cst_59 = arith.constant dense<0xFF800000> : vector<16xf32>
    %213 = vector.multi_reduction <maximumf>, %212, %cst_59 [1] : vector<16x16xf32> to vector<16xf32>
    %214 = vector.shape_cast %213 : vector<16xf32> to vector<16x1xf32>
    %215 = vector.broadcast %214 : vector<16x1xf32> to vector<16x16xf32>
    %216 = arith.subf %212, %215 : vector<16x16xf32>
    %217 = math.exp %216 : vector<16x16xf32>
    %cst_60 = arith.constant dense<0.000000e+00> : vector<16xf32>
    %218 = vector.multi_reduction <add>, %217, %cst_60 [1] : vector<16x16xf32> to vector<16xf32>
    %219 = vector.shape_cast %218 : vector<16xf32> to vector<16x1xf32>
    %220 = tpu.reciprocal %219 {approx = true} : vector<16x1xf32> -> vector<16x1xf32>
    %221 = vector.broadcast %220 : vector<16x1xf32> to vector<16x16xf32>
    %222 = arith.mulf %217, %221 : vector<16x16xf32>
    %223 = arith.truncf %222 : vector<16x16xf32> to vector<16x16xbf16>
    %cst_61 = arith.constant dense<0.000000e+00> : vector<16x64xf32>
    %224 = tpu.matmul %223, %207, %cst_61 {dimension_numbers = #tpu.dot_dimension_numbers<[1], [0], [0], [1], [0, 0, 1, 1], [], []>} : vector<16x16xbf16>, vector<16x64xbf16>, vector<16x64xf32> -> vector<16x64xf32>
    %225 = vector.extract_strided_slice %2 {offsets = [0, 704], sizes = [16, 64], strides = [1, 1]} : vector<16x768xbf16> to vector<16x64xbf16>
    %226 = vector.extract_strided_slice %3 {offsets = [0, 704], sizes = [16, 64], strides = [1, 1]} : vector<16x768xbf16> to vector<16x64xbf16>
    %227 = vector.extract_strided_slice %4 {offsets = [0, 704], sizes = [16, 64], strides = [1, 1]} : vector<16x768xbf16> to vector<16x64xbf16>
    %cst_62 = arith.constant dense<0.000000e+00> : vector<16x16xf32>
    %228 = tpu.matmul %225, %226, %cst_62 {dimension_numbers = #tpu.dot_dimension_numbers<[1], [1], [0], [0], [0, 0, 1, 0], [], []>} : vector<16x64xbf16>, vector<16x64xbf16>, vector<16x16xf32> -> vector<16x16xf32>
    %cst_63 = arith.constant 1.250000e-01 : f32
    %229 = vector.broadcast %cst_63 : f32 to vector<16x16xf32>
    %230 = arith.mulf %228, %229 : vector<16x16xf32>
    %231 = vector.broadcast %1 : vector<1x16xf32> to vector<16x16xf32>
    %232 = arith.addf %230, %231 : vector<16x16xf32>
    %cst_64 = arith.constant dense<0xFF800000> : vector<16xf32>
    %233 = vector.multi_reduction <maximumf>, %232, %cst_64 [1] : vector<16x16xf32> to vector<16xf32>
    %234 = vector.shape_cast %233 : vector<16xf32> to vector<16x1xf32>
    %235 = vector.broadcast %234 : vector<16x1xf32> to vector<16x16xf32>
    %236 = arith.subf %232, %235 : vector<16x16xf32>
    %237 = math.exp %236 : vector<16x16xf32>
    %cst_65 = arith.constant dense<0.000000e+00> : vector<16xf32>
    %238 = vector.multi_reduction <add>, %237, %cst_65 [1] : vector<16x16xf32> to vector<16xf32>
    %239 = vector.shape_cast %238 : vector<16xf32> to vector<16x1xf32>
    %240 = tpu.reciprocal %239 {approx = true} : vector<16x1xf32> -> vector<16x1xf32>
    %241 = vector.broadcast %240 : vector<16x1xf32> to vector<16x16xf32>
    %242 = arith.mulf %237, %241 : vector<16x16xf32>
    %243 = arith.truncf %242 : vector<16x16xf32> to vector<16x16xbf16>
    %cst_66 = arith.constant dense<0.000000e+00> : vector<16x64xf32>
    %244 = tpu.matmul %243, %227, %cst_66 {dimension_numbers = #tpu.dot_dimension_numbers<[1], [0], [0], [1], [0, 0, 1, 1], [], []>} : vector<16x16xbf16>, vector<16x64xbf16>, vector<16x64xf32> -> vector<16x64xf32>
    %245 = tpu.concatenate %24, %44, %64, %84, %104, %124, %144, %164, %184, %204, %224, %244 in 1 : vector<16x64xf32>, vector<16x64xf32>, vector<16x64xf32>, vector<16x64xf32>, vector<16x64xf32>, vector<16x64xf32>, vector<16x64xf32>, vector<16x64xf32>, vector<16x64xf32>, vector<16x64xf32>, vector<16x64xf32>, vector<16x64xf32> -> vector<16x768xf32>
    %246 = arith.truncf %245 : vector<16x768xf32> to vector<16x768xbf16>
    %c0_67 = arith.constant 0 : index
    %c0_68 = arith.constant 0 : index
    %247 = vector.load %arg6[%c0_67, %c0_68] : memref<16x768xbf16, #tpu.memory_space<vmem>>, vector<16x768xbf16>
    tpu.vector_store %arg6[%c0_67, %c0_68], %246 {strides = array<i32>} : memref<16x768xbf16, #tpu.memory_space<vmem>>, vector<16x768xbf16>,
    return
  }
  func.func @transform_0(%arg0: i32, %arg1: i32) -> (i32, i32) {
    %c0_i32 = arith.constant 0 : i32
    return %arg0, %arg1 : i32, i32
  }
  func.func @transform_1(%arg0: i32, %arg1: i32) -> (i32, i32) {
    %c1_i32 = arith.constant 1 : i32
    %0 = arith.addi %c1_i32, %arg1 : i32
    %c0_i32 = arith.constant 0 : i32
    return %arg0, %0 : i32, i32
  }
  func.func @transform_2(%arg0: i32, %arg1: i32) -> (i32, i32) {
    %c2_i32 = arith.constant 2 : i32
    %0 = arith.addi %c2_i32, %arg1 : i32
    %c0_i32 = arith.constant 0 : i32
    return %arg0, %0 : i32, i32
  }
  func.func @transform_3(%arg0: i32, %arg1: i32) -> (i32, i32, i32) {
    %c0_i32 = arith.constant 0 : i32
    %c0_i32_0 = arith.constant 0 : i32
    %c0_i32_1 = arith.constant 0 : i32
    return %arg0, %c0_i32, %c0_i32_0 : i32, i32, i32
  }
  func.func @transform_4(%arg0: i32, %arg1: i32) -> (i32, i32) {
    %c0_i32 = arith.constant 0 : i32
    return %arg0, %arg1 : i32, i32
  }
}

module attributes {stable_mosaic.version = 11 : i64} {
  func.func @_dense_add_ln_kernel(%arg0: i32, %arg1: memref<16x768xbf16, #tpu.memory_space<vmem>>, %arg2: memref<768x768xbf16, #tpu.memory_space<vmem>>, %arg3: memref<1x768xf32, #tpu.memory_space<vmem>>, %arg4: memref<16x768xf32, #tpu.memory_space<vmem>>, %arg5: memref<1x768xf32, #tpu.memory_space<vmem>>, %arg6: memref<1x768xf32, #tpu.memory_space<vmem>>, %arg7: memref<16x768xf32, #tpu.memory_space<vmem>>) attributes {dimension_semantics = [#tpu.dimension_semantics<parallel>], iteration_bounds = array<i64: 2>, scalar_prefetch = 0 : i64, scratch_operands = 0 : i64, tpu.core_type = #tpu.core_type<tc>, window_params = [{transform_indices = @transform_0, window_bounds = array<i64: 16, 768>}, {pipeline_mode = #tpu.pipeline_mode<synchronous>, transform_indices = @transform_1, window_bounds = array<i64: 768, 768>}, {pipeline_mode = #tpu.pipeline_mode<synchronous>, transform_indices = @transform_2, window_bounds = array<i64: 1, 768>}, {transform_indices = @transform_3, window_bounds = array<i64: 16, 768>}, {pipeline_mode = #tpu.pipeline_mode<synchronous>, transform_indices = @transform_4, window_bounds = array<i64: 1, 768>}, {pipeline_mode = #tpu.pipeline_mode<synchronous>, transform_indices = @transform_5, window_bounds = array<i64: 1, 768>}, {transform_indices = @transform_6, window_bounds = array<i64: 16, 768>}]} {
    %c0 = arith.constant 0 : index
    %c0_0 = arith.constant 0 : index
    %0 = vector.load %arg1[%c0, %c0_0] : memref<16x768xbf16, #tpu.memory_space<vmem>>, vector<16x768xbf16>
    %c0_1 = arith.constant 0 : index
    %c0_2 = arith.constant 0 : index
    %1 = vector.load %arg2[%c0_1, %c0_2] : memref<768x768xbf16, #tpu.memory_space<vmem>>, vector<768x768xbf16>
    %cst = arith.constant dense<0.000000e+00> : vector<16x768xf32>
    %2 = tpu.matmul %0, %1, %cst {dimension_numbers = #tpu.dot_dimension_numbers<[1], [0], [0], [1], [0, 0, 1, 1], [], []>} : vector<16x768xbf16>, vector<768x768xbf16>, vector<16x768xf32> -> vector<16x768xf32>
    %c0_3 = arith.constant 0 : index
    %c0_4 = arith.constant 0 : index
    %3 = vector.load %arg3[%c0_3, %c0_4] : memref<1x768xf32, #tpu.memory_space<vmem>>, vector<1x768xf32>
    %4 = vector.broadcast %3 : vector<1x768xf32> to vector<16x768xf32>
    %5 = arith.addf %2, %4 : vector<16x768xf32>
    %c0_5 = arith.constant 0 : index
    %c0_6 = arith.constant 0 : index
    %6 = vector.load %arg4[%c0_5, %c0_6] : memref<16x768xf32, #tpu.memory_space<vmem>>, vector<16x768xf32>
    %7 = arith.addf %5, %6 : vector<16x768xf32>
    %c0_7 = arith.constant 0 : index
    %c0_8 = arith.constant 0 : index
    %8 = vector.load %arg5[%c0_7, %c0_8] : memref<1x768xf32, #tpu.memory_space<vmem>>, vector<1x768xf32>
    %c0_9 = arith.constant 0 : index
    %c0_10 = arith.constant 0 : index
    %9 = vector.load %arg6[%c0_9, %c0_10] : memref<1x768xf32, #tpu.memory_space<vmem>>, vector<1x768xf32>
    %cst_11 = arith.constant dense<0.000000e+00> : vector<16xf32>
    %10 = vector.multi_reduction <add>, %7, %cst_11 [1] : vector<16x768xf32> to vector<16xf32>
    %11 = vector.shape_cast %10 : vector<16xf32> to vector<16x1xf32>
    %cst_12 = arith.constant 7.680000e+02 : f32
    %12 = vector.broadcast %cst_12 : f32 to vector<16x1xf32>
    %13 = arith.divf %11, %12 : vector<16x1xf32>
    %14 = vector.broadcast %13 : vector<16x1xf32> to vector<16x768xf32>
    %15 = arith.subf %7, %14 : vector<16x768xf32>
    %16 = arith.mulf %15, %15 : vector<16x768xf32>
    %cst_13 = arith.constant dense<0.000000e+00> : vector<16xf32>
    %17 = vector.multi_reduction <add>, %16, %cst_13 [1] : vector<16x768xf32> to vector<16xf32>
    %18 = vector.shape_cast %17 : vector<16xf32> to vector<16x1xf32>
    %cst_14 = arith.constant 7.680000e+02 : f32
    %19 = vector.broadcast %cst_14 : f32 to vector<16x1xf32>
    %20 = arith.divf %18, %19 : vector<16x1xf32>
    %21 = vector.broadcast %13 : vector<16x1xf32> to vector<16x768xf32>
    %22 = arith.subf %7, %21 : vector<16x768xf32>
    %cst_15 = arith.constant 9.99999996E-13 : f32
    %23 = vector.broadcast %cst_15 : f32 to vector<16x1xf32>
    %24 = arith.addf %20, %23 : vector<16x1xf32>
    %25 = math.rsqrt %24 : vector<16x1xf32>
    %26 = vector.broadcast %25 : vector<16x1xf32> to vector<16x768xf32>
    %27 = arith.mulf %22, %26 : vector<16x768xf32>
    %28 = vector.broadcast %8 : vector<1x768xf32> to vector<16x768xf32>
    %29 = arith.mulf %27, %28 : vector<16x768xf32>
    %30 = vector.broadcast %9 : vector<1x768xf32> to vector<16x768xf32>
    %31 = arith.addf %29, %30 : vector<16x768xf32>
    %c0_16 = arith.constant 0 : index
    %c0_17 = arith.constant 0 : index
    %32 = vector.load %arg7[%c0_16, %c0_17] : memref<16x768xf32, #tpu.memory_space<vmem>>, vector<16x768xf32>
    tpu.vector_store %arg7[%c0_16, %c0_17], %31 {strides = array<i32>} : memref<16x768xf32, #tpu.memory_space<vmem>>, vector<16x768xf32>,
    return
  }
  func.func @transform_0(%arg0: i32) -> (i32, i32) {
    %c0_i32 = arith.constant 0 : i32
    %c0_i32_0 = arith.constant 0 : i32
    return %arg0, %c0_i32 : i32, i32
  }
  func.func @transform_1(%arg0: i32) -> (i32, i32) {
    %c0_i32 = arith.constant 0 : i32
    %c0_i32_0 = arith.constant 0 : i32
    %c0_i32_1 = arith.constant 0 : i32
    return %c0_i32, %c0_i32_0 : i32, i32
  }
  func.func @transform_2(%arg0: i32) -> (i32, i32) {
    %c0_i32 = arith.constant 0 : i32
    %c0_i32_0 = arith.constant 0 : i32
    %c0_i32_1 = arith.constant 0 : i32
    return %c0_i32, %c0_i32_0 : i32, i32
  }
  func.func @transform_3(%arg0: i32) -> (i32, i32) {
    %c0_i32 = arith.constant 0 : i32
    %c0_i32_0 = arith.constant 0 : i32
    return %arg0, %c0_i32 : i32, i32
  }
  func.func @transform_4(%arg0: i32) -> (i32, i32) {
    %c0_i32 = arith.constant 0 : i32
    %c0_i32_0 = arith.constant 0 : i32
    %c0_i32_1 = arith.constant 0 : i32
    return %c0_i32, %c0_i32_0 : i32, i32
  }
  func.func @transform_5(%arg0: i32) -> (i32, i32) {
    %c0_i32 = arith.constant 0 : i32
    %c0_i32_0 = arith.constant 0 : i32
    %c0_i32_1 = arith.constant 0 : i32
    return %c0_i32, %c0_i32_0 : i32, i32
  }
  func.func @transform_6(%arg0: i32) -> (i32, i32) {
    %c0_i32 = arith.constant 0 : i32
    %c0_i32_0 = arith.constant 0 : i32
    return %arg0, %c0_i32 : i32, i32
  }
}

module attributes {stable_mosaic.version = 11 : i64} {
  func.func @_ffn_kernel(%arg0: i32, %arg1: i32, %arg2: memref<16x768xf32, #tpu.memory_space<vmem>>, %arg3: memref<768x512xbf16, #tpu.memory_space<vmem>>, %arg4: memref<1x512xf32, #tpu.memory_space<vmem>>, %arg5: memref<512x768xbf16, #tpu.memory_space<vmem>>, %arg6: memref<1x768xf32, #tpu.memory_space<vmem>>, %arg7: memref<16x768xf32, #tpu.memory_space<vmem>>, %arg8: memref<1x768xf32, #tpu.memory_space<vmem>>, %arg9: memref<1x768xf32, #tpu.memory_space<vmem>>, %arg10: memref<16x768xf32, #tpu.memory_space<vmem>>, %arg11: memref<16x768xf32, #tpu.memory_space<vmem>>) attributes {dimension_semantics = [#tpu.dimension_semantics<parallel>, #tpu.dimension_semantics<arbitrary>], iteration_bounds = array<i64: 2, 6>, scalar_prefetch = 0 : i64, scratch_operands = 1 : i64, tpu.core_type = #tpu.core_type<tc>, window_params = [{transform_indices = @transform_0, window_bounds = array<i64: 16, 768>}, {transform_indices = @transform_1, window_bounds = array<i64: 768, 512>}, {transform_indices = @transform_2, window_bounds = array<i64: 1, 512>}, {transform_indices = @transform_3, window_bounds = array<i64: 512, 768>}, {pipeline_mode = #tpu.pipeline_mode<synchronous>, transform_indices = @transform_4, window_bounds = array<i64: 1, 768>}, {transform_indices = @transform_5, window_bounds = array<i64: 16, 768>}, {pipeline_mode = #tpu.pipeline_mode<synchronous>, transform_indices = @transform_6, window_bounds = array<i64: 1, 768>}, {pipeline_mode = #tpu.pipeline_mode<synchronous>, transform_indices = @transform_7, window_bounds = array<i64: 1, 768>}, {transform_indices = @transform_8, window_bounds = array<i64: 16, 768>}]} {
    %c0_i32 = arith.constant 0 : i32
    %0 = arith.cmpi eq, %arg1, %c0_i32 : i32
    %1 = arith.extui %0 : i1 to i32
    %c0_i32_0 = arith.constant 0 : i32
    %2 = arith.cmpi ne, %1, %c0_i32_0 : i32
    scf.if %2 {
      %cst_18 = arith.constant 0.000000e+00 : f32
      %32 = vector.broadcast %cst_18 : f32 to vector<16x768xf32>
      %c0_19 = arith.constant 0 : index
      %c0_20 = arith.constant 0 : index
      %33 = vector.load %arg11[%c0_19, %c0_20] : memref<16x768xf32, #tpu.memory_space<vmem>>, vector<16x768xf32>
      tpu.vector_store %arg11[%c0_19, %c0_20], %32 {strides = array<i32>} : memref<16x768xf32, #tpu.memory_space<vmem>>, vector<16x768xf32>,
    } else {
    }
    %c0 = arith.constant 0 : index
    %c0_1 = arith.constant 0 : index
    %3 = vector.load %arg2[%c0, %c0_1] : memref<16x768xf32, #tpu.memory_space<vmem>>, vector<16x768xf32>
    %4 = arith.truncf %3 : vector<16x768xf32> to vector<16x768xbf16>
    %c0_2 = arith.constant 0 : index
    %c0_3 = arith.constant 0 : index
    %5 = vector.load %arg3[%c0_2, %c0_3] : memref<768x512xbf16, #tpu.memory_space<vmem>>, vector<768x512xbf16>
    %cst = arith.constant dense<0.000000e+00> : vector<16x512xf32>
    %6 = tpu.matmul %4, %5, %cst {dimension_numbers = #tpu.dot_dimension_numbers<[1], [0], [0], [1], [0, 0, 1, 1], [], []>} : vector<16x768xbf16>, vector<768x512xbf16>, vector<16x512xf32> -> vector<16x512xf32>
    %c0_4 = arith.constant 0 : index
    %c0_5 = arith.constant 0 : index
    %7 = vector.load %arg4[%c0_4, %c0_5] : memref<1x512xf32, #tpu.memory_space<vmem>>, vector<1x512xf32>
    %8 = vector.broadcast %7 : vector<1x512xf32> to vector<16x512xf32>
    %9 = arith.addf %6, %8 : vector<16x512xf32>
    %cst_6 = arith.constant 5.000000e-01 : f32
    %10 = vector.broadcast %cst_6 : f32 to vector<16x512xf32>
    %11 = arith.mulf %10, %9 : vector<16x512xf32>
    %cst_7 = arith.constant 4.471500e-02 : f32
    %12 = vector.broadcast %cst_7 : f32 to vector<16x512xf32>
    %13 = arith.mulf %12, %9 : vector<16x512xf32>
    %14 = arith.mulf %13, %9 : vector<16x512xf32>
    %15 = arith.mulf %14, %9 : vector<16x512xf32>
    %16 = arith.addf %9, %15 : vector<16x512xf32>
    %cst_8 = arith.constant 0.797884583 : f32
    %17 = vector.broadcast %cst_8 : f32 to vector<16x512xf32>
    %18 = arith.mulf %17, %16 : vector<16x512xf32>
    %19 = math.tanh %18 : vector<16x512xf32>
    %cst_9 = arith.constant 1.000000e+00 : f32
    %20 = vector.broadcast %cst_9 : f32 to vector<16x512xf32>
    %21 = arith.addf %20, %19 : vector<16x512xf32>
    %22 = arith.mulf %11, %21 : vector<16x512xf32>
    %c0_10 = arith.constant 0 : index
    %c0_11 = arith.constant 0 : index
    %23 = vector.load %arg11[%c0_10, %c0_11] : memref<16x768xf32, #tpu.memory_space<vmem>>, vector<16x768xf32>
    %24 = arith.truncf %22 : vector<16x512xf32> to vector<16x512xbf16>
    %c0_12 = arith.constant 0 : index
    %c0_13 = arith.constant 0 : index
    %25 = vector.load %arg5[%c0_12, %c0_13] : memref<512x768xbf16, #tpu.memory_space<vmem>>, vector<512x768xbf16>
    %cst_14 = arith.constant dense<0.000000e+00> : vector<16x768xf32>
    %26 = tpu.matmul %24, %25, %cst_14 {dimension_numbers = #tpu.dot_dimension_numbers<[1], [0], [0], [1], [0, 0, 1, 1], [], []>} : vector<16x512xbf16>, vector<512x768xbf16>, vector<16x768xf32> -> vector<16x768xf32>
    %27 = arith.addf %23, %26 : vector<16x768xf32>
    %c0_15 = arith.constant 0 : index
    %c0_16 = arith.constant 0 : index
    %28 = vector.load %arg11[%c0_15, %c0_16] : memref<16x768xf32, #tpu.memory_space<vmem>>, vector<16x768xf32>
    tpu.vector_store %arg11[%c0_15, %c0_16], %27 {strides = array<i32>} : memref<16x768xf32, #tpu.memory_space<vmem>>, vector<16x768xf32>,
    %c5_i32 = arith.constant 5 : i32
    %29 = arith.cmpi eq, %arg1, %c5_i32 : i32
    %30 = arith.extui %29 : i1 to i32
    %c0_i32_17 = arith.constant 0 : i32
    %31 = arith.cmpi ne, %30, %c0_i32_17 : i32
    scf.if %31 {
      %c0_18 = arith.constant 0 : index
      %c0_19 = arith.constant 0 : index
      %32 = vector.load %arg11[%c0_18, %c0_19] : memref<16x768xf32, #tpu.memory_space<vmem>>, vector<16x768xf32>
      %c0_20 = arith.constant 0 : index
      %c0_21 = arith.constant 0 : index
      %33 = vector.load %arg6[%c0_20, %c0_21] : memref<1x768xf32, #tpu.memory_space<vmem>>, vector<1x768xf32>
      %34 = vector.broadcast %33 : vector<1x768xf32> to vector<16x768xf32>
      %35 = arith.addf %32, %34 : vector<16x768xf32>
      %c0_22 = arith.constant 0 : index
      %c0_23 = arith.constant 0 : index
      %36 = vector.load %arg7[%c0_22, %c0_23] : memref<16x768xf32, #tpu.memory_space<vmem>>, vector<16x768xf32>
      %37 = arith.addf %35, %36 : vector<16x768xf32>
      %c0_24 = arith.constant 0 : index
      %c0_25 = arith.constant 0 : index
      %38 = vector.load %arg8[%c0_24, %c0_25] : memref<1x768xf32, #tpu.memory_space<vmem>>, vector<1x768xf32>
      %c0_26 = arith.constant 0 : index
      %c0_27 = arith.constant 0 : index
      %39 = vector.load %arg9[%c0_26, %c0_27] : memref<1x768xf32, #tpu.memory_space<vmem>>, vector<1x768xf32>
      %cst_28 = arith.constant dense<0.000000e+00> : vector<16xf32>
      %40 = vector.multi_reduction <add>, %37, %cst_28 [1] : vector<16x768xf32> to vector<16xf32>
      %41 = vector.shape_cast %40 : vector<16xf32> to vector<16x1xf32>
      %cst_29 = arith.constant 7.680000e+02 : f32
      %42 = vector.broadcast %cst_29 : f32 to vector<16x1xf32>
      %43 = arith.divf %41, %42 : vector<16x1xf32>
      %44 = vector.broadcast %43 : vector<16x1xf32> to vector<16x768xf32>
      %45 = arith.subf %37, %44 : vector<16x768xf32>
      %46 = arith.mulf %45, %45 : vector<16x768xf32>
      %cst_30 = arith.constant dense<0.000000e+00> : vector<16xf32>
      %47 = vector.multi_reduction <add>, %46, %cst_30 [1] : vector<16x768xf32> to vector<16xf32>
      %48 = vector.shape_cast %47 : vector<16xf32> to vector<16x1xf32>
      %cst_31 = arith.constant 7.680000e+02 : f32
      %49 = vector.broadcast %cst_31 : f32 to vector<16x1xf32>
      %50 = arith.divf %48, %49 : vector<16x1xf32>
      %51 = vector.broadcast %43 : vector<16x1xf32> to vector<16x768xf32>
      %52 = arith.subf %37, %51 : vector<16x768xf32>
      %cst_32 = arith.constant 9.99999996E-13 : f32
      %53 = vector.broadcast %cst_32 : f32 to vector<16x1xf32>
      %54 = arith.addf %50, %53 : vector<16x1xf32>
      %55 = math.rsqrt %54 : vector<16x1xf32>
      %56 = vector.broadcast %55 : vector<16x1xf32> to vector<16x768xf32>
      %57 = arith.mulf %52, %56 : vector<16x768xf32>
      %58 = vector.broadcast %38 : vector<1x768xf32> to vector<16x768xf32>
      %59 = arith.mulf %57, %58 : vector<16x768xf32>
      %60 = vector.broadcast %39 : vector<1x768xf32> to vector<16x768xf32>
      %61 = arith.addf %59, %60 : vector<16x768xf32>
      %c0_33 = arith.constant 0 : index
      %c0_34 = arith.constant 0 : index
      %62 = vector.load %arg10[%c0_33, %c0_34] : memref<16x768xf32, #tpu.memory_space<vmem>>, vector<16x768xf32>
      tpu.vector_store %arg10[%c0_33, %c0_34], %61 {strides = array<i32>} : memref<16x768xf32, #tpu.memory_space<vmem>>, vector<16x768xf32>,
    } else {
    }
    return
  }
  func.func @transform_0(%arg0: i32, %arg1: i32) -> (i32, i32) {
    %c0_i32 = arith.constant 0 : i32
    %c0_i32_0 = arith.constant 0 : i32
    return %arg0, %c0_i32 : i32, i32
  }
  func.func @transform_1(%arg0: i32, %arg1: i32) -> (i32, i32) {
    %c0_i32 = arith.constant 0 : i32
    %c0_i32_0 = arith.constant 0 : i32
    return %c0_i32, %arg1 : i32, i32
  }
  func.func @transform_2(%arg0: i32, %arg1: i32) -> (i32, i32) {
    %c0_i32 = arith.constant 0 : i32
    %c0_i32_0 = arith.constant 0 : i32
    return %c0_i32, %arg1 : i32, i32
  }
  func.func @transform_3(%arg0: i32, %arg1: i32) -> (i32, i32) {
    %c0_i32 = arith.constant 0 : i32
    %c0_i32_0 = arith.constant 0 : i32
    return %arg1, %c0_i32 : i32, i32
  }
  func.func @transform_4(%arg0: i32, %arg1: i32) -> (i32, i32) {
    %c0_i32 = arith.constant 0 : i32
    %c0_i32_0 = arith.constant 0 : i32
    %c0_i32_1 = arith.constant 0 : i32
    return %c0_i32, %c0_i32_0 : i32, i32
  }
  func.func @transform_5(%arg0: i32, %arg1: i32) -> (i32, i32) {
    %c0_i32 = arith.constant 0 : i32
    %c0_i32_0 = arith.constant 0 : i32
    return %arg0, %c0_i32 : i32, i32
  }
  func.func @transform_6(%arg0: i32, %arg1: i32) -> (i32, i32) {
    %c0_i32 = arith.constant 0 : i32
    %c0_i32_0 = arith.constant 0 : i32
    %c0_i32_1 = arith.constant 0 : i32
    return %c0_i32, %c0_i32_0 : i32, i32
  }
  func.func @transform_7(%arg0: i32, %arg1: i32) -> (i32, i32) {
    %c0_i32 = arith.constant 0 : i32
    %c0_i32_0 = arith.constant 0 : i32
    %c0_i32_1 = arith.constant 0 : i32
    return %c0_i32, %c0_i32_0 : i32, i32
  }
  func.func @transform_8(%arg0: i32, %arg1: i32) -> (i32, i32) {
    %c0_i32 = arith.constant 0 : i32
    %c0_i32_0 = arith.constant 0 : i32
    return %arg0, %c0_i32 : i32, i32
  }
}

module attributes {stable_mosaic.version = 11 : i64} {
  func.func @_head_kernel(%arg0: i32, %arg1: memref<2x768xf32, #tpu.memory_space<vmem>>, %arg2: memref<768x768xbf16, #tpu.memory_space<vmem>>, %arg3: memref<1x768xf32, #tpu.memory_space<vmem>>, %arg4: memref<768x128xbf16, #tpu.memory_space<vmem>>, %arg5: memref<1x128xf32, #tpu.memory_space<vmem>>, %arg6: memref<2x128xf32, #tpu.memory_space<vmem>>) attributes {dimension_semantics = [#tpu.dimension_semantics<arbitrary>], iteration_bounds = array<i64: 1>, scalar_prefetch = 0 : i64, scratch_operands = 0 : i64, tpu.core_type = #tpu.core_type<tc>, window_params = [{pipeline_mode = #tpu.pipeline_mode<synchronous>, transform_indices = @transform_0, window_bounds = array<i64: 2, 768>}, {pipeline_mode = #tpu.pipeline_mode<synchronous>, transform_indices = @transform_1, window_bounds = array<i64: 768, 768>}, {pipeline_mode = #tpu.pipeline_mode<synchronous>, transform_indices = @transform_2, window_bounds = array<i64: 1, 768>}, {pipeline_mode = #tpu.pipeline_mode<synchronous>, transform_indices = @transform_3, window_bounds = array<i64: 768, 128>}, {pipeline_mode = #tpu.pipeline_mode<synchronous>, transform_indices = @transform_4, window_bounds = array<i64: 1, 128>}, {pipeline_mode = #tpu.pipeline_mode<synchronous>, transform_indices = @transform_5, window_bounds = array<i64: 2, 128>}]} {
    %c0 = arith.constant 0 : index
    %c0_0 = arith.constant 0 : index
    %0 = vector.load %arg1[%c0, %c0_0] : memref<2x768xf32, #tpu.memory_space<vmem>>, vector<2x768xf32>
    %1 = arith.truncf %0 : vector<2x768xf32> to vector<2x768xbf16>
    %c0_1 = arith.constant 0 : index
    %c0_2 = arith.constant 0 : index
    %2 = vector.load %arg2[%c0_1, %c0_2] : memref<768x768xbf16, #tpu.memory_space<vmem>>, vector<768x768xbf16>
    %cst = arith.constant dense<0.000000e+00> : vector<2x768xf32>
    %3 = tpu.matmul %1, %2, %cst {dimension_numbers = #tpu.dot_dimension_numbers<[1], [0], [0], [1], [0, 0, 1, 1], [], []>} : vector<2x768xbf16>, vector<768x768xbf16>, vector<2x768xf32> -> vector<2x768xf32>
    %c0_3 = arith.constant 0 : index
    %c0_4 = arith.constant 0 : index
    %4 = vector.load %arg3[%c0_3, %c0_4] : memref<1x768xf32, #tpu.memory_space<vmem>>, vector<1x768xf32>
    %5 = vector.broadcast %4 : vector<1x768xf32> to vector<2x768xf32>
    %6 = arith.addf %3, %5 : vector<2x768xf32>
    %7 = math.tanh %6 : vector<2x768xf32>
    %8 = arith.truncf %7 : vector<2x768xf32> to vector<2x768xbf16>
    %c0_5 = arith.constant 0 : index
    %c0_6 = arith.constant 0 : index
    %9 = vector.load %arg4[%c0_5, %c0_6] : memref<768x128xbf16, #tpu.memory_space<vmem>>, vector<768x128xbf16>
    %cst_7 = arith.constant dense<0.000000e+00> : vector<2x128xf32>
    %10 = tpu.matmul %8, %9, %cst_7 {dimension_numbers = #tpu.dot_dimension_numbers<[1], [0], [0], [1], [0, 0, 1, 1], [], []>} : vector<2x768xbf16>, vector<768x128xbf16>, vector<2x128xf32> -> vector<2x128xf32>
    %c0_8 = arith.constant 0 : index
    %c0_9 = arith.constant 0 : index
    %11 = vector.load %arg5[%c0_8, %c0_9] : memref<1x128xf32, #tpu.memory_space<vmem>>, vector<1x128xf32>
    %12 = vector.broadcast %11 : vector<1x128xf32> to vector<2x128xf32>
    %13 = arith.addf %10, %12 : vector<2x128xf32>
    %cst_10 = arith.constant 0.000000e+00 : f32
    %14 = vector.broadcast %cst_10 : f32 to vector<2x128xf32>
    %15 = arith.maximumf %13, %14 : vector<2x128xf32>
    %c0_11 = arith.constant 0 : index
    %c0_12 = arith.constant 0 : index
    %16 = vector.load %arg6[%c0_11, %c0_12] : memref<2x128xf32, #tpu.memory_space<vmem>>, vector<2x128xf32>
    tpu.vector_store %arg6[%c0_11, %c0_12], %15 {strides = array<i32>} : memref<2x128xf32, #tpu.memory_space<vmem>>, vector<2x128xf32>,
    return
  }
  func.func @transform_0(%arg0: i32) -> (i32, i32) {
    %c0_i32 = arith.constant 0 : i32
    %c0_i32_0 = arith.constant 0 : i32
    %c0_i32_1 = arith.constant 0 : i32
    return %c0_i32, %c0_i32_0 : i32, i32
  }
  func.func @transform_1(%arg0: i32) -> (i32, i32) {
    %c0_i32 = arith.constant 0 : i32
    %c0_i32_0 = arith.constant 0 : i32
    %c0_i32_1 = arith.constant 0 : i32
    return %c0_i32, %c0_i32_0 : i32, i32
  }
  func.func @transform_2(%arg0: i32) -> (i32, i32) {
    %c0_i32 = arith.constant 0 : i32
    %c0_i32_0 = arith.constant 0 : i32
    %c0_i32_1 = arith.constant 0 : i32
    return %c0_i32, %c0_i32_0 : i32, i32
  }
  func.func @transform_3(%arg0: i32) -> (i32, i32) {
    %c0_i32 = arith.constant 0 : i32
    %c0_i32_0 = arith.constant 0 : i32
    %c0_i32_1 = arith.constant 0 : i32
    return %c0_i32, %c0_i32_0 : i32, i32
  }
  func.func @transform_4(%arg0: i32) -> (i32, i32) {
    %c0_i32 = arith.constant 0 : i32
    %c0_i32_0 = arith.constant 0 : i32
    %c0_i32_1 = arith.constant 0 : i32
    return %c0_i32, %c0_i32_0 : i32, i32
  }
  func.func @transform_5(%arg0: i32) -> (i32, i32) {
    %c0_i32 = arith.constant 0 : i32
    %c0_i32_0 = arith.constant 0 : i32
    %c0_i32_1 = arith.constant 0 : i32
    return %c0_i32, %c0_i32_0 : i32, i32
  }
}

</mosaic_0001>

<bundles_post_ra>
// kernel: bert_classifier_forward.10
= control target key start
LH: loop header
LB: loop body
LE: loop exit
PB: predicated region body
PF: predicated region fallthrough
CT: control target
= control target key end

     0   :  { %s474_s12 = smov 0   ;;  %s573_s0 = inlined_call_operand.vmem [shape: f32[32,768], index: 0, kind: input, shape index: {}]   ;;  %s574_s1 = inlined_call_operand.vmem [shape: f32[1,768], index: 1, kind: input, shape index: {}]   ;;  %s575_s2 = inlined_call_operand.vmem [shape: f32[1,768], index: 2, kind: input, shape index: {}]   ;;  %s576_s3 = inlined_call_operand.vmem [shape: f32[32,768], index: 3, kind: output, shape index: {}]  }
   0x1 LB: > { %s422_s13 = sadd.s32 4294967295, %s452_s12   ;;  %p426_p0 = scmp.ge.s32.totalorder %s452_s12, 1  ;;  %s452_s12 = sphi %s474_s12, %s13_s12  }
   0x2   : > { %p139_p1 = scmp.lt.s32.totalorder %s452_s12, 3 }
   0x4   : > { %p140_p2 = pnand %p426_p0, %p139_p1 }
   0x5   : > { %s427_s14 = sshll.u32 (!%p140_p2), %s422_s13, 1  ;;  %v267_v61 = vlaneseq (!%p140_p2) }
   0x6   : > { %143 = sbr.rel (%p140_p2) target bundleno = 357 (0x165), region = 32  ;;  %p166_p3 = scmp.lt.s32.totalorder (!%p140_p2), %s427_s14, 3 }
   0xd   : > { %s578_s14 = smov (!%p166_p3, %s427_s14), 3 }
   0xe   : > { %s433_s15 = smul.u32 48, %s578_s14 }
  0x10   : > { %s170_s18 = scalar_lea.vmem %s573_s0, %s433_s15  ;;  %s550_s25 = scalar_lea.vmem %s576_s3, %s433_s15 }
  0x11   : > { %v179_v0 = vld [vmem:[%s170_s18] sm:$0xff]  ;;  %v180_v1 = vld [vmem:[%s170_s18 + $0x8] sm:$0xff]  ;;  %v181_v2 = vld [vmem:[%s170_s18 + $0x10] sm:$0xff] }
  0x12   : > { %v182_v3 = vld [vmem:[%s170_s18 + $0x18] sm:$0xff]  ;;  %v193_v4 = vadd.f32 %v180_v1, %v179_v0  ;;  %v185_v5 = vld [vmem:[%s170_s18 + $0x30] sm:$0xff]  ;;  %v187_v7 = vld [vmem:[%s170_s18 + $0x40] sm:$0xff] }
  0x13   : > { %v186_v6 = vld [vmem:[%s170_s18 + $0x38] sm:$0xff]  ;;  %v183_v10 = vld [vmem:[%s170_s18 + $0x20] sm:$0xff]  ;;  %v188_v11 = vld [vmem:[%s170_s18 + $0x48] sm:$0xff] }
  0x14   : > { %v194_v8 = vadd.f32 %v193_v4, %v181_v2  ;;  %v200_v9 = vadd.f32 %v186_v6, %v185_v5  ;;  %v184_v14 = vld [vmem:[%s170_s18 + $0x28] sm:$0xff]  ;;  %v189_v15 = vld [vmem:[%s170_s18 + $0x50] sm:$0xff]  ;;  %v190_v18 = vld [vmem:[%s170_s18 + $0x58] sm:$0xff] }
  0x16   : > { %v195_v12 = vadd.f32 %v194_v8, %v182_v3  ;;  %v201_v13 = vadd.f32 %v200_v9, %v187_v7 }
  0x18   : > { %v196_v16 = vadd.f32 %v195_v12, %v183_v10  ;;  %v202_v17 = vadd.f32 %v201_v13, %v188_v11 }
  0x1a   : > { %v197_v19 = vadd.f32 %v196_v16, %v184_v14  ;;  %v203_v20 = vadd.f32 %v202_v17, %v189_v15 }
  0x1c   : > { %198 = vadd.xlane.f32.xlu0 %v197_v19  ;;  %v204_v21 = vadd.f32 %v203_v20, %v190_v18 }
  0x20   : > { %205 = vadd.xlane.f32.xlu0 %v204_v21 }
  0xa9   : > { %v199_v22 = vpop.xlane.xlu0 %198 }
  0xaa   : > { %v208_v23 = vmul.f32 0.0013020834, %v199_v22 }
  0xac   : > { %v490_v24 = vsub.f32 %v179_v0, %v208_v23  ;;  %v492_v25 = vsub.f32 %v180_v1, %v208_v23  ;;  %v494_v26 = vsub.f32 %v181_v2, %v208_v23  ;;  %v496_v28 = vsub.f32 %v182_v3, %v208_v23 }
  0xad   : > { %v206_v27 = vpop.xlane.xlu0 %205  ;;  %v502_v32 = vsub.f32 %v183_v10, %v208_v23  ;;  %v215_v38 = vsub.f32 %v184_v14, %v208_v23  ;;  %v268_v1 = vshrl.u32 %v267_v61, 7 }
  0xae   : > { %v209_v29 = vmul.f32 0.0013020834, %v206_v27  ;;  %v222_v30 = vmul.f32 %v490_v24, %v490_v24  ;;  %v223_v31 = vmul.f32 %v492_v25, %v492_v25  ;;  %v224_v33 = vmul.f32 %v494_v26, %v494_v26 }
  0xaf   : > { %v225_v39 = vmul.f32 %v496_v28, %v496_v28  ;;  %v226_v44 = vmul.f32 %v502_v32, %v502_v32  ;;  %v227_v49 = vmul.f32 %v215_v38, %v215_v38  ;;  %v269_v4 = vsub.s32 0, %v268_v1 }
  0xb0   : > { %v234_v34 = vadd.f32 %v223_v31, %v222_v30  ;;  %v506_v35 = vsub.f32 %v185_v5, %v209_v29  ;;  %v508_v36 = vsub.f32 %v186_v6, %v209_v29  ;;  %v510_v37 = vsub.f32 %v187_v7, %v209_v29  ;;  %v191_v6 = vld [vmem:[%s574_s1] sm:$0x3f] }
  0xb1   : > { %v514_v41 = vsub.f32 %v188_v11, %v209_v29  ;;  %v522_v46 = vsub.f32 %v189_v15, %v209_v29  ;;  %v526_v51 = vsub.f32 %v190_v18, %v209_v29  ;;  %v273_v5 = vsub.s32 1, %v268_v1  ;;  %v192_v11 = vld [vmem:[%s575_s2] sm:$0x3f] }
  0xb2   : > { %v235_v40 = vadd.f32 %v234_v34, %v224_v33  ;;  %v228_v42 = vmul.f32 %v506_v35, %v506_v35  ;;  %v229_v43 = vmul.f32 %v508_v36, %v508_v36  ;;  %v230_v47 = vmul.f32 %v510_v37, %v510_v37 }
  0xb3   : > { %v231_v52 = vmul.f32 %v514_v41, %v514_v41  ;;  %v232_v55 = vmul.f32 %v522_v46, %v522_v46  ;;  %v233_v57 = vmul.f32 %v526_v51, %v526_v51  ;;  %v277_v7 = vsub.s32 2, %v268_v1 }
  0xb4   : > { %v236_v45 = vadd.f32 %v235_v40, %v225_v39  ;;  %v241_v48 = vadd.f32 %v229_v43, %v228_v42  ;;  %v281_v8 = vsub.s32 3, %v268_v1  ;;  %v285_v9 = vsub.s32 4, %v268_v1 }
  0xb5   : > { %v289_v10 = vsub.s32 5, %v268_v1  ;;  %v270_v12 = vrot.slane %v191_v6, %v269_v4  ;;  %v274_v13 = vrot.slane %v191_v6, %v273_v5  ;;  %v278_v14 = vrot.slane %v191_v6, %v277_v7 }
  0xb6   : > { %v237_v50 = vadd.f32 %v236_v45, %v226_v44  ;;  %v242_v53 = vadd.f32 %v241_v48, %v230_v47  ;;  %v282_v15 = vrot.slane %v191_v6, %v281_v8  ;;  %v286_v16 = vrot.slane %v191_v6, %v285_v9 }
  0xb7   : > { %v290_v17 = vrot.slane %v191_v6, %v289_v10  ;;  %v313_v19 = vrot.slane %v192_v11, %v269_v4  ;;  %v317_v20 = vrot.slane %v192_v11, %v273_v5  ;;  %v321_v21 = vrot.slane %v192_v11, %v277_v7 }
  0xb8   : > { %v238_v54 = vadd.f32 %v237_v50, %v227_v49  ;;  %v243_v56 = vadd.f32 %v242_v53, %v231_v52  ;;  %v325_v22 = vrot.slane %v192_v11, %v281_v8  ;;  %v329_v31 = vrot.slane %v192_v11, %v285_v9 }
  0xb9   : > { %v333_v33 = vrot.slane %v192_v11, %v289_v10 }
  0xba   : > { %239 = vadd.xlane.f32.xlu1 %v238_v54  ;;  %v244_v58 = vadd.f32 %v243_v56, %v232_v55 }
  0xbc   : > { %v245_v59 = vadd.f32 %v244_v58, %v233_v57 }
  0xbe   : > { %246 = vadd.xlane.f32.xlu1 %v245_v59 }
 0x147   : > { %v240_v60 = vpop.xlane.xlu1 %239 }
 0x148   : > { %v248_v62 = vmul.f32 0.0013020834, %v240_v60 }
 0x14a   : > { %v250_v63 = vadd.f32 1e-12, %v248_v62 }
 0x14b   : > { %v247_v0 = vpop.xlane.xlu1 %246 }
 0x14c   : > { %442 = vrsqrt.f32 %v250_v63  ;;  %v249_v2 = vmul.f32 0.0013020834, %v247_v0 }
 0x14e   : > { %v251_v3 = vadd.f32 1e-12, %v249_v2 }
 0x150   : > { %444 = vrsqrt.f32 %v251_v3 }
 0x156   : > { %v443_v18 = vpop.eup %442 }
 0x157   : > { %v254_v23 = vmul.f32 %v443_v18, %v490_v24  ;;  %v255_v27 = vmul.f32 %v443_v18, %v492_v25  ;;  %v256_v29 = vmul.f32 %v443_v18, %v494_v26  ;;  %v257_v30 = vmul.f32 %v443_v18, %v496_v28 }
 0x158   : > { %v258_v34 = vmul.f32 %v443_v18, %v502_v32  ;;  %v259_v39 = vmul.f32 %v443_v18, %v215_v38 }
 0x159   : > { %v297_v40 = vmul.f32 %v270_v12, %v254_v23  ;;  %v298_v42 = vmul.f32 %v274_v13, %v255_v27  ;;  %v299_v43 = vmul.f32 %v278_v14, %v256_v29  ;;  %v300_v44 = vmul.f32 %v282_v15, %v257_v30 }
 0x15a   : > { %v445_v45 = vpop.eup %444  ;;  %v301_v24 = vmul.f32 %v286_v16, %v258_v34  ;;  %v302_v25 = vmul.f32 %v290_v17, %v259_v39 }
 0x15b   : > { %v340_v26 = vadd.f32 %v313_v19, %v297_v40  ;;  %v341_v28 = vadd.f32 %v317_v20, %v298_v42  ;;  %v342_v32 = vadd.f32 %v321_v21, %v299_v43  ;;  %v343_v38 = vadd.f32 %v325_v22, %v300_v44 }
 0x15c   : > { %v344_v47 = vadd.f32 %v329_v31, %v301_v24  ;;  %v345_v48 = vadd.f32 %v333_v33, %v302_v25  ;;  %v260_v49 = vmul.f32 %v445_v45, %v506_v35  ;;  %v261_v50 = vmul.f32 %v445_v45, %v508_v36 }
 0x15d   : > { %352 = vst [vmem:[%s550_s25] sm:$0xff] %v340_v26  ;;  %353 = vst [vmem:[%s550_s25 + $0x8] sm:$0xff] %v341_v28  ;;  %v262_v52 = vmul.f32 %v445_v45, %v510_v37  ;;  %v263_v53 = vmul.f32 %v445_v45, %v514_v41  ;;  %v264_v54 = vmul.f32 %v445_v45, %v522_v46 }
 0x15e   : > { %354 = vst [vmem:[%s550_s25 + $0x10] sm:$0xff] %v342_v32  ;;  %355 = vst [vmem:[%s550_s25 + $0x18] sm:$0xff] %v343_v38  ;;  %v265_v55 = vmul.f32 %v445_v45, %v526_v51  ;;  %v303_v35 = vmul.f32 %v270_v12, %v260_v49  ;;  %v304_v36 = vmul.f32 %v274_v13, %v261_v50 }
 0x15f   : > { %356 = vst [vmem:[%s550_s25 + $0x20] sm:$0xff] %v344_v47  ;;  %357 = vst [vmem:[%s550_s25 + $0x28] sm:$0xff] %v345_v48  ;;  %v305_v56 = vmul.f32 %v278_v14, %v262_v52  ;;  %v306_v57 = vmul.f32 %v282_v15, %v263_v53  ;;  %v307_v58 = vmul.f32 %v286_v16, %v264_v54 }
 0x160   : > { %v308_v37 = vmul.f32 %v290_v17, %v265_v55  ;;  %v346_v59 = vadd.f32 %v313_v19, %v303_v35  ;;  %v347_v41 = vadd.f32 %v317_v20, %v304_v36 }
 0x161   : > { %v348_v60 = vadd.f32 %v321_v21, %v305_v56  ;;  %v349_v46 = vadd.f32 %v325_v22, %v306_v57  ;;  %v350_v61 = vadd.f32 %v329_v31, %v307_v58 }
 0x162   : > { %v351_v62 = vadd.f32 %v333_v33, %v308_v37  ;;  %358 = vst [vmem:[%s550_s25 + $0x30] sm:$0xff] %v346_v59  ;;  %359 = vst [vmem:[%s550_s25 + $0x38] sm:$0xff] %v347_v41 }
 0x163   : > { %360 = vst [vmem:[%s550_s25 + $0x40] sm:$0xff] %v348_v60  ;;  %361 = vst [vmem:[%s550_s25 + $0x48] sm:$0xff] %v349_v46 }
 0x164   : > { %362 = vst [vmem:[%s550_s25 + $0x50] sm:$0xff] %v350_v61  ;;  %363 = vst [vmem:[%s550_s25 + $0x58] sm:$0xff] %v351_v62 }
 0x165 PF: > { %s13_s12 = sadd.s32 1, %s452_s12  }
 0x166   : > { %p10_p4 = scmp.ge.s32.totalorder %s13_s12, 4  }
 0x168   :  { %12 = sbr.rel (!%p10_p4) target bundleno = 1 (0x1), region = 62 }

// kernel: bert_classifier_forward.11
= control target key start
LH: loop header
LB: loop body
LE: loop exit
PB: predicated region body
PF: predicated region fallthrough
CT: control target
= control target key end

     0   :  { %s4284_s12 = smov 0   ;;  %s4286_s13 = smov 0   ;;  %s5432_s0 = inlined_call_operand.vmem [shape: f32[32,768], index: 0, kind: input, shape index: {}]   ;;  %s5433_s1 = inlined_call_operand.vmem [shape: bf16[768,2304], index: 1, kind: input, shape index: {}]   ;;  %s5434_s2 = inlined_call_operand.vmem [shape: f32[1,2304], index: 2, kind: input, shape index: {}]   ;;  %s5435_s3 = inlined_call_operand.vmem [shape: bf16[32,2304], index: 3, kind: output, shape index: {}]  }
   0x1   :  { %s4288_s14 = smov 0   ;;  %s4290_s15 = smov 0  }
   0x2   :  { %s4292_s16 = smov 0  }
   0x3 LB: > { %s22_s17 = sadd.s32 1, %s4258_s15  ;;  %s3321_s18 = sadd.s32 4294967295, %s4262_s16   ;;  %s4262_s16 = sphi %s4292_s16, %s13_s16   ;;  %s4258_s15 = sphi %s4290_s15, %s5440_s15   ;;  %s4254_s14 = sphi %s4288_s14, %s5439_s14   ;;  %s4250_s13 = sphi %s4286_s13, %s5438_s13   ;;  %s4246_s12 = sphi %s4284_s12, %s5437_s12  }
   0x4   : > { %p23_p0 = scmp.ge.s32.totalorder %s22_s17, 3  ;;  %p65_p1 = scmp.ne.s32.totalorder %s4250_s13, %s4246_s12 }
   0x5   : > { %p66_p2 = scmp.eq.s32.totalorder %s4262_s16, 0  ;;  %p123_p4 = scmp.eq.s32.totalorder %s3321_s18, 2 }
   0x6   : > { %s5442_s17 = smov (%p23_p0, %s22_s17), 0  ;;  %s58_s20 = sadd.s32 1, %s4250_s13 }
   0x7   : > { %p67_p3 = por %p66_p2, %p65_p1  ;;  %s55_s19 = ssub.s32 %s4258_s15, %s5442_s17 }
   0x8   : > { %p56_p5 = scmp.eq.s32.totalorder %s55_s19, 0  ;;  %p4319_p6 = por %p123_p4, %p65_p1 }
   0x9   : > { %p3325_p7 = scmp.ge.s32.totalorder %s4262_s16, 3 }
   0xa   : > { %s4324_s22 = scalar_select %p56_p5, %s4250_s13, %s58_s20  }
   0xb   : > { %155 = sbr.rel (%p3325_p7) target bundleno = 167 (0xa7), region = 20 }
  0x12   : > { %158 = sbr.rel (!%p67_p3) target bundleno = 167 (0xa7), region = 24  ;;  %s160_s23 = sand.u32 (%p67_p3), 1, %s4250_s13  }
  0x13   : > { %s3631_s24 = smul.u32 (%p67_p3), 24, %s4258_s15 }
  0x14   : > { %s3749_s25 = smul.u32 (%p67_p3), 2304, %s160_s23 }
  0x15   : > { %s4332_s28 = scalar_lea.vmem (%p67_p3), %s5433_s1, %s3631_s24 }
  0x16   : > { %v178_v0 = vld [vmem:[%s4332_s28] sm:$0xff] (%p67_p3)  ;;  %v180_v1 = vld [vmem:[%s4332_s28 + $0x8] sm:$0xff] (%p67_p3)  ;;  %v182_v2 = vld [vmem:[%s4332_s28 + $0x10] sm:$0xff] (%p67_p3)  ;;  %s4337_s29 = scalar_lea.vmem (%p67_p3), [#allocation2], %s3749_s25 }
  0x17   : > { %179 = vst [vmem:[%s4337_s29] sm:$0xff] (%p67_p3), %v178_v0  ;;  %181 = vst [vmem:[%s4337_s29 + $0x8] sm:$0xff] (%p67_p3), %v180_v1  ;;  %v184_v3 = vld [vmem:[%s4332_s28 + $0x48] sm:$0xff] (%p67_p3)  ;;  %v186_v4 = vld [vmem:[%s4332_s28 + $0x50] sm:$0xff] (%p67_p3) }
  0x18   : > { %183 = vst [vmem:[%s4337_s29 + $0x10] sm:$0xff] (%p67_p3), %v182_v2  ;;  %v188_v5 = vld [vmem:[%s4332_s28 + $0x58] sm:$0xff] (%p67_p3)  ;;  %185 = vst [vmem:[%s4337_s29 + $0x18] sm:$0xff] (%p67_p3), %v184_v3  ;;  %v190_v6 = vld [vmem:[%s4332_s28 + $0x90] sm:$0xff] (%p67_p3) }
  0x19   : > { %187 = vst [vmem:[%s4337_s29 + $0x20] sm:$0xff] %v186_v4  ;;  %189 = vst [vmem:[%s4337_s29 + $0x28] sm:$0xff] %v188_v5  ;;  %v192_v7 = vld [vmem:[%s4332_s28 + $0x98] sm:$0xff]  ;;  %v194_v8 = vld [vmem:[%s4332_s28 + $0xa0] sm:$0xff] }
  0x1a   : > { %191 = vst [vmem:[%s4337_s29 + $0x30] sm:$0xff] %v190_v6  ;;  %193 = vst [vmem:[%s4337_s29 + $0x38] sm:$0xff] %v192_v7  ;;  %v196_v9 = vld [vmem:[%s4332_s28 + $0xd8] sm:$0xff]  ;;  %v198_v10 = vld [vmem:[%s4332_s28 + $0xe0] sm:$0xff] }
  0x1b   : > { %195 = vst [vmem:[%s4337_s29 + $0x40] sm:$0xff] %v194_v8  ;;  %v200_v11 = vld [vmem:[%s4332_s28 + $0xe8] sm:$0xff]  ;;  %197 = vst [vmem:[%s4337_s29 + $0x48] sm:$0xff] %v196_v9  ;;  %v202_v12 = vld [vmem:[%s4332_s28 + $0x120] sm:$0xff] }
  0x1c   : > { %199 = vst [vmem:[%s4337_s29 + $0x50] sm:$0xff] %v198_v10  ;;  %201 = vst [vmem:[%s4337_s29 + $0x58] sm:$0xff] %v200_v11  ;;  %v204_v13 = vld [vmem:[%s4332_s28 + $0x128] sm:$0xff]  ;;  %v206_v14 = vld [vmem:[%s4332_s28 + $0x130] sm:$0xff] }
  0x1d   : > { %203 = vst [vmem:[%s4337_s29 + $0x60] sm:$0xff] %v202_v12  ;;  %205 = vst [vmem:[%s4337_s29 + $0x68] sm:$0xff] %v204_v13  ;;  %v208_v15 = vld [vmem:[%s4332_s28 + $0x168] sm:$0xff]  ;;  %v210_v16 = vld [vmem:[%s4332_s28 + $0x170] sm:$0xff] }
  0x1e   : > { %207 = vst [vmem:[%s4337_s29 + $0x70] sm:$0xff] %v206_v14  ;;  %v212_v17 = vld [vmem:[%s4332_s28 + $0x178] sm:$0xff]  ;;  %209 = vst [vmem:[%s4337_s29 + $0x78] sm:$0xff] %v208_v15  ;;  %v214_v18 = vld [vmem:[%s4332_s28 + $0x1b0] sm:$0xff] }
  0x1f   : > { %211 = vst [vmem:[%s4337_s29 + $0x80] sm:$0xff] %v210_v16  ;;  %213 = vst [vmem:[%s4337_s29 + $0x88] sm:$0xff] %v212_v17  ;;  %v216_v19 = vld [vmem:[%s4332_s28 + $0x1b8] sm:$0xff]  ;;  %v218_v20 = vld [vmem:[%s4332_s28 + $0x1c0] sm:$0xff] }
  0x20   : > { %215 = vst [vmem:[%s4337_s29 + $0x90] sm:$0xff] %v214_v18  ;;  %217 = vst [vmem:[%s4337_s29 + $0x98] sm:$0xff] %v216_v19  ;;  %v220_v21 = vld [vmem:[%s4332_s28 + $0x1f8] sm:$0xff]  ;;  %v222_v22 = vld [vmem:[%s4332_s28 + $0x200] sm:$0xff] }
  0x21   : > { %219 = vst [vmem:[%s4337_s29 + $0xa0] sm:$0xff] %v218_v20  ;;  %v224_v23 = vld [vmem:[%s4332_s28 + $0x208] sm:$0xff]  ;;  %221 = vst [vmem:[%s4337_s29 + $0xa8] sm:$0xff] %v220_v21  ;;  %v226_v24 = vld [vmem:[%s4332_s28 + $0x240] sm:$0xff] }
  0x22   : > { %223 = vst [vmem:[%s4337_s29 + $0xb0] sm:$0xff] %v222_v22  ;;  %225 = vst [vmem:[%s4337_s29 + $0xb8] sm:$0xff] %v224_v23  ;;  %v228_v25 = vld [vmem:[%s4332_s28 + $0x248] sm:$0xff]  ;;  %v230_v26 = vld [vmem:[%s4332_s28 + $0x250] sm:$0xff] }
  0x23   : > { %227 = vst [vmem:[%s4337_s29 + $0xc0] sm:$0xff] %v226_v24  ;;  %229 = vst [vmem:[%s4337_s29 + $0xc8] sm:$0xff] %v228_v25  ;;  %v232_v27 = vld [vmem:[%s4332_s28 + $0x288] sm:$0xff]  ;;  %v234_v28 = vld [vmem:[%s4332_s28 + $0x290] sm:$0xff] }
  0x24   : > { %231 = vst [vmem:[%s4337_s29 + $0xd0] sm:$0xff] %v230_v26  ;;  %v236_v29 = vld [vmem:[%s4332_s28 + $0x298] sm:$0xff]  ;;  %233 = vst [vmem:[%s4337_s29 + $0xd8] sm:$0xff] %v232_v27  ;;  %v238_v30 = vld [vmem:[%s4332_s28 + $0x2d0] sm:$0xff] }
  0x25   : > { %235 = vst [vmem:[%s4337_s29 + $0xe0] sm:$0xff] %v234_v28  ;;  %237 = vst [vmem:[%s4337_s29 + $0xe8] sm:$0xff] %v236_v29  ;;  %v240_v31 = vld [vmem:[%s4332_s28 + $0x2d8] sm:$0xff]  ;;  %v242_v32 = vld [vmem:[%s4332_s28 + $0x2e0] sm:$0xff] }
  0x26   : > { %239 = vst [vmem:[%s4337_s29 + $0xf0] sm:$0xff] %v238_v30  ;;  %241 = vst [vmem:[%s4337_s29 + $0xf8] sm:$0xff] %v240_v31  ;;  %v244_v33 = vld [vmem:[%s4332_s28 + $0x318] sm:$0xff]  ;;  %v246_v34 = vld [vmem:[%s4332_s28 + $0x320] sm:$0xff] }
  0x27   : > { %243 = vst [vmem:[%s4337_s29 + $0x100] sm:$0xff] %v242_v32  ;;  %v248_v35 = vld [vmem:[%s4332_s28 + $0x328] sm:$0xff]  ;;  %245 = vst [vmem:[%s4337_s29 + $0x108] sm:$0xff] %v244_v33  ;;  %v250_v36 = vld [vmem:[%s4332_s28 + $0x360] sm:$0xff] }
  0x28   : > { %247 = vst [vmem:[%s4337_s29 + $0x110] sm:$0xff] %v246_v34  ;;  %249 = vst [vmem:[%s4337_s29 + $0x118] sm:$0xff] %v248_v35  ;;  %v252_v37 = vld [vmem:[%s4332_s28 + $0x368] sm:$0xff]  ;;  %v254_v38 = vld [vmem:[%s4332_s28 + $0x370] sm:$0xff] }
  0x29   : > { %251 = vst [vmem:[%s4337_s29 + $0x120] sm:$0xff] %v250_v36  ;;  %253 = vst [vmem:[%s4337_s29 + $0x128] sm:$0xff] %v252_v37  ;;  %v256_v39 = vld [vmem:[%s4332_s28 + $0x3a8] sm:$0xff]  ;;  %v258_v40 = vld [vmem:[%s4332_s28 + $0x3b0] sm:$0xff] }
  0x2a   : > { %255 = vst [vmem:[%s4337_s29 + $0x130] sm:$0xff] %v254_v38  ;;  %v260_v41 = vld [vmem:[%s4332_s28 + $0x3b8] sm:$0xff]  ;;  %257 = vst [vmem:[%s4337_s29 + $0x138] sm:$0xff] %v256_v39  ;;  %v262_v42 = vld [vmem:[%s4332_s28 + $0x3f0] sm:$0xff] }
  0x2b   : > { %259 = vst [vmem:[%s4337_s29 + $0x140] sm:$0xff] %v258_v40  ;;  %261 = vst [vmem:[%s4337_s29 + $0x148] sm:$0xff] %v260_v41  ;;  %v264_v43 = vld [vmem:[%s4332_s28 + $0x3f8] sm:$0xff]  ;;  %v266_v44 = vld [vmem:[%s4332_s28 + $0x400] sm:$0xff] }
  0x2c   : > { %263 = vst [vmem:[%s4337_s29 + $0x150] sm:$0xff] %v262_v42  ;;  %265 = vst [vmem:[%s4337_s29 + $0x158] sm:$0xff] %v264_v43  ;;  %v268_v45 = vld [vmem:[%s4332_s28 + $0x438] sm:$0xff]  ;;  %v270_v46 = vld [vmem:[%s4332_s28 + $0x440] sm:$0xff] }
  0x2d   : > { %267 = vst [vmem:[%s4337_s29 + $0x160] sm:$0xff] %v266_v44  ;;  %v272_v47 = vld [vmem:[%s4332_s28 + $0x448] sm:$0xff]  ;;  %269 = vst [vmem:[%s4337_s29 + $0x168] sm:$0xff] %v268_v45  ;;  %v274_v48 = vld [vmem:[%s4332_s28 + $0x480] sm:$0xff] }
  0x2e   : > { %271 = vst [vmem:[%s4337_s29 + $0x170] sm:$0xff] %v270_v46  ;;  %273 = vst [vmem:[%s4337_s29 + $0x178] sm:$0xff] %v272_v47  ;;  %v276_v49 = vld [vmem:[%s4332_s28 + $0x488] sm:$0xff]  ;;  %v278_v50 = vld [vmem:[%s4332_s28 + $0x490] sm:$0xff] }
  0x2f   : > { %275 = vst [vmem:[%s4337_s29 + $0x180] sm:$0xff] %v274_v48  ;;  %277 = vst [vmem:[%s4337_s29 + $0x188] sm:$0xff] %v276_v49  ;;  %v280_v51 = vld [vmem:[%s4332_s28 + $0x4c8] sm:$0xff]  ;;  %v282_v52 = vld [vmem:[%s4332_s28 + $0x4d0] sm:$0xff] }
  0x30   : > { %279 = vst [vmem:[%s4337_s29 + $0x190] sm:$0xff] %v278_v50  ;;  %v284_v53 = vld [vmem:[%s4332_s28 + $0x4d8] sm:$0xff]  ;;  %281 = vst [vmem:[%s4337_s29 + $0x198] sm:$0xff] %v280_v51  ;;  %v286_v54 = vld [vmem:[%s4332_s28 + $0x510] sm:$0xff] }
  0x31   : > { %283 = vst [vmem:[%s4337_s29 + $0x1a0] sm:$0xff] %v282_v52  ;;  %285 = vst [vmem:[%s4337_s29 + $0x1a8] sm:$0xff] %v284_v53  ;;  %v288_v55 = vld [vmem:[%s4332_s28 + $0x518] sm:$0xff]  ;;  %v290_v56 = vld [vmem:[%s4332_s28 + $0x520] sm:$0xff] }
  0x32   : > { %287 = vst [vmem:[%s4337_s29 + $0x1b0] sm:$0xff] %v286_v54  ;;  %289 = vst [vmem:[%s4337_s29 + $0x1b8] sm:$0xff] %v288_v55  ;;  %v292_v57 = vld [vmem:[%s4332_s28 + $0x558] sm:$0xff]  ;;  %v294_v58 = vld [vmem:[%s4332_s28 + $0x560] sm:$0xff] }
  0x33   : > { %291 = vst [vmem:[%s4337_s29 + $0x1c0] sm:$0xff] %v290_v56  ;;  %v296_v59 = vld [vmem:[%s4332_s28 + $0x568] sm:$0xff]  ;;  %293 = vst [vmem:[%s4337_s29 + $0x1c8] sm:$0xff] %v292_v57  ;;  %v298_v60 = vld [vmem:[%s4332_s28 + $0x5a0] sm:$0xff] }
  0x34   : > { %295 = vst [vmem:[%s4337_s29 + $0x1d0] sm:$0xff] %v294_v58  ;;  %297 = vst [vmem:[%s4337_s29 + $0x1d8] sm:$0xff] %v296_v59  ;;  %v300_v61 = vld [vmem:[%s4332_s28 + $0x5a8] sm:$0xff]  ;;  %v302_v62 = vld [vmem:[%s4332_s28 + $0x5b0] sm:$0xff] }
  0x35   : > { %299 = vst [vmem:[%s4337_s29 + $0x1e0] sm:$0xff] %v298_v60  ;;  %301 = vst [vmem:[%s4337_s29 + $0x1e8] sm:$0xff] %v300_v61  ;;  %v304_v63 = vld [vmem:[%s4332_s28 + $0x5e8] sm:$0xff]  ;;  %v306_v0 = vld [vmem:[%s4332_s28 + $0x5f0] sm:$0xff] }
  0x36   : > { %303 = vst [vmem:[%s4337_s29 + $0x1f0] sm:$0xff] %v302_v62  ;;  %v308_v1 = vld [vmem:[%s4332_s28 + $0x5f8] sm:$0xff]  ;;  %305 = vst [vmem:[%s4337_s29 + $0x1f8] sm:$0xff] %v304_v63  ;;  %v310_v2 = vld [vmem:[%s4332_s28 + $0x630] sm:$0xff] }
  0x37   : > { %307 = vst [vmem:[%s4337_s29 + $0x200] sm:$0xff] %v306_v0  ;;  %309 = vst [vmem:[%s4337_s29 + $0x208] sm:$0xff] %v308_v1  ;;  %v312_v3 = vld [vmem:[%s4332_s28 + $0x638] sm:$0xff]  ;;  %v314_v4 = vld [vmem:[%s4332_s28 + $0x640] sm:$0xff] }
  0x38   : > { %311 = vst [vmem:[%s4337_s29 + $0x210] sm:$0xff] %v310_v2  ;;  %313 = vst [vmem:[%s4337_s29 + $0x218] sm:$0xff] %v312_v3  ;;  %v316_v5 = vld [vmem:[%s4332_s28 + $0x678] sm:$0xff]  ;;  %v318_v6 = vld [vmem:[%s4332_s28 + $0x680] sm:$0xff] }
  0x39   : > { %315 = vst [vmem:[%s4337_s29 + $0x220] sm:$0xff] %v314_v4  ;;  %v320_v7 = vld [vmem:[%s4332_s28 + $0x688] sm:$0xff]  ;;  %317 = vst [vmem:[%s4337_s29 + $0x228] sm:$0xff] %v316_v5  ;;  %v322_v8 = vld [vmem:[%s4332_s28 + $0x6c0] sm:$0xff] }
  0x3a   : > { %319 = vst [vmem:[%s4337_s29 + $0x230] sm:$0xff] %v318_v6  ;;  %321 = vst [vmem:[%s4337_s29 + $0x238] sm:$0xff] %v320_v7  ;;  %v324_v9 = vld [vmem:[%s4332_s28 + $0x6c8] sm:$0xff]  ;;  %v326_v10 = vld [vmem:[%s4332_s28 + $0x6d0] sm:$0xff] }
  0x3b   : > { %323 = vst [vmem:[%s4337_s29 + $0x240] sm:$0xff] %v322_v8  ;;  %325 = vst [vmem:[%s4337_s29 + $0x248] sm:$0xff] %v324_v9  ;;  %v328_v11 = vld [vmem:[%s4332_s28 + $0x708] sm:$0xff]  ;;  %v330_v12 = vld [vmem:[%s4332_s28 + $0x710] sm:$0xff] }
  0x3c   : > { %327 = vst [vmem:[%s4337_s29 + $0x250] sm:$0xff] %v326_v10  ;;  %v332_v13 = vld [vmem:[%s4332_s28 + $0x718] sm:$0xff]  ;;  %329 = vst [vmem:[%s4337_s29 + $0x258] sm:$0xff] %v328_v11  ;;  %v334_v14 = vld [vmem:[%s4332_s28 + $0x750] sm:$0xff] }
  0x3d   : > { %331 = vst [vmem:[%s4337_s29 + $0x260] sm:$0xff] %v330_v12  ;;  %333 = vst [vmem:[%s4337_s29 + $0x268] sm:$0xff] %v332_v13  ;;  %v336_v15 = vld [vmem:[%s4332_s28 + $0x758] sm:$0xff]  ;;  %v338_v16 = vld [vmem:[%s4332_s28 + $0x760] sm:$0xff] }
  0x3e   : > { %335 = vst [vmem:[%s4337_s29 + $0x270] sm:$0xff] %v334_v14  ;;  %337 = vst [vmem:[%s4337_s29 + $0x278] sm:$0xff] %v336_v15  ;;  %v340_v17 = vld [vmem:[%s4332_s28 + $0x798] sm:$0xff]  ;;  %v342_v18 = vld [vmem:[%s4332_s28 + $0x7a0] sm:$0xff] }
  0x3f   : > { %339 = vst [vmem:[%s4337_s29 + $0x280] sm:$0xff] %v338_v16  ;;  %v344_v19 = vld [vmem:[%s4332_s28 + $0x7a8] sm:$0xff]  ;;  %341 = vst [vmem:[%s4337_s29 + $0x288] sm:$0xff] %v340_v17  ;;  %v346_v20 = vld [vmem:[%s4332_s28 + $0x7e0] sm:$0xff] }
  0x40   : > { %343 = vst [vmem:[%s4337_s29 + $0x290] sm:$0xff] %v342_v18  ;;  %345 = vst [vmem:[%s4337_s29 + $0x298] sm:$0xff] %v344_v19  ;;  %v348_v21 = vld [vmem:[%s4332_s28 + $0x7e8] sm:$0xff]  ;;  %v350_v22 = vld [vmem:[%s4332_s28 + $0x7f0] sm:$0xff] }
  0x41   : > { %347 = vst [vmem:[%s4337_s29 + $0x2a0] sm:$0xff] %v346_v20  ;;  %349 = vst [vmem:[%s4337_s29 + $0x2a8] sm:$0xff] %v348_v21  ;;  %v352_v23 = vld [vmem:[%s4332_s28 + $0x828] sm:$0xff]  ;;  %v354_v24 = vld [vmem:[%s4332_s28 + $0x830] sm:$0xff] }
  0x42   : > { %351 = vst [vmem:[%s4337_s29 + $0x2b0] sm:$0xff] %v350_v22  ;;  %v356_v25 = vld [vmem:[%s4332_s28 + $0x838] sm:$0xff]  ;;  %353 = vst [vmem:[%s4337_s29 + $0x2b8] sm:$0xff] %v352_v23  ;;  %v358_v26 = vld [vmem:[%s4332_s28 + $0x870] sm:$0xff] }
  0x43   : > { %355 = vst [vmem:[%s4337_s29 + $0x2c0] sm:$0xff] %v354_v24  ;;  %357 = vst [vmem:[%s4337_s29 + $0x2c8] sm:$0xff] %v356_v25  ;;  %v360_v27 = vld [vmem:[%s4332_s28 + $0x878] sm:$0xff]  ;;  %v362_v28 = vld [vmem:[%s4332_s28 + $0x880] sm:$0xff] }
  0x44   : > { %359 = vst [vmem:[%s4337_s29 + $0x2d0] sm:$0xff] %v358_v26  ;;  %361 = vst [vmem:[%s4337_s29 + $0x2d8] sm:$0xff] %v360_v27  ;;  %v364_v29 = vld [vmem:[%s4332_s28 + $0x8b8] sm:$0xff]  ;;  %v366_v30 = vld [vmem:[%s4332_s28 + $0x8c0] sm:$0xff] }
  0x45   : > { %363 = vst [vmem:[%s4337_s29 + $0x2e0] sm:$0xff] %v362_v28  ;;  %v368_v31 = vld [vmem:[%s4332_s28 + $0x8c8] sm:$0xff]  ;;  %365 = vst [vmem:[%s4337_s29 + $0x2e8] sm:$0xff] %v364_v29  ;;  %v370_v32 = vld [vmem:[%s4332_s28 + $0x900] sm:$0xff] }
  0x46   : > { %367 = vst [vmem:[%s4337_s29 + $0x2f0] sm:$0xff] %v366_v30  ;;  %369 = vst [vmem:[%s4337_s29 + $0x2f8] sm:$0xff] %v368_v31  ;;  %v372_v33 = vld [vmem:[%s4332_s28 + $0x908] sm:$0xff]  ;;  %v374_v34 = vld [vmem:[%s4332_s28 + $0x910] sm:$0xff] }
  0x47   : > { %371 = vst [vmem:[%s4337_s29 + $0x300] sm:$0xff] %v370_v32  ;;  %373 = vst [vmem:[%s4337_s29 + $0x308] sm:$0xff] %v372_v33  ;;  %v376_v35 = vld [vmem:[%s4332_s28 + $0x948] sm:$0xff]  ;;  %v378_v36 = vld [vmem:[%s4332_s28 + $0x950] sm:$0xff] }
  0x48   : > { %375 = vst [vmem:[%s4337_s29 + $0x310] sm:$0xff] %v374_v34  ;;  %v380_v37 = vld [vmem:[%s4332_s28 + $0x958] sm:$0xff]  ;;  %377 = vst [vmem:[%s4337_s29 + $0x318] sm:$0xff] %v376_v35  ;;  %v382_v38 = vld [vmem:[%s4332_s28 + $0x990] sm:$0xff] }
  0x49   : > { %379 = vst [vmem:[%s4337_s29 + $0x320] sm:$0xff] %v378_v36  ;;  %381 = vst [vmem:[%s4337_s29 + $0x328] sm:$0xff] %v380_v37  ;;  %v384_v39 = vld [vmem:[%s4332_s28 + $0x998] sm:$0xff]  ;;  %v386_v40 = vld [vmem:[%s4332_s28 + $0x9a0] sm:$0xff] }
  0x4a   : > { %383 = vst [vmem:[%s4337_s29 + $0x330] sm:$0xff] %v382_v38  ;;  %385 = vst [vmem:[%s4337_s29 + $0x338] sm:$0xff] %v384_v39  ;;  %v388_v41 = vld [vmem:[%s4332_s28 + $0x9d8] sm:$0xff]  ;;  %v390_v42 = vld [vmem:[%s4332_s28 + $0x9e0] sm:$0xff] }
  0x4b   : > { %387 = vst [vmem:[%s4337_s29 + $0x340] sm:$0xff] %v386_v40  ;;  %v392_v43 = vld [vmem:[%s4332_s28 + $0x9e8] sm:$0xff]  ;;  %389 = vst [vmem:[%s4337_s29 + $0x348] sm:$0xff] %v388_v41  ;;  %v394_v44 = vld [vmem:[%s4332_s28 + $0xa20] sm:$0xff] }
  0x4c   : > { %391 = vst [vmem:[%s4337_s29 + $0x350] sm:$0xff] %v390_v42  ;;  %393 = vst [vmem:[%s4337_s29 + $0x358] sm:$0xff] %v392_v43  ;;  %v396_v45 = vld [vmem:[%s4332_s28 + $0xa28] sm:$0xff]  ;;  %v398_v46 = vld [vmem:[%s4332_s28 + $0xa30] sm:$0xff] }
  0x4d   : > { %395 = vst [vmem:[%s4337_s29 + $0x360] sm:$0xff] %v394_v44  ;;  %397 = vst [vmem:[%s4337_s29 + $0x368] sm:$0xff] %v396_v45  ;;  %v400_v47 = vld [vmem:[%s4332_s28 + $0xa68] sm:$0xff]  ;;  %v402_v48 = vld [vmem:[%s4332_s28 + $0xa70] sm:$0xff] }
  0x4e   : > { %399 = vst [vmem:[%s4337_s29 + $0x370] sm:$0xff] %v398_v46  ;;  %v404_v49 = vld [vmem:[%s4332_s28 + $0xa78] sm:$0xff]  ;;  %401 = vst [vmem:[%s4337_s29 + $0x378] sm:$0xff] %v400_v47  ;;  %v406_v50 = vld [vmem:[%s4332_s28 + $0xab0] sm:$0xff] }
  0x4f   : > { %403 = vst [vmem:[%s4337_s29 + $0x380] sm:$0xff] %v402_v48  ;;  %405 = vst [vmem:[%s4337_s29 + $0x388] sm:$0xff] %v404_v49  ;;  %v408_v51 = vld [vmem:[%s4332_s28 + $0xab8] sm:$0xff]  ;;  %v410_v52 = vld [vmem:[%s4332_s28 + $0xac0] sm:$0xff] }
  0x50   : > { %407 = vst [vmem:[%s4337_s29 + $0x390] sm:$0xff] %v406_v50  ;;  %409 = vst [vmem:[%s4337_s29 + $0x398] sm:$0xff] %v408_v51  ;;  %v412_v53 = vld [vmem:[%s4332_s28 + $0xaf8] sm:$0xff]  ;;  %v414_v54 = vld [vmem:[%s4332_s28 + $0xb00] sm:$0xff] }
  0x51   : > { %411 = vst [vmem:[%s4337_s29 + $0x3a0] sm:$0xff] %v410_v52  ;;  %v416_v55 = vld [vmem:[%s4332_s28 + $0xb08] sm:$0xff]  ;;  %413 = vst [vmem:[%s4337_s29 + $0x3a8] sm:$0xff] %v412_v53  ;;  %v418_v56 = vld [vmem:[%s4332_s28 + $0xb40] sm:$0xff] }
  0x52   : > { %415 = vst [vmem:[%s4337_s29 + $0x3b0] sm:$0xff] %v414_v54  ;;  %417 = vst [vmem:[%s4337_s29 + $0x3b8] sm:$0xff] %v416_v55  ;;  %v420_v57 = vld [vmem:[%s4332_s28 + $0xb48] sm:$0xff]  ;;  %v422_v58 = vld [vmem:[%s4332_s28 + $0xb50] sm:$0xff] }
  0x53   : > { %419 = vst [vmem:[%s4337_s29 + $0x3c0] sm:$0xff] %v418_v56  ;;  %421 = vst [vmem:[%s4337_s29 + $0x3c8] sm:$0xff] %v420_v57  ;;  %v424_v59 = vld [vmem:[%s4332_s28 + $0xb88] sm:$0xff]  ;;  %v426_v60 = vld [vmem:[%s4332_s28 + $0xb90] sm:$0xff] }
  0x54   : > { %423 = vst [vmem:[%s4337_s29 + $0x3d0] sm:$0xff] %v422_v58  ;;  %v428_v61 = vld [vmem:[%s4332_s28 + $0xb98] sm:$0xff]  ;;  %425 = vst [vmem:[%s4337_s29 + $0x3d8] sm:$0xff] %v424_v59  ;;  %v430_v62 = vld [vmem:[%s4332_s28 + $0xbd0] sm:$0xff] }
  0x55   : > { %427 = vst [vmem:[%s4337_s29 + $0x3e0] sm:$0xff] %v426_v60  ;;  %429 = vst [vmem:[%s4337_s29 + $0x3e8] sm:$0xff] %v428_v61  ;;  %v432_v63 = vld [vmem:[%s4332_s28 + $0xbd8] sm:$0xff]  ;;  %v434_v0 = vld [vmem:[%s4332_s28 + $0xbe0] sm:$0xff] }
  0x56   : > { %431 = vst [vmem:[%s4337_s29 + $0x3f0] sm:$0xff] %v430_v62  ;;  %433 = vst [vmem:[%s4337_s29 + $0x3f8] sm:$0xff] %v432_v63  ;;  %v436_v1 = vld [vmem:[%s4332_s28 + $0xc18] sm:$0xff]  ;;  %v438_v2 = vld [vmem:[%s4332_s28 + $0xc20] sm:$0xff] }
  0x57   : > { %435 = vst [vmem:[%s4337_s29 + $0x400] sm:$0xff] %v434_v0  ;;  %v440_v3 = vld [vmem:[%s4332_s28 + $0xc28] sm:$0xff]  ;;  %437 = vst [vmem:[%s4337_s29 + $0x408] sm:$0xff] %v436_v1  ;;  %v442_v4 = vld [vmem:[%s4332_s28 + $0xc60] sm:$0xff] }
  0x58   : > { %439 = vst [vmem:[%s4337_s29 + $0x410] sm:$0xff] %v438_v2  ;;  %441 = vst [vmem:[%s4337_s29 + $0x418] sm:$0xff] %v440_v3  ;;  %v444_v5 = vld [vmem:[%s4332_s28 + $0xc68] sm:$0xff]  ;;  %v446_v6 = vld [vmem:[%s4332_s28 + $0xc70] sm:$0xff] }
  0x59   : > { %443 = vst [vmem:[%s4337_s29 + $0x420] sm:$0xff] %v442_v4  ;;  %445 = vst [vmem:[%s4337_s29 + $0x428] sm:$0xff] %v444_v5  ;;  %v448_v7 = vld [vmem:[%s4332_s28 + $0xca8] sm:$0xff]  ;;  %v450_v8 = vld [vmem:[%s4332_s28 + $0xcb0] sm:$0xff] }
  0x5a   : > { %447 = vst [vmem:[%s4337_s29 + $0x430] sm:$0xff] %v446_v6  ;;  %v452_v9 = vld [vmem:[%s4332_s28 + $0xcb8] sm:$0xff]  ;;  %449 = vst [vmem:[%s4337_s29 + $0x438] sm:$0xff] %v448_v7  ;;  %v454_v10 = vld [vmem:[%s4332_s28 + $0xcf0] sm:$0xff] }
  0x5b   : > { %451 = vst [vmem:[%s4337_s29 + $0x440] sm:$0xff] %v450_v8  ;;  %453 = vst [vmem:[%s4337_s29 + $0x448] sm:$0xff] %v452_v9  ;;  %v456_v11 = vld [vmem:[%s4332_s28 + $0xcf8] sm:$0xff]  ;;  %v458_v12 = vld [vmem:[%s4332_s28 + $0xd00] sm:$0xff] }
  0x5c   : > { %455 = vst [vmem:[%s4337_s29 + $0x450] sm:$0xff] %v454_v10  ;;  %457 = vst [vmem:[%s4337_s29 + $0x458] sm:$0xff] %v456_v11  ;;  %v460_v13 = vld [vmem:[%s4332_s28 + $0xd38] sm:$0xff]  ;;  %v462_v14 = vld [vmem:[%s4332_s28 + $0xd40] sm:$0xff] }
  0x5d   : > { %459 = vst [vmem:[%s4337_s29 + $0x460] sm:$0xff] %v458_v12  ;;  %v464_v15 = vld [vmem:[%s4332_s28 + $0xd48] sm:$0xff]  ;;  %461 = vst [vmem:[%s4337_s29 + $0x468] sm:$0xff] %v460_v13  ;;  %v466_v16 = vld [vmem:[%s4332_s28 + $0xd80] sm:$0xff] }
  0x5e   : > { %463 = vst [vmem:[%s4337_s29 + $0x470] sm:$0xff] %v462_v14  ;;  %465 = vst [vmem:[%s4337_s29 + $0x478] sm:$0xff] %v464_v15  ;;  %v468_v17 = vld [vmem:[%s4332_s28 + $0xd88] sm:$0xff]  ;;  %v470_v18 = vld [vmem:[%s4332_s28 + $0xd90] sm:$0xff] }
  0x5f   : > { %467 = vst [vmem:[%s4337_s29 + $0x480] sm:$0xff] %v466_v16  ;;  %469 = vst [vmem:[%s4337_s29 + $0x488] sm:$0xff] %v468_v17  ;;  %v472_v19 = vld [vmem:[%s4332_s28 + $0xdc8] sm:$0xff]  ;;  %v474_v20 = vld [vmem:[%s4332_s28 + $0xdd0] sm:$0xff] }
  0x60   : > { %471 = vst [vmem:[%s4337_s29 + $0x490] sm:$0xff] %v470_v18  ;;  %v476_v21 = vld [vmem:[%s4332_s28 + $0xdd8] sm:$0xff]  ;;  %473 = vst [vmem:[%s4337_s29 + $0x498] sm:$0xff] %v472_v19  ;;  %v478_v22 = vld [vmem:[%s4332_s28 + $0xe10] sm:$0xff] }
  0x61   : > { %475 = vst [vmem:[%s4337_s29 + $0x4a0] sm:$0xff] %v474_v20  ;;  %477 = vst [vmem:[%s4337_s29 + $0x4a8] sm:$0xff] %v476_v21  ;;  %v480_v23 = vld [vmem:[%s4332_s28 + $0xe18] sm:$0xff]  ;;  %v482_v24 = vld [vmem:[%s4332_s28 + $0xe20] sm:$0xff] }
  0x62   : > { %479 = vst [vmem:[%s4337_s29 + $0x4b0] sm:$0xff] %v478_v22  ;;  %481 = vst [vmem:[%s4337_s29 + $0x4b8] sm:$0xff] %v480_v23  ;;  %v484_v25 = vld [vmem:[%s4332_s28 + $0xe58] sm:$0xff]  ;;  %v486_v26 = vld [vmem:[%s4332_s28 + $0xe60] sm:$0xff] }
  0x63   : > { %483 = vst [vmem:[%s4337_s29 + $0x4c0] sm:$0xff] %v482_v24  ;;  %v488_v27 = vld [vmem:[%s4332_s28 + $0xe68] sm:$0xff]  ;;  %485 = vst [vmem:[%s4337_s29 + $0x4c8] sm:$0xff] %v484_v25  ;;  %v490_v28 = vld [vmem:[%s4332_s28 + $0xea0] sm:$0xff] }
  0x64   : > { %487 = vst [vmem:[%s4337_s29 + $0x4d0] sm:$0xff] %v486_v26  ;;  %489 = vst [vmem:[%s4337_s29 + $0x4d8] sm:$0xff] %v488_v27  ;;  %v492_v29 = vld [vmem:[%s4332_s28 + $0xea8] sm:$0xff]  ;;  %v494_v30 = vld [vmem:[%s4332_s28 + $0xeb0] sm:$0xff] }
  0x65   : > { %491 = vst [vmem:[%s4337_s29 + $0x4e0] sm:$0xff] %v490_v28  ;;  %493 = vst [vmem:[%s4337_s29 + $0x4e8] sm:$0xff] %v492_v29  ;;  %v496_v31 = vld [vmem:[%s4332_s28 + $0xee8] sm:$0xff]  ;;  %v498_v32 = vld [vmem:[%s4332_s28 + $0xef0] sm:$0xff] }
  0x66   : > { %495 = vst [vmem:[%s4337_s29 + $0x4f0] sm:$0xff] %v494_v30  ;;  %v500_v33 = vld [vmem:[%s4332_s28 + $0xef8] sm:$0xff]  ;;  %497 = vst [vmem:[%s4337_s29 + $0x4f8] sm:$0xff] %v496_v31  ;;  %v502_v34 = vld [vmem:[%s4332_s28 + $0xf30] sm:$0xff] }
  0x67   : > { %499 = vst [vmem:[%s4337_s29 + $0x500] sm:$0xff] %v498_v32  ;;  %501 = vst [vmem:[%s4337_s29 + $0x508] sm:$0xff] %v500_v33  ;;  %v504_v35 = vld [vmem:[%s4332_s28 + $0xf38] sm:$0xff]  ;;  %v506_v36 = vld [vmem:[%s4332_s28 + $0xf40] sm:$0xff] }
  0x68   : > { %503 = vst [vmem:[%s4337_s29 + $0x510] sm:$0xff] %v502_v34  ;;  %505 = vst [vmem:[%s4337_s29 + $0x518] sm:$0xff] %v504_v35  ;;  %v508_v37 = vld [vmem:[%s4332_s28 + $0xf78] sm:$0xff]  ;;  %v510_v38 = vld [vmem:[%s4332_s28 + $0xf80] sm:$0xff] }
  0x69   : > { %507 = vst [vmem:[%s4337_s29 + $0x520] sm:$0xff] %v506_v36  ;;  %v512_v39 = vld [vmem:[%s4332_s28 + $0xf88] sm:$0xff]  ;;  %509 = vst [vmem:[%s4337_s29 + $0x528] sm:$0xff] %v508_v37  ;;  %v514_v40 = vld [vmem:[%s4332_s28 + $0xfc0] sm:$0xff] }
  0x6a   : > { %511 = vst [vmem:[%s4337_s29 + $0x530] sm:$0xff] %v510_v38  ;;  %513 = vst [vmem:[%s4337_s29 + $0x538] sm:$0xff] %v512_v39  ;;  %v516_v41 = vld [vmem:[%s4332_s28 + $0xfc8] sm:$0xff]  ;;  %v518_v42 = vld [vmem:[%s4332_s28 + $0xfd0] sm:$0xff] }
  0x6b   : > { %515 = vst [vmem:[%s4337_s29 + $0x540] sm:$0xff] %v514_v40  ;;  %517 = vst [vmem:[%s4337_s29 + $0x548] sm:$0xff] %v516_v41  ;;  %v520_v43 = vld [vmem:[%s4332_s28 + $0x1008] sm:$0xff]  ;;  %v522_v44 = vld [vmem:[%s4332_s28 + $0x1010] sm:$0xff] }
  0x6c   : > { %519 = vst [vmem:[%s4337_s29 + $0x550] sm:$0xff] %v518_v42  ;;  %v524_v45 = vld [vmem:[%s4332_s28 + $0x1018] sm:$0xff]  ;;  %521 = vst [vmem:[%s4337_s29 + $0x558] sm:$0xff] %v520_v43  ;;  %v526_v46 = vld [vmem:[%s4332_s28 + $0x1050] sm:$0xff] }
  0x6d   : > { %523 = vst [vmem:[%s4337_s29 + $0x560] sm:$0xff] %v522_v44  ;;  %525 = vst [vmem:[%s4337_s29 + $0x568] sm:$0xff] %v524_v45  ;;  %v528_v47 = vld [vmem:[%s4332_s28 + $0x1058] sm:$0xff]  ;;  %v530_v48 = vld [vmem:[%s4332_s28 + $0x1060] sm:$0xff] }
  0x6e   : > { %527 = vst [vmem:[%s4337_s29 + $0x570] sm:$0xff] %v526_v46  ;;  %529 = vst [vmem:[%s4337_s29 + $0x578] sm:$0xff] %v528_v47  ;;  %v532_v49 = vld [vmem:[%s4332_s28 + $0x1098] sm:$0xff]  ;;  %v534_v50 = vld [vmem:[%s4332_s28 + $0x10a0] sm:$0xff] }
  0x6f   : > { %531 = vst [vmem:[%s4337_s29 + $0x580] sm:$0xff] %v530_v48  ;;  %v536_v51 = vld [vmem:[%s4332_s28 + $0x10a8] sm:$0xff]  ;;  %533 = vst [vmem:[%s4337_s29 + $0x588] sm:$0xff] %v532_v49  ;;  %v538_v52 = vld [vmem:[%s4332_s28 + $0x10e0] sm:$0xff] }
  0x70   : > { %535 = vst [vmem:[%s4337_s29 + $0x590] sm:$0xff] %v534_v50  ;;  %537 = vst [vmem:[%s4337_s29 + $0x598] sm:$0xff] %v536_v51  ;;  %v540_v53 = vld [vmem:[%s4332_s28 + $0x10e8] sm:$0xff]  ;;  %v542_v54 = vld [vmem:[%s4332_s28 + $0x10f0] sm:$0xff] }
  0x71   : > { %539 = vst [vmem:[%s4337_s29 + $0x5a0] sm:$0xff] %v538_v52  ;;  %541 = vst [vmem:[%s4337_s29 + $0x5a8] sm:$0xff] %v540_v53  ;;  %v544_v55 = vld [vmem:[%s4332_s28 + $0x1128] sm:$0xff]  ;;  %v546_v56 = vld [vmem:[%s4332_s28 + $0x1130] sm:$0xff] }
  0x72   : > { %543 = vst [vmem:[%s4337_s29 + $0x5b0] sm:$0xff] %v542_v54  ;;  %v548_v57 = vld [vmem:[%s4332_s28 + $0x1138] sm:$0xff]  ;;  %545 = vst [vmem:[%s4337_s29 + $0x5b8] sm:$0xff] %v544_v55  ;;  %v550_v58 = vld [vmem:[%s4332_s28 + $0x1170] sm:$0xff] }
  0x73   : > { %547 = vst [vmem:[%s4337_s29 + $0x5c0] sm:$0xff] %v546_v56  ;;  %549 = vst [vmem:[%s4337_s29 + $0x5c8] sm:$0xff] %v548_v57  ;;  %v552_v59 = vld [vmem:[%s4332_s28 + $0x1178] sm:$0xff]  ;;  %v554_v60 = vld [vmem:[%s4332_s28 + $0x1180] sm:$0xff] }
  0x74   : > { %551 = vst [vmem:[%s4337_s29 + $0x5d0] sm:$0xff] %v550_v58  ;;  %553 = vst [vmem:[%s4337_s29 + $0x5d8] sm:$0xff] %v552_v59  ;;  %v556_v61 = vld [vmem:[%s4332_s28 + $0x11b8] sm:$0xff]  ;;  %v558_v62 = vld [vmem:[%s4332_s28 + $0x11c0] sm:$0xff] }
  0x75   : > { %555 = vst [vmem:[%s4337_s29 + $0x5e0] sm:$0xff] %v554_v60  ;;  %v560_v63 = vld [vmem:[%s4332_s28 + $0x11c8] sm:$0xff]  ;;  %557 = vst [vmem:[%s4337_s29 + $0x5e8] sm:$0xff] %v556_v61  ;;  %v562_v0 = vld [vmem:[%s4332_s28 + $0x1200] sm:$0xff] }
  0x76   : > { %559 = vst [vmem:[%s4337_s29 + $0x5f0] sm:$0xff] %v558_v62  ;;  %561 = vst [vmem:[%s4337_s29 + $0x5f8] sm:$0xff] %v560_v63  ;;  %v564_v1 = vld [vmem:[%s4332_s28 + $0x1208] sm:$0xff]  ;;  %v566_v2 = vld [vmem:[%s4332_s28 + $0x1210] sm:$0xff] }
  0x77   : > { %563 = vst [vmem:[%s4337_s29 + $0x600] sm:$0xff] %v562_v0  ;;  %565 = vst [vmem:[%s4337_s29 + $0x608] sm:$0xff] %v564_v1  ;;  %v568_v3 = vld [vmem:[%s4332_s28 + $0x1248] sm:$0xff]  ;;  %v570_v4 = vld [vmem:[%s4332_s28 + $0x1250] sm:$0xff] }
  0x78   : > { %567 = vst [vmem:[%s4337_s29 + $0x610] sm:$0xff] %v566_v2  ;;  %v572_v5 = vld [vmem:[%s4332_s28 + $0x1258] sm:$0xff]  ;;  %569 = vst [vmem:[%s4337_s29 + $0x618] sm:$0xff] %v568_v3  ;;  %v574_v6 = vld [vmem:[%s4332_s28 + $0x1290] sm:$0xff] }
  0x79   : > { %571 = vst [vmem:[%s4337_s29 + $0x620] sm:$0xff] %v570_v4  ;;  %573 = vst [vmem:[%s4337_s29 + $0x628] sm:$0xff] %v572_v5  ;;  %v576_v7 = vld [vmem:[%s4332_s28 + $0x1298] sm:$0xff]  ;;  %v578_v8 = vld [vmem:[%s4332_s28 + $0x12a0] sm:$0xff] }
  0x7a   : > { %575 = vst [vmem:[%s4337_s29 + $0x630] sm:$0xff] %v574_v6  ;;  %577 = vst [vmem:[%s4337_s29 + $0x638] sm:$0xff] %v576_v7  ;;  %v580_v9 = vld [vmem:[%s4332_s28 + $0x12d8] sm:$0xff]  ;;  %v582_v10 = vld [vmem:[%s4332_s28 + $0x12e0] sm:$0xff] }
  0x7b   : > { %579 = vst [vmem:[%s4337_s29 + $0x640] sm:$0xff] %v578_v8  ;;  %v584_v11 = vld [vmem:[%s4332_s28 + $0x12e8] sm:$0xff]  ;;  %581 = vst [vmem:[%s4337_s29 + $0x648] sm:$0xff] %v580_v9  ;;  %v586_v12 = vld [vmem:[%s4332_s28 + $0x1320] sm:$0xff] }
  0x7c   : > { %583 = vst [vmem:[%s4337_s29 + $0x650] sm:$0xff] %v582_v10  ;;  %585 = vst [vmem:[%s4337_s29 + $0x658] sm:$0xff] %v584_v11  ;;  %v588_v13 = vld [vmem:[%s4332_s28 + $0x1328] sm:$0xff]  ;;  %v590_v14 = vld [vmem:[%s4332_s28 + $0x1330] sm:$0xff] }
  0x7d   : > { %587 = vst [vmem:[%s4337_s29 + $0x660] sm:$0xff] %v586_v12  ;;  %589 = vst [vmem:[%s4337_s29 + $0x668] sm:$0xff] %v588_v13  ;;  %v592_v15 = vld [vmem:[%s4332_s28 + $0x1368] sm:$0xff]  ;;  %v594_v16 = vld [vmem:[%s4332_s28 + $0x1370] sm:$0xff] }
  0x7e   : > { %591 = vst [vmem:[%s4337_s29 + $0x670] sm:$0xff] %v590_v14  ;;  %v596_v17 = vld [vmem:[%s4332_s28 + $0x1378] sm:$0xff]  ;;  %593 = vst [vmem:[%s4337_s29 + $0x678] sm:$0xff] %v592_v15  ;;  %v598_v18 = vld [vmem:[%s4332_s28 + $0x13b0] sm:$0xff] }
  0x7f   : > { %595 = vst [vmem:[%s4337_s29 + $0x680] sm:$0xff] %v594_v16  ;;  %597 = vst [vmem:[%s4337_s29 + $0x688] sm:$0xff] %v596_v17  ;;  %v600_v19 = vld [vmem:[%s4332_s28 + $0x13b8] sm:$0xff]  ;;  %v602_v20 = vld [vmem:[%s4332_s28 + $0x13c0] sm:$0xff] }
  0x80   : > { %599 = vst [vmem:[%s4337_s29 + $0x690] sm:$0xff] %v598_v18  ;;  %601 = vst [vmem:[%s4337_s29 + $0x698] sm:$0xff] %v600_v19  ;;  %v604_v21 = vld [vmem:[%s4332_s28 + $0x13f8] sm:$0xff]  ;;  %v606_v22 = vld [vmem:[%s4332_s28 + $0x1400] sm:$0xff] }
  0x81   : > { %603 = vst [vmem:[%s4337_s29 + $0x6a0] sm:$0xff] %v602_v20  ;;  %v608_v23 = vld [vmem:[%s4332_s28 + $0x1408] sm:$0xff]  ;;  %605 = vst [vmem:[%s4337_s29 + $0x6a8] sm:$0xff] %v604_v21  ;;  %v610_v24 = vld [vmem:[%s4332_s28 + $0x1440] sm:$0xff] }
  0x82   : > { %607 = vst [vmem:[%s4337_s29 + $0x6b0] sm:$0xff] %v606_v22  ;;  %609 = vst [vmem:[%s4337_s29 + $0x6b8] sm:$0xff] %v608_v23  ;;  %v612_v25 = vld [vmem:[%s4332_s28 + $0x1448] sm:$0xff]  ;;  %v614_v26 = vld [vmem:[%s4332_s28 + $0x1450] sm:$0xff] }
  0x83   : > { %611 = vst [vmem:[%s4337_s29 + $0x6c0] sm:$0xff] %v610_v24  ;;  %613 = vst [vmem:[%s4337_s29 + $0x6c8] sm:$0xff] %v612_v25  ;;  %v616_v27 = vld [vmem:[%s4332_s28 + $0x1488] sm:$0xff]  ;;  %v618_v28 = vld [vmem:[%s4332_s28 + $0x1490] sm:$0xff] }
  0x84   : > { %615 = vst [vmem:[%s4337_s29 + $0x6d0] sm:$0xff] %v614_v26  ;;  %v620_v29 = vld [vmem:[%s4332_s28 + $0x1498] sm:$0xff]  ;;  %617 = vst [vmem:[%s4337_s29 + $0x6d8] sm:$0xff] %v616_v27  ;;  %v622_v30 = vld [vmem:[%s4332_s28 + $0x14d0] sm:$0xff] }
  0x85   : > { %619 = vst [vmem:[%s4337_s29 + $0x6e0] sm:$0xff] %v618_v28  ;;  %621 = vst [vmem:[%s4337_s29 + $0x6e8] sm:$0xff] %v620_v29  ;;  %v624_v31 = vld [vmem:[%s4332_s28 + $0x14d8] sm:$0xff]  ;;  %v626_v32 = vld [vmem:[%s4332_s28 + $0x14e0] sm:$0xff] }
  0x86   : > { %623 = vst [vmem:[%s4337_s29 + $0x6f0] sm:$0xff] %v622_v30  ;;  %625 = vst [vmem:[%s4337_s29 + $0x6f8] sm:$0xff] %v624_v31  ;;  %v628_v33 = vld [vmem:[%s4332_s28 + $0x1518] sm:$0xff]  ;;  %v630_v34 = vld [vmem:[%s4332_s28 + $0x1520] sm:$0xff] }
  0x87   : > { %627 = vst [vmem:[%s4337_s29 + $0x700] sm:$0xff] %v626_v32  ;;  %v632_v35 = vld [vmem:[%s4332_s28 + $0x1528] sm:$0xff]  ;;  %629 = vst [vmem:[%s4337_s29 + $0x708] sm:$0xff] %v628_v33  ;;  %v634_v36 = vld [vmem:[%s4332_s28 + $0x1560] sm:$0xff] }
  0x88   : > { %631 = vst [vmem:[%s4337_s29 + $0x710] sm:$0xff] %v630_v34  ;;  %633 = vst [vmem:[%s4337_s29 + $0x718] sm:$0xff] %v632_v35  ;;  %v636_v37 = vld [vmem:[%s4332_s28 + $0x1568] sm:$0xff]  ;;  %v638_v38 = vld [vmem:[%s4332_s28 + $0x1570] sm:$0xff] }
  0x89   : > { %635 = vst [vmem:[%s4337_s29 + $0x720] sm:$0xff] %v634_v36  ;;  %637 = vst [vmem:[%s4337_s29 + $0x728] sm:$0xff] %v636_v37  ;;  %v640_v39 = vld [vmem:[%s4332_s28 + $0x15a8] sm:$0xff]  ;;  %v642_v40 = vld [vmem:[%s4332_s28 + $0x15b0] sm:$0xff] }
  0x8a   : > { %639 = vst [vmem:[%s4337_s29 + $0x730] sm:$0xff] %v638_v38  ;;  %v644_v41 = vld [vmem:[%s4332_s28 + $0x15b8] sm:$0xff]  ;;  %641 = vst [vmem:[%s4337_s29 + $0x738] sm:$0xff] %v640_v39  ;;  %v646_v42 = vld [vmem:[%s4332_s28 + $0x15f0] sm:$0xff] }
  0x8b   : > { %643 = vst [vmem:[%s4337_s29 + $0x740] sm:$0xff] %v642_v40  ;;  %645 = vst [vmem:[%s4337_s29 + $0x748] sm:$0xff] %v644_v41  ;;  %v648_v43 = vld [vmem:[%s4332_s28 + $0x15f8] sm:$0xff]  ;;  %v650_v44 = vld [vmem:[%s4332_s28 + $0x1600] sm:$0xff] }
  0x8c   : > { %647 = vst [vmem:[%s4337_s29 + $0x750] sm:$0xff] %v646_v42  ;;  %649 = vst [vmem:[%s4337_s29 + $0x758] sm:$0xff] %v648_v43  ;;  %v652_v45 = vld [vmem:[%s4332_s28 + $0x1638] sm:$0xff]  ;;  %v654_v46 = vld [vmem:[%s4332_s28 + $0x1640] sm:$0xff] }
  0x8d   : > { %651 = vst [vmem:[%s4337_s29 + $0x760] sm:$0xff] %v650_v44  ;;  %v656_v47 = vld [vmem:[%s4332_s28 + $0x1648] sm:$0xff]  ;;  %653 = vst [vmem:[%s4337_s29 + $0x768] sm:$0xff] %v652_v45  ;;  %v658_v48 = vld [vmem:[%s4332_s28 + $0x1680] sm:$0xff] }
  0x8e   : > { %655 = vst [vmem:[%s4337_s29 + $0x770] sm:$0xff] %v654_v46  ;;  %657 = vst [vmem:[%s4337_s29 + $0x778] sm:$0xff] %v656_v47  ;;  %v660_v49 = vld [vmem:[%s4332_s28 + $0x1688] sm:$0xff]  ;;  %v662_v50 = vld [vmem:[%s4332_s28 + $0x1690] sm:$0xff] }
  0x8f   : > { %659 = vst [vmem:[%s4337_s29 + $0x780] sm:$0xff] %v658_v48  ;;  %661 = vst [vmem:[%s4337_s29 + $0x788] sm:$0xff] %v660_v49  ;;  %v664_v51 = vld [vmem:[%s4332_s28 + $0x16c8] sm:$0xff]  ;;  %v666_v52 = vld [vmem:[%s4332_s28 + $0x16d0] sm:$0xff] }
  0x90   : > { %663 = vst [vmem:[%s4337_s29 + $0x790] sm:$0xff] %v662_v50  ;;  %v668_v53 = vld [vmem:[%s4332_s28 + $0x16d8] sm:$0xff]  ;;  %665 = vst [vmem:[%s4337_s29 + $0x798] sm:$0xff] %v664_v51  ;;  %v670_v54 = vld [vmem:[%s4332_s28 + $0x1710] sm:$0xff] }
  0x91   : > { %667 = vst [vmem:[%s4337_s29 + $0x7a0] sm:$0xff] %v666_v52  ;;  %669 = vst [vmem:[%s4337_s29 + $0x7a8] sm:$0xff] %v668_v53  ;;  %v672_v55 = vld [vmem:[%s4332_s28 + $0x1718] sm:$0xff]  ;;  %v674_v56 = vld [vmem:[%s4332_s28 + $0x1720] sm:$0xff] }
  0x92   : > { %671 = vst [vmem:[%s4337_s29 + $0x7b0] sm:$0xff] %v670_v54  ;;  %673 = vst [vmem:[%s4337_s29 + $0x7b8] sm:$0xff] %v672_v55  ;;  %v676_v57 = vld [vmem:[%s4332_s28 + $0x1758] sm:$0xff]  ;;  %v678_v58 = vld [vmem:[%s4332_s28 + $0x1760] sm:$0xff] }
  0x93   : > { %675 = vst [vmem:[%s4337_s29 + $0x7c0] sm:$0xff] %v674_v56  ;;  %v680_v59 = vld [vmem:[%s4332_s28 + $0x1768] sm:$0xff]  ;;  %677 = vst [vmem:[%s4337_s29 + $0x7c8] sm:$0xff] %v676_v57  ;;  %v682_v60 = vld [vmem:[%s4332_s28 + $0x17a0] sm:$0xff] }
  0x94   : > { %679 = vst [vmem:[%s4337_s29 + $0x7d0] sm:$0xff] %v678_v58  ;;  %681 = vst [vmem:[%s4337_s29 + $0x7d8] sm:$0xff] %v680_v59  ;;  %v684_v61 = vld [vmem:[%s4332_s28 + $0x17a8] sm:$0xff]  ;;  %v686_v62 = vld [vmem:[%s4332_s28 + $0x17b0] sm:$0xff] }
  0x95   : > { %683 = vst [vmem:[%s4337_s29 + $0x7e0] sm:$0xff] %v682_v60  ;;  %685 = vst [vmem:[%s4337_s29 + $0x7e8] sm:$0xff] %v684_v61  ;;  %v688_v63 = vld [vmem:[%s4332_s28 + $0x17e8] sm:$0xff]  ;;  %v690_v0 = vld [vmem:[%s4332_s28 + $0x17f0] sm:$0xff] }
  0x96   : > { %687 = vst [vmem:[%s4337_s29 + $0x7f0] sm:$0xff] %v686_v62  ;;  %v692_v1 = vld [vmem:[%s4332_s28 + $0x17f8] sm:$0xff]  ;;  %689 = vst [vmem:[%s4337_s29 + $0x7f8] sm:$0xff] %v688_v63  ;;  %v694_v2 = vld [vmem:[%s4332_s28 + $0x1830] sm:$0xff] }
  0x97   : > { %691 = vst [vmem:[%s4337_s29 + $0x800] sm:$0xff] %v690_v0  ;;  %693 = vst [vmem:[%s4337_s29 + $0x808] sm:$0xff] %v692_v1  ;;  %v696_v3 = vld [vmem:[%s4332_s28 + $0x1838] sm:$0xff]  ;;  %v698_v4 = vld [vmem:[%s4332_s28 + $0x1840] sm:$0xff] }
  0x98   : > { %695 = vst [vmem:[%s4337_s29 + $0x810] sm:$0xff] %v694_v2  ;;  %697 = vst [vmem:[%s4337_s29 + $0x818] sm:$0xff] %v696_v3  ;;  %v700_v5 = vld [vmem:[%s4332_s28 + $0x1878] sm:$0xff]  ;;  %v702_v6 = vld [vmem:[%s4332_s28 + $0x1880] sm:$0xff] }
  0x99   : > { %699 = vst [vmem:[%s4337_s29 + $0x820] sm:$0xff] %v698_v4  ;;  %v704_v7 = vld [vmem:[%s4332_s28 + $0x1888] sm:$0xff]  ;;  %701 = vst [vmem:[%s4337_s29 + $0x828] sm:$0xff] %v700_v5  ;;  %v706_v8 = vld [vmem:[%s4332_s28 + $0x18c0] sm:$0xff] }
  0x9a   : > { %703 = vst [vmem:[%s4337_s29 + $0x830] sm:$0xff] %v702_v6  ;;  %705 = vst [vmem:[%s4337_s29 + $0x838] sm:$0xff] %v704_v7  ;;  %v708_v9 = vld [vmem:[%s4332_s28 + $0x18c8] sm:$0xff]  ;;  %v710_v10 = vld [vmem:[%s4332_s28 + $0x18d0] sm:$0xff] }
  0x9b   : > { %707 = vst [vmem:[%s4337_s29 + $0x840] sm:$0xff] %v706_v8  ;;  %709 = vst [vmem:[%s4337_s29 + $0x848] sm:$0xff] %v708_v9  ;;  %v712_v11 = vld [vmem:[%s4332_s28 + $0x1908] sm:$0xff]  ;;  %v714_v12 = vld [vmem:[%s4332_s28 + $0x1910] sm:$0xff] }
  0x9c   : > { %711 = vst [vmem:[%s4337_s29 + $0x850] sm:$0xff] %v710_v10  ;;  %v716_v13 = vld [vmem:[%s4332_s28 + $0x1918] sm:$0xff]  ;;  %713 = vst [vmem:[%s4337_s29 + $0x858] sm:$0xff] %v712_v11  ;;  %v718_v14 = vld [vmem:[%s4332_s28 + $0x1950] sm:$0xff] }
  0x9d   : > { %715 = vst [vmem:[%s4337_s29 + $0x860] sm:$0xff] %v714_v12  ;;  %717 = vst [vmem:[%s4337_s29 + $0x868] sm:$0xff] %v716_v13  ;;  %v720_v15 = vld [vmem:[%s4332_s28 + $0x1958] sm:$0xff]  ;;  %v722_v16 = vld [vmem:[%s4332_s28 + $0x1960] sm:$0xff] }
  0x9e   : > { %719 = vst [vmem:[%s4337_s29 + $0x870] sm:$0xff] %v718_v14  ;;  %721 = vst [vmem:[%s4337_s29 + $0x878] sm:$0xff] %v720_v15  ;;  %v724_v17 = vld [vmem:[%s4332_s28 + $0x1998] sm:$0xff]  ;;  %v726_v18 = vld [vmem:[%s4332_s28 + $0x19a0] sm:$0xff] }
  0x9f   : > { %723 = vst [vmem:[%s4337_s29 + $0x880] sm:$0xff] %v722_v16  ;;  %v728_v19 = vld [vmem:[%s4332_s28 + $0x19a8] sm:$0xff]  ;;  %725 = vst [vmem:[%s4337_s29 + $0x888] sm:$0xff] %v724_v17  ;;  %v730_v20 = vld [vmem:[%s4332_s28 + $0x19e0] sm:$0xff] }
  0xa0   : > { %727 = vst [vmem:[%s4337_s29 + $0x890] sm:$0xff] %v726_v18  ;;  %729 = vst [vmem:[%s4337_s29 + $0x898] sm:$0xff] %v728_v19  ;;  %v732_v21 = vld [vmem:[%s4332_s28 + $0x19e8] sm:$0xff]  ;;  %v734_v22 = vld [vmem:[%s4332_s28 + $0x19f0] sm:$0xff] }
  0xa1   : > { %731 = vst [vmem:[%s4337_s29 + $0x8a0] sm:$0xff] %v730_v20  ;;  %733 = vst [vmem:[%s4337_s29 + $0x8a8] sm:$0xff] %v732_v21  ;;  %v736_v23 = vld [vmem:[%s4332_s28 + $0x1a28] sm:$0xff]  ;;  %v738_v24 = vld [vmem:[%s4332_s28 + $0x1a30] sm:$0xff] }
  0xa2   : > { %735 = vst [vmem:[%s4337_s29 + $0x8b0] sm:$0xff] %v734_v22  ;;  %v740_v25 = vld [vmem:[%s4332_s28 + $0x1a38] sm:$0xff]  ;;  %737 = vst [vmem:[%s4337_s29 + $0x8b8] sm:$0xff] %v736_v23  ;;  %v742_v26 = vld [vmem:[%s4332_s28 + $0x1a70] sm:$0xff] }
  0xa3   : > { %739 = vst [vmem:[%s4337_s29 + $0x8c0] sm:$0xff] %v738_v24  ;;  %741 = vst [vmem:[%s4337_s29 + $0x8c8] sm:$0xff] %v740_v25  ;;  %v744_v27 = vld [vmem:[%s4332_s28 + $0x1a78] sm:$0xff]  ;;  %v746_v28 = vld [vmem:[%s4332_s28 + $0x1a80] sm:$0xff] }
  0xa4   : > { %743 = vst [vmem:[%s4337_s29 + $0x8d0] sm:$0xff] %v742_v26  ;;  %745 = vst [vmem:[%s4337_s29 + $0x8d8] sm:$0xff] %v744_v27  ;;  %v748_v29 = vld [vmem:[%s4332_s28 + $0x1ab8] sm:$0xff]  ;;  %v750_v30 = vld [vmem:[%s4332_s28 + $0x1ac0] sm:$0xff] }
  0xa5   : > { %747 = vst [vmem:[%s4337_s29 + $0x8e0] sm:$0xff] %v746_v28  ;;  %v752_v31 = vld [vmem:[%s4332_s28 + $0x1ac8] sm:$0xff]  ;;  %749 = vst [vmem:[%s4337_s29 + $0x8e8] sm:$0xff] %v748_v29 }
  0xa6   : > { %751 = vst [vmem:[%s4337_s29 + $0x8f0] sm:$0xff] %v750_v30  ;;  %753 = vst [vmem:[%s4337_s29 + $0x8f8] sm:$0xff] %v752_v31 }
  0xa7 PF: > { %p3327_p8 = scmp.ge.s32.totalorder %s4262_s16, 1  ;;  %p766_p9 = scmp.lt.s32.totalorder %s4262_s16, 4 }
  0xa9   : > { %p767_p10 = pnand %p3327_p8, %p766_p9 }
  0xaa   : > { %s773_s30 = sand.u32 (!%p767_p10), 1, %s4246_s12   ;;  %v821_v32 = vld [vmem:[%s5432_s0 + $0x8] sm:$0xff] (!%p767_p10)  ;;  %v827_v33 = vld [vmem:[%s5432_s0 + $0x38] sm:$0xff] (!%p767_p10)  ;;  %s813_s28 = smul.u32 (!%p767_p10), 6, %s4254_s14 }
  0xab   : > { %770 = sbr.rel (%p767_p10) target bundleno = 725 (0x2d5), region = 51  ;;  %v4923_v34 = vpack.c.bf16 (!%p767_p10), %v827_v33, %v821_v32  ;;  %v823_v35 = vld [vmem:[%s5432_s0 + $0x18] sm:$0xff] (!%p767_p10)  ;;  %v829_v36 = vld [vmem:[%s5432_s0 + $0x48] sm:$0xff] (!%p767_p10) }
  0xac   : > { %s3750_s8 = smul.u32 (!%p767_p10), 2304, %s773_s30  ;;  %v4931_v37 = vpack.c.bf16 (!%p767_p10), %v829_v36, %v823_v35  ;;  %p814_p11 = scmp.lt.s32.totalorder (!%p767_p10), %s813_s28, 17 }
  0xad   : > { %2648 = vmatprep.mubr.bf16.mxu1 (!%p767_p10), %v4923_v34 }
  0xae   : > { %s4934_s19 = scalar_lea.vmem (!%p767_p10), [#allocation2], %s3750_s8  ;;  %2701 = vmatprep.mubr.bf16.mxu0 (!%p767_p10), %v4931_v37 }
  0xaf   : > { %v3792_v38 = vld [vmem:[%s4934_s19 + $0x4] ss:$24 sps:$4 sm:$0xff] (!%p767_p10)   ;;  %v3796_v40 = vld [vmem:[%s4934_s19] ss:$24 sps:$4 sm:$0xff] (!%p767_p10)   ;;  %v3798_v42 = vld [vmem:[%s4934_s19 + $0x34] ss:$24 sps:$4 sm:$0xff] (!%p767_p10)  }
  0xb0   : > { %v3794_v39 = vld [vmem:[%s4934_s19 + $0x304] ss:$24 sps:$4 sm:$0xff] (!%p767_p10)   ;;  %2616 = vmatprep.subr.bf16.mxu1 (!%p767_p10), %v3792_v38  ;;  %v3797_v41 = vld [vmem:[%s4934_s19 + $0x300] ss:$24 sps:$4 sm:$0xff] (!%p767_p10)   ;;  %v3800_v43 = vld [vmem:[%s4934_s19 + $0x334] ss:$24 sps:$4 sm:$0xff] (!%p767_p10)  }
  0xb1   : > { %2669 = vmatprep.subr.bf16.mxu0 (!%p767_p10), %v3794_v39  ;;  %2617 = vmatpush1.bf16.msra.mxu1 (!%p767_p10), %v3796_v40  ;;  %v3802_v44 = vld [vmem:[%s4934_s19 + $0x30] ss:$24 sps:$4 sm:$0xff] (!%p767_p10)   ;;  %v3804_v46 = vld [vmem:[%s4934_s19 + $0x64] ss:$24 sps:$4 sm:$0xff] (!%p767_p10)   ;;  %v3808_v48 = vld [vmem:[%s4934_s19 + $0x60] ss:$24 sps:$4 sm:$0xff] (!%p767_p10)  }
  0xb2   : > { %2670 = vmatpush1.bf16.msra.mxu0 %v3797_v41  ;;  %2618 = vmatprep.subr.bf16.mxu1 %v3798_v42  ;;  %v3803_v45 = vld [vmem:[%s4934_s19 + $0x330] ss:$24 sps:$4 sm:$0xff]   ;;  %v3806_v47 = vld [vmem:[%s4934_s19 + $0x364] ss:$24 sps:$4 sm:$0xff]   ;;  %v3809_v49 = vld [vmem:[%s4934_s19 + $0x360] ss:$24 sps:$4 sm:$0xff]  }
  0xb3   : > { %2671 = vmatprep.subr.bf16.mxu0 %v3800_v43  ;;  %v3810_v50 = vld [vmem:[%s4934_s19 + $0x94] ss:$24 sps:$4 sm:$0xff]   ;;  %v3814_v52 = vld [vmem:[%s4934_s19 + $0x90] ss:$24 sps:$4 sm:$0xff]   ;;  %v3816_v54 = vld [vmem:[%s4934_s19 + $0xc4] ss:$24 sps:$4 sm:$0xff]  }
  0xb4   : > { %v3812_v51 = vld [vmem:[%s4934_s19 + $0x394] ss:$24 sps:$4 sm:$0xff]   ;;  %v3815_v53 = vld [vmem:[%s4934_s19 + $0x390] ss:$24 sps:$4 sm:$0xff]   ;;  %v3818_v55 = vld [vmem:[%s4934_s19 + $0x3c4] ss:$24 sps:$4 sm:$0xff]  }
  0xb5   : > { %2619 = vmatpush1.bf16.msra.mxu1 %v3802_v44  ;;  %v3820_v56 = vld [vmem:[%s4934_s19 + $0xc0] ss:$24 sps:$4 sm:$0xff]   ;;  %v3822_v58 = vld [vmem:[%s4934_s19 + $0xf4] ss:$24 sps:$4 sm:$0xff]   ;;  %v3826_v60 = vld [vmem:[%s4934_s19 + $0xf0] ss:$24 sps:$4 sm:$0xff]  }
  0xb6   : > { %2672 = vmatpush1.bf16.msra.mxu0 %v3803_v45  ;;  %2620 = vmatprep.subr.bf16.mxu1 %v3804_v46  ;;  %v3821_v57 = vld [vmem:[%s4934_s19 + $0x3c0] ss:$24 sps:$4 sm:$0xff]   ;;  %v3824_v59 = vld [vmem:[%s4934_s19 + $0x3f4] ss:$24 sps:$4 sm:$0xff]   ;;  %v3827_v61 = vld [vmem:[%s4934_s19 + $0x3f0] ss:$24 sps:$4 sm:$0xff]  }
  0xb7   : > { %2673 = vmatprep.subr.bf16.mxu0 %v3806_v47  ;;  %v3828_v62 = vld [vmem:[%s4934_s19 + $0x124] ss:$24 sps:$4 sm:$0xff]   ;;  %v3832_v0 = vld [vmem:[%s4934_s19 + $0x120] ss:$24 sps:$4 sm:$0xff]   ;;  %v3834_v2 = vld [vmem:[%s4934_s19 + $0x154] ss:$24 sps:$4 sm:$0xff]  }
  0xb8   : > { %v3830_v63 = vld [vmem:[%s4934_s19 + $0x424] ss:$24 sps:$4 sm:$0xff]   ;;  %v3833_v1 = vld [vmem:[%s4934_s19 + $0x420] ss:$24 sps:$4 sm:$0xff]   ;;  %v3836_v3 = vld [vmem:[%s4934_s19 + $0x454] ss:$24 sps:$4 sm:$0xff]  }
  0xb9   : > { %2621 = vmatpush1.bf16.msra.mxu1 %v3808_v48  ;;  %v3838_v4 = vld [vmem:[%s4934_s19 + $0x150] ss:$24 sps:$4 sm:$0xff]   ;;  %v3840_v6 = vld [vmem:[%s4934_s19 + $0x184] ss:$24 sps:$4 sm:$0xff]   ;;  %v3844_v8 = vld [vmem:[%s4934_s19 + $0x180] ss:$24 sps:$4 sm:$0xff]  }
  0xba   : > { %2674 = vmatpush1.bf16.msra.mxu0 %v3809_v49  ;;  %2622 = vmatprep.subr.bf16.mxu1 %v3810_v50  ;;  %v3839_v5 = vld [vmem:[%s4934_s19 + $0x450] ss:$24 sps:$4 sm:$0xff]   ;;  %v3842_v7 = vld [vmem:[%s4934_s19 + $0x484] ss:$24 sps:$4 sm:$0xff]   ;;  %v3845_v9 = vld [vmem:[%s4934_s19 + $0x480] ss:$24 sps:$4 sm:$0xff]  }
  0xbb   : > { %2675 = vmatprep.subr.bf16.mxu0 %v3812_v51  ;;  %v3846_v10 = vld [vmem:[%s4934_s19 + $0x1b4] ss:$24 sps:$4 sm:$0xff]   ;;  %v3850_v12 = vld [vmem:[%s4934_s19 + $0x1b0] ss:$24 sps:$4 sm:$0xff]   ;;  %v3852_v14 = vld [vmem:[%s4934_s19 + $0x1e4] ss:$24 sps:$4 sm:$0xff]  }
  0xbc   : > { %v3848_v11 = vld [vmem:[%s4934_s19 + $0x4b4] ss:$24 sps:$4 sm:$0xff]   ;;  %v3851_v13 = vld [vmem:[%s4934_s19 + $0x4b0] ss:$24 sps:$4 sm:$0xff]   ;;  %v3854_v15 = vld [vmem:[%s4934_s19 + $0x4e4] ss:$24 sps:$4 sm:$0xff]  }
  0xbd   : > { %2623 = vmatpush1.bf16.msra.mxu1 %v3814_v52  ;;  %v3856_v16 = vld [vmem:[%s4934_s19 + $0x1e0] ss:$24 sps:$4 sm:$0xff]   ;;  %v3858_v18 = vld [vmem:[%s4934_s19 + $0x214] ss:$24 sps:$4 sm:$0xff]   ;;  %v3862_v20 = vld [vmem:[%s4934_s19 + $0x210] ss:$24 sps:$4 sm:$0xff]  }
  0xbe   : > { %2676 = vmatpush1.bf16.msra.mxu0 %v3815_v53  ;;  %2624 = vmatprep.subr.bf16.mxu1 %v3816_v54  ;;  %v3857_v17 = vld [vmem:[%s4934_s19 + $0x4e0] ss:$24 sps:$4 sm:$0xff]   ;;  %v3860_v19 = vld [vmem:[%s4934_s19 + $0x514] ss:$24 sps:$4 sm:$0xff]   ;;  %v3863_v21 = vld [vmem:[%s4934_s19 + $0x510] ss:$24 sps:$4 sm:$0xff]  }
  0xbf   : > { %2677 = vmatprep.subr.bf16.mxu0 %v3818_v55  ;;  %v3864_v22 = vld [vmem:[%s4934_s19 + $0x244] ss:$24 sps:$4 sm:$0xff]   ;;  %v3868_v24 = vld [vmem:[%s4934_s19 + $0x240] ss:$24 sps:$4 sm:$0xff]   ;;  %v3870_v26 = vld [vmem:[%s4934_s19 + $0x274] ss:$24 sps:$4 sm:$0xff]  }
  0xc0   : > { %v3866_v23 = vld [vmem:[%s4934_s19 + $0x544] ss:$24 sps:$4 sm:$0xff]   ;;  %v3869_v25 = vld [vmem:[%s4934_s19 + $0x540] ss:$24 sps:$4 sm:$0xff]   ;;  %v3872_v27 = vld [vmem:[%s4934_s19 + $0x574] ss:$24 sps:$4 sm:$0xff]  }
  0xc1   : > { %2625 = vmatpush1.bf16.msra.mxu1 %v3820_v56  ;;  %v3874_v28 = vld [vmem:[%s4934_s19 + $0x270] ss:$24 sps:$4 sm:$0xff]   ;;  %v3876_v30 = vld [vmem:[%s4934_s19 + $0x2a4] ss:$24 sps:$4 sm:$0xff]   ;;  %v3880_v32 = vld [vmem:[%s4934_s19 + $0x2a0] ss:$24 sps:$4 sm:$0xff]  }
  0xc2   : > { %2678 = vmatpush1.bf16.msra.mxu0 %v3821_v57  ;;  %2626 = vmatprep.subr.bf16.mxu1 %v3822_v58  ;;  %v3875_v29 = vld [vmem:[%s4934_s19 + $0x570] ss:$24 sps:$4 sm:$0xff]   ;;  %v3878_v31 = vld [vmem:[%s4934_s19 + $0x5a4] ss:$24 sps:$4 sm:$0xff]   ;;  %v3881_v33 = vld [vmem:[%s4934_s19 + $0x5a0] ss:$24 sps:$4 sm:$0xff]  }
  0xc3   : > { %2679 = vmatprep.subr.bf16.mxu0 %v3824_v59  ;;  %v3882_v35 = vld [vmem:[%s4934_s19 + $0x2d4] ss:$24 sps:$4 sm:$0xff]   ;;  %v820_v38 = vld [vmem:[%s5432_s0] sm:$0xff]  ;;  %v3886_v42 = vld [vmem:[%s4934_s19 + $0x2d0] ss:$24 sps:$4 sm:$0xff]   ;;  %s5444_s28 = smov (!%p814_p11, %s813_s28), 17 }
  0xc4   : > { %v3884_v36 = vld [vmem:[%s4934_s19 + $0x5d4] ss:$24 sps:$4 sm:$0xff]   ;;  %v828_v41 = vld [vmem:[%s5432_s0 + $0x40] sm:$0xff]  ;;  %v3887_v43 = vld [vmem:[%s4934_s19 + $0x5d0] ss:$24 sps:$4 sm:$0xff]   ;;  %s816_s5 = scalar_lea.vmem %s5434_s2, %s5444_s28  ;;  %s3644_s12 = smul.u32 (%p4319_p6), 24, %s4254_s14 }
  0xc5   : > { %2627 = vmatpush1.bf16.msra.mxu1 %v3826_v60  ;;  %v826_v39 = vld [vmem:[%s5432_s0 + $0x30] sm:$0xff]  ;;  %v3890_v44 = vld [vmem:[%s4934_s19 + $0x604] ss:$24 sps:$4 sm:$0xff]   ;;  %v833_v46 = vld [vmem:[%s5432_s0 + $0x68] sm:$0xff] }
  0xc6   : > { %2680 = vmatpush1.bf16.msra.mxu0 %v3827_v61  ;;  %2628 = vmatprep.subr.bf16.mxu1 %v3828_v62  ;;  %v822_v40 = vld [vmem:[%s5432_s0 + $0x10] sm:$0xff]  ;;  %v3893_v45 = vld [vmem:[%s4934_s19 + $0xc] ss:$24 sps:$4 sm:$0xff]   ;;  %v839_v47 = vld [vmem:[%s5432_s0 + $0x98] sm:$0xff]  ;;  %v5021_v48 = vpack.c.bf16 %v826_v39, %v820_v38  ;;  %s3189_s7 = scalar_lea.vmem (%p4319_p6), %s5435_s3, %s3644_s12 }
  0xc7   : > { %2681 = vmatprep.subr.bf16.mxu0 %v3830_v63  ;;  %v3888_v49 = vld [vmem:[%s4934_s19 + $0x600] ss:$24 sps:$4 sm:$0xff]   ;;  %v5025_v51 = vpack.c.bf16 %v828_v41, %v822_v40  ;;  %v3896_v52 = vld [vmem:[%s4934_s19 + $0x634] ss:$24 sps:$4 sm:$0xff]   ;;  %v5029_v54 = vpack.c.bf16 %v839_v47, %v833_v46  ;;  %v3894_v57 = vld [vmem:[%s4934_s19 + $0x630] ss:$24 sps:$4 sm:$0xff]  }
  0xc8   : > { %v3891_v50 = vld [vmem:[%s4934_s19 + $0x8] ss:$24 sps:$4 sm:$0xff]   ;;  %v3899_v53 = vld [vmem:[%s4934_s19 + $0x3c] ss:$24 sps:$4 sm:$0xff]   ;;  %v3897_v58 = vld [vmem:[%s4934_s19 + $0x38] ss:$24 sps:$4 sm:$0xff]  }
  0xc9   : > { %2629 = vmatpush1.bf16.msra.mxu1 %v3832_v0  ;;  %v832_v55 = vld [vmem:[%s5432_s0 + $0x60] sm:$0xff]  ;;  %v838_v56 = vld [vmem:[%s5432_s0 + $0x90] sm:$0xff] }
  0xca   : > { %2682 = vmatpush1.bf16.msra.mxu0 %v3833_v1  ;;  %2630 = vmatprep.subr.bf16.mxu1 %v3834_v2  ;;  %v3902_v59 = vld [vmem:[%s4934_s19 + $0x664] ss:$24 sps:$4 sm:$0xff]   ;;  %v3900_v61 = vld [vmem:[%s4934_s19 + $0x660] ss:$24 sps:$4 sm:$0xff]   ;;  %v5046_v63 = vpack.c.bf16 %v838_v56, %v832_v55  ;;  %v3908_v0 = vld [vmem:[%s4934_s19 + $0x694] ss:$24 sps:$4 sm:$0xff]  }
  0xcb   : > { %2683 = vmatprep.subr.bf16.mxu0 %v3836_v3  ;;  %v3905_v60 = vld [vmem:[%s4934_s19 + $0x6c] ss:$24 sps:$4 sm:$0xff]   ;;  %v3903_v62 = vld [vmem:[%s4934_s19 + $0x68] ss:$24 sps:$4 sm:$0xff]   ;;  %v3911_v1 = vld [vmem:[%s4934_s19 + $0x9c] ss:$24 sps:$4 sm:$0xff]  }
  0xcc   : > { %v3906_v2 = vld [vmem:[%s4934_s19 + $0x690] ss:$24 sps:$4 sm:$0xff]   ;;  %v3950_v39 = vld [vmem:[%s4934_s19 + $0x7e4] ss:$24 sps:$4 sm:$0xff]   ;;  %v3948_v41 = vld [vmem:[%s4934_s19 + $0x7e0] ss:$24 sps:$4 sm:$0xff]  }
  0xcd   : > { %2631 = vmatpush1.bf16.msra.mxu1 %v3838_v4  ;;  %v3909_v3 = vld [vmem:[%s4934_s19 + $0x98] ss:$24 sps:$4 sm:$0xff]   ;;  %v3914_v4 = vld [vmem:[%s4934_s19 + $0x6c4] ss:$24 sps:$4 sm:$0xff]  }
  0xce   : > { %2684 = vmatpush1.bf16.msra.mxu0 %v3839_v5  ;;  %2632 = vmatprep.subr.bf16.mxu1 %v3840_v6  ;;  %v3917_v5 = vld [vmem:[%s4934_s19 + $0xcc] ss:$24 sps:$4 sm:$0xff]   ;;  %v3912_v6 = vld [vmem:[%s4934_s19 + $0x6c0] ss:$24 sps:$4 sm:$0xff]   ;;  %v3971_v55 = vld [vmem:[%s4934_s19 + $0x27c] ss:$24 sps:$4 sm:$0xff]  }
  0xcf   : > { %2685 = vmatprep.subr.bf16.mxu0 %v3842_v7  ;;  %v3915_v7 = vld [vmem:[%s4934_s19 + $0xc8] ss:$24 sps:$4 sm:$0xff]   ;;  %v3945_v38 = vld [vmem:[%s4934_s19 + $0x1b8] ss:$24 sps:$4 sm:$0xff]   ;;  %v3953_v40 = vld [vmem:[%s4934_s19 + $0x1ec] ss:$24 sps:$4 sm:$0xff]  }
  0xd0   : > { %v3957_v46 = vld [vmem:[%s4934_s19 + $0x218] ss:$24 sps:$4 sm:$0xff]   ;;  %v3962_v47 = vld [vmem:[%s4934_s19 + $0x844] ss:$24 sps:$4 sm:$0xff]  }
  0xd1   : > { %2633 = vmatpush1.bf16.msra.mxu1 %v3844_v8  ;;  %v3920_v8 = vld [vmem:[%s4934_s19 + $0x6f4] ss:$24 sps:$4 sm:$0xff]   ;;  %v3966_v56 = vld [vmem:[%s4934_s19 + $0x870] ss:$24 sps:$4 sm:$0xff]  }
  0xd2   : > { %2686 = vmatpush1.bf16.msra.mxu0 %v3845_v9  ;;  %2634 = vmatprep.subr.bf16.mxu1 %v3846_v10  ;;  %v3923_v9 = vld [vmem:[%s4934_s19 + $0xfc] ss:$24 sps:$4 sm:$0xff]  }
  0xd3   : > { %2687 = vmatprep.subr.bf16.mxu0 %v3848_v11  ;;  %v835_v10 = vld [vmem:[%s5432_s0 + $0x78] sm:$0xff]  ;;  %v841_v11 = vld [vmem:[%s5432_s0 + $0xa8] sm:$0xff] }
  0xd5   : > { %2635 = vmatpush1.bf16.msra.mxu1 %v3850_v12  ;;  %v834_v12 = vld [vmem:[%s5432_s0 + $0x70] sm:$0xff] }
  0xd6   : > { %2688 = vmatpush1.bf16.msra.mxu0 %v3851_v13  ;;  %2636 = vmatprep.subr.bf16.mxu1 %v3852_v14  ;;  %v5069_v13 = vpack.c.bf16 %v841_v11, %v835_v10  ;;  %v840_v14 = vld [vmem:[%s5432_s0 + $0xa0] sm:$0xff]  ;;  %v837_v10 = vld [vmem:[%s5432_s0 + $0x88] sm:$0xff]  ;;  %v843_v11 = vld [vmem:[%s5432_s0 + $0xb8] sm:$0xff] }
  0xd7   : > { %2689 = vmatprep.subr.bf16.mxu0 %v3854_v15  ;;  %v5074_v15 = vpack.c.bf16 %v840_v14, %v834_v12  ;;  %v3992_v12 = vld [vmem:[%s4934_s19 + $0x33c] ss:$24 sps:$4 sm:$0xff]  }
  0xd8   : > { %v3995_v14 = vld [vmem:[%s4934_s19 + $0x44] ss:$24 sps:$4 sm:$0xff]  }
  0xd9   : > { %2637 = vmatpush1.bf16.msra.mxu1 %v3856_v16  ;;  %v3918_v16 = vld [vmem:[%s4934_s19 + $0x6f0] ss:$24 sps:$4 sm:$0xff]  }
  0xda   : > { %2690 = vmatpush1.bf16.msra.mxu0 %v3857_v17  ;;  %2638 = vmatprep.subr.bf16.mxu1 %v3858_v18  ;;  %v3921_v17 = vld [vmem:[%s4934_s19 + $0xf8] ss:$24 sps:$4 sm:$0xff]   ;;  %v3926_v18 = vld [vmem:[%s4934_s19 + $0x724] ss:$24 sps:$4 sm:$0xff]  }
  0xdb   : > { %2691 = vmatprep.subr.bf16.mxu0 %v3860_v19  ;;  %v3929_v19 = vld [vmem:[%s4934_s19 + $0x12c] ss:$24 sps:$4 sm:$0xff]  }
  0xdd   : > { %2639 = vmatpush1.bf16.msra.mxu1 %v3862_v20  ;;  %v825_v20 = vld [vmem:[%s5432_s0 + $0x28] sm:$0xff] }
  0xde   : > { %2692 = vmatpush1.bf16.msra.mxu0 %v3863_v21  ;;  %2640 = vmatprep.subr.bf16.mxu1 %v3864_v22  ;;  %v3924_v21 = vld [vmem:[%s4934_s19 + $0x720] ss:$24 sps:$4 sm:$0xff]  }
  0xdf   : > { %2693 = vmatprep.subr.bf16.mxu0 %v3866_v23  ;;  %v3927_v22 = vld [vmem:[%s4934_s19 + $0x128] ss:$24 sps:$4 sm:$0xff]   ;;  %v831_v23 = vld [vmem:[%s5432_s0 + $0x58] sm:$0xff] }
  0xe1   : > { %2641 = vmatpush1.bf16.msra.mxu1 %v3868_v24  ;;  %v3932_v24 = vld [vmem:[%s4934_s19 + $0x754] ss:$24 sps:$4 sm:$0xff]  }
  0xe2   : > { %2694 = vmatpush1.bf16.msra.mxu0 %v3869_v25  ;;  %2642 = vmatprep.subr.bf16.mxu1 %v3870_v26  ;;  %v5091_v25 = vpack.c.bf16 %v831_v23, %v825_v20  ;;  %v3935_v26 = vld [vmem:[%s4934_s19 + $0x15c] ss:$24 sps:$4 sm:$0xff]  }
  0xe3   : > { %2695 = vmatprep.subr.bf16.mxu0 %v3872_v27  ;;  %v3930_v27 = vld [vmem:[%s4934_s19 + $0x750] ss:$24 sps:$4 sm:$0xff]  }
  0xe4   : > { %v842_v20 = vld [vmem:[%s5432_s0 + $0xb0] sm:$0xff] }
  0xe5   : > { %2643 = vmatpush1.bf16.msra.mxu1 %v3874_v28  ;;  %v3933_v28 = vld [vmem:[%s4934_s19 + $0x158] ss:$24 sps:$4 sm:$0xff]  }
  0xe6   : > { %2696 = vmatpush1.bf16.msra.mxu0 %v3875_v29  ;;  %2644 = vmatprep.subr.bf16.mxu1 %v3876_v30  ;;  %v3938_v29 = vld [vmem:[%s4934_s19 + $0x784] ss:$24 sps:$4 sm:$0xff]  }
  0xe7   : > { %2697 = vmatprep.subr.bf16.mxu0 %v3878_v31  ;;  %v3941_v30 = vld [vmem:[%s4934_s19 + $0x18c] ss:$24 sps:$4 sm:$0xff]   ;;  %v3936_v31 = vld [vmem:[%s4934_s19 + $0x780] ss:$24 sps:$4 sm:$0xff]  }
  0xe9   : > { %2645 = vmatpush1.bf16.msra.mxu1 %v3880_v32  ;;  %v3939_v32 = vld [vmem:[%s4934_s19 + $0x188] ss:$24 sps:$4 sm:$0xff]  }
  0xea   : > { %2698 = vmatpush1.bf16.msra.mxu0 %v3881_v33  ;;  %2646 = vmatprep.subr.bf16.mxu1 %v3882_v35  ;;  %v3944_v33 = vld [vmem:[%s4934_s19 + $0x7b4] ss:$24 sps:$4 sm:$0xff]  }
  0xeb   : > { %2699 = vmatprep.subr.bf16.mxu0 %v3884_v36  ;;  %v3947_v35 = vld [vmem:[%s4934_s19 + $0x1bc] ss:$24 sps:$4 sm:$0xff]   ;;  %v3942_v36 = vld [vmem:[%s4934_s19 + $0x7b0] ss:$24 sps:$4 sm:$0xff]  }
  0xed   : > { %2647 = vmatpush1.bf16.msra.mxu1 %v3886_v42  ;;  %v3951_v42 = vld [vmem:[%s4934_s19 + $0x1e8] ss:$24 sps:$4 sm:$0xff]  }
  0xee   : > { %2700 = vmatpush1.bf16.msra.mxu0 %v3887_v43  ;;  %2775 = vmatprep.subr.bf16.mxu1 %v3893_v45  ;;  %v3956_v43 = vld [vmem:[%s4934_s19 + $0x814] ss:$24 sps:$4 sm:$0xff]   ;;  %v3954_v45 = vld [vmem:[%s4934_s19 + $0x810] ss:$24 sps:$4 sm:$0xff]  }
  0xef   : > { %2722 = vmatprep.subr.bf16.mxu0 %v3890_v44  ;;  %v3959_v44 = vld [vmem:[%s4934_s19 + $0x21c] ss:$24 sps:$4 sm:$0xff]  }
  0xf0   : > { %2649 = vmatmul.mubr.bf16.vlgmr.msra.gmra.mrb[0].mxu1 %v5021_v48 }
  0xf1   : > { %2702 = vmatmul.mubr.bf16.vlgmr.msra.gmra.mrb[0].mxu0 %v5025_v51  ;;  %2776 = vmatpush1.bf16.msra.mxu1 %v3891_v50  ;;  %v3960_v50 = vld [vmem:[%s4934_s19 + $0x840] ss:$24 sps:$4 sm:$0xff]  }
  0xf2   : > { %2723 = vmatpush1.bf16.msra.mxu0 %v3888_v49  ;;  %2777 = vmatprep.subr.bf16.mxu1 %v3899_v53  ;;  %v3965_v49 = vld [vmem:[%s4934_s19 + $0x24c] ss:$24 sps:$4 sm:$0xff]  }
  0xf3   : > { %2724 = vmatprep.subr.bf16.mxu0 %v3896_v52  ;;  %2658 = vmatprep.mubr.bf16.mxu1 %v5029_v54  ;;  %v3963_v52 = vld [vmem:[%s4934_s19 + $0x248] ss:$24 sps:$4 sm:$0xff]   ;;  %v3968_v53 = vld [vmem:[%s4934_s19 + $0x874] ss:$24 sps:$4 sm:$0xff]  }
  0xf4   : > { %2711 = vmatprep.mubr.bf16.mxu0 %v5069_v13 }
  0xf5   : > { %2778 = vmatpush1.bf16.msra.mxu1 %v3897_v58  ;;  %v3974_v58 = vld [vmem:[%s4934_s19 + $0x8a4] ss:$24 sps:$4 sm:$0xff]  }
  0xf6   : > { %2725 = vmatpush1.bf16.msra.mxu0 %v3894_v57  ;;  %2779 = vmatprep.subr.bf16.mxu1 %v3905_v60  ;;  %v3969_v57 = vld [vmem:[%s4934_s19 + $0x278] ss:$24 sps:$4 sm:$0xff]  }
  0xf7   : > { %2726 = vmatprep.subr.bf16.mxu0 %v3902_v59  ;;  %v3977_v59 = vld [vmem:[%s4934_s19 + $0x2ac] ss:$24 sps:$4 sm:$0xff]   ;;  %v3972_v60 = vld [vmem:[%s4934_s19 + $0x8a0] ss:$24 sps:$4 sm:$0xff]  }
  0xf8   : > { %2659 = vmatmul.mubr.bf16.gmra.mrb[4].mxu1 %v5046_v63 }
  0xf9   : > { %2780 = vmatpush1.bf16.msra.mxu1 %v3903_v62  ;;  %2807 = vmatprep.mubr.bf16.mxu1 %v4923_v34  ;;  %v3980_v62 = vld [vmem:[%s4934_s19 + $0x8d4] ss:$24 sps:$4 sm:$0xff]  }
  0xfa   : > { %2727 = vmatpush1.bf16.msra.mxu0 %v3900_v61  ;;  %2781 = vmatprep.subr.bf16.mxu1 %v3911_v1  ;;  %v3975_v61 = vld [vmem:[%s4934_s19 + $0x2a8] ss:$24 sps:$4 sm:$0xff]  }
  0xfb   : > { %2728 = vmatprep.subr.bf16.mxu0 %v3908_v0  ;;  %2712 = vmatmul.mubr.bf16.gmra.mrb[4].mxu0 %v5074_v15  ;;  %v3983_v0 = vld [vmem:[%s4934_s19 + $0x2dc] ss:$24 sps:$4 sm:$0xff]   ;;  %v3978_v1 = vld [vmem:[%s4934_s19 + $0x8d0] ss:$24 sps:$4 sm:$0xff]  }
  0xfc   : > { %2754 = vmatprep.mubr.bf16.mxu0 %v5091_v25 }
  0xfd   : > { %2782 = vmatpush1.bf16.msra.mxu1 %v3909_v3  ;;  %v824_v3 = vld [vmem:[%s5432_s0 + $0x20] sm:$0xff] }
  0xfe   : > { %2729 = vmatpush1.bf16.msra.mxu0 %v3906_v2  ;;  %2783 = vmatprep.subr.bf16.mxu1 %v3917_v5  ;;  %v3981_v2 = vld [vmem:[%s4934_s19 + $0x2d8] ss:$24 sps:$4 sm:$0xff]   ;;  %v3986_v5 = vld [vmem:[%s4934_s19 + $0x30c] ss:$24 sps:$4 sm:$0xff]  }
  0xff   : > { %2730 = vmatprep.subr.bf16.mxu0 %v3914_v4  ;;  %v830_v4 = vld [vmem:[%s5432_s0 + $0x50] sm:$0xff] }
 0x101   : > { %2784 = vmatpush1.bf16.msra.mxu1 %v3915_v7  ;;  %v3984_v7 = vld [vmem:[%s4934_s19 + $0x308] ss:$24 sps:$4 sm:$0xff]  }
 0x102   : > { %2731 = vmatpush1.bf16.msra.mxu0 %v3912_v6  ;;  %2785 = vmatprep.subr.bf16.mxu1 %v3923_v9  ;;  %v3989_v6 = vld [vmem:[%s4934_s19 + $0x14] ss:$24 sps:$4 sm:$0xff]   ;;  %v5139_v9 = vpack.c.bf16 %v830_v4, %v824_v3  ;;  %v4053_v3 = vld [vmem:[%s4934_s19 + $0x220] ss:$24 sps:$4 sm:$0xff]  }
 0x103   : > { %2732 = vmatprep.subr.bf16.mxu0 %v3920_v8  ;;  %v3987_v8 = vld [vmem:[%s4934_s19 + $0x10] ss:$24 sps:$4 sm:$0xff]   ;;  %v4058_v4 = vld [vmem:[%s4934_s19 + $0x54c] ss:$24 sps:$4 sm:$0xff]  }
 0x105   : > { %2786 = vmatpush1.bf16.msra.mxu1 %v3921_v17  ;;  %v3993_v17 = vld [vmem:[%s4934_s19 + $0x40] ss:$24 sps:$4 sm:$0xff]  }
 0x106   : > { %2733 = vmatpush1.bf16.msra.mxu0 %v3918_v16  ;;  %2787 = vmatprep.subr.bf16.mxu1 %v3929_v19  ;;  %v3990_v16 = vld [vmem:[%s4934_s19 + $0x338] ss:$24 sps:$4 sm:$0xff]   ;;  %v836_v19 = vld [vmem:[%s5432_s0 + $0x80] sm:$0xff] }
 0x107   : > { %2734 = vmatprep.subr.bf16.mxu0 %v3926_v18  ;;  %v5151_v18 = vpack.c.bf16 %v843_v11, %v837_v10  ;;  %v5165_v23 = vpack.c.bf16 %v842_v20, %v836_v19  ;;  %v4067_v10 = vld [vmem:[%s4934_s19 + $0x284] ss:$24 sps:$4 sm:$0xff]   ;;  %v4062_v11 = vld [vmem:[%s4934_s19 + $0x578] ss:$24 sps:$4 sm:$0xff]  }
 0x108   : > { %v4071_v19 = vld [vmem:[%s4934_s19 + $0x2b0] ss:$24 sps:$4 sm:$0xff]   ;;  %v4076_v20 = vld [vmem:[%s4934_s19 + $0x5dc] ss:$24 sps:$4 sm:$0xff]  }
 0x109   : > { %2788 = vmatpush1.bf16.msra.mxu1 %v3927_v22  ;;  %v4001_v22 = vld [vmem:[%s4934_s19 + $0x74] ss:$24 sps:$4 sm:$0xff]  }
 0x10a   : > { %2735 = vmatpush1.bf16.msra.mxu0 %v3924_v21  ;;  %2789 = vmatprep.subr.bf16.mxu1 %v3935_v26  ;;  %v3998_v21 = vld [vmem:[%s4934_s19 + $0x36c] ss:$24 sps:$4 sm:$0xff]   ;;  %v3999_v26 = vld [vmem:[%s4934_s19 + $0x70] ss:$24 sps:$4 sm:$0xff]  }
 0x10b   : > { %2736 = vmatprep.subr.bf16.mxu0 %v3932_v24  ;;  %v3996_v24 = vld [vmem:[%s4934_s19 + $0x368] ss:$24 sps:$4 sm:$0xff]  }
 0x10d   : > { %2790 = vmatpush1.bf16.msra.mxu1 %v3933_v28  ;;  %v4007_v28 = vld [vmem:[%s4934_s19 + $0xa4] ss:$24 sps:$4 sm:$0xff]  }
 0x10e   : > { %2737 = vmatpush1.bf16.msra.mxu0 %v3930_v27  ;;  %2791 = vmatprep.subr.bf16.mxu1 %v3941_v30  ;;  %v4004_v27 = vld [vmem:[%s4934_s19 + $0x39c] ss:$24 sps:$4 sm:$0xff]   ;;  %v4005_v30 = vld [vmem:[%s4934_s19 + $0xa0] ss:$24 sps:$4 sm:$0xff]  }
 0x10f   : > { %2738 = vmatprep.subr.bf16.mxu0 %v3938_v29  ;;  %v4002_v29 = vld [vmem:[%s4934_s19 + $0x398] ss:$24 sps:$4 sm:$0xff]  }
 0x111   : > { %2792 = vmatpush1.bf16.msra.mxu1 %v3939_v32  ;;  %v4013_v32 = vld [vmem:[%s4934_s19 + $0xd4] ss:$24 sps:$4 sm:$0xff]  }
 0x112   : > { %2739 = vmatpush1.bf16.msra.mxu0 %v3936_v31  ;;  %2793 = vmatprep.subr.bf16.mxu1 %v3947_v35  ;;  %v4010_v31 = vld [vmem:[%s4934_s19 + $0x3cc] ss:$24 sps:$4 sm:$0xff]   ;;  %v4011_v35 = vld [vmem:[%s4934_s19 + $0xd0] ss:$24 sps:$4 sm:$0xff]  }
 0x113   : > { %2740 = vmatprep.subr.bf16.mxu0 %v3944_v33  ;;  %v4008_v33 = vld [vmem:[%s4934_s19 + $0x3c8] ss:$24 sps:$4 sm:$0xff]  }
 0x115   : > { %2794 = vmatpush1.bf16.msra.mxu1 %v3945_v38  ;;  %v4019_v38 = vld [vmem:[%s4934_s19 + $0x104] ss:$24 sps:$4 sm:$0xff]  }
 0x116   : > { %2741 = vmatpush1.bf16.msra.mxu0 %v3942_v36  ;;  %2795 = vmatprep.subr.bf16.mxu1 %v3953_v40  ;;  %v4016_v36 = vld [vmem:[%s4934_s19 + $0x3fc] ss:$24 sps:$4 sm:$0xff]   ;;  %v4017_v40 = vld [vmem:[%s4934_s19 + $0x100] ss:$24 sps:$4 sm:$0xff]  }
 0x117   : > { %2742 = vmatprep.subr.bf16.mxu0 %v3950_v39  ;;  %v4014_v39 = vld [vmem:[%s4934_s19 + $0x3f8] ss:$24 sps:$4 sm:$0xff]  }
 0x119   : > { %2796 = vmatpush1.bf16.msra.mxu1 %v3951_v42  ;;  %v4020_v42 = vld [vmem:[%s4934_s19 + $0x428] ss:$24 sps:$4 sm:$0xff]  }
 0x11a   : > { %2743 = vmatpush1.bf16.msra.mxu0 %v3948_v41  ;;  %2797 = vmatprep.subr.bf16.mxu1 %v3959_v44  ;;  %v4025_v41 = vld [vmem:[%s4934_s19 + $0x134] ss:$24 sps:$4 sm:$0xff]  }
 0x11b   : > { %2744 = vmatprep.subr.bf16.mxu0 %v3956_v43  ;;  %v4023_v43 = vld [vmem:[%s4934_s19 + $0x130] ss:$24 sps:$4 sm:$0xff]   ;;  %v4028_v44 = vld [vmem:[%s4934_s19 + $0x45c] ss:$24 sps:$4 sm:$0xff]  }
 0x11d   : > { %2798 = vmatpush1.bf16.msra.mxu1 %v3957_v46  ;;  %v4026_v46 = vld [vmem:[%s4934_s19 + $0x458] ss:$24 sps:$4 sm:$0xff]  }
 0x11e   : > { %2745 = vmatpush1.bf16.msra.mxu0 %v3954_v45  ;;  %2799 = vmatprep.subr.bf16.mxu1 %v3965_v49  ;;  %v4031_v45 = vld [vmem:[%s4934_s19 + $0x164] ss:$24 sps:$4 sm:$0xff]  }
 0x11f   : > { %2746 = vmatprep.subr.bf16.mxu0 %v3962_v47  ;;  %v4029_v47 = vld [vmem:[%s4934_s19 + $0x160] ss:$24 sps:$4 sm:$0xff]   ;;  %v4034_v49 = vld [vmem:[%s4934_s19 + $0x48c] ss:$24 sps:$4 sm:$0xff]  }
 0x121   : > { %2800 = vmatpush1.bf16.msra.mxu1 %v3963_v52  ;;  %v4032_v52 = vld [vmem:[%s4934_s19 + $0x488] ss:$24 sps:$4 sm:$0xff]  }
 0x122   : > { %2747 = vmatpush1.bf16.msra.mxu0 %v3960_v50  ;;  %2801 = vmatprep.subr.bf16.mxu1 %v3971_v55  ;;  %v4037_v50 = vld [vmem:[%s4934_s19 + $0x194] ss:$24 sps:$4 sm:$0xff]  }
 0x123   : > { %2748 = vmatprep.subr.bf16.mxu0 %v3968_v53  ;;  %v4035_v53 = vld [vmem:[%s4934_s19 + $0x190] ss:$24 sps:$4 sm:$0xff]   ;;  %v4040_v55 = vld [vmem:[%s4934_s19 + $0x4bc] ss:$24 sps:$4 sm:$0xff]  }
 0x125   : > { %2802 = vmatpush1.bf16.msra.mxu1 %v3969_v57  ;;  %v4038_v57 = vld [vmem:[%s4934_s19 + $0x4b8] ss:$24 sps:$4 sm:$0xff]  }
 0x126   : > { %2749 = vmatpush1.bf16.msra.mxu0 %v3966_v56  ;;  %2803 = vmatprep.subr.bf16.mxu1 %v3977_v59  ;;  %v4043_v56 = vld [vmem:[%s4934_s19 + $0x1c4] ss:$24 sps:$4 sm:$0xff]  }
 0x127   : > { %2750 = vmatprep.subr.bf16.mxu0 %v3974_v58  ;;  %v4041_v58 = vld [vmem:[%s4934_s19 + $0x1c0] ss:$24 sps:$4 sm:$0xff]   ;;  %v4046_v59 = vld [vmem:[%s4934_s19 + $0x4ec] ss:$24 sps:$4 sm:$0xff]  }
 0x129   : > { %2804 = vmatpush1.bf16.msra.mxu1 %v3975_v61  ;;  %v4044_v61 = vld [vmem:[%s4934_s19 + $0x4e8] ss:$24 sps:$4 sm:$0xff]  }
 0x12a   : > { %2751 = vmatpush1.bf16.msra.mxu0 %v3972_v60  ;;  %2805 = vmatprep.subr.bf16.mxu1 %v3983_v0  ;;  %v4049_v60 = vld [vmem:[%s4934_s19 + $0x1f4] ss:$24 sps:$4 sm:$0xff]  }
 0x12b   : > { %2752 = vmatprep.subr.bf16.mxu0 %v3980_v62  ;;  %v4047_v62 = vld [vmem:[%s4934_s19 + $0x1f0] ss:$24 sps:$4 sm:$0xff]   ;;  %v4052_v0 = vld [vmem:[%s4934_s19 + $0x51c] ss:$24 sps:$4 sm:$0xff]  }
 0x12d   : > { %2806 = vmatpush1.bf16.msra.mxu1 %v3981_v2  ;;  %v4050_v2 = vld [vmem:[%s4934_s19 + $0x518] ss:$24 sps:$4 sm:$0xff]  }
 0x12e   : > { %2753 = vmatpush1.bf16.msra.mxu0 %v3978_v1  ;;  %2828 = vmatprep.subr.bf16.mxu1 %v3986_v5  ;;  %v4055_v1 = vld [vmem:[%s4934_s19 + $0x224] ss:$24 sps:$4 sm:$0xff]   ;;  %v4061_v5 = vld [vmem:[%s4934_s19 + $0x254] ss:$24 sps:$4 sm:$0xff]  }
 0x12f   : > { %2934 = vmatprep.subr.bf16.mxu0 %v3989_v6  ;;  %v4056_v6 = vld [vmem:[%s4934_s19 + $0x548] ss:$24 sps:$4 sm:$0xff]  }
 0x130   : > { %2808 = vmatmul.mubr.bf16.vlgmr.msra.gmra.mrb[8].mxu1 %v5021_v48 }
 0x131   : > { %2755 = vmatmul.mubr.bf16.vlgmr.msra.gmra.mrb[0].mxu0 %v5139_v9  ;;  %2829 = vmatpush1.bf16.msra.mxu1 %v3984_v7  ;;  %v4059_v7 = vld [vmem:[%s4934_s19 + $0x250] ss:$24 sps:$4 sm:$0xff]  }
 0x132   : > { %2935 = vmatpush1.bf16.msra.mxu0 %v3987_v8  ;;  %2830 = vmatprep.subr.bf16.mxu1 %v3992_v12  ;;  %v4064_v8 = vld [vmem:[%s4934_s19 + $0x57c] ss:$24 sps:$4 sm:$0xff]   ;;  %v4065_v12 = vld [vmem:[%s4934_s19 + $0x280] ss:$24 sps:$4 sm:$0xff]  }
 0x133   : > { %2936 = vmatprep.subr.bf16.mxu0 %v3995_v14  ;;  %2764 = vmatprep.mubr.bf16.mxu0 %v5151_v18  ;;  %v4070_v14 = vld [vmem:[%s4934_s19 + $0x5ac] ss:$24 sps:$4 sm:$0xff]  }
 0x134   : > { %2817 = vmatprep.mubr.bf16.mxu1 %v5029_v54 }
 0x135   : > { %2831 = vmatpush1.bf16.msra.mxu1 %v3990_v16  ;;  %v4073_v16 = vld [vmem:[%s4934_s19 + $0x2b4] ss:$24 sps:$4 sm:$0xff]  }
 0x136   : > { %2937 = vmatpush1.bf16.msra.mxu0 %v3993_v17  ;;  %2832 = vmatprep.subr.bf16.mxu1 %v3998_v21  ;;  %v4068_v17 = vld [vmem:[%s4934_s19 + $0x5a8] ss:$24 sps:$4 sm:$0xff]   ;;  %v4079_v21 = vld [vmem:[%s4934_s19 + $0x2e4] ss:$24 sps:$4 sm:$0xff]  }
 0x137   : > { %2938 = vmatprep.subr.bf16.mxu0 %v4001_v22  ;;  %v4074_v22 = vld [vmem:[%s4934_s19 + $0x5d8] ss:$24 sps:$4 sm:$0xff]  }
 0x138   : > { %2818 = vmatmul.mubr.bf16.gmra.mrb[12].mxu1 %v5046_v63 }
 0x139   : > { %2765 = vmatmul.mubr.bf16.gmra.mrb[4].mxu0 %v5165_v23  ;;  %2833 = vmatpush1.bf16.msra.mxu1 %v3996_v24  ;;  %v4077_v24 = vld [vmem:[%s4934_s19 + $0x2e0] ss:$24 sps:$4 sm:$0xff]  }
 0x13a   : > { %2939 = vmatpush1.bf16.msra.mxu0 %v3999_v26  ;;  %2834 = vmatprep.subr.bf16.mxu1 %v4004_v27  ;;  %v4082_v26 = vld [vmem:[%s4934_s19 + $0x60c] ss:$24 sps:$4 sm:$0xff]  }
 0x13b   : > { %2940 = vmatprep.subr.bf16.mxu0 %v4007_v28  ;;  %2860 = vmatprep.mubr.bf16.mxu1 %v4931_v37  ;;  %v4085_v27 = vld [vmem:[%s4934_s19 + $0x314] ss:$24 sps:$4 sm:$0xff]   ;;  %v4080_v28 = vld [vmem:[%s4934_s19 + $0x608] ss:$24 sps:$4 sm:$0xff]  }
 0x13c   : > { %2966 = vmatprep.mubr.bf16.mxu0 %v4923_v34  ;;  %v4022_v34 = vld [vmem:[%s4934_s19 + $0x42c] ss:$24 sps:$4 sm:$0xff]  }
 0x13d   : > { %2835 = vmatpush1.bf16.msra.mxu1 %v4002_v29  ;;  %v4083_v29 = vld [vmem:[%s4934_s19 + $0x310] ss:$24 sps:$4 sm:$0xff]  }
 0x13e   : > { %2941 = vmatpush1.bf16.msra.mxu0 %v4005_v30  ;;  %2836 = vmatprep.subr.bf16.mxu1 %v4010_v31  ;;  %v4088_v30 = vld [vmem:[%s4934_s19 + $0x63c] ss:$24 sps:$4 sm:$0xff]  }
 0x13f   : > { %2942 = vmatprep.subr.bf16.mxu0 %v4013_v32  ;;  %v4091_v31 = vld [vmem:[%s4934_s19 + $0x344] ss:$24 sps:$4 sm:$0xff]   ;;  %v4086_v32 = vld [vmem:[%s4934_s19 + $0x638] ss:$24 sps:$4 sm:$0xff]  }
 0x141   : > { %2837 = vmatpush1.bf16.msra.mxu1 %v4008_v33  ;;  %v4089_v33 = vld [vmem:[%s4934_s19 + $0x340] ss:$24 sps:$4 sm:$0xff]  }
 0x142   : > { %2943 = vmatpush1.bf16.msra.mxu0 %v4011_v35  ;;  %2838 = vmatprep.subr.bf16.mxu1 %v4016_v36  ;;  %v4094_v35 = vld [vmem:[%s4934_s19 + $0x66c] ss:$24 sps:$4 sm:$0xff]  }
 0x143   : > { %2944 = vmatprep.subr.bf16.mxu0 %v4019_v38  ;;  %v4097_v36 = vld [vmem:[%s4934_s19 + $0x374] ss:$24 sps:$4 sm:$0xff]   ;;  %v4095_v38 = vld [vmem:[%s4934_s19 + $0x370] ss:$24 sps:$4 sm:$0xff]  }
 0x145   : > { %2839 = vmatpush1.bf16.msra.mxu1 %v4014_v39  ;;  %v4100_v39 = vld [vmem:[%s4934_s19 + $0x69c] ss:$24 sps:$4 sm:$0xff]  }
 0x146   : > { %2945 = vmatpush1.bf16.msra.mxu0 %v4017_v40  ;;  %2840 = vmatprep.subr.bf16.mxu1 %v4022_v34  ;;  %v4103_v40 = vld [vmem:[%s4934_s19 + $0x3a4] ss:$24 sps:$4 sm:$0xff]   ;;  %v4101_v34 = vld [vmem:[%s4934_s19 + $0x3a0] ss:$24 sps:$4 sm:$0xff]  }
 0x147   : > { %2946 = vmatprep.subr.bf16.mxu0 %v4025_v41  ;;  %v4106_v41 = vld [vmem:[%s4934_s19 + $0x6cc] ss:$24 sps:$4 sm:$0xff]  }
 0x149   : > { %2841 = vmatpush1.bf16.msra.mxu1 %v4020_v42  ;;  %v4109_v42 = vld [vmem:[%s4934_s19 + $0x3d4] ss:$24 sps:$4 sm:$0xff]  }
 0x14a   : > { %2947 = vmatpush1.bf16.msra.mxu0 %v4023_v43  ;;  %2842 = vmatprep.subr.bf16.mxu1 %v4028_v44  ;;  %v4107_v43 = vld [vmem:[%s4934_s19 + $0x3d0] ss:$24 sps:$4 sm:$0xff]   ;;  %v4112_v44 = vld [vmem:[%s4934_s19 + $0x6fc] ss:$24 sps:$4 sm:$0xff]  }
 0x14b   : > { %2948 = vmatprep.subr.bf16.mxu0 %v4031_v45  ;;  %v4115_v45 = vld [vmem:[%s4934_s19 + $0x404] ss:$24 sps:$4 sm:$0xff]  }
 0x14d   : > { %2843 = vmatpush1.bf16.msra.mxu1 %v4026_v46  ;;  %v4110_v46 = vld [vmem:[%s4934_s19 + $0x6f8] ss:$24 sps:$4 sm:$0xff]  }
 0x14e   : > { %2949 = vmatpush1.bf16.msra.mxu0 %v4029_v47  ;;  %2844 = vmatprep.subr.bf16.mxu1 %v4034_v49  ;;  %v4113_v47 = vld [vmem:[%s4934_s19 + $0x400] ss:$24 sps:$4 sm:$0xff]   ;;  %v4121_v49 = vld [vmem:[%s4934_s19 + $0x434] ss:$24 sps:$4 sm:$0xff]  }
 0x14f   : > { %2950 = vmatprep.subr.bf16.mxu0 %v4037_v50  ;;  %v4116_v50 = vld [vmem:[%s4934_s19 + $0x728] ss:$24 sps:$4 sm:$0xff]  }
 0x151   : > { %2845 = vmatpush1.bf16.msra.mxu1 %v4032_v52  ;;  %v4119_v52 = vld [vmem:[%s4934_s19 + $0x430] ss:$24 sps:$4 sm:$0xff]  }
 0x152   : > { %2951 = vmatpush1.bf16.msra.mxu0 %v4035_v53  ;;  %2846 = vmatprep.subr.bf16.mxu1 %v4040_v55  ;;  %v4124_v53 = vld [vmem:[%s4934_s19 + $0x75c] ss:$24 sps:$4 sm:$0xff]  }
 0x153   : > { %2952 = vmatprep.subr.bf16.mxu0 %v4043_v56  ;;  %v4127_v55 = vld [vmem:[%s4934_s19 + $0x464] ss:$24 sps:$4 sm:$0xff]   ;;  %v4122_v56 = vld [vmem:[%s4934_s19 + $0x758] ss:$24 sps:$4 sm:$0xff]  }
 0x155   : > { %2847 = vmatpush1.bf16.msra.mxu1 %v4038_v57  ;;  %v4125_v57 = vld [vmem:[%s4934_s19 + $0x460] ss:$24 sps:$4 sm:$0xff]  }
 0x156   : > { %2953 = vmatpush1.bf16.msra.mxu0 %v4041_v58  ;;  %2848 = vmatprep.subr.bf16.mxu1 %v4046_v59  ;;  %v4130_v58 = vld [vmem:[%s4934_s19 + $0x78c] ss:$24 sps:$4 sm:$0xff]  }
 0x157   : > { %2954 = vmatprep.subr.bf16.mxu0 %v4049_v60  ;;  %v4133_v59 = vld [vmem:[%s4934_s19 + $0x494] ss:$24 sps:$4 sm:$0xff]   ;;  %v4128_v60 = vld [vmem:[%s4934_s19 + $0x788] ss:$24 sps:$4 sm:$0xff]  }
 0x159   : > { %2849 = vmatpush1.bf16.msra.mxu1 %v4044_v61  ;;  %v4131_v61 = vld [vmem:[%s4934_s19 + $0x490] ss:$24 sps:$4 sm:$0xff]  }
 0x15a   : > { %2955 = vmatpush1.bf16.msra.mxu0 %v4047_v62  ;;  %2850 = vmatprep.subr.bf16.mxu1 %v4052_v0  ;;  %v4136_v62 = vld [vmem:[%s4934_s19 + $0x7bc] ss:$24 sps:$4 sm:$0xff]  }
 0x15b   : > { %2956 = vmatprep.subr.bf16.mxu0 %v4055_v1  ;;  %v4139_v0 = vld [vmem:[%s4934_s19 + $0x4c4] ss:$24 sps:$4 sm:$0xff]   ;;  %v4134_v1 = vld [vmem:[%s4934_s19 + $0x7b8] ss:$24 sps:$4 sm:$0xff]  }
 0x15d   : > { %2851 = vmatpush1.bf16.msra.mxu1 %v4050_v2  ;;  %v4137_v2 = vld [vmem:[%s4934_s19 + $0x4c0] ss:$24 sps:$4 sm:$0xff]  }
 0x15e   : > { %2957 = vmatpush1.bf16.msra.mxu0 %v4053_v3  ;;  %2852 = vmatprep.subr.bf16.mxu1 %v4058_v4  ;;  %v4142_v3 = vld [vmem:[%s4934_s19 + $0x7ec] ss:$24 sps:$4 sm:$0xff]  }
 0x15f   : > { %2958 = vmatprep.subr.bf16.mxu0 %v4061_v5  ;;  %v4145_v4 = vld [vmem:[%s4934_s19 + $0x4f4] ss:$24 sps:$4 sm:$0xff]   ;;  %v4140_v5 = vld [vmem:[%s4934_s19 + $0x7e8] ss:$24 sps:$4 sm:$0xff]  }
 0x161   : > { %2853 = vmatpush1.bf16.msra.mxu1 %v4056_v6  ;;  %v4143_v6 = vld [vmem:[%s4934_s19 + $0x4f0] ss:$24 sps:$4 sm:$0xff]  }
 0x162   : > { %2959 = vmatpush1.bf16.msra.mxu0 %v4059_v7  ;;  %2854 = vmatprep.subr.bf16.mxu1 %v4064_v8  ;;  %v4148_v7 = vld [vmem:[%s4934_s19 + $0x81c] ss:$24 sps:$4 sm:$0xff]  }
 0x163   : > { %2960 = vmatprep.subr.bf16.mxu0 %v4067_v10  ;;  %v4151_v8 = vld [vmem:[%s4934_s19 + $0x524] ss:$24 sps:$4 sm:$0xff]   ;;  %v4146_v10 = vld [vmem:[%s4934_s19 + $0x818] ss:$24 sps:$4 sm:$0xff]  }
 0x165   : > { %2855 = vmatpush1.bf16.msra.mxu1 %v4062_v11  ;;  %v4149_v11 = vld [vmem:[%s4934_s19 + $0x520] ss:$24 sps:$4 sm:$0xff]  }
 0x166   : > { %2961 = vmatpush1.bf16.msra.mxu0 %v4065_v12  ;;  %2856 = vmatprep.subr.bf16.mxu1 %v4070_v14  ;;  %v4154_v12 = vld [vmem:[%s4934_s19 + $0x84c] ss:$24 sps:$4 sm:$0xff]  }
 0x167   : > { %2962 = vmatprep.subr.bf16.mxu0 %v4073_v16  ;;  %v4157_v14 = vld [vmem:[%s4934_s19 + $0x554] ss:$24 sps:$4 sm:$0xff]   ;;  %v4152_v16 = vld [vmem:[%s4934_s19 + $0x848] ss:$24 sps:$4 sm:$0xff]  }
 0x169   : > { %2857 = vmatpush1.bf16.msra.mxu1 %v4068_v17  ;;  %v4155_v17 = vld [vmem:[%s4934_s19 + $0x550] ss:$24 sps:$4 sm:$0xff]  }
 0x16a   : > { %2963 = vmatpush1.bf16.msra.mxu0 %v4071_v19  ;;  %2858 = vmatprep.subr.bf16.mxu1 %v4076_v20  ;;  %v4160_v19 = vld [vmem:[%s4934_s19 + $0x87c] ss:$24 sps:$4 sm:$0xff]  }
 0x16b   : > { %2964 = vmatprep.subr.bf16.mxu0 %v4079_v21  ;;  %v4163_v20 = vld [vmem:[%s4934_s19 + $0x584] ss:$24 sps:$4 sm:$0xff]   ;;  %v4158_v21 = vld [vmem:[%s4934_s19 + $0x878] ss:$24 sps:$4 sm:$0xff]  }
 0x16d   : > { %2859 = vmatpush1.bf16.msra.mxu1 %v4074_v22  ;;  %v4161_v22 = vld [vmem:[%s4934_s19 + $0x580] ss:$24 sps:$4 sm:$0xff]  }
 0x16e   : > { %2965 = vmatpush1.bf16.msra.mxu0 %v4077_v24  ;;  %2881 = vmatprep.subr.bf16.mxu1 %v4082_v26  ;;  %v4166_v24 = vld [vmem:[%s4934_s19 + $0x8ac] ss:$24 sps:$4 sm:$0xff]  }
 0x16f   : > { %2987 = vmatprep.subr.bf16.mxu0 %v4085_v27  ;;  %v4169_v26 = vld [vmem:[%s4934_s19 + $0x5b4] ss:$24 sps:$4 sm:$0xff]   ;;  %v4164_v27 = vld [vmem:[%s4934_s19 + $0x8a8] ss:$24 sps:$4 sm:$0xff]  }
 0x170   : > { %2861 = vmatmul.mubr.bf16.vlgmr.msra.gmra.mrb[8].mxu1 %v5025_v51 }
 0x171   : > { %2967 = vmatmul.mubr.bf16.vlgmr.msra.gmra.mrb[8].mxu0 %v5021_v48  ;;  %2882 = vmatpush1.bf16.msra.mxu1 %v4080_v28  ;;  %v4092_v48 = vld [vmem:[%s4934_s19 + $0x668] ss:$24 sps:$4 sm:$0xff]  }
 0x172   : > { %2988 = vmatpush1.bf16.msra.mxu0 %v4083_v29  ;;  %2883 = vmatprep.subr.bf16.mxu1 %v4088_v30  ;;  %v4167_v28 = vld [vmem:[%s4934_s19 + $0x5b0] ss:$24 sps:$4 sm:$0xff]   ;;  %v4172_v29 = vld [vmem:[%s4934_s19 + $0x8dc] ss:$24 sps:$4 sm:$0xff]  }
 0x173   : > { %2989 = vmatprep.subr.bf16.mxu0 %v4091_v31  ;;  %2870 = vmatprep.mubr.bf16.mxu1 %v5069_v13  ;;  %v4175_v30 = vld [vmem:[%s4934_s19 + $0x5e4] ss:$24 sps:$4 sm:$0xff]   ;;  %v4170_v31 = vld [vmem:[%s4934_s19 + $0x8d8] ss:$24 sps:$4 sm:$0xff]  }
 0x174   : > { %2976 = vmatprep.mubr.bf16.mxu0 %v5029_v54  ;;  %v4098_v54 = vld [vmem:[%s4934_s19 + $0x698] ss:$24 sps:$4 sm:$0xff]  }
 0x175   : > { %2884 = vmatpush1.bf16.msra.mxu1 %v4086_v32  ;;  %v4173_v32 = vld [vmem:[%s4934_s19 + $0x5e0] ss:$24 sps:$4 sm:$0xff]  }
 0x176   : > { %2990 = vmatpush1.bf16.msra.mxu0 %v4089_v33  ;;  %2885 = vmatprep.subr.bf16.mxu1 %v4094_v35  ;;  %v4178_v33 = vld [vmem:[%s4934_s19 + $0x614] ss:$24 sps:$4 sm:$0xff]   ;;  %v4176_v35 = vld [vmem:[%s4934_s19 + $0x610] ss:$24 sps:$4 sm:$0xff]  }
 0x177   : > { %2991 = vmatprep.subr.bf16.mxu0 %v4097_v36  ;;  %v4181_v36 = vld [vmem:[%s4934_s19 + $0x644] ss:$24 sps:$4 sm:$0xff]  }
 0x178   : > { %2871 = vmatmul.mubr.bf16.gmra.mrb[12].mxu1 %v5074_v15 }
 0x179   : > { %2977 = vmatmul.mubr.bf16.gmra.mrb[12].mxu0 %v5046_v63  ;;  %2886 = vmatpush1.bf16.msra.mxu1 %v4092_v48  ;;  %v4104_v63 = vld [vmem:[%s4934_s19 + $0x6c8] ss:$24 sps:$4 sm:$0xff]  }
 0x17a   : > { %2992 = vmatpush1.bf16.msra.mxu0 %v4095_v38  ;;  %2887 = vmatprep.subr.bf16.mxu1 %v4100_v39  ;;  %v4179_v48 = vld [vmem:[%s4934_s19 + $0x640] ss:$24 sps:$4 sm:$0xff]   ;;  %v4184_v38 = vld [vmem:[%s4934_s19 + $0x674] ss:$24 sps:$4 sm:$0xff]   ;;  %v4182_v39 = vld [vmem:[%s4934_s19 + $0x670] ss:$24 sps:$4 sm:$0xff]  }
 0x17b   : > { %2993 = vmatprep.subr.bf16.mxu0 %v4103_v40  ;;  %2913 = vmatprep.mubr.bf16.mxu1 %v5091_v25  ;;  %v4187_v40 = vld [vmem:[%s4934_s19 + $0x6a4] ss:$24 sps:$4 sm:$0xff]  }
 0x17c   : > { %3019 = vmatprep.mubr.bf16.mxu0 %v4931_v37  ;;  %v4118_v37 = vld [vmem:[%s4934_s19 + $0x72c] ss:$24 sps:$4 sm:$0xff]  }
 0x17d   : > { %2888 = vmatpush1.bf16.msra.mxu1 %v4098_v54  ;;  %v4188_v54 = vld [vmem:[%s4934_s19 + $0x6d0] ss:$24 sps:$4 sm:$0xff]  }
 0x17e   : > { %2994 = vmatpush1.bf16.msra.mxu0 %v4101_v34  ;;  %2889 = vmatprep.subr.bf16.mxu1 %v4106_v41  ;;  %v4193_v34 = vld [vmem:[%s4934_s19 + $0x704] ss:$24 sps:$4 sm:$0xff]   ;;  %v4196_v41 = vld [vmem:[%s4934_s19 + $0x734] ss:$24 sps:$4 sm:$0xff]  }
 0x17f   : > { %2995 = vmatprep.subr.bf16.mxu0 %v4109_v42 }
 0x181   : > { %2890 = vmatpush1.bf16.msra.mxu1 %v4104_v63  ;;  %v4194_v63 = vld [vmem:[%s4934_s19 + $0x730] ss:$24 sps:$4 sm:$0xff]  }
 0x182   : > { %2996 = vmatpush1.bf16.msra.mxu0 %v4107_v43  ;;  %2891 = vmatprep.subr.bf16.mxu1 %v4112_v44  ;;  %v4199_v44 = vld [vmem:[%s4934_s19 + $0x764] ss:$24 sps:$4 sm:$0xff]  }
 0x183   : > { %2997 = vmatprep.subr.bf16.mxu0 %v4115_v45  ;;  %v4197_v45 = vld [vmem:[%s4934_s19 + $0x760] ss:$24 sps:$4 sm:$0xff]  }
 0x185   : > { %2892 = vmatpush1.bf16.msra.mxu1 %v4110_v46  ;;  %v4202_v46 = vld [vmem:[%s4934_s19 + $0x794] ss:$24 sps:$4 sm:$0xff]  }
 0x186   : > { %2998 = vmatpush1.bf16.msra.mxu0 %v4113_v47  ;;  %2893 = vmatprep.subr.bf16.mxu1 %v4118_v37 }
 0x187   : > { %2999 = vmatprep.subr.bf16.mxu0 %v4121_v49  ;;  %v4200_v49 = vld [vmem:[%s4934_s19 + $0x790] ss:$24 sps:$4 sm:$0xff]  }
 0x189   : > { %2894 = vmatpush1.bf16.msra.mxu1 %v4116_v50 }
 0x18a   : > { %3000 = vmatpush1.bf16.msra.mxu0 %v4119_v52  ;;  %2895 = vmatprep.subr.bf16.mxu1 %v4124_v53  ;;  %v4205_v52 = vld [vmem:[%s4934_s19 + $0x7c4] ss:$24 sps:$4 sm:$0xff]  }
 0x18b   : > { %3001 = vmatprep.subr.bf16.mxu0 %v4127_v55  ;;  %v4203_v55 = vld [vmem:[%s4934_s19 + $0x7c0] ss:$24 sps:$4 sm:$0xff]  }
 0x18d   : > { %2896 = vmatpush1.bf16.msra.mxu1 %v4122_v56  ;;  %v4208_v56 = vld [vmem:[%s4934_s19 + $0x7f4] ss:$24 sps:$4 sm:$0xff]  }
 0x18e   : > { %3002 = vmatpush1.bf16.msra.mxu0 %v4125_v57  ;;  %2897 = vmatprep.subr.bf16.mxu1 %v4130_v58  ;;  %v4206_v57 = vld [vmem:[%s4934_s19 + $0x7f0] ss:$24 sps:$4 sm:$0xff]   ;;  %v4211_v58 = vld [vmem:[%s4934_s19 + $0x824] ss:$24 sps:$4 sm:$0xff]  }
 0x18f   : > { %3003 = vmatprep.subr.bf16.mxu0 %v4133_v59  ;;  %v4209_v59 = vld [vmem:[%s4934_s19 + $0x820] ss:$24 sps:$4 sm:$0xff]  }
 0x191   : > { %2898 = vmatpush1.bf16.msra.mxu1 %v4128_v60  ;;  %v4214_v60 = vld [vmem:[%s4934_s19 + $0x854] ss:$24 sps:$4 sm:$0xff]  }
 0x192   : > { %3004 = vmatpush1.bf16.msra.mxu0 %v4131_v61  ;;  %2899 = vmatprep.subr.bf16.mxu1 %v4136_v62  ;;  %v4212_v61 = vld [vmem:[%s4934_s19 + $0x850] ss:$24 sps:$4 sm:$0xff]   ;;  %v4217_v62 = vld [vmem:[%s4934_s19 + $0x884] ss:$24 sps:$4 sm:$0xff]  }
 0x193   : > { %3005 = vmatprep.subr.bf16.mxu0 %v4139_v0  ;;  %v4215_v0 = vld [vmem:[%s4934_s19 + $0x880] ss:$24 sps:$4 sm:$0xff]  }
 0x195   : > { %2900 = vmatpush1.bf16.msra.mxu1 %v4134_v1  ;;  %v4220_v1 = vld [vmem:[%s4934_s19 + $0x8b4] ss:$24 sps:$4 sm:$0xff]  }
 0x196   : > { %3006 = vmatpush1.bf16.msra.mxu0 %v4137_v2  ;;  %2901 = vmatprep.subr.bf16.mxu1 %v4142_v3  ;;  %v4218_v2 = vld [vmem:[%s4934_s19 + $0x8b0] ss:$24 sps:$4 sm:$0xff]   ;;  %v4223_v3 = vld [vmem:[%s4934_s19 + $0x8e4] ss:$24 sps:$4 sm:$0xff]  }
 0x197   : > { %3007 = vmatprep.subr.bf16.mxu0 %v4145_v4  ;;  %v4221_v4 = vld [vmem:[%s4934_s19 + $0x8e0] ss:$24 sps:$4 sm:$0xff]  }
 0x199   : > { %2902 = vmatpush1.bf16.msra.mxu1 %v4140_v5  ;;  %v1146_v5 = vlaneseq }
 0x19a   : > { %3008 = vmatpush1.bf16.msra.mxu0 %v4143_v6  ;;  %2903 = vmatprep.subr.bf16.mxu1 %v4148_v7 }
 0x19b   : > { %3009 = vmatprep.subr.bf16.mxu0 %v4151_v8  ;;  %v5356_v6 = vshrl.u32 %v1146_v5, 7  ;;  %v5362_v8 = vld [vmem:[%s816_s5] sm:$0x3f] }
 0x19d   : > { %2904 = vmatpush1.bf16.msra.mxu1 %v4146_v10  ;;  %v1148_v7 = vsub.s32 0, %v5356_v6  ;;  %v1152_v10 = vsub.s32 1, %v5356_v6  ;;  %v1168_v5 = vsub.s32 5, %v5356_v6 }
 0x19e   : > { %3010 = vmatpush1.bf16.msra.mxu0 %v4149_v11  ;;  %2905 = vmatprep.subr.bf16.mxu1 %v4154_v12 }
 0x19f   : > { %3011 = vmatprep.subr.bf16.mxu0 %v4157_v14  ;;  %v1149_v11 = vrot.slane %v5362_v8, %v1148_v7 }
 0x1a1   : > { %2906 = vmatpush1.bf16.msra.mxu1 %v4152_v16 }
 0x1a2   : > { %3012 = vmatpush1.bf16.msra.mxu0 %v4155_v17  ;;  %2907 = vmatprep.subr.bf16.mxu1 %v4160_v19 }
 0x1a3   : > { %3013 = vmatprep.subr.bf16.mxu0 %v4163_v20 }
 0x1a5   : > { %2908 = vmatpush1.bf16.msra.mxu1 %v4158_v21 }
 0x1a6   : > { %3014 = vmatpush1.bf16.msra.mxu0 %v4161_v22  ;;  %2909 = vmatprep.subr.bf16.mxu1 %v4166_v24 }
 0x1a7   : > { %3015 = vmatprep.subr.bf16.mxu0 %v4169_v26 }
 0x1a9   : > { %2910 = vmatpush1.bf16.msra.mxu1 %v4164_v27 }
 0x1aa   : > { %3016 = vmatpush1.bf16.msra.mxu0 %v4167_v28  ;;  %2911 = vmatprep.subr.bf16.mxu1 %v4172_v29 }
 0x1ab   : > { %3017 = vmatprep.subr.bf16.mxu0 %v4175_v30 }
 0x1ad   : > { %2912 = vmatpush1.bf16.msra.mxu1 %v4170_v31 }
 0x1ae   : > { %3018 = vmatpush1.bf16.msra.mxu0 %v4173_v32  ;;  %3645 = vmatprep.subr.bf16.mxu1 %v4178_v33 }
 0x1af   : > { %3040 = vmatprep.subr.bf16.mxu0 %v4178_v33 }
 0x1b0   : > { %2914 = vmatmul.mubr.bf16.vlgmr.msra.gmra.mrb[8].mxu1 %v5139_v9 }
 0x1b1   : > { %3020 = vmatmul.mubr.bf16.vlgmr.msra.gmra.mrb[8].mxu0 %v5025_v51  ;;  %3661 = vmatpush1.bf16.msra.mxu1 %v4176_v35  ;;  %v4185_v51 = vld [vmem:[%s4934_s19 + $0x6a0] ss:$24 sps:$4 sm:$0xff]  }
 0x1b2   : > { %3041 = vmatpush1.bf16.msra.mxu0 %v4176_v35  ;;  %3646 = vmatprep.subr.bf16.mxu1 %v4181_v36 }
 0x1b3   : > { %3042 = vmatprep.subr.bf16.mxu0 %v4181_v36  ;;  %2923 = vmatprep.mubr.bf16.mxu1 %v5151_v18 }
 0x1b4   : > { %3029 = vmatprep.mubr.bf16.mxu0 %v5069_v13  ;;  %v4190_v13 = vld [vmem:[%s4934_s19 + $0x6d4] ss:$24 sps:$4 sm:$0xff]  }
 0x1b5   : > { %3662 = vmatpush1.bf16.msra.mxu1 %v4179_v48 }
 0x1b6   : > { %3043 = vmatpush1.bf16.msra.mxu0 %v4179_v48  ;;  %3647 = vmatprep.subr.bf16.mxu1 %v4184_v38 }
 0x1b7   : > { %3044 = vmatprep.subr.bf16.mxu0 %v4184_v38 }
 0x1b8   : > { %2924 = vmatmul.mubr.bf16.gmra.mrb[12].mxu1 %v5165_v23 }
 0x1b9   : > { %3030 = vmatmul.mubr.bf16.gmra.mrb[12].mxu0 %v5074_v15  ;;  %3663 = vmatpush1.bf16.msra.mxu1 %v4182_v39  ;;  %v4191_v15 = vld [vmem:[%s4934_s19 + $0x700] ss:$24 sps:$4 sm:$0xff]   ;;  %s3751_s19 = smul.u32 96, %s773_s30 }
 0x1ba   : > { %3045 = vmatpush1.bf16.msra.mxu0 %v4182_v39  ;;  %3648 = vmatprep.subr.bf16.mxu1 %v4187_v40 }
 0x1bb   : > { %3046 = vmatprep.subr.bf16.mxu0 %v4187_v40  ;;  %3072 = vmatprep.mubr.bf16.mxu0 %v5091_v25  ;;  %s5373_s6 = scalar_lea.vmem [#allocation3], %s3751_s19 }
 0x1bc   : > { %3082 = vmatprep.mubr.bf16.mxu1 %v5151_v18 }
 0x1bd   : > { %3664 = vmatpush1.bf16.msra.mxu1 %v4185_v51 }
 0x1be   : > { %3047 = vmatpush1.bf16.msra.mxu0 %v4185_v51  ;;  %3649 = vmatprep.subr.bf16.mxu1 %v4190_v13 }
 0x1bf   : > { %3048 = vmatprep.subr.bf16.mxu0 %v4190_v13 }
 0x1c1   : > { %3665 = vmatpush1.bf16.msra.mxu1 %v4188_v54 }
 0x1c2   : > { %3049 = vmatpush1.bf16.msra.mxu0 %v4188_v54  ;;  %3650 = vmatprep.subr.bf16.mxu1 %v4193_v34 }
 0x1c3   : > { %3050 = vmatprep.subr.bf16.mxu0 %v4193_v34  ;;  %v5318_v42 = vpop.f32.mrb[0].mxu1 }
 0x1c4   : > { %v5320_v25 = vpop.f32.mrb[1].mxu1 }
 0x1c5   : > { %v5322_v18 = vpop.f32.mrb[2].mxu1  ;;  %3666 = vmatpush1.bf16.msra.mxu1 %v4191_v15 }
 0x1c6   : > { %3051 = vmatpush1.bf16.msra.mxu0 %v4191_v15  ;;  %v5325_v43 = vpop.f32.mrb[3].mxu1  ;;  %3651 = vmatprep.subr.bf16.mxu1 %v4196_v41  ;;  %v2655_v16 = vadd.f32 %v5322_v18, %v1149_v11  ;;  %v1156_v15 = vsub.s32 2, %v5356_v6 }
 0x1c7   : > { %3052 = vmatprep.subr.bf16.mxu0 %v4196_v41  ;;  %v1160_v41 = vsub.s32 3, %v5356_v6 }
 0x1c9   : > { %3667 = vmatpush1.bf16.msra.mxu1 %v4194_v63 }
 0x1ca   : > { %3053 = vmatpush1.bf16.msra.mxu0 %v4194_v63  ;;  %3652 = vmatprep.subr.bf16.mxu1 %v4199_v44 }
 0x1cb   : > { %3054 = vmatprep.subr.bf16.mxu0 %v4199_v44  ;;  %v5330_v47 = vpop.f32.mrb[4].mxu1 }
 0x1cc   : > { %v5332_v37 = vpop.f32.mrb[5].mxu1  ;;  %v2661_v30 = vadd.f32 %v5330_v47, %v1149_v11 }
 0x1cd   : > { %3668 = vmatpush1.bf16.msra.mxu1 %v4197_v45  ;;  %v5335_v50 = vpop.f32.mrb[6].mxu1 }
 0x1ce   : > { %3055 = vmatpush1.bf16.msra.mxu0 %v4197_v45  ;;  %3653 = vmatprep.subr.bf16.mxu1 %v4202_v46  ;;  %v5338_v53 = vpop.f32.mrb[7].mxu1  ;;  %v2665_v33 = vadd.f32 %v5335_v50, %v1149_v11 }
 0x1cf   : > { %3056 = vmatprep.subr.bf16.mxu0 %v4202_v46 }
 0x1d1   : > { %3669 = vmatpush1.bf16.msra.mxu1 %v4200_v49 }
 0x1d2   : > { %3057 = vmatpush1.bf16.msra.mxu0 %v4200_v49  ;;  %3654 = vmatprep.subr.bf16.mxu1 %v4205_v52 }
 0x1d3   : > { %3058 = vmatprep.subr.bf16.mxu0 %v4205_v52 }
 0x1d5   : > { %3670 = vmatpush1.bf16.msra.mxu1 %v4203_v55 }
 0x1d6   : > { %3059 = vmatpush1.bf16.msra.mxu0 %v4203_v55  ;;  %3655 = vmatprep.subr.bf16.mxu1 %v4208_v56 }
 0x1d7   : > { %3060 = vmatprep.subr.bf16.mxu0 %v4208_v56 }
 0x1d9   : > { %3671 = vmatpush1.bf16.msra.mxu1 %v4206_v57 }
 0x1da   : > { %3061 = vmatpush1.bf16.msra.mxu0 %v4206_v57  ;;  %3656 = vmatprep.subr.bf16.mxu1 %v4211_v58 }
 0x1db   : > { %3062 = vmatprep.subr.bf16.mxu0 %v4211_v58 }
 0x1dd   : > { %3672 = vmatpush1.bf16.msra.mxu1 %v4209_v59 }
 0x1de   : > { %3063 = vmatpush1.bf16.msra.mxu0 %v4209_v59  ;;  %3657 = vmatprep.subr.bf16.mxu1 %v4214_v60 }
 0x1df   : > { %3064 = vmatprep.subr.bf16.mxu0 %v4214_v60 }
 0x1e1   : > { %3673 = vmatpush1.bf16.msra.mxu1 %v4212_v61 }
 0x1e2   : > { %3065 = vmatpush1.bf16.msra.mxu0 %v4212_v61  ;;  %3658 = vmatprep.subr.bf16.mxu1 %v4217_v62 }
 0x1e3   : > { %3066 = vmatprep.subr.bf16.mxu0 %v4217_v62 }
 0x1e5   : > { %3674 = vmatpush1.bf16.msra.mxu1 %v4215_v0 }
 0x1e6   : > { %3067 = vmatpush1.bf16.msra.mxu0 %v4215_v0  ;;  %3659 = vmatprep.subr.bf16.mxu1 %v4220_v1 }
 0x1e7   : > { %3068 = vmatprep.subr.bf16.mxu0 %v4220_v1 }
 0x1e9   : > { %3675 = vmatpush1.bf16.msra.mxu1 %v4218_v2 }
 0x1ea   : > { %3069 = vmatpush1.bf16.msra.mxu0 %v4218_v2  ;;  %3660 = vmatprep.subr.bf16.mxu1 %v4223_v3 }
 0x1eb   : > { %3070 = vmatprep.subr.bf16.mxu0 %v4223_v3 }
 0x1ed   : > { %3676 = vmatpush1.bf16.msra.mxu1 %v4221_v4 }
 0x1ee   : > { %3071 = vmatpush1.bf16.msra.mxu0 %v4221_v4  ;;  %v1164_v4 = vsub.s32 4, %v5356_v6 }
 0x1f0   : > { %3083 = vmatmul.mubr.bf16.vlgmr.msra.gmra.mrb[16].mxu1 %v5165_v23  ;;  %v2651_v23 = vadd.f32 %v5318_v42, %v1149_v11  ;;  %v1157_v42 = vrot.slane %v5362_v8, %v1156_v15  ;;  %v1165_v7 = vrot.slane %v5362_v8, %v1164_v4 }
 0x1f1   : > { %3073 = vmatmul.mubr.bf16.vlgmr.msra.gmra.mrb[8].mxu0 %v5139_v9  ;;  %v1153_v9 = vrot.slane %v5362_v8, %v1152_v10  ;;  %v1169_v10 = vrot.slane %v5362_v8, %v1168_v5 }
 0x1f3   : > { %v2653_v12 = vadd.f32 %v5320_v25, %v1153_v9  ;;  %v2657_v20 = vadd.f32 %v5325_v43, %v1153_v9  ;;  %v2663_v31 = vadd.f32 %v5332_v37, %v1153_v9  ;;  %v2667_v48 = vadd.f32 %v5338_v53, %v1153_v9 }
 0x1f4   : > { %v1161_v25 = vrot.slane %v5362_v8, %v1160_v41 }
 0x204   : > { %v2756_v14 = vpop.f32.mrb[0].mxu0 }
 0x205   : > { %v3678_v17 = vadd.f32 %v2756_v14, %v2651_v23  ;;  %v2758_v19 = vpop.f32.mrb[1].mxu0 }
 0x206   : > { %v3680_v21 = vadd.f32 %v2758_v19, %v2653_v12  ;;  %v2760_v22 = vpop.f32.mrb[2].mxu0 }
 0x207   : > { %v3682_v24 = vadd.f32 %v2760_v22, %v2655_v16  ;;  %v2762_v26 = vpop.f32.mrb[3].mxu0 }
 0x208   : > { %v3632_v27 = vpack.c.bf16 %v3680_v21, %v3678_v17  ;;  %v3684_v28 = vadd.f32 %v2762_v26, %v2657_v20 }
 0x20a   : > { %3165 = vst [vmem:[%s5373_s6] sm:$0xff] %v3632_v27  ;;  %v3635_v29 = vpack.c.bf16 %v3684_v28, %v3682_v24 }
 0x20c   : > { %3168 = vst [vmem:[%s5373_s6 + $0x18] sm:$0xff] %v3635_v29  ;;  %v2766_v32 = vpop.f32.mrb[4].mxu0 }
 0x20d   : > { %v3686_v35 = vadd.f32 %v2766_v32, %v2661_v30  ;;  %v2768_v36 = vpop.f32.mrb[5].mxu0 }
 0x20e   : > { %v3688_v38 = vadd.f32 %v2768_v36, %v2663_v31  ;;  %v2770_v39 = vpop.f32.mrb[6].mxu0 }
 0x20f   : > { %v3690_v40 = vadd.f32 %v2770_v39, %v2665_v33  ;;  %v2772_v51 = vpop.f32.mrb[7].mxu0 }
 0x210   : > { %v3638_v13 = vpack.c.bf16 %v3688_v38, %v3686_v35  ;;  %v3692_v54 = vadd.f32 %v2772_v51, %v2667_v48 }
 0x211   : > { %v3202_v48 = vld [vmem:[%s5373_s6] sm:$0xff] (%p4319_p6) }
 0x212   : > { %3171 = vst [vmem:[%s5373_s6 + $0x30] sm:$0xff] %v3638_v13  ;;  %v3641_v34 = vpack.c.bf16 %v3692_v54, %v3690_v40  ;;  %3203 = vst [vmem:[%s3189_s7] sm:$0xff] (%p4319_p6), %v3202_v48 }
 0x213   : > { %v3208_v40 = vld [vmem:[%s5373_s6 + $0x18] sm:$0xff] (%p4319_p6) }
 0x214   : > { %3174 = vst [vmem:[%s5373_s6 + $0x48] sm:$0xff] %v3641_v34  ;;  %3209 = vst [vmem:[%s3189_s7 + $0x48] sm:$0xff] (%p4319_p6), %v3208_v40 }
 0x219   : > { %v3214_v54 = vld [vmem:[%s5373_s6 + $0x30] sm:$0xff] (%p4319_p6) }
 0x21a   : > { %3215 = vst [vmem:[%s3189_s7 + $0x90] sm:$0xff] (%p4319_p6), %v3214_v54 }
 0x21b   : > { %v3220_v41 = vld [vmem:[%s5373_s6 + $0x48] sm:$0xff] (%p4319_p6) }
 0x21c   : > { %3221 = vst [vmem:[%s3189_s7 + $0xd8] sm:$0xff] (%p4319_p6), %v3220_v41 }
 0x283   : > { %v2915_v18 = vpop.f32.mrb[8].mxu1 }
 0x284   : > { %v3693_v63 = vadd.f32 %v2915_v18, %v1157_v42  ;;  %v2917_v43 = vpop.f32.mrb[9].mxu1 }
 0x285   : > { %v3694_v44 = vadd.f32 %v2917_v43, %v1161_v25  ;;  %v2919_v45 = vpop.f32.mrb[10].mxu1 }
 0x286   : > { %v3695_v46 = vadd.f32 %v2919_v45, %v1157_v42  ;;  %v2921_v47 = vpop.f32.mrb[11].mxu1 }
 0x287   : > { %v3633_v37 = vpack.c.bf16 %v3694_v44, %v3693_v63  ;;  %v3696_v49 = vadd.f32 %v2921_v47, %v1161_v25 }
 0x289   : > { %3166 = vst [vmem:[%s5373_s6 + $0x8] sm:$0xff] %v3633_v37  ;;  %v3636_v50 = vpack.c.bf16 %v3696_v49, %v3695_v46 }
 0x28b   : > { %3169 = vst [vmem:[%s5373_s6 + $0x20] sm:$0xff] %v3636_v50  ;;  %v2925_v52 = vpop.f32.mrb[12].mxu1 }
 0x28c   : > { %v3031_v53 = vpop.f32.mrb[12].mxu0  ;;  %v3697_v55 = vadd.f32 %v2925_v52, %v1157_v42  ;;  %v2927_v56 = vpop.f32.mrb[13].mxu1 }
 0x28d   : > { %v3033_v57 = vpop.f32.mrb[13].mxu0  ;;  %v3698_v58 = vadd.f32 %v2927_v56, %v1161_v25  ;;  %v2929_v59 = vpop.f32.mrb[14].mxu1  ;;  %v3705_v11 = vadd.f32 %v3031_v53, %v1165_v7 }
 0x28e   : > { %v3035_v60 = vpop.f32.mrb[14].mxu0  ;;  %v3699_v61 = vadd.f32 %v2929_v59, %v1157_v42  ;;  %v2931_v62 = vpop.f32.mrb[15].mxu1  ;;  %v3707_v9 = vadd.f32 %v3033_v57, %v1169_v10 }
 0x28f   : > { %v3037_v0 = vpop.f32.mrb[15].mxu0  ;;  %v3639_v1 = vpack.c.bf16 %v3698_v58, %v3697_v55  ;;  %v3700_v2 = vadd.f32 %v2931_v62, %v1161_v25  ;;  %v3709_v14 = vadd.f32 %v3035_v60, %v1165_v7 }
 0x290   : > { %v3711_v21 = vadd.f32 %v3037_v0, %v1169_v10  ;;  %v3204_v38 = vld [vmem:[%s5373_s6 + $0x8] sm:$0xff] (%p4319_p6) }
 0x291   : > { %3172 = vst [vmem:[%s5373_s6 + $0x38] sm:$0xff] %v3639_v1  ;;  %v3642_v3 = vpack.c.bf16 %v3700_v2, %v3699_v61  ;;  %3205 = vst [vmem:[%s3189_s7 + $0x8] sm:$0xff] (%p4319_p6), %v3204_v38 }
 0x292   : > { %v3210_v51 = vld [vmem:[%s5373_s6 + $0x20] sm:$0xff] (%p4319_p6) }
 0x293   : > { %3175 = vst [vmem:[%s5373_s6 + $0x50] sm:$0xff] %v3642_v3  ;;  %3211 = vst [vmem:[%s3189_s7 + $0x50] sm:$0xff] (%p4319_p6), %v3210_v51 }
 0x298   : > { %v3216_v34 = vld [vmem:[%s5373_s6 + $0x38] sm:$0xff] (%p4319_p6) }
 0x299   : > { %3217 = vst [vmem:[%s3189_s7 + $0x98] sm:$0xff] (%p4319_p6), %v3216_v34 }
 0x29a   : > { %v3222_v42 = vld [vmem:[%s5373_s6 + $0x50] sm:$0xff] (%p4319_p6) }
 0x29b   : > { %3223 = vst [vmem:[%s3189_s7 + $0xe0] sm:$0xff] (%p4319_p6), %v3222_v42 }
 0x2c3   : > { %v3084_v12 = vpop.f32.mrb[16].mxu1 }
 0x2c4   : > { %v3074_v23 = vpop.f32.mrb[8].mxu0  ;;  %v3706_v17 = vadd.f32 %v3705_v11, %v3084_v12  ;;  %v3086_v20 = vpop.f32.mrb[17].mxu1 }
 0x2c5   : > { %v3701_v16 = vadd.f32 %v3074_v23, %v1165_v7  ;;  %v3076_v19 = vpop.f32.mrb[9].mxu0  ;;  %v3708_v24 = vadd.f32 %v3707_v9, %v3086_v20  ;;  %v3088_v26 = vpop.f32.mrb[18].mxu1 }
 0x2c6   : > { %v3702_v22 = vadd.f32 %v3076_v19, %v1169_v10  ;;  %v3078_v6 = vpop.f32.mrb[10].mxu0  ;;  %v3710_v8 = vadd.f32 %v3709_v14, %v3088_v26  ;;  %v3090_v29 = vpop.f32.mrb[19].mxu1  ;;  %3183 = sbr.rel (!%p4319_p6) target bundleno = 725 (0x2d5), region = 59 }
 0x2c7   : > { %v3703_v27 = vadd.f32 %v3078_v6, %v1165_v7  ;;  %v3080_v28 = vpop.f32.mrb[11].mxu0  ;;  %v3640_v31 = vpack.c.bf16 %v3708_v24, %v3706_v17  ;;  %v3712_v33 = vadd.f32 %v3711_v21, %v3090_v29 }
 0x2c8   : > { %v3634_v30 = vpack.c.bf16 %v3702_v22, %v3701_v16  ;;  %v3704_v32 = vadd.f32 %v3080_v28, %v1169_v10 }
 0x2c9   : > { %3173 = vst [vmem:[%s5373_s6 + $0x40] sm:$0xff] %v3640_v31  ;;  %v3643_v36 = vpack.c.bf16 %v3712_v33, %v3710_v8 }
 0x2ca   : > { %3167 = vst [vmem:[%s5373_s6 + $0x10] sm:$0xff] %v3634_v30  ;;  %v3637_v35 = vpack.c.bf16 %v3704_v32, %v3703_v27 }
 0x2cb   : > { %3176 = vst [vmem:[%s5373_s6 + $0x58] sm:$0xff] %v3643_v36 }
 0x2cc   : > { %3170 = vst [vmem:[%s5373_s6 + $0x28] sm:$0xff] %v3637_v35 }
 0x2d0   : > { %v3218_v15 = vld [vmem:[%s5373_s6 + $0x40] sm:$0xff] }
 0x2d1   : > { %v3206_v39 = vld [vmem:[%s5373_s6 + $0x10] sm:$0xff]  ;;  %3219 = vst [vmem:[%s3189_s7 + $0xa0] sm:$0xff] %v3218_v15 }
 0x2d2   : > { %3207 = vst [vmem:[%s3189_s7 + $0x10] sm:$0xff] %v3206_v39  ;;  %v3224_v25 = vld [vmem:[%s5373_s6 + $0x58] sm:$0xff] }
 0x2d3   : > { %v3212_v13 = vld [vmem:[%s5373_s6 + $0x28] sm:$0xff]  ;;  %3225 = vst [vmem:[%s3189_s7 + $0xe8] sm:$0xff] %v3224_v25 }
 0x2d4   : > { %3213 = vst [vmem:[%s3189_s7 + $0x58] sm:$0xff] %v3212_v13 }
 0x2d5 PF: > { %s13_s16 = sadd.s32 1, %s4262_s16   ;;  %s5437_s12 = smov %s4250_s13 }
 0x2d6   : > { %p10_p12 = scmp.ge.s32.totalorder %s13_s16, 5   ;;  %s5438_s13 = smov %s4324_s22 }
 0x2d7   : > { %s5439_s14 = smov %s4258_s15  ;;  %s5440_s15 = smov %s5442_s17 }
 0x2d8   :  { %12 = sbr.rel (!%p10_p12) target bundleno = 3 (0x3), region = 119 }

// kernel: bert_classifier_forward.12
= control target key start
LH: loop header
LB: loop body
LE: loop exit
PB: predicated region body
PF: predicated region fallthrough
CT: control target
= control target key end

     0   :  { %s2752_s15 = smov 0   ;;  %s2754_s16 = smov 0   ;;  %s3336_s0 = inlined_call_operand.vmem [shape: bf16[32,2304], index: 0, kind: input, shape index: {}, may-alias: {0,1,2}]   ;;  %s3337_s1 = inlined_call_operand.vmem [shape: bf16[32,2304], index: 1, kind: input, shape index: {}, may-alias: {0,1,2}]   ;;  %s3338_s2 = inlined_call_operand.vmem [shape: bf16[32,2304], index: 2, kind: input, shape index: {}, may-alias: {0,1,2}]   ;;  %s3339_s3 = inlined_call_operand.vmem [shape: f32[2,1,16], index: 3, kind: input, shape index: {}]   ;;  %s3340_s4 = inlined_call_operand.vmem [shape: bf16[32,768], index: 4, kind: output, shape index: {}]  }
   0x1   :  { %s2756_s17 = smov 0   ;;  %s2758_s18 = smov 0  }
   0x2   :  { %s2760_s19 = smov 0  }
   0x3 LB: > { %s26_s20 = sadd.s32 1, %s2718_s18  ;;  %p42_p1 = scmp.ne.s32.totalorder %s2710_s16, %s2706_s15  ;;  %s2722_s19 = sphi %s2760_s19, %s14_s19   ;;  %s2718_s18 = sphi %s2758_s18, %s3345_s18   ;;  %s2714_s17 = sphi %s2756_s17, %s3344_s17   ;;  %s2710_s16 = sphi %s2754_s16, %s3343_s16   ;;  %s2706_s15 = sphi %s2752_s15, %s3342_s15  }
   0x4   : > { %p28_p0 = scmp.ge.s32.totalorder %s26_s20, 2  ;;  %p43_p2 = scmp.eq.s32.totalorder %s2722_s19, 0 }
   0x5   : > { %s35_s23 = sadd.s32 1, %s2710_s16  ;;  %p2212_p5 = scmp.ge.s32.totalorder %s2722_s19, 2 }
   0x6   : > { %s3347_s20 = smov (%p28_p0, %s26_s20), 0  ;;  %p2783_p3 = por %p43_p2, %p42_p1 }
   0x7   : > { %s30_s22 = ssub.s32 %s2718_s18, %s3347_s20  ;;  %182 = sbr.rel (%p2212_p5) target bundleno = 38 (0x26), region = 16 }
   0x8   : > { %p33_p4 = scmp.eq.s32.totalorder %s30_s22, 0 }
   0xa   : > { %s2791_s24 = scalar_select %p33_p4, %s2710_s16, %s35_s23  }
   0xe   : > { %185 = sbr.rel (!%p2783_p3) target bundleno = 22 (0x16), region = 20  ;;  %s187_s25 = sand.u32 (%p2783_p3), 1, %s2710_s16  }
   0xf   : > { %s2483_s26 = smul.u32 (%p2783_p3), 144, %s2718_s18 }
  0x10   : > { %s2482_s27 = smul.u32 (%p2783_p3), 48, %s187_s25 }
  0x11   : > { %s195_s30 = scalar_lea.vmem (%p2783_p3), %s3336_s0, %s2483_s26 }
  0x12   : > { %v208_v0 = vld [vmem:[%s195_s30] sm:$0xff] (%p2783_p3)  ;;  %v210_v1 = vld [vmem:[%s195_s30 + $0x8] sm:$0xff] (%p2783_p3)  ;;  %v212_v2 = vld [vmem:[%s195_s30 + $0x10] sm:$0xff] (%p2783_p3)  ;;  %s189_s5 = scalar_lea.vmem (%p2783_p3), [#allocation2], %s2482_s27 }
  0x13   : > { %209 = vst [vmem:[%s189_s5] sm:$0xff] (%p2783_p3), %v208_v0  ;;  %211 = vst [vmem:[%s189_s5 + $0x8] sm:$0xff] (%p2783_p3), %v210_v1  ;;  %v214_v3 = vld [vmem:[%s195_s30 + $0x48] sm:$0xff] (%p2783_p3)  ;;  %v216_v4 = vld [vmem:[%s195_s30 + $0x50] sm:$0xff] (%p2783_p3) }
  0x14   : > { %213 = vst [vmem:[%s189_s5 + $0x10] sm:$0xff] (%p2783_p3), %v212_v2  ;;  %v218_v5 = vld [vmem:[%s195_s30 + $0x58] sm:$0xff] (%p2783_p3)  ;;  %215 = vst [vmem:[%s189_s5 + $0x18] sm:$0xff] (%p2783_p3), %v214_v3 }
  0x15   : > { %217 = vst [vmem:[%s189_s5 + $0x20] sm:$0xff] %v216_v4  ;;  %219 = vst [vmem:[%s189_s5 + $0x28] sm:$0xff] %v218_v5 }
  0x16 PF: > { %225 = sbr.rel (!%p2783_p3) target bundleno = 30 (0x1e), region = 43  ;;  %s227_s6 = sand.u32 (%p2783_p3), 1, %s2710_s16  }
  0x17   : > { %s2216_s7 = smul.u32 (%p2783_p3), 144, %s2718_s18 }
  0x18   : > { %s2484_s8 = smul.u32 (%p2783_p3), 48, %s227_s6 }
  0x19   : > { %s2109_s11 = scalar_lea.vmem (%p2783_p3), %s3337_s1, %s2216_s7 }
  0x1a   : > { %v2217_v6 = vld [vmem:[%s2109_s11 + $0x18] sm:$0xff] (%p2783_p3)  ;;  %v2218_v7 = vld [vmem:[%s2109_s11 + $0x20] sm:$0xff] (%p2783_p3)  ;;  %v2219_v8 = vld [vmem:[%s2109_s11 + $0x28] sm:$0xff] (%p2783_p3)  ;;  %s229_s12 = scalar_lea.vmem (%p2783_p3), [#allocation3], %s2484_s8 }
  0x1b   : > { %250 = vst [vmem:[%s229_s12] sm:$0xff] (%p2783_p3), %v2217_v6  ;;  %252 = vst [vmem:[%s229_s12 + $0x8] sm:$0xff] (%p2783_p3), %v2218_v7  ;;  %v2220_v9 = vld [vmem:[%s2109_s11 + $0x60] sm:$0xff] (%p2783_p3)  ;;  %v2221_v10 = vld [vmem:[%s2109_s11 + $0x68] sm:$0xff] (%p2783_p3) }
  0x1c   : > { %254 = vst [vmem:[%s229_s12 + $0x10] sm:$0xff] (%p2783_p3), %v2219_v8  ;;  %v2222_v11 = vld [vmem:[%s2109_s11 + $0x70] sm:$0xff] (%p2783_p3)  ;;  %256 = vst [vmem:[%s229_s12 + $0x18] sm:$0xff] (%p2783_p3), %v2220_v9 }
  0x1d   : > { %258 = vst [vmem:[%s229_s12 + $0x20] sm:$0xff] %v2221_v10  ;;  %260 = vst [vmem:[%s229_s12 + $0x28] sm:$0xff] %v2222_v11 }
  0x1e PF: > { %266 = sbr.rel (!%p2783_p3) target bundleno = 38 (0x26), region = 66  ;;  %s268_s13 = sand.u32 (%p2783_p3), 1, %s2710_s16  }
  0x1f   : > { %s2223_s14 = smul.u32 (%p2783_p3), 144, %s2718_s18 }
  0x20   : > { %s2485_s22 = smul.u32 (%p2783_p3), 48, %s268_s13 }
  0x21   : > { %s2117_s26 = scalar_lea.vmem (%p2783_p3), %s3338_s2, %s2223_s14 }
  0x22   : > { %v2224_v12 = vld [vmem:[%s2117_s26 + $0x30] sm:$0xff] (%p2783_p3)  ;;  %v2225_v13 = vld [vmem:[%s2117_s26 + $0x38] sm:$0xff] (%p2783_p3)  ;;  %v2226_v14 = vld [vmem:[%s2117_s26 + $0x40] sm:$0xff] (%p2783_p3)  ;;  %s270_s27 = scalar_lea.vmem (%p2783_p3), [#allocation4], %s2485_s22 }
  0x23   : > { %291 = vst [vmem:[%s270_s27] sm:$0xff] (%p2783_p3), %v2224_v12  ;;  %293 = vst [vmem:[%s270_s27 + $0x8] sm:$0xff] (%p2783_p3), %v2225_v13  ;;  %v2227_v15 = vld [vmem:[%s2117_s26 + $0x78] sm:$0xff] (%p2783_p3)  ;;  %v2228_v16 = vld [vmem:[%s2117_s26 + $0x80] sm:$0xff] (%p2783_p3) }
  0x24   : > { %295 = vst [vmem:[%s270_s27 + $0x10] sm:$0xff] (%p2783_p3), %v2226_v14  ;;  %v2229_v17 = vld [vmem:[%s2117_s26 + $0x88] sm:$0xff] (%p2783_p3)  ;;  %297 = vst [vmem:[%s270_s27 + $0x18] sm:$0xff] (%p2783_p3), %v2227_v15 }
  0x25   : > { %299 = vst [vmem:[%s270_s27 + $0x20] sm:$0xff] %v2228_v16  ;;  %301 = vst [vmem:[%s270_s27 + $0x28] sm:$0xff] %v2229_v17 }
  0x26 PF: > { %p2230_p6 = scmp.ge.s32.totalorder %s2722_s19, 1  ;;  %p312_p7 = scmp.lt.s32.totalorder %s2722_s19, 3 }
  0x28   : > { %p313_p8 = pnand %p2230_p6, %p312_p7 }
  0x29   : > { %s319_s21 = sand.u32 (!%p313_p8), 1, %s2706_s15   ;;  %v2724_v18 = vmov (!%p313_p8), 0.0   ;;  %vm2725_vm0 = vmmov (!%p313_p8), 0   ;;  %vm427_vm1 = vcmask (!%p313_p8), 523264   ;;  %p382_p9 = scmp.lt.s32.totalorder (!%p313_p8), %s2714_s17, 1  ;;  %vm485_vm2 = vcmask (!%p313_p8), 130048  }
  0x2a   : > { %316 = sbr.rel (%p313_p8) target bundleno = 1606 (0x646), region = 93  ;;  %2338 = vmatprep.subr.bf16.mxu0 (!%p313_p8), %v2724_v18  ;;  %2340 = vmatprep.mubr.msk.bf16.mxu0 (!%p313_p8), %vm2725_vm0, %v2724_v18  ;;  %s2726_s8 = smov (!%p313_p8), 64  }
  0x2b   : > { %s2819_s28 = smul.u32 (!%p313_p8), 48, %s319_s21  ;;  %2344 = vmatprep.subr.bf16.mxu1 (!%p313_p8), %v2724_v18  ;;  %2346 = vmatprep.mubr.msk.bf16.mxu1 (!%p313_p8), %vm2725_vm0, %v2724_v18  ;;  %s2231_s10 = sshll.u32 (!%p313_p8), %s2714_s17, 1 }
  0x2c   : > { %p387_p10 = scmp.lt.s32.totalorder (!%p313_p8), %s2231_s10, 3 }
  0x2d   : > { %s2827_s15 = scalar_lea.vmem (!%p313_p8), [#allocation3], %s2819_s28  ;;  %s2831_s29 = scalar_lea.vmem (!%p313_p8), [#allocation2], %s2819_s28 }
  0x2e   : > { %v2561_v19 = vld [vmem:[%s2827_s15] ss:$24 sps:$4 sm:$0xff] (!%p313_p8)   ;;  %v2857_v34 = vld [vmem:[%s2827_s15 + $0xc] ss:$24 sps:$4 sm:$0xff] (!%p313_p8)   ;;  %v2862_v35 = vld [vmem:[%s2827_s15 + $0x10] ss:$24 sps:$4 sm:$0xff] (!%p313_p8)  }
  0x2f   : > { %v432_v20 = vsel (!%p313_p8), %vm427_vm1, %v2561_v19, 0  ;;  %v2563_v21 = vld [vmem:[%s2831_s29] ss:$24 sps:$4 sm:$0xff] (!%p313_p8)   ;;  %v2867_v36 = vld [vmem:[%s2827_s15 + $0x14] ss:$24 sps:$4 sm:$0xff] (!%p313_p8)   ;;  %s2874_s9 = scalar_lea.vmem (!%p313_p8), [#allocation4], %s2819_s28 }
  0x30   : > { %2339 = vmatpush3.bf16.xpose.msra.mxu0 (!%p313_p8), %v432_v20  ;;  %v2852_v33 = vld [vmem:[%s2827_s15 + $0x8] ss:$24 sps:$4 sm:$0xff] (!%p313_p8)   ;;  %v2565_v48 = vld [vmem:[%s2827_s15 + $0x4] ss:$24 sps:$4 sm:$0xff] (!%p313_p8)   ;;  %v2896_v53 = vld [vmem:[%s2831_s29 + $0x14] ss:$24 sps:$4 sm:$0xff] (!%p313_p8)  }
  0x31   : > { %2356 = vmatprep.subr.bf16.mxu0 %v2724_v18  ;;  %s383_s30 = scalar_select %p382_p9, %s2714_s17, 1  ;;  %v2877_v47 = vld [vmem:[%s2874_s9] ss:$24 sps:$4 sm:$0xff]   ;;  %v2566_v49 = vld [vmem:[%s2831_s29 + $0x4] ss:$24 sps:$4 sm:$0xff]   ;;  %v694_v0 = vsel %vm427_vm1, %v2565_v48, 0 }
  0x32   : > { %2345 = vmatpush3.bf16.msra.mxu1 %v2877_v47  ;;  %v2569_v50 = vld [vmem:[%s2831_s29 + $0x8] ss:$24 sps:$4 sm:$0xff]   ;;  %v2572_v51 = vld [vmem:[%s2831_s29 + $0xc] ss:$24 sps:$4 sm:$0xff]   ;;  %v951_v4 = vsel %vm427_vm1, %v2852_v33, 0  ;;  %v1206_v8 = vsel %vm427_vm1, %v2857_v34, 0 }
  0x33   : > { %s384_s7 = scalar_lea.vmem %s3339_s3, %s383_s30  ;;  %2350 = vmatprep.subr.bf16.mxu1 %v2724_v18  ;;  %v2891_v52 = vld [vmem:[%s2831_s29 + $0x10] ss:$24 sps:$4 sm:$0xff]   ;;  %v1463_v12 = vsel %vm427_vm1, %v2862_v35, 0  ;;  %v1718_v16 = vsel %vm427_vm1, %v2867_v36, 0  ;;  %s3349_s10 = smov (!%p387_p10, %s2231_s10), 3 }
  0x34   : > { %v2844_v23 = vld [vmem:[%s384_s7] ss:$0 sm:$0xff]  ;;  %s2487_s11 = smul.u32 24, %s3349_s10 }
  0x36   : > { %s3300_s14 = scalar_lea.vmem %s3340_s4, %s2487_s11 }
  0x37   : > { %2341 = vmatmul.mubr.msk.bf16.vlgmr.msra.gmra.mrb[0].mxu0 %vm427_vm1, %v2563_v21 }
  0x38   : > { %2358 = vmatprep.mubr.msk.bf16.mxu0 %vm2725_vm0, %v2724_v18 }
 0x10a   : > { %v468_v22 = vpop.f32.mrb[0].mxu0 }
 0x10b   : > { %v475_v24 = vmul.f32 0.125, %v468_v22  ;;  %v2342_v25 = vpop.f32.mrb[1].mxu0 }
 0x10c   : > { %v471_v26 = vpop.f32.mrb[2].mxu0 }
 0x10d   : > { %v476_v27 = vmul.f32 0.125, %v471_v26  ;;  %v2343_v28 = vpop.f32.mrb[3].mxu0  ;;  %v483_v29 = vadd.f32 %v2844_v23, %v475_v24 }
 0x10f   : > { %v486_v30 = vsel %vm485_vm2, %v483_v29, -inf  ;;  %v484_v31 = vadd.f32 %v2844_v23, %v476_v27 }
 0x110   : > { %487 = vmax.xlane.f32.xlu0 %v486_v30 }
 0x111   : > { %v489_v32 = vsel %vm485_vm2, %v484_v31, -inf }
 0x114   : > { %490 = vmax.xlane.f32.xlu0 %v489_v32 }
 0x12a   : > { %561 = vrot.lane.b32.xlu0 %v2561_v19, %s2726_s8 }
 0x12e   : > { %1073 = vrot.lane.b32.xlu0 %v2852_v33, %s2726_s8 }
 0x132   : > { %1326 = vrot.lane.b32.xlu0 %v2857_v34, %s2726_s8 }
 0x136   : > { %1585 = vrot.lane.b32.xlu0 %v2862_v35, %s2726_s8 }
 0x13a   : > { %1838 = vrot.lane.b32.xlu0 %v2867_v36, %s2726_s8 }
 0x19d   : > { %v488_v37 = vpop.xlane.xlu0 %487 }
 0x19e   : > { %v492_v38 = vsub.f32 %v483_v29, %v488_v37 }
 0x1a0   : > { %v494_v39 = vmul.f32 1.442695, %v492_v38 }
 0x1a1   : > { %v491_v40 = vpop.xlane.xlu0 %490 }
 0x1a2   : > { %2588 = vpow2.f32 %v494_v39  ;;  %v493_v41 = vsub.f32 %v484_v31, %v491_v40 }
 0x1a4   : > { %v496_v42 = vmul.f32 1.442695, %v493_v41 }
 0x1a5   : > { %v562_v58 = vpop.permute.xlu0 %561 }
 0x1a6   : > { %2590 = vpow2.f32 %v496_v42  ;;  %v567_v61 = vsel %vm427_vm1, %v562_v58, 0 }
 0x1a9   : > { %v1074_v5 = vpop.permute.xlu0 %1073 }
 0x1aa   : > { %v1079_v6 = vsel %vm427_vm1, %v1074_v5, 0 }
 0x1ac   : > { %v2589_v43 = vpop.eup %2588 }
 0x1ad   : > { %v498_v44 = vsel %vm485_vm2, %v2589_v43, 0.0  ;;  %v1327_v9 = vpop.permute.xlu0 %1326 }
 0x1ae   : > { %499 = vadd.xlane.f32.xlu1 %v498_v44  ;;  %v1332_v10 = vsel %vm427_vm1, %v1327_v9, 0 }
 0x1b0   : > { %v2591_v45 = vpop.eup %2590 }
 0x1b1   : > { %v501_v46 = vsel %vm485_vm2, %v2591_v45, 0.0  ;;  %v1586_v13 = vpop.permute.xlu0 %1585 }
 0x1b2   : > { %502 = vadd.xlane.f32.xlu1 %v501_v46  ;;  %v1591_v14 = vsel %vm427_vm1, %v1586_v13, 0 }
 0x1b5   : > { %v1839_v17 = vpop.permute.xlu0 %1838 }
 0x1b6   : > { %v1844_v19 = vsel %vm427_vm1, %v1839_v17, 0 }
 0x1c3   : > { %559 = vrot.lane.b32.xlu1 %v2563_v21, %s2726_s8 }
 0x1c7   : > { %814 = vrot.lane.b32.xlu1 %v2565_v48, %s2726_s8 }
 0x1cb   : > { %812 = vrot.lane.b32.xlu1 %v2566_v49, %s2726_s8 }
 0x1cf   : > { %1071 = vrot.lane.b32.xlu1 %v2569_v50, %s2726_s8 }
 0x1d3   : > { %1324 = vrot.lane.b32.xlu1 %v2572_v51, %s2726_s8 }
 0x1d7   : > { %1583 = vrot.lane.b32.xlu1 %v2891_v52, %s2726_s8 }
 0x1db   : > { %1836 = vrot.lane.b32.xlu1 %v2896_v53, %s2726_s8 }
 0x23b   : > { %v500_v54 = vpop.xlane.xlu1 %499 }
 0x23c   : > { %2592 = vrcp.f32 %v500_v54 }
 0x23f   : > { %v503_v55 = vpop.xlane.xlu1 %502 }
 0x240   : > { %2594 = vrcp.f32 %v503_v55 }
 0x243   : > { %v560_v63 = vpop.permute.xlu1 %559 }
 0x246   : > { %v2593_v56 = vpop.eup %2592 }
 0x247   : > { %v506_v59 = vmul.f32 %v2593_v56, %v2589_v43  ;;  %v815_v1 = vpop.permute.xlu1 %814 }
 0x248   : > { %v820_v2 = vsel %vm427_vm1, %v815_v1, 0 }
 0x24a   : > { %v2595_v57 = vpop.eup %2594 }
 0x24b   : > { %v507_v60 = vmul.f32 %v2595_v57, %v2591_v45  ;;  %v813_v3 = vpop.permute.xlu1 %812 }
 0x24d   : > { %v508_v62 = vpack.c.bf16 %v507_v60, %v506_v59 }
 0x24f   : > { %2347 = vmatmul.mubr.msk.bf16.vlgmr.msra.gmra.mrb[0].mxu1 %vm485_vm2, %v508_v62  ;;  %v1072_v7 = vpop.permute.xlu1 %1071 }
 0x250   : > { %2351 = vmatpush3.bf16.xpose.msra.mxu1 %v567_v61  ;;  %2352 = vmatprep.mubr.msk.bf16.mxu1 %vm2725_vm0, %v2724_v18 }
 0x251   : > { %2362 = vmatprep.subr.bf16.mxu1 %v2724_v18 }
 0x253   : > { %v1325_v11 = vpop.permute.xlu1 %1324 }
 0x257   : > { %2353 = vmatmul.mubr.msk.bf16.vlgmr.msra.gmra.mrb[4].mxu1 %vm427_vm1, %v560_v63  ;;  %v1584_v15 = vpop.permute.xlu1 %1583 }
 0x258   : > { %2363 = vmatpush3.bf16.xpose.msra.mxu1 %v694_v0  ;;  %2364 = vmatprep.mubr.msk.bf16.mxu1 %vm2725_vm0, %v2724_v18 }
 0x259   : > { %2374 = vmatprep.subr.bf16.mxu1 %v2724_v18 }
 0x25b   : > { %v1837_v20 = vpop.permute.xlu1 %1836 }
 0x25f   : > { %2365 = vmatmul.mubr.msk.bf16.vlgmr.msra.gmra.mrb[8].mxu1 %vm427_vm1, %v2566_v49 }
 0x260   : > { %2375 = vmatpush3.bf16.xpose.msra.mxu1 %v820_v2  ;;  %2376 = vmatprep.mubr.msk.bf16.mxu1 %vm2725_vm0, %v2724_v18 }
 0x261   : > { %2386 = vmatprep.subr.bf16.mxu1 %v2724_v18 }
 0x267   : > { %2377 = vmatmul.mubr.msk.bf16.vlgmr.msra.gmra.mrb[12].mxu1 %vm427_vm1, %v813_v3 }
 0x268   : > { %2387 = vmatpush3.bf16.xpose.msra.mxu1 %v951_v4  ;;  %2388 = vmatprep.mubr.msk.bf16.mxu1 %vm2725_vm0, %v2724_v18 }
 0x269   : > { %2398 = vmatprep.subr.bf16.mxu1 %v2724_v18 }
 0x26f   : > { %2389 = vmatmul.mubr.msk.bf16.vlgmr.msra.gmra.mrb[16].mxu1 %vm427_vm1, %v2569_v50 }
 0x270   : > { %2399 = vmatpush3.bf16.xpose.msra.mxu1 %v1079_v6  ;;  %2400 = vmatprep.mubr.msk.bf16.mxu1 %vm2725_vm0, %v2724_v18 }
 0x271   : > { %2410 = vmatprep.subr.bf16.mxu1 %v2724_v18 }
 0x277   : > { %2401 = vmatmul.mubr.msk.bf16.vlgmr.msra.gmra.mrb[20].mxu1 %vm427_vm1, %v1072_v7 }
 0x278   : > { %2411 = vmatpush3.bf16.xpose.msra.mxu1 %v1206_v8  ;;  %2412 = vmatprep.mubr.msk.bf16.mxu1 %vm2725_vm0, %v2724_v18 }
 0x279   : > { %2422 = vmatprep.subr.bf16.mxu1 %v2724_v18 }
 0x27f   : > { %2413 = vmatmul.mubr.msk.bf16.vlgmr.msra.gmra.mrb[24].mxu1 %vm427_vm1, %v2572_v51 }
 0x280   : > { %2423 = vmatpush3.bf16.xpose.msra.mxu1 %v1332_v10  ;;  %2424 = vmatprep.mubr.msk.bf16.mxu1 %vm2725_vm0, %v2724_v18 }
 0x281   : > { %2434 = vmatprep.subr.bf16.mxu1 %v2724_v18 }
 0x287   : > { %2425 = vmatmul.mubr.msk.bf16.vlgmr.msra.gmra.mrb[28].mxu1 %vm427_vm1, %v1325_v11 }
 0x288   : > { %2435 = vmatpush3.bf16.xpose.msra.mxu1 %v1463_v12  ;;  %2436 = vmatprep.mubr.msk.bf16.mxu1 %vm2725_vm0, %v2724_v18 }
 0x289   : > { %2446 = vmatprep.subr.bf16.mxu1 %v2724_v18 }
 0x28f   : > { %2437 = vmatmul.mubr.msk.bf16.vlgmr.msra.gmra.mrb[32].mxu1 %vm427_vm1, %v2891_v52 }
 0x290   : > { %2447 = vmatpush3.bf16.xpose.msra.mxu1 %v1591_v14  ;;  %2448 = vmatprep.mubr.msk.bf16.mxu1 %vm2725_vm0, %v2724_v18 }
 0x291   : > { %2458 = vmatprep.subr.bf16.mxu1 %v2724_v18 }
 0x297   : > { %2449 = vmatmul.mubr.msk.bf16.vlgmr.msra.gmra.mrb[36].mxu1 %vm427_vm1, %v1584_v15 }
 0x298   : > { %2459 = vmatpush3.bf16.xpose.msra.mxu1 %v1718_v16  ;;  %2460 = vmatprep.mubr.msk.bf16.mxu1 %vm2725_vm0, %v2724_v18 }
 0x299   : > { %2470 = vmatprep.subr.bf16.mxu1 %v2724_v18 }
 0x29f   : > { %2461 = vmatmul.mubr.msk.bf16.vlgmr.msra.gmra.mrb[40].mxu1 %vm427_vm1, %v2896_v53 }
 0x2a0   : > { %2471 = vmatpush3.bf16.xpose.msra.mxu1 %v1844_v19  ;;  %2472 = vmatprep.mubr.msk.bf16.mxu1 %vm2725_vm0, %v2724_v18 }
 0x2a7   : > { %2473 = vmatmul.mubr.msk.bf16.vlgmr.msra.gmra.mrb[44].mxu1 %vm427_vm1, %v1837_v20 }
 0x322   : > { %v2961_v21 = vpop.f32.mrb[0].mxu1 }
 0x323   : > { %v2348_v22 = vpop.f32.mrb[1].mxu1 }
 0x324   : > { %v2963_v24 = vpop.f32.mrb[2].mxu1 }
 0x325   : > { %v2349_v25 = vpop.f32.mrb[3].mxu1 }
 0x32a   : > { %v603_v26 = vpop.f32.mrb[4].mxu1 }
 0x32b   : > { %v610_v27 = vmul.f32 0.125, %v603_v26  ;;  %v2354_v28 = vpop.f32.mrb[5].mxu1 }
 0x32c   : > { %v606_v29 = vpop.f32.mrb[6].mxu1 }
 0x32d   : > { %v611_v30 = vmul.f32 0.125, %v606_v29  ;;  %v2355_v31 = vpop.f32.mrb[7].mxu1  ;;  %v2966_v32 = vadd.f32 %v2844_v23, %v610_v27 }
 0x32f   : > { %v614_v33 = vsel %vm485_vm2, %v2966_v32, -inf  ;;  %v2971_v34 = vadd.f32 %v2844_v23, %v611_v30 }
 0x330   : > { %615 = vmax.xlane.f32.xlu0 %v614_v33 }
 0x331   : > { %v617_v35 = vsel %vm485_vm2, %v2971_v34, -inf }
 0x332   : > { %618 = vmax.xlane.f32.xlu1 %v617_v35  ;;  %v730_v36 = vpop.f32.mrb[8].mxu1 }
 0x333   : > { %v2366_v37 = vpop.f32.mrb[9].mxu1  ;;  %v737_v6 = vmul.f32 0.125, %v730_v36 }
 0x334   : > { %v733_v38 = vpop.f32.mrb[10].mxu1 }
 0x335   : > { %v2367_v39 = vpop.f32.mrb[11].mxu1  ;;  %v738_v11 = vmul.f32 0.125, %v733_v38  ;;  %v3001_v12 = vadd.f32 %v2844_v23, %v737_v6 }
 0x337   : > { %v741_v19 = vsel %vm485_vm2, %v3001_v12, -inf  ;;  %v3008_v20 = vadd.f32 %v2844_v23, %v738_v11 }
 0x339   : > { %v744_v28 = vsel %vm485_vm2, %v3008_v20, -inf }
 0x33a   : > { %v856_v40 = vpop.f32.mrb[12].mxu1 }
 0x33b   : > { %v2378_v41 = vpop.f32.mrb[13].mxu1  ;;  %v863_v16 = vmul.f32 0.125, %v856_v40 }
 0x33c   : > { %v859_v42 = vpop.f32.mrb[14].mxu1 }
 0x33d   : > { %v864_v43 = vmul.f32 0.125, %v859_v42  ;;  %v2379_v44 = vpop.f32.mrb[15].mxu1  ;;  %v3016_v29 = vadd.f32 %v2844_v23, %v863_v16 }
 0x33f   : > { %v2976_v45 = vadd.f32 %v2844_v23, %v864_v43  ;;  %v867_v37 = vsel %vm485_vm2, %v3016_v29, -inf }
 0x341   : > { %v870_v46 = vsel %vm485_vm2, %v2976_v45, -inf }
 0x342   : > { %871 = vmax.xlane.f32.xlu1 %v870_v46  ;;  %v987_v48 = vpop.f32.mrb[16].mxu1 }
 0x343   : > { %v2390_v49 = vpop.f32.mrb[17].mxu1  ;;  %v994_v27 = vmul.f32 0.125, %v987_v48 }
 0x344   : > { %v990_v50 = vpop.f32.mrb[18].mxu1 }
 0x345   : > { %v995_v51 = vmul.f32 0.125, %v990_v50  ;;  %v2391_v52 = vpop.f32.mrb[19].mxu1  ;;  %v3023_v38 = vadd.f32 %v2844_v23, %v994_v27 }
 0x346   : > { %637 = vrot.lane.b32.xlu0 %v2877_v47, %s2726_s8 }
 0x347   : > { %v2983_v53 = vadd.f32 %v2844_v23, %v995_v51  ;;  %v998_v43 = vsel %vm485_vm2, %v3023_v38, -inf }
 0x349   : > { %v1001_v54 = vsel %vm485_vm2, %v2983_v53, -inf }
 0x34a   : > { %1002 = vmax.xlane.f32.xlu1 %v1001_v54  ;;  %v1115_v55 = vpop.f32.mrb[20].mxu1 }
 0x34b   : > { %v2402_v56 = vpop.f32.mrb[21].mxu1  ;;  %v1122_v35 = vmul.f32 0.125, %v1115_v55 }
 0x34c   : > { %v1118_v57 = vpop.f32.mrb[22].mxu1 }
 0x34d   : > { %v1123_v58 = vmul.f32 0.125, %v1118_v57  ;;  %v2403_v59 = vpop.f32.mrb[23].mxu1  ;;  %v3031_v44 = vadd.f32 %v2844_v23, %v1122_v35 }
 0x34f   : > { %v2988_v60 = vadd.f32 %v2844_v23, %v1123_v58  ;;  %v1126_v52 = vsel %vm485_vm2, %v3031_v44, -inf }
 0x351   : > { %v1129_v61 = vsel %vm485_vm2, %v2988_v60, -inf }
 0x352   : > { %1130 = vmax.xlane.f32.xlu1 %v1129_v61  ;;  %v1242_v47 = vpop.f32.mrb[24].mxu1 }
 0x353   : > { %v2414_v62 = vpop.f32.mrb[25].mxu1  ;;  %v1249_v42 = vmul.f32 0.125, %v1242_v47 }
 0x354   : > { %v1245_v63 = vpop.f32.mrb[26].mxu1 }
 0x355   : > { %v1250_v0 = vmul.f32 0.125, %v1245_v63  ;;  %v2415_v1 = vpop.f32.mrb[27].mxu1  ;;  %v3038_v54 = vadd.f32 %v2844_v23, %v1249_v42 }
 0x357   : > { %v2993_v2 = vadd.f32 %v2844_v23, %v1250_v0  ;;  %v1253_v59 = vsel %vm485_vm2, %v3038_v54, -inf }
 0x359   : > { %v1256_v3 = vsel %vm485_vm2, %v2993_v2, -inf }
 0x35a   : > { %1257 = vmax.xlane.f32.xlu1 %v1256_v3  ;;  %v1368_v4 = vpop.f32.mrb[28].mxu1 }
 0x35b   : > { %v2426_v5 = vpop.f32.mrb[29].mxu1  ;;  %v1375_v50 = vmul.f32 0.125, %v1368_v4 }
 0x35c   : > { %v1371_v7 = vpop.f32.mrb[30].mxu1 }
 0x35d   : > { %v1376_v8 = vmul.f32 0.125, %v1371_v7  ;;  %v2427_v9 = vpop.f32.mrb[31].mxu1  ;;  %v3046_v61 = vadd.f32 %v2844_v23, %v1375_v50 }
 0x35f   : > { %v2998_v10 = vadd.f32 %v2844_v23, %v1376_v8  ;;  %v1379_v4 = vsel %vm485_vm2, %v3046_v61, -inf }
 0x361   : > { %v1382_v13 = vsel %vm485_vm2, %v2998_v10, -inf }
 0x362   : > { %1383 = vmax.xlane.f32.xlu1 %v1382_v13  ;;  %v1499_v14 = vpop.f32.mrb[32].mxu1 }
 0x363   : > { %v2438_v15 = vpop.f32.mrb[33].mxu1  ;;  %v1506_v57 = vmul.f32 0.125, %v1499_v14 }
 0x364   : > { %v1502_v17 = vpop.f32.mrb[34].mxu1 }
 0x365   : > { %v1507_v22 = vmul.f32 0.125, %v1502_v17  ;;  %742 = vmax.xlane.f32.xlu0 %v741_v19  ;;  %v2439_v25 = vpop.f32.mrb[35].mxu1  ;;  %v3051_v0 = vadd.f32 %v2844_v23, %v1506_v57 }
 0x367   : > { %v3011_v26 = vadd.f32 %v2844_v23, %v1507_v22  ;;  %v1510_v8 = vsel %vm485_vm2, %v3051_v0, -inf }
 0x369   : > { %745 = vmax.xlane.f32.xlu0 %v744_v28  ;;  %v1513_v30 = vsel %vm485_vm2, %v3011_v26, -inf }
 0x36a   : > { %1514 = vmax.xlane.f32.xlu1 %v1513_v30  ;;  %v1627_v31 = vpop.f32.mrb[36].mxu1 }
 0x36b   : > { %v2450_v33 = vpop.f32.mrb[37].mxu1  ;;  %v1634_v62 = vmul.f32 0.125, %v1627_v31 }
 0x36c   : > { %v1630_v36 = vpop.f32.mrb[38].mxu1 }
 0x36d   : > { %v1635_v39 = vmul.f32 0.125, %v1630_v36  ;;  %868 = vmax.xlane.f32.xlu0 %v867_v37  ;;  %v2451_v40 = vpop.f32.mrb[39].mxu1  ;;  %v3058_v9 = vadd.f32 %v2844_v23, %v1634_v62 }
 0x36f   : > { %v3026_v41 = vadd.f32 %v2844_v23, %v1635_v39  ;;  %v1638_v15 = vsel %vm485_vm2, %v3058_v9, -inf  ;;  %v3092_v39 = vld [vmem:[%s2874_s9 + $0x8] ss:$24 sps:$4 sm:$0xff]  }
 0x371   : > { %999 = vmax.xlane.f32.xlu0 %v998_v43  ;;  %v1641_v46 = vsel %vm485_vm2, %v3026_v41, -inf }
 0x372   : > { %1642 = vmax.xlane.f32.xlu1 %v1641_v46  ;;  %v1754_v48 = vpop.f32.mrb[40].mxu1 }
 0x373   : > { %v2462_v49 = vpop.f32.mrb[41].mxu1  ;;  %v1761_v7 = vmul.f32 0.125, %v1754_v48 }
 0x374   : > { %v1757_v51 = vpop.f32.mrb[42].mxu1 }
 0x375   : > { %v1762_v55 = vmul.f32 0.125, %v1757_v51  ;;  %1127 = vmax.xlane.f32.xlu0 %v1126_v52  ;;  %v2463_v56 = vpop.f32.mrb[43].mxu1  ;;  %v3068_v16 = vadd.f32 %v2844_v23, %v1761_v7 }
 0x377   : > { %v3041_v58 = vadd.f32 %v2844_v23, %v1762_v55  ;;  %v1765_v17 = vsel %vm485_vm2, %v3068_v16, -inf }
 0x379   : > { %1254 = vmax.xlane.f32.xlu0 %v1253_v59  ;;  %v1768_v47 = vsel %vm485_vm2, %v3041_v58, -inf }
 0x37a   : > { %1769 = vmax.xlane.f32.xlu1 %v1768_v47  ;;  %v1880_v63 = vpop.f32.mrb[44].mxu1 }
 0x37b   : > { %v2474_v1 = vpop.f32.mrb[45].mxu1  ;;  %v1887_v14 = vmul.f32 0.125, %v1880_v63 }
 0x37c   : > { %v1883_v3 = vpop.f32.mrb[46].mxu1 }
 0x37d   : > { %v1888_v5 = vmul.f32 0.125, %v1883_v3  ;;  %1380 = vmax.xlane.f32.xlu0 %v1379_v4  ;;  %v2475_v6 = vpop.f32.mrb[47].mxu1  ;;  %v3073_v19 = vadd.f32 %v2844_v23, %v1887_v14 }
 0x37f   : > { %v3061_v11 = vadd.f32 %v2844_v23, %v1888_v5  ;;  %v1891_v22 = vsel %vm485_vm2, %v3073_v19, -inf }
 0x381   : > { %1511 = vmax.xlane.f32.xlu0 %v1510_v8  ;;  %v1894_v13 = vsel %vm485_vm2, %v3061_v11, -inf }
 0x382   : > { %1895 = vmax.xlane.f32.xlu1 %v1894_v13 }
 0x385   : > { %1639 = vmax.xlane.f32.xlu0 %v1638_v15 }
 0x389   : > { %1766 = vmax.xlane.f32.xlu0 %v1765_v17 }
 0x38d   : > { %1892 = vmax.xlane.f32.xlu0 %v1891_v22 }
 0x3bd   : > { %v616_v25 = vpop.xlane.xlu0 %615 }
 0x3be   : > { %v620_v27 = vsub.f32 %v2966_v32, %v616_v25 }
 0x3bf   : > { %v619_v28 = vpop.xlane.xlu1 %618 }
 0x3c0   : > { %v622_v30 = vmul.f32 1.442695, %v620_v27  ;;  %v621_v31 = vsub.f32 %v2971_v34, %v619_v28  ;;  %v3089_v34 = vld [vmem:[%s2874_s9 + $0x4] ss:$24 sps:$4 sm:$0xff]  }
 0x3c1   : > { %v638_v33 = vpop.permute.xlu0 %637 }
 0x3c2   : > { %2596 = vpow2.f32 %v622_v30  ;;  %v624_v35 = vmul.f32 1.442695, %v621_v31  ;;  %2357 = vmatpush3.bf16.msra.mxu0 %v638_v33 }
 0x3c3   : > { %2368 = vmatprep.subr.bf16.mxu0 %v2724_v18 }
 0x3c4   : > { %2598 = vpow2.f32 %v624_v35 }
 0x3cc   : > { %v3080_v23 = vpop.eup %2596 }
 0x3cd   : > { %v626_v36 = vsel %vm485_vm2, %v3080_v23, 0.0 }
 0x3ce   : > { %v3084_v37 = vpop.eup %2598  ;;  %627 = vadd.xlane.f32.xlu0 %v626_v36 }
 0x3cf   : > { %v629_v32 = vsel %vm485_vm2, %v3084_v37, 0.0  ;;  %v872_v40 = vpop.xlane.xlu1 %871 }
 0x3d0   : > { %630 = vadd.xlane.f32.xlu1 %v629_v32  ;;  %v874_v46 = vsub.f32 %v2976_v45, %v872_v40 }
 0x3d2   : > { %v877_v52 = vmul.f32 1.442695, %v874_v46 }
 0x3d7   : > { %v1003_v49 = vpop.xlane.xlu1 %1002 }
 0x3d8   : > { %v1005_v55 = vsub.f32 %v2983_v53, %v1003_v49 }
 0x3da   : > { %v1008_v47 = vmul.f32 1.442695, %v1005_v55 }
 0x3e1   : > { %890 = vrot.lane.b32.xlu1 %v3089_v34, %s2726_s8 }
 0x3e4   : > { %1149 = vrot.lane.b32.xlu0 %v3092_v39, %s2726_s8 }
 0x3f2   : > { %v743_v42 = vpop.xlane.xlu0 %742 }
 0x3f3   : > { %v747_v43 = vsub.f32 %v3001_v12, %v743_v42  ;;  %v1131_v12 = vpop.xlane.xlu1 %1130 }
 0x3f5   : > { %v749_v48 = vmul.f32 1.442695, %v747_v43 }
 0x3f6   : > { %v746_v50 = vpop.xlane.xlu0 %745 }
 0x3f7   : > { %2600 = vpow2.f32 %v749_v48  ;;  %v748_v51 = vsub.f32 %v3008_v20, %v746_v50  ;;  %v1133_v20 = vsub.f32 %v2988_v60, %v1131_v12  ;;  %v1258_v53 = vpop.xlane.xlu1 %1257 }
 0x3f9   : > { %v751_v56 = vmul.f32 1.442695, %v748_v51  ;;  %v1136_v7 = vmul.f32 1.442695, %v1133_v20 }
 0x3fa   : > { %v869_v57 = vpop.xlane.xlu0 %868 }
 0x3fb   : > { %2602 = vpow2.f32 %v751_v56  ;;  %v873_v59 = vsub.f32 %v3016_v29, %v869_v57 }
 0x3fc   : > { %2604 = vpow2.f32 %v877_v52 }
 0x3fd   : > { %v875_v62 = vmul.f32 1.442695, %v873_v59 }
 0x3fe   : > { %v1000_v63 = vpop.xlane.xlu0 %999 }
 0x3ff   : > { %2606 = vpow2.f32 %v875_v62  ;;  %v1004_v45 = vsub.f32 %v3023_v38, %v1000_v63  ;;  %v1384_v38 = vpop.xlane.xlu1 %1383 }
 0x400   : > { %2608 = vpow2.f32 %v1008_v47 }
 0x401   : > { %v3104_v1 = vpop.eup %2600  ;;  %v1006_v3 = vmul.f32 1.442695, %v1004_v45 }
 0x402   : > { %v1128_v4 = vpop.xlane.xlu0 %1127  ;;  %v753_v5 = vsel %vm485_vm2, %v3104_v1, 0.0 }
 0x403   : > { %2610 = vpow2.f32 %v1006_v3  ;;  %v1132_v29 = vsub.f32 %v3031_v44, %v1128_v4  ;;  %754 = vadd.xlane.f32.xlu0 %v753_v5  ;;  %v1260_v44 = vsub.f32 %v2993_v2, %v1258_v53  ;;  %v1515_v25 = vpop.xlane.xlu1 %1514 }
 0x404   : > { %v1517_v36 = vsub.f32 %v3011_v26, %v1515_v25 }
 0x405   : > { %v3110_v6 = vpop.eup %2602  ;;  %v1134_v8 = vmul.f32 1.442695, %v1132_v29  ;;  %v1263_v2 = vmul.f32 1.442695, %v1260_v44 }
 0x406   : > { %v1255_v13 = vpop.xlane.xlu0 %1254  ;;  %v756_v14 = vsel %vm485_vm2, %v3110_v6, 0.0  ;;  %v3114_v60 = vpop.eup %2604  ;;  %v1520_v48 = vmul.f32 1.442695, %v1517_v36 }
 0x407   : > { %2612 = vpow2.f32 %v1134_v8  ;;  %v1259_v15 = vsub.f32 %v3038_v54, %v1255_v13  ;;  %757 = vadd.xlane.f32.xlu1 %v756_v14  ;;  %v882_v28 = vsel %vm485_vm2, %v3114_v60, 0.0  ;;  %v1386_v54 = vsub.f32 %v2998_v10, %v1384_v38  ;;  %v1643_v49 = vpop.xlane.xlu1 %1642 }
 0x408   : > { %2614 = vpow2.f32 %v1136_v7 }
 0x409   : > { %v3117_v17 = vpop.eup %2606  ;;  %v1261_v22 = vmul.f32 1.442695, %v1259_v15  ;;  %v1389_v10 = vmul.f32 1.442695, %v1386_v54 }
 0x40a   : > { %v1381_v27 = vpop.xlane.xlu0 %1380  ;;  %v879_v30 = vsel %vm485_vm2, %v3117_v17, 0.0  ;;  %v3124_v31 = vpop.eup %2608 }
 0x40b   : > { %v1385_v33 = vsub.f32 %v3046_v61, %v1381_v27  ;;  %883 = vadd.xlane.f32.xlu1 %v882_v28  ;;  %880 = vadd.xlane.f32.xlu0 %v879_v30  ;;  %2616 = vpow2.f32 %v1261_v22  ;;  %v1013_v42 = vsel %vm485_vm2, %v3124_v31, 0.0 }
 0x40d   : > { %v3128_v35 = vpop.eup %2610  ;;  %v1387_v32 = vmul.f32 1.442695, %v1385_v33 }
 0x40e   : > { %v1512_v40 = vpop.xlane.xlu0 %1511  ;;  %v1010_v43 = vsel %vm485_vm2, %v3128_v35, 0.0 }
 0x40f   : > { %2618 = vpow2.f32 %v1387_v32  ;;  %v1516_v61 = vsub.f32 %v3051_v0, %v1512_v40  ;;  %1014 = vadd.xlane.f32.xlu1 %v1013_v42  ;;  %1011 = vadd.xlane.f32.xlu0 %v1010_v43  ;;  %v1645_v0 = vsub.f32 %v3026_v41, %v1643_v49  ;;  %v3200_v42 = vld [vmem:[%s2874_s9 + $0x10] ss:$24 sps:$4 sm:$0xff]  }
 0x410   : > { %2620 = vpow2.f32 %v1263_v2  ;;  %v3192_v2 = vld [vmem:[%s2874_s9 + $0xc] ss:$24 sps:$4 sm:$0xff]  }
 0x411   : > { %v3136_v46 = vpop.eup %2612  ;;  %v1518_v26 = vmul.f32 1.442695, %v1516_v61  ;;  %v1648_v12 = vmul.f32 1.442695, %v1645_v0  ;;  %v3205_v61 = vld [vmem:[%s2874_s9 + $0x14] ss:$24 sps:$4 sm:$0xff]  }
 0x412   : > { %v1640_v50 = vpop.xlane.xlu0 %1639  ;;  %v1138_v51 = vsel %vm485_vm2, %v3136_v46, 0.0  ;;  %v3140_v52 = vpop.eup %2614 }
 0x413   : > { %2622 = vpow2.f32 %v1518_v26  ;;  %v1644_v55 = vsub.f32 %v3058_v9, %v1640_v50  ;;  %1139 = vadd.xlane.f32.xlu1 %v1138_v51  ;;  %v1141_v59 = vsel %vm485_vm2, %v3140_v52, 0.0  ;;  %v1770_v9 = vpop.xlane.xlu1 %1769 }
 0x414   : > { %2624 = vpow2.f32 %v1389_v10  ;;  %v1772_v53 = vsub.f32 %v3041_v58, %v1770_v9 }
 0x415   : > { %2626 = vpow2.f32 %v1520_v48  ;;  %v1646_v56 = vmul.f32 1.442695, %v1644_v55  ;;  %v3146_v47 = vpop.eup %2616 }
 0x416   : > { %v1767_v57 = vpop.xlane.xlu0 %1766  ;;  %v1265_v45 = vsel %vm485_vm2, %v3146_v47, 0.0  ;;  %v1775_v38 = vmul.f32 1.442695, %v1772_v53 }
 0x417   : > { %1142 = vadd.xlane.f32.xlu1 %v1141_v59  ;;  %2628 = vpow2.f32 %v1646_v56  ;;  %v1771_v63 = vsub.f32 %v3068_v16, %v1767_v57  ;;  %v1896_v32 = vpop.xlane.xlu1 %1895 }
 0x418   : > { %2630 = vpow2.f32 %v1648_v12  ;;  %v1898_v40 = vsub.f32 %v3061_v11, %v1896_v32 }
 0x419   : > { %v3148_v62 = vpop.eup %2618  ;;  %v1773_v4 = vmul.f32 1.442695, %v1771_v63 }
 0x41a   : > { %v1391_v41 = vsel %vm485_vm2, %v3148_v62, 0.0  ;;  %v3155_v20 = vpop.eup %2620  ;;  %v1893_v16 = vpop.xlane.xlu0 %1892  ;;  %v1901_v43 = vmul.f32 1.442695, %v1898_v40 }
 0x41b   : > { %1266 = vadd.xlane.f32.xlu1 %v1265_v45  ;;  %1392 = vadd.xlane.f32.xlu0 %v1391_v41  ;;  %v1268_v29 = vsel %vm485_vm2, %v3155_v20, 0.0  ;;  %2632 = vpow2.f32 %v1773_v4  ;;  %v1897_v13 = vsub.f32 %v3073_v19, %v1893_v16 }
 0x41c   : > { %2634 = vpow2.f32 %v1775_v38 }
 0x41d   : > { %v3157_v3 = vpop.eup %2622  ;;  %v1899_v44 = vmul.f32 1.442695, %v1897_v13 }
 0x41e   : > { %v3160_v5 = vpop.eup %2624  ;;  %v1522_v7 = vsel %vm485_vm2, %v3157_v3, 0.0 }
 0x41f   : > { %v3166_v8 = vpop.eup %2626  ;;  %1269 = vadd.xlane.f32.xlu1 %v1268_v29  ;;  %1523 = vadd.xlane.f32.xlu0 %v1522_v7  ;;  %v1394_v58 = vsel %vm485_vm2, %v3160_v5, 0.0  ;;  %2636 = vpow2.f32 %v1899_v44 }
 0x420   : > { %v1525_v14 = vsel %vm485_vm2, %v3166_v8, 0.0  ;;  %2638 = vpow2.f32 %v1901_v43 }
 0x421   : > { %v3173_v15 = vpop.eup %2628 }
 0x422   : > { %v1650_v22 = vsel %vm485_vm2, %v3173_v15, 0.0  ;;  %v3177_v25 = vpop.eup %2630 }
 0x423   : > { %1395 = vadd.xlane.f32.xlu1 %v1394_v58  ;;  %1526 = vadd.xlane.f32.xlu0 %v1525_v14  ;;  %v1653_v19 = vsel %vm485_vm2, %v3177_v25, 0.0 }
 0x425   : > { %v3181_v27 = vpop.eup %2632 }
 0x426   : > { %v1777_v28 = vsel %vm485_vm2, %v3181_v27, 0.0  ;;  %v3185_v30 = vpop.eup %2634 }
 0x427   : > { %1651 = vadd.xlane.f32.xlu1 %v1650_v22  ;;  %v1780_v33 = vsel %vm485_vm2, %v3185_v30, 0.0 }
 0x429   : > { %v3189_v54 = vpop.eup %2636 }
 0x42a   : > { %v1903_v36 = vsel %vm485_vm2, %v3189_v54, 0.0  ;;  %v3209_v10 = vpop.eup %2638 }
 0x42b   : > { %1654 = vadd.xlane.f32.xlu1 %v1653_v19  ;;  %v1906_v48 = vsel %vm485_vm2, %v3209_v10, 0.0 }
 0x42f   : > { %1778 = vadd.xlane.f32.xlu1 %v1777_v28 }
 0x433   : > { %1781 = vadd.xlane.f32.xlu1 %v1780_v33 }
 0x437   : > { %1904 = vadd.xlane.f32.xlu1 %v1903_v36 }
 0x439   : > { %1402 = vrot.lane.b32.xlu0 %v3192_v2, %s2726_s8 }
 0x448   : > { %1661 = vrot.lane.b32.xlu1 %v3200_v42, %s2726_s8 }
 0x44c   : > { %1914 = vrot.lane.b32.xlu1 %v3205_v61, %s2726_s8 }
 0x458   : > { %1907 = vadd.xlane.f32.xlu0 %v1906_v48 }
 0x45b   : > { %v628_v26 = vpop.xlane.xlu0 %627 }
 0x45c   : > { %2640 = vrcp.f32 %v628_v26 }
 0x45d   : > { %v631_v11 = vpop.xlane.xlu1 %630 }
 0x45e   : > { %2642 = vrcp.f32 %v631_v11 }
 0x45f   : > { %v1150_v56 = vpop.permute.xlu0 %1149 }
 0x461   : > { %v891_v57 = vpop.permute.xlu1 %890 }
 0x466   : > { %v2641_v49 = vpop.eup %2640 }
 0x467   : > { %v634_v51 = vmul.f32 %v2641_v49, %v3080_v23 }
 0x468   : > { %v2643_v50 = vpop.eup %2642 }
 0x469   : > { %v635_v55 = vmul.f32 %v2643_v50, %v3084_v37 }
 0x46b   : > { %v636_v0 = vpack.c.bf16 %v635_v55, %v634_v51 }
 0x46d   : > { %2359 = vmatmul.mubr.msk.bf16.vlgmr.msra.gmra.mrb[4].mxu0 %vm485_vm2, %v636_v0 }
 0x46e   : > { %2369 = vmatpush3.bf16.msra.mxu0 %v3089_v34  ;;  %2370 = vmatprep.mubr.msk.bf16.mxu0 %vm2725_vm0, %v2724_v18 }
 0x46f   : > { %2380 = vmatprep.subr.bf16.mxu0 %v2724_v18 }
 0x490   : > { %v755_v59 = vpop.xlane.xlu0 %754 }
 0x491   : > { %2644 = vrcp.f32 %v755_v59 }
 0x494   : > { %v758_v12 = vpop.xlane.xlu1 %757 }
 0x495   : > { %2646 = vrcp.f32 %v758_v12 }
 0x498   : > { %v884_v63 = vpop.xlane.xlu1 %883  ;;  %v881_v23 = vpop.xlane.xlu0 %880 }
 0x499   : > { %2648 = vrcp.f32 %v884_v63 }
 0x49a   : > { %2650 = vrcp.f32 %v881_v23 }
 0x49b   : > { %v2645_v9 = vpop.eup %2644 }
 0x49c   : > { %v1015_v37 = vpop.xlane.xlu1 %1014  ;;  %v1012_v45 = vpop.xlane.xlu0 %1011  ;;  %v761_v34 = vmul.f32 %v2645_v9, %v3104_v1 }
 0x49d   : > { %2652 = vrcp.f32 %v1015_v37 }
 0x49e   : > { %2654 = vrcp.f32 %v1012_v45 }
 0x49f   : > { %v2647_v41 = vpop.eup %2646 }
 0x4a0   : > { %v762_v53 = vmul.f32 %v2647_v41, %v3110_v6  ;;  %v1140_v4 = vpop.xlane.xlu1 %1139 }
 0x4a2   : > { %v763_v16 = vpack.c.bf16 %v762_v53, %v761_v34 }
 0x4a3   : > { %v2649_v29 = vpop.eup %2648 }
 0x4a4   : > { %v2651_v7 = vpop.eup %2650  ;;  %v1143_v38 = vpop.xlane.xlu1 %1142  ;;  %2371 = vmatmul.mubr.msk.bf16.vlgmr.msra.gmra.mrb[8].mxu0 %vm485_vm2, %v763_v16  ;;  %v888_v13 = vmul.f32 %v2649_v29, %v3114_v60 }
 0x4a5   : > { %2381 = vmatpush3.bf16.msra.mxu0 %v891_v57  ;;  %2382 = vmatprep.mubr.msk.bf16.mxu0 %vm2725_vm0, %v2724_v18  ;;  %v887_v58 = vmul.f32 %v2651_v7, %v3117_v17  ;;  %2656 = vrcp.f32 %v1143_v38 }
 0x4a6   : > { %2392 = vmatprep.subr.bf16.mxu0 %v2724_v18  ;;  %2658 = vrcp.f32 %v1140_v4 }
 0x4a7   : > { %v2653_v6 = vpop.eup %2652  ;;  %v889_v14 = vpack.c.bf16 %v888_v13, %v887_v58 }
 0x4a8   : > { %v1267_v1 = vpop.xlane.xlu1 %1266  ;;  %v2655_v44 = vpop.eup %2654  ;;  %v1019_v60 = vmul.f32 %v2653_v6, %v3124_v31 }
 0x4a9   : > { %v1018_v17 = vmul.f32 %v2655_v44, %v3128_v35  ;;  %v1393_v28 = vpop.xlane.xlu0 %1392 }
 0x4ab   : > { %v1020_v33 = vpack.c.bf16 %v1019_v60, %v1018_v17 }
 0x4ac   : > { %v1270_v22 = vpop.xlane.xlu1 %1269  ;;  %2383 = vmatmul.mubr.msk.bf16.vlgmr.msra.gmra.mrb[12].mxu0 %vm485_vm2, %v889_v14 }
 0x4ad   : > { %2393 = vmatpush3.bf16.msra.mxu0 %v3092_v39  ;;  %2394 = vmatprep.mubr.msk.bf16.mxu0 %vm2725_vm0, %v2724_v18  ;;  %2660 = vrcp.f32 %v1270_v22  ;;  %v1524_v40 = vpop.xlane.xlu0 %1523 }
 0x4ae   : > { %2404 = vmatprep.subr.bf16.mxu0 %v2724_v18  ;;  %2662 = vrcp.f32 %v1267_v1 }
 0x4af   : > { %v2657_v36 = vpop.eup %2656 }
 0x4b0   : > { %v1396_v19 = vpop.xlane.xlu1 %1395  ;;  %v2659_v32 = vpop.eup %2658  ;;  %v1147_v39 = vmul.f32 %v2657_v36, %v3140_v52 }
 0x4b1   : > { %v1146_v35 = vmul.f32 %v2659_v32, %v3136_v46  ;;  %2664 = vrcp.f32 %v1396_v19  ;;  %v1527_v49 = vpop.xlane.xlu0 %1526 }
 0x4b2   : > { %2666 = vrcp.f32 %v1393_v28 }
 0x4b3   : > { %v1148_v43 = vpack.c.bf16 %v1147_v39, %v1146_v35  ;;  %2668 = vrcp.f32 %v1527_v49 }
 0x4b4   : > { %2395 = vmatmul.mubr.msk.bf16.vlgmr.msra.gmra.mrb[16].mxu0 %vm485_vm2, %v1020_v33  ;;  %v1652_v31 = vpop.xlane.xlu1 %1651  ;;  %2670 = vrcp.f32 %v1524_v40 }
 0x4b5   : > { %2405 = vmatpush3.bf16.msra.mxu0 %v1150_v56  ;;  %2406 = vmatprep.mubr.msk.bf16.mxu0 %vm2725_vm0, %v2724_v18  ;;  %v1403_v0 = vpop.permute.xlu0 %1402 }
 0x4b6   : > { %2416 = vmatprep.subr.bf16.mxu0 %v2724_v18 }
 0x4b7   : > { %v2661_v48 = vpop.eup %2660 }
 0x4b8   : > { %v1655_v26 = vpop.xlane.xlu1 %1654  ;;  %v2663_v11 = vpop.eup %2662  ;;  %v1274_v52 = vmul.f32 %v2661_v48, %v3155_v20 }
 0x4b9   : > { %v1273_v46 = vmul.f32 %v2663_v11, %v3146_v47  ;;  %2672 = vrcp.f32 %v1655_v26 }
 0x4ba   : > { %2674 = vrcp.f32 %v1652_v31 }
 0x4bb   : > { %v1275_v51 = vpack.c.bf16 %v1274_v52, %v1273_v46  ;;  %v2665_v55 = vpop.eup %2664 }
 0x4bc   : > { %2407 = vmatmul.mubr.msk.bf16.vlgmr.msra.gmra.mrb[20].mxu0 %vm485_vm2, %v1148_v43  ;;  %v1779_v50 = vpop.xlane.xlu1 %1778  ;;  %v2667_v56 = vpop.eup %2666  ;;  %v1400_v20 = vmul.f32 %v2665_v55, %v3160_v5 }
 0x4bd   : > { %2417 = vmatpush3.bf16.msra.mxu0 %v3192_v2  ;;  %2418 = vmatprep.mubr.msk.bf16.mxu0 %vm2725_vm0, %v2724_v18  ;;  %v1399_v2 = vmul.f32 %v2667_v56, %v3148_v62  ;;  %v2669_v59 = vpop.eup %2668 }
 0x4be   : > { %2428 = vmatprep.subr.bf16.mxu0 %v2724_v18  ;;  %v2671_v12 = vpop.eup %2670  ;;  %v1531_v63 = vmul.f32 %v2669_v59, %v3166_v8 }
 0x4bf   : > { %v1401_v57 = vpack.c.bf16 %v1400_v20, %v1399_v2  ;;  %v1530_v62 = vmul.f32 %v2671_v12, %v3157_v3 }
 0x4c0   : > { %v1782_v47 = vpop.xlane.xlu1 %1781 }
 0x4c1   : > { %2676 = vrcp.f32 %v1782_v47  ;;  %v1532_v23 = vpack.c.bf16 %v1531_v63, %v1530_v62 }
 0x4c2   : > { %2678 = vrcp.f32 %v1779_v50 }
 0x4c3   : > { %v2673_v9 = vpop.eup %2672 }
 0x4c4   : > { %2419 = vmatmul.mubr.msk.bf16.vlgmr.msra.gmra.mrb[24].mxu0 %vm485_vm2, %v1275_v51  ;;  %v1905_v5 = vpop.xlane.xlu1 %1904  ;;  %v2675_v45 = vpop.eup %2674 }
 0x4c5   : > { %2429 = vmatpush3.bf16.msra.mxu0 %v1403_v0  ;;  %2430 = vmatprep.mubr.msk.bf16.mxu0 %vm2725_vm0, %v2724_v18  ;;  %v1658_v8 = vmul.f32 %v2675_v45, %v3173_v15  ;;  %2680 = vrcp.f32 %v1905_v5 }
 0x4c6   : > { %2440 = vmatprep.subr.bf16.mxu0 %v2724_v18 }
 0x4c8   : > { %v1662_v37 = vpop.permute.xlu1 %1661 }
 0x4cb   : > { %v2677_v3 = vpop.eup %2676 }
 0x4cc   : > { %2431 = vmatmul.mubr.msk.bf16.vlgmr.msra.gmra.mrb[28].mxu0 %vm485_vm2, %v1401_v57  ;;  %v2679_v34 = vpop.eup %2678  ;;  %v1786_v53 = vmul.f32 %v2677_v3, %v3185_v30  ;;  %v1915_v16 = vpop.permute.xlu1 %1914 }
 0x4cd   : > { %2441 = vmatpush3.bf16.msra.mxu0 %v3200_v42  ;;  %2442 = vmatprep.mubr.msk.bf16.mxu0 %vm2725_vm0, %v2724_v18  ;;  %v1659_v42 = vmul.f32 %v2673_v9, %v3177_v25  ;;  %v1785_v25 = vmul.f32 %v2679_v34, %v3181_v27 }
 0x4ce   : > { %2452 = vmatprep.subr.bf16.mxu0 %v2724_v18 }
 0x4cf   : > { %v1660_v41 = vpack.c.bf16 %v1659_v42, %v1658_v8  ;;  %v1787_v4 = vpack.c.bf16 %v1786_v53, %v1785_v25 }
 0x4d4   : > { %2443 = vmatmul.mubr.msk.bf16.vlgmr.msra.gmra.mrb[32].mxu0 %vm485_vm2, %v1532_v23 }
 0x4d5   : > { %2453 = vmatpush3.bf16.msra.mxu0 %v1662_v37  ;;  %2454 = vmatprep.mubr.msk.bf16.mxu0 %vm2725_vm0, %v2724_v18 }
 0x4d6   : > { %2464 = vmatprep.subr.bf16.mxu0 %v2724_v18 }
 0x4dc   : > { %2455 = vmatmul.mubr.msk.bf16.vlgmr.msra.gmra.mrb[36].mxu0 %vm485_vm2, %v1660_v41 }
 0x4dd   : > { %2465 = vmatpush3.bf16.msra.mxu0 %v3205_v61  ;;  %2466 = vmatprep.mubr.msk.bf16.mxu0 %vm2725_vm0, %v2724_v18  ;;  %v2681_v61 = vpop.eup %2680 }
 0x4de   : > { %2476 = vmatprep.subr.bf16.mxu0 %v2724_v18  ;;  %v1911_v7 = vmul.f32 %v2681_v61, %v3189_v54 }
 0x4e4   : > { %2467 = vmatmul.mubr.msk.bf16.vlgmr.msra.gmra.mrb[40].mxu0 %vm485_vm2, %v1787_v4 }
 0x4e5   : > { %v1908_v15 = vpop.xlane.xlu0 %1907  ;;  %2477 = vmatpush3.bf16.msra.mxu0 %v1915_v16  ;;  %2478 = vmatprep.mubr.msk.bf16.mxu0 %vm2725_vm0, %v2724_v18 }
 0x4e6   : > { %2682 = vrcp.f32 %v1908_v15 }
 0x4f0   : > { %v2683_v29 = vpop.eup %2682 }
 0x4f1   : > { %v1912_v30 = vmul.f32 %v2683_v29, %v3209_v10 }
 0x4f3   : > { %v1913_v38 = vpack.c.bf16 %v1912_v30, %v1911_v7 }
 0x4f5   : > { %2479 = vmatmul.mubr.msk.bf16.vlgmr.msra.gmra.mrb[44].mxu0 %vm485_vm2, %v1913_v38 }
 0x540   : > { %v677_v27 = vpop.f32.mrb[4].mxu0 }
 0x541   : > { %v2360_v13 = vpop.f32.mrb[5].mxu0 }
 0x542   : > { %v680_v58 = vpop.f32.mrb[6].mxu0 }
 0x543   : > { %v2531_v1 = vpack.i.bf16 %v680_v58, %v677_v27  ;;  %v2361_v6 = vpop.f32.mrb[7].mxu0 }
 0x545   : > { %2532 = vrot.lane.b32.xlu1 %v2531_v1, %s2726_s8 }
 0x577   : > { %v3281_v14 = vpop.f32.mrb[8].mxu0 }
 0x578   : > { %v2372_v18 = vpop.f32.mrb[9].mxu0 }
 0x579   : > { %v808_v44 = vpop.f32.mrb[10].mxu0 }
 0x57a   : > { %v2373_v22 = vpop.f32.mrb[11].mxu0 }
 0x57f   : > { %v930_v60 = vpop.f32.mrb[12].mxu0 }
 0x580   : > { %v2384_v17 = vpop.f32.mrb[13].mxu0 }
 0x581   : > { %v933_v54 = vpop.f32.mrb[14].mxu0 }
 0x582   : > { %v2536_v19 = vpack.i.bf16 %v933_v54, %v930_v60  ;;  %v2385_v10 = vpop.f32.mrb[15].mxu0 }
 0x584   : > { %2537 = vrot.lane.b32.xlu1 %v2536_v19, %s2726_s8 }
 0x587   : > { %v3284_v28 = vpop.f32.mrb[16].mxu0 }
 0x588   : > { %v2396_v33 = vpop.f32.mrb[17].mxu0 }
 0x589   : > { %v3286_v36 = vpop.f32.mrb[18].mxu0 }
 0x58a   : > { %v2397_v32 = vpop.f32.mrb[19].mxu0 }
 0x58f   : > { %v1189_v39 = vpop.f32.mrb[20].mxu0 }
 0x590   : > { %v2408_v31 = vpop.f32.mrb[21].mxu0 }
 0x591   : > { %v1192_v35 = vpop.f32.mrb[22].mxu0 }
 0x592   : > { %v2541_v40 = vpack.i.bf16 %v1192_v35, %v1189_v39  ;;  %v2409_v43 = vpop.f32.mrb[23].mxu0 }
 0x594   : > { %2542 = vrot.lane.b32.xlu0 %v2541_v40, %s2726_s8 }
 0x597   : > { %v1317_v48 = vpop.f32.mrb[24].mxu0 }
 0x598   : > { %v2420_v26 = vpop.f32.mrb[25].mxu0 }
 0x599   : > { %v1320_v11 = vpop.f32.mrb[26].mxu0 }
 0x59a   : > { %v2421_v52 = vpop.f32.mrb[27].mxu0 }
 0x59f   : > { %v1442_v49 = vpop.f32.mrb[28].mxu0 }
 0x5a0   : > { %v2432_v46 = vpop.f32.mrb[29].mxu0 }
 0x5a1   : > { %v1445_v50 = vpop.f32.mrb[30].mxu0 }
 0x5a2   : > { %v2546_v51 = vpack.i.bf16 %v1445_v50, %v1442_v49  ;;  %v2433_v55 = vpop.f32.mrb[31].mxu0 }
 0x5a4   : > { %2547 = vrot.lane.b32.xlu1 %v2546_v51, %s2726_s8 }
 0x5a7   : > { %v1576_v0 = vpop.f32.mrb[32].mxu0 }
 0x5a8   : > { %v2444_v56 = vpop.f32.mrb[33].mxu0 }
 0x5a9   : > { %v1579_v20 = vpop.f32.mrb[34].mxu0 }
 0x5aa   : > { %v2445_v2 = vpop.f32.mrb[35].mxu0 }
 0x5af   : > { %v1701_v47 = vpop.f32.mrb[36].mxu0 }
 0x5b0   : > { %v2456_v57 = vpop.f32.mrb[37].mxu0 }
 0x5b1   : > { %v1704_v59 = vpop.f32.mrb[38].mxu0 }
 0x5b2   : > { %v2551_v12 = vpack.i.bf16 %v1704_v59, %v1701_v47  ;;  %v2457_v63 = vpop.f32.mrb[39].mxu0 }
 0x5b4   : > { %2552 = vrot.lane.b32.xlu1 %v2551_v12, %s2726_s8 }
 0x5b7   : > { %v1829_v5 = vpop.f32.mrb[40].mxu0  ;;  %v2533_v3 = vpop.permute.xlu1 %2532 }
 0x5b8   : > { %v2468_v62 = vpop.f32.mrb[41].mxu0  ;;  %v2535_v34 = vunpack.i.h.bf16 %v2533_v3  ;;  %v2534_v53 = vunpack.i.l.bf16 %v2533_v3 }
 0x5b9   : > { %v1832_v23 = vpop.f32.mrb[42].mxu0 }
 0x5ba   : > { %v2469_v37 = vpop.f32.mrb[43].mxu0  ;;  %v2010_v15 = vsel %vm427_vm1, %v2963_v24, %v2535_v34  ;;  %v2009_v61 = vsel %vm427_vm1, %v2961_v21, %v2534_v53 }
 0x5c8   : > { %v1954_v9 = vpop.f32.mrb[44].mxu0 }
 0x5c9   : > { %v2480_v45 = vpop.f32.mrb[45].mxu0 }
 0x5ca   : > { %v1957_v42 = vpop.f32.mrb[46].mxu0 }
 0x5cb   : > { %v2556_v8 = vpack.i.bf16 %v1957_v42, %v1954_v9  ;;  %v2481_v41 = vpop.f32.mrb[47].mxu0 }
 0x5cd   : > { %2557 = vrot.lane.b32.xlu1 %v2556_v8, %s2726_s8 }
 0x5f6   : > { %v2538_v25 = vpop.permute.xlu1 %2537 }
 0x5f7   : > { %v2540_v4 = vunpack.i.h.bf16 %v2538_v25  ;;  %v2539_v16 = vunpack.i.l.bf16 %v2538_v25 }
 0x5f9   : > { %v2012_v29 = vsel %vm427_vm1, %v808_v44, %v2540_v4  ;;  %v2011_v7 = vsel %vm427_vm1, %v3281_v14, %v2539_v16 }
 0x5fa   : > { %v2287_v30 = vpack.c.bf16 %v2012_v29, %v2010_v15  ;;  %v2284_v38 = vpack.c.bf16 %v2011_v7, %v2009_v61 }
 0x5fc   : > { %2057 = vst [vmem:[%s3300_s14] sm:$0xff] %v2284_v38  ;;  %2060 = vst [vmem:[%s3300_s14 + $0x18] sm:$0xff] %v2287_v30 }
 0x606   : > { %v2543_v24 = vpop.permute.xlu0 %2542 }
 0x607   : > { %v2545_v21 = vunpack.i.h.bf16 %v2543_v24  ;;  %v2544_v27 = vunpack.i.l.bf16 %v2543_v24 }
 0x609   : > { %v2014_v6 = vsel %vm427_vm1, %v3286_v36, %v2545_v21  ;;  %v2013_v18 = vsel %vm427_vm1, %v3284_v28, %v2544_v27 }
 0x616   : > { %v2548_v13 = vpop.permute.xlu1 %2547 }
 0x617   : > { %v2550_v58 = vunpack.i.h.bf16 %v2548_v13  ;;  %v2549_v1 = vunpack.i.l.bf16 %v2548_v13 }
 0x619   : > { %v2016_v14 = vsel %vm427_vm1, %v1320_v11, %v2550_v58  ;;  %v2015_v44 = vsel %vm427_vm1, %v1317_v48, %v2549_v1 }
 0x61a   : > { %v2288_v22 = vpack.c.bf16 %v2016_v14, %v2014_v6  ;;  %v2285_v60 = vpack.c.bf16 %v2015_v44, %v2013_v18 }
 0x61c   : > { %2058 = vst [vmem:[%s3300_s14 + $0x8] sm:$0xff] %v2285_v60  ;;  %2061 = vst [vmem:[%s3300_s14 + $0x20] sm:$0xff] %v2288_v22 }
 0x626   : > { %v2553_v17 = vpop.permute.xlu1 %2552 }
 0x627   : > { %v2555_v54 = vunpack.i.h.bf16 %v2553_v17  ;;  %v2554_v19 = vunpack.i.l.bf16 %v2553_v17 }
 0x629   : > { %v2018_v36 = vsel %vm427_vm1, %v1579_v20, %v2555_v54  ;;  %v2017_v28 = vsel %vm427_vm1, %v1576_v0, %v2554_v19 }
 0x63f   : > { %v2558_v10 = vpop.permute.xlu1 %2557 }
 0x640   : > { %v2560_v33 = vunpack.i.h.bf16 %v2558_v10  ;;  %v2559_v32 = vunpack.i.l.bf16 %v2558_v10 }
 0x642   : > { %v2020_v39 = vsel %vm427_vm1, %v1832_v23, %v2560_v33  ;;  %v2019_v31 = vsel %vm427_vm1, %v1829_v5, %v2559_v32 }
 0x643   : > { %v2289_v35 = vpack.c.bf16 %v2020_v39, %v2018_v36  ;;  %v2286_v40 = vpack.c.bf16 %v2019_v31, %v2017_v28 }
 0x645   : > { %2059 = vst [vmem:[%s3300_s14 + $0x10] sm:$0xff] %v2286_v40  ;;  %2062 = vst [vmem:[%s3300_s14 + $0x28] sm:$0xff] %v2289_v35 }
 0x646 PF: > { %s14_s19 = sadd.s32 1, %s2722_s19   ;;  %s3342_s15 = smov %s2710_s16 }
 0x647   : > { %p11_p11 = scmp.ge.s32.totalorder %s14_s19, 4   ;;  %s3343_s16 = smov %s2791_s24 }
 0x648   : > { %s3344_s17 = smov %s2718_s18  ;;  %s3345_s18 = smov %s3347_s20 }
 0x649   :  { %13 = sbr.rel (!%p11_p11) target bundleno = 3 (0x3), region = 159 }

// kernel: bert_classifier_forward.13
= control target key start
LH: loop header
LB: loop body
LE: loop exit
PB: predicated region body
PF: predicated region fallthrough
CT: control target
= control target key end

     0   :  { %s3578_s21 = smov 0   ;;  %s4615_s0 = inlined_call_operand.vmem [shape: bf16[32,768], index: 0, kind: input, shape index: {}]   ;;  %s4616_s1 = inlined_call_operand.vmem [shape: bf16[768,768], index: 1, kind: input, shape index: {}]   ;;  %s4617_s2 = inlined_call_operand.vmem [shape: f32[1,768], index: 2, kind: input, shape index: {}, may-alias: {2,5}]   ;;  %s4618_s3 = inlined_call_operand.vmem [shape: f32[32,768], index: 3, kind: input, shape index: {}]   ;;  %s4619_s4 = inlined_call_operand.vmem [shape: f32[1,768], index: 4, kind: input, shape index: {}]   ;;  %s4620_s5 = inlined_call_operand.vmem [shape: f32[1,768], index: 5, kind: input, shape index: {}, may-alias: {2,5}]   ;;  %s4621_s6 = inlined_call_operand.vmem [shape: f32[32,768], index: 6, kind: output, shape index: {}]  }
   0x1 LB: > { %s2735_s22 = sadd.s32 4294967295, %s3541_s21   ;;  %p2739_p0 = scmp.ge.s32.totalorder %s3541_s21, 1  ;;  %s3541_s21 = sphi %s3578_s21, %s16_s21  }
   0x2   : > { %p226_p1 = scmp.lt.s32.totalorder %s3541_s21, 3 }
   0x4   : > { %p227_p2 = pnand %p2739_p0, %p226_p1 }
   0x5   : > { %v3088_v0 = vld [vmem:[%s4616_s1 + $0x4] ss:$24 sps:$4 sm:$0xff] (!%p227_p2)   ;;  %v3092_v2 = vld [vmem:[%s4616_s1] ss:$24 sps:$4 sm:$0xff] (!%p227_p2)   ;;  %v3094_v4 = vld [vmem:[%s4616_s1 + $0x34] ss:$24 sps:$4 sm:$0xff] (!%p227_p2)  }
   0x6   : > { %230 = sbr.rel (%p227_p2) target bundleno = 876 (0x36c), region = 44  ;;  %v3090_v1 = vld [vmem:[%s4616_s1 + $0x304] ss:$24 sps:$4 sm:$0xff] (!%p227_p2)   ;;  %2081 = vmatprep.subr.bf16.mxu1 (!%p227_p2), %v3088_v0  ;;  %v3093_v3 = vld [vmem:[%s4616_s1 + $0x300] ss:$24 sps:$4 sm:$0xff] (!%p227_p2)   ;;  %s2740_s15 = sshll.u32 (!%p227_p2), %s2735_s22, 1 }
   0x7   : > { %2124 = vmatprep.subr.bf16.mxu0 (!%p227_p2), %v3090_v1  ;;  %2082 = vmatpush1.bf16.msra.mxu1 (!%p227_p2), %v3092_v2  ;;  %v3096_v5 = vld [vmem:[%s4616_s1 + $0x334] ss:$24 sps:$4 sm:$0xff] (!%p227_p2)   ;;  %v3098_v6 = vld [vmem:[%s4616_s1 + $0x30] ss:$24 sps:$4 sm:$0xff] (!%p227_p2)   ;;  %v3100_v8 = vld [vmem:[%s4616_s1 + $0x64] ss:$24 sps:$4 sm:$0xff] (!%p227_p2)  }
   0x8   : > { %2125 = vmatpush1.bf16.msra.mxu0 (!%p227_p2), %v3093_v3  ;;  %2083 = vmatprep.subr.bf16.mxu1 (!%p227_p2), %v3094_v4  ;;  %v3099_v7 = vld [vmem:[%s4616_s1 + $0x330] ss:$24 sps:$4 sm:$0xff] (!%p227_p2)   ;;  %v3102_v9 = vld [vmem:[%s4616_s1 + $0x364] ss:$24 sps:$4 sm:$0xff] (!%p227_p2)   ;;  %v3104_v10 = vld [vmem:[%s4616_s1 + $0x60] ss:$24 sps:$4 sm:$0xff] (!%p227_p2)  }
   0x9   : > { %2126 = vmatprep.subr.bf16.mxu0 (!%p227_p2), %v3096_v5  ;;  %v3105_v11 = vld [vmem:[%s4616_s1 + $0x360] ss:$24 sps:$4 sm:$0xff] (!%p227_p2)   ;;  %v3106_v12 = vld [vmem:[%s4616_s1 + $0x94] ss:$24 sps:$4 sm:$0xff] (!%p227_p2)   ;;  %v3110_v14 = vld [vmem:[%s4616_s1 + $0x90] ss:$24 sps:$4 sm:$0xff] (!%p227_p2)  }
   0xa   : > { %v3108_v13 = vld [vmem:[%s4616_s1 + $0x394] ss:$24 sps:$4 sm:$0xff] (!%p227_p2)   ;;  %v3111_v15 = vld [vmem:[%s4616_s1 + $0x390] ss:$24 sps:$4 sm:$0xff] (!%p227_p2)   ;;  %v3112_v16 = vld [vmem:[%s4616_s1 + $0xc4] ss:$24 sps:$4 sm:$0xff] (!%p227_p2)  }
   0xb   : > { %2084 = vmatpush1.bf16.msra.mxu1 (!%p227_p2), %v3098_v6  ;;  %v3114_v17 = vld [vmem:[%s4616_s1 + $0x3c4] ss:$24 sps:$4 sm:$0xff] (!%p227_p2)   ;;  %v3116_v18 = vld [vmem:[%s4616_s1 + $0xc0] ss:$24 sps:$4 sm:$0xff] (!%p227_p2)   ;;  %v3118_v20 = vld [vmem:[%s4616_s1 + $0xf4] ss:$24 sps:$4 sm:$0xff] (!%p227_p2)  }
   0xc   : > { %2127 = vmatpush1.bf16.msra.mxu0 (!%p227_p2), %v3099_v7  ;;  %2085 = vmatprep.subr.bf16.mxu1 (!%p227_p2), %v3100_v8  ;;  %v3117_v19 = vld [vmem:[%s4616_s1 + $0x3c0] ss:$24 sps:$4 sm:$0xff] (!%p227_p2)   ;;  %v3120_v21 = vld [vmem:[%s4616_s1 + $0x3f4] ss:$24 sps:$4 sm:$0xff] (!%p227_p2)   ;;  %v3122_v22 = vld [vmem:[%s4616_s1 + $0xf0] ss:$24 sps:$4 sm:$0xff] (!%p227_p2)  }
   0xd   : > { %2128 = vmatprep.subr.bf16.mxu0 %v3102_v9  ;;  %v3123_v23 = vld [vmem:[%s4616_s1 + $0x3f0] ss:$24 sps:$4 sm:$0xff]   ;;  %v3124_v24 = vld [vmem:[%s4616_s1 + $0x124] ss:$24 sps:$4 sm:$0xff]   ;;  %v3128_v26 = vld [vmem:[%s4616_s1 + $0x120] ss:$24 sps:$4 sm:$0xff]  }
   0xe   : > { %v3126_v25 = vld [vmem:[%s4616_s1 + $0x424] ss:$24 sps:$4 sm:$0xff]   ;;  %v3129_v27 = vld [vmem:[%s4616_s1 + $0x420] ss:$24 sps:$4 sm:$0xff]   ;;  %v3130_v28 = vld [vmem:[%s4616_s1 + $0x154] ss:$24 sps:$4 sm:$0xff]  }
   0xf   : > { %2086 = vmatpush1.bf16.msra.mxu1 %v3104_v10  ;;  %v3132_v29 = vld [vmem:[%s4616_s1 + $0x454] ss:$24 sps:$4 sm:$0xff]   ;;  %v3134_v30 = vld [vmem:[%s4616_s1 + $0x150] ss:$24 sps:$4 sm:$0xff]   ;;  %v3136_v32 = vld [vmem:[%s4616_s1 + $0x184] ss:$24 sps:$4 sm:$0xff]  }
  0x10   : > { %2129 = vmatpush1.bf16.msra.mxu0 %v3105_v11  ;;  %2087 = vmatprep.subr.bf16.mxu1 %v3106_v12  ;;  %v3135_v31 = vld [vmem:[%s4616_s1 + $0x450] ss:$24 sps:$4 sm:$0xff]   ;;  %p265_p3 = scmp.lt.s32.totalorder %s2740_s15, 3  ;;  %v3138_v33 = vld [vmem:[%s4616_s1 + $0x484] ss:$24 sps:$4 sm:$0xff]  }
  0x11   : > { %2130 = vmatprep.subr.bf16.mxu0 %v3108_v13  ;;  %v3140_v34 = vld [vmem:[%s4616_s1 + $0x180] ss:$24 sps:$4 sm:$0xff]   ;;  %v3142_v36 = vld [vmem:[%s4616_s1 + $0x1b4] ss:$24 sps:$4 sm:$0xff]   ;;  %v3146_v38 = vld [vmem:[%s4616_s1 + $0x1b0] ss:$24 sps:$4 sm:$0xff]  }
  0x12   : > { %v3141_v35 = vld [vmem:[%s4616_s1 + $0x480] ss:$24 sps:$4 sm:$0xff]   ;;  %s4623_s15 = smov (!%p265_p3, %s2740_s15), 3  ;;  %v3144_v37 = vld [vmem:[%s4616_s1 + $0x4b4] ss:$24 sps:$4 sm:$0xff]  }
  0x13   : > { %2088 = vmatpush1.bf16.msra.mxu1 %v3110_v14  ;;  %v3147_v39 = vld [vmem:[%s4616_s1 + $0x4b0] ss:$24 sps:$4 sm:$0xff]   ;;  %v3148_v40 = vld [vmem:[%s4616_s1 + $0x1e4] ss:$24 sps:$4 sm:$0xff]   ;;  %s3078_s16 = smul.u32 24, %s4623_s15 }
  0x14   : > { %2131 = vmatpush1.bf16.msra.mxu0 %v3111_v15  ;;  %2089 = vmatprep.subr.bf16.mxu1 %v3112_v16  ;;  %v3150_v41 = vld [vmem:[%s4616_s1 + $0x4e4] ss:$24 sps:$4 sm:$0xff]   ;;  %v3152_v42 = vld [vmem:[%s4616_s1 + $0x1e0] ss:$24 sps:$4 sm:$0xff]   ;;  %v3154_v44 = vld [vmem:[%s4616_s1 + $0x214] ss:$24 sps:$4 sm:$0xff]  }
  0x15   : > { %2132 = vmatprep.subr.bf16.mxu0 %v3114_v17  ;;  %v3153_v43 = vld [vmem:[%s4616_s1 + $0x4e0] ss:$24 sps:$4 sm:$0xff]   ;;  %s3729_s28 = scalar_lea.vmem %s4615_s0, %s3078_s16  ;;  %v3156_v45 = vld [vmem:[%s4616_s1 + $0x514] ss:$24 sps:$4 sm:$0xff]   ;;  %v3158_v46 = vld [vmem:[%s4616_s1 + $0x210] ss:$24 sps:$4 sm:$0xff]  }
  0x16   : > { %v3159_v47 = vld [vmem:[%s4616_s1 + $0x510] ss:$24 sps:$4 sm:$0xff]   ;;  %v3741_v48 = vld [vmem:[%s3729_s28 + $0x4] ss:$24 sps:$4 sm:$0xff]   ;;  %v3164_v52 = vld [vmem:[%s4616_s1 + $0x240] ss:$24 sps:$4 sm:$0xff]  }
  0x17   : > { %2090 = vmatpush1.bf16.msra.mxu1 %v3116_v18  ;;  %v3744_v49 = vld [vmem:[%s3729_s28 + $0xc] ss:$24 sps:$4 sm:$0xff]   ;;  %2113 = vmatprep.mubr.bf16.mxu1 %v3741_v48  ;;  %v3165_v53 = vld [vmem:[%s4616_s1 + $0x540] ss:$24 sps:$4 sm:$0xff]   ;;  %v3170_v56 = vld [vmem:[%s4616_s1 + $0x270] ss:$24 sps:$4 sm:$0xff]  }
  0x18   : > { %2133 = vmatpush1.bf16.msra.mxu0 %v3117_v19  ;;  %2091 = vmatprep.subr.bf16.mxu1 %v3118_v20  ;;  %v3160_v50 = vld [vmem:[%s4616_s1 + $0x244] ss:$24 sps:$4 sm:$0xff]   ;;  %v3166_v54 = vld [vmem:[%s4616_s1 + $0x274] ss:$24 sps:$4 sm:$0xff]   ;;  %v3171_v57 = vld [vmem:[%s4616_s1 + $0x570] ss:$24 sps:$4 sm:$0xff]  }
  0x19   : > { %2134 = vmatprep.subr.bf16.mxu0 %v3120_v21  ;;  %v3162_v51 = vld [vmem:[%s4616_s1 + $0x544] ss:$24 sps:$4 sm:$0xff]   ;;  %2156 = vmatprep.mubr.bf16.mxu0 %v3744_v49  ;;  %v3168_v55 = vld [vmem:[%s4616_s1 + $0x574] ss:$24 sps:$4 sm:$0xff]   ;;  %v3176_v60 = vld [vmem:[%s4616_s1 + $0x2a0] ss:$24 sps:$4 sm:$0xff]  }
  0x1a   : > { %v3172_v58 = vld [vmem:[%s4616_s1 + $0x2a4] ss:$24 sps:$4 sm:$0xff]   ;;  %v3177_v61 = vld [vmem:[%s4616_s1 + $0x5a0] ss:$24 sps:$4 sm:$0xff]   ;;  %v3178_v62 = vld [vmem:[%s4616_s1 + $0x2d4] ss:$24 sps:$4 sm:$0xff]  }
  0x1b   : > { %2092 = vmatpush1.bf16.msra.mxu1 %v3122_v22  ;;  %v3174_v59 = vld [vmem:[%s4616_s1 + $0x5a4] ss:$24 sps:$4 sm:$0xff]   ;;  %v3180_v63 = vld [vmem:[%s4616_s1 + $0x5d4] ss:$24 sps:$4 sm:$0xff]   ;;  %v3182_v0 = vld [vmem:[%s4616_s1 + $0x2d0] ss:$24 sps:$4 sm:$0xff]  }
  0x1c   : > { %2135 = vmatpush1.bf16.msra.mxu0 %v3123_v23  ;;  %2093 = vmatprep.subr.bf16.mxu1 %v3124_v24  ;;  %v3183_v1 = vld [vmem:[%s4616_s1 + $0x5d0] ss:$24 sps:$4 sm:$0xff]   ;;  %v3190_v2 = vld [vmem:[%s4616_s1 + $0x604] ss:$24 sps:$4 sm:$0xff]   ;;  %v3188_v4 = vld [vmem:[%s4616_s1 + $0x600] ss:$24 sps:$4 sm:$0xff]  }
  0x1d   : > { %2136 = vmatprep.subr.bf16.mxu0 %v3126_v25  ;;  %v3193_v3 = vld [vmem:[%s4616_s1 + $0xc] ss:$24 sps:$4 sm:$0xff]   ;;  %v3191_v5 = vld [vmem:[%s4616_s1 + $0x8] ss:$24 sps:$4 sm:$0xff]   ;;  %v3201_v9 = vld [vmem:[%s4616_s1 + $0x3c] ss:$24 sps:$4 sm:$0xff]  }
  0x1e   : > { %v3809_v6 = vld [vmem:[%s3729_s28] ss:$24 sps:$4 sm:$0xff]   ;;  %v3198_v8 = vld [vmem:[%s4616_s1 + $0x634] ss:$24 sps:$4 sm:$0xff]   ;;  %v3196_v10 = vld [vmem:[%s4616_s1 + $0x630] ss:$24 sps:$4 sm:$0xff]  }
  0x1f   : > { %2094 = vmatpush1.bf16.msra.mxu1 %v3128_v26  ;;  %v3812_v7 = vld [vmem:[%s3729_s28 + $0x8] ss:$24 sps:$4 sm:$0xff]   ;;  %v3199_v11 = vld [vmem:[%s4616_s1 + $0x38] ss:$24 sps:$4 sm:$0xff]   ;;  %v3204_v12 = vld [vmem:[%s4616_s1 + $0x664] ss:$24 sps:$4 sm:$0xff]  }
  0x20   : > { %2137 = vmatpush1.bf16.msra.mxu0 %v3129_v27  ;;  %2095 = vmatprep.subr.bf16.mxu1 %v3130_v28  ;;  %v3207_v13 = vld [vmem:[%s4616_s1 + $0x6c] ss:$24 sps:$4 sm:$0xff]   ;;  %v3202_v14 = vld [vmem:[%s4616_s1 + $0x660] ss:$24 sps:$4 sm:$0xff]   ;;  %v3213_v17 = vld [vmem:[%s4616_s1 + $0x9c] ss:$24 sps:$4 sm:$0xff]  }
  0x21   : > { %2138 = vmatprep.subr.bf16.mxu0 %v3132_v29  ;;  %v3205_v15 = vld [vmem:[%s4616_s1 + $0x68] ss:$24 sps:$4 sm:$0xff]   ;;  %v3210_v16 = vld [vmem:[%s4616_s1 + $0x694] ss:$24 sps:$4 sm:$0xff]   ;;  %v3211_v19 = vld [vmem:[%s4616_s1 + $0x98] ss:$24 sps:$4 sm:$0xff]  }
  0x22   : > { %v3208_v18 = vld [vmem:[%s4616_s1 + $0x690] ss:$24 sps:$4 sm:$0xff]   ;;  %v3216_v20 = vld [vmem:[%s4616_s1 + $0x6c4] ss:$24 sps:$4 sm:$0xff]   ;;  %v3214_v22 = vld [vmem:[%s4616_s1 + $0x6c0] ss:$24 sps:$4 sm:$0xff]  }
  0x23   : > { %2096 = vmatpush1.bf16.msra.mxu1 %v3134_v30  ;;  %v3219_v21 = vld [vmem:[%s4616_s1 + $0xcc] ss:$24 sps:$4 sm:$0xff]   ;;  %v3217_v23 = vld [vmem:[%s4616_s1 + $0xc8] ss:$24 sps:$4 sm:$0xff]   ;;  %v3225_v25 = vld [vmem:[%s4616_s1 + $0xfc] ss:$24 sps:$4 sm:$0xff]  }
  0x24   : > { %2139 = vmatpush1.bf16.msra.mxu0 %v3135_v31  ;;  %2097 = vmatprep.subr.bf16.mxu1 %v3136_v32  ;;  %v3222_v24 = vld [vmem:[%s4616_s1 + $0x6f4] ss:$24 sps:$4 sm:$0xff]   ;;  %v3220_v26 = vld [vmem:[%s4616_s1 + $0x6f0] ss:$24 sps:$4 sm:$0xff]   ;;  %v3228_v28 = vld [vmem:[%s4616_s1 + $0x724] ss:$24 sps:$4 sm:$0xff]  }
  0x25   : > { %2140 = vmatprep.subr.bf16.mxu0 %v3138_v33  ;;  %v3223_v27 = vld [vmem:[%s4616_s1 + $0xf8] ss:$24 sps:$4 sm:$0xff]   ;;  %v3231_v29 = vld [vmem:[%s4616_s1 + $0x12c] ss:$24 sps:$4 sm:$0xff]   ;;  %v3229_v31 = vld [vmem:[%s4616_s1 + $0x128] ss:$24 sps:$4 sm:$0xff]  }
  0x26   : > { %v3226_v30 = vld [vmem:[%s4616_s1 + $0x720] ss:$24 sps:$4 sm:$0xff]   ;;  %v3234_v32 = vld [vmem:[%s4616_s1 + $0x754] ss:$24 sps:$4 sm:$0xff]   ;;  %s3079_s7 = smul.u32 48, %s4623_s15 }
  0x27   : > { %2098 = vmatpush1.bf16.msra.mxu1 %v3140_v34  ;;  %v3237_v33 = vld [vmem:[%s4616_s1 + $0x15c] ss:$24 sps:$4 sm:$0xff]  }
  0x28   : > { %2141 = vmatpush1.bf16.msra.mxu0 %v3141_v35  ;;  %2099 = vmatprep.subr.bf16.mxu1 %v3142_v36  ;;  %v3896_v34 = vld [vmem:[%s3729_s28 + $0x14] ss:$24 sps:$4 sm:$0xff]   ;;  %v3232_v35 = vld [vmem:[%s4616_s1 + $0x750] ss:$24 sps:$4 sm:$0xff]   ;;  %s4511_s10 = scalar_lea.vmem %s4618_s3, %s3079_s7  ;;  %s4592_s18 = scalar_lea.vmem %s4621_s6, %s3079_s7 }
  0x29   : > { %2142 = vmatprep.subr.bf16.mxu0 %v3144_v37  ;;  %v3235_v36 = vld [vmem:[%s4616_s1 + $0x158] ss:$24 sps:$4 sm:$0xff]   ;;  %v3240_v37 = vld [vmem:[%s4616_s1 + $0x784] ss:$24 sps:$4 sm:$0xff]  }
  0x2b   : > { %2100 = vmatpush1.bf16.msra.mxu1 %v3146_v38  ;;  %v3243_v38 = vld [vmem:[%s4616_s1 + $0x18c] ss:$24 sps:$4 sm:$0xff]  }
  0x2c   : > { %2143 = vmatpush1.bf16.msra.mxu0 %v3147_v39  ;;  %2101 = vmatprep.subr.bf16.mxu1 %v3148_v40  ;;  %v3238_v39 = vld [vmem:[%s4616_s1 + $0x780] ss:$24 sps:$4 sm:$0xff]  }
  0x2d   : > { %2144 = vmatprep.subr.bf16.mxu0 %v3150_v41  ;;  %v3241_v40 = vld [vmem:[%s4616_s1 + $0x188] ss:$24 sps:$4 sm:$0xff]   ;;  %v3246_v41 = vld [vmem:[%s4616_s1 + $0x7b4] ss:$24 sps:$4 sm:$0xff]  }
  0x2f   : > { %2102 = vmatpush1.bf16.msra.mxu1 %v3152_v42  ;;  %v3249_v42 = vld [vmem:[%s4616_s1 + $0x1bc] ss:$24 sps:$4 sm:$0xff]  }
  0x30   : > { %2145 = vmatpush1.bf16.msra.mxu0 %v3153_v43  ;;  %2103 = vmatprep.subr.bf16.mxu1 %v3154_v44  ;;  %v3244_v43 = vld [vmem:[%s4616_s1 + $0x7b0] ss:$24 sps:$4 sm:$0xff]  }
  0x31   : > { %2146 = vmatprep.subr.bf16.mxu0 %v3156_v45  ;;  %v3247_v44 = vld [vmem:[%s4616_s1 + $0x1b8] ss:$24 sps:$4 sm:$0xff]   ;;  %v3252_v45 = vld [vmem:[%s4616_s1 + $0x7e4] ss:$24 sps:$4 sm:$0xff]  }
  0x33   : > { %2104 = vmatpush1.bf16.msra.mxu1 %v3158_v46  ;;  %v3255_v46 = vld [vmem:[%s4616_s1 + $0x1ec] ss:$24 sps:$4 sm:$0xff]  }
  0x34   : > { %2147 = vmatpush1.bf16.msra.mxu0 %v3159_v47  ;;  %2105 = vmatprep.subr.bf16.mxu1 %v3160_v50  ;;  %v3250_v47 = vld [vmem:[%s4616_s1 + $0x7e0] ss:$24 sps:$4 sm:$0xff]  }
  0x35   : > { %2148 = vmatprep.subr.bf16.mxu0 %v3162_v51  ;;  %v3253_v50 = vld [vmem:[%s4616_s1 + $0x1e8] ss:$24 sps:$4 sm:$0xff]   ;;  %v3258_v51 = vld [vmem:[%s4616_s1 + $0x814] ss:$24 sps:$4 sm:$0xff]  }
  0x37   : > { %2106 = vmatpush1.bf16.msra.mxu1 %v3164_v52  ;;  %v3261_v52 = vld [vmem:[%s4616_s1 + $0x21c] ss:$24 sps:$4 sm:$0xff]  }
  0x38   : > { %2149 = vmatpush1.bf16.msra.mxu0 %v3165_v53  ;;  %2107 = vmatprep.subr.bf16.mxu1 %v3166_v54  ;;  %v3256_v53 = vld [vmem:[%s4616_s1 + $0x810] ss:$24 sps:$4 sm:$0xff]  }
  0x39   : > { %2150 = vmatprep.subr.bf16.mxu0 %v3168_v55  ;;  %v3259_v54 = vld [vmem:[%s4616_s1 + $0x218] ss:$24 sps:$4 sm:$0xff]   ;;  %v3264_v55 = vld [vmem:[%s4616_s1 + $0x844] ss:$24 sps:$4 sm:$0xff]  }
  0x3b   : > { %2108 = vmatpush1.bf16.msra.mxu1 %v3170_v56  ;;  %v3267_v56 = vld [vmem:[%s4616_s1 + $0x24c] ss:$24 sps:$4 sm:$0xff]  }
  0x3c   : > { %2151 = vmatpush1.bf16.msra.mxu0 %v3171_v57  ;;  %2109 = vmatprep.subr.bf16.mxu1 %v3172_v58  ;;  %v3262_v57 = vld [vmem:[%s4616_s1 + $0x840] ss:$24 sps:$4 sm:$0xff]  }
  0x3d   : > { %2152 = vmatprep.subr.bf16.mxu0 %v3174_v59  ;;  %v3265_v58 = vld [vmem:[%s4616_s1 + $0x248] ss:$24 sps:$4 sm:$0xff]   ;;  %v3270_v59 = vld [vmem:[%s4616_s1 + $0x874] ss:$24 sps:$4 sm:$0xff]  }
  0x3f   : > { %2110 = vmatpush1.bf16.msra.mxu1 %v3176_v60  ;;  %v3273_v60 = vld [vmem:[%s4616_s1 + $0x27c] ss:$24 sps:$4 sm:$0xff]  }
  0x40   : > { %2153 = vmatpush1.bf16.msra.mxu0 %v3177_v61  ;;  %2111 = vmatprep.subr.bf16.mxu1 %v3178_v62  ;;  %v3268_v61 = vld [vmem:[%s4616_s1 + $0x870] ss:$24 sps:$4 sm:$0xff]  }
  0x41   : > { %2154 = vmatprep.subr.bf16.mxu0 %v3180_v63  ;;  %v3271_v62 = vld [vmem:[%s4616_s1 + $0x278] ss:$24 sps:$4 sm:$0xff]   ;;  %v3276_v63 = vld [vmem:[%s4616_s1 + $0x8a4] ss:$24 sps:$4 sm:$0xff]  }
  0x43   : > { %2112 = vmatpush1.bf16.msra.mxu1 %v3182_v0  ;;  %v3279_v0 = vld [vmem:[%s4616_s1 + $0x2ac] ss:$24 sps:$4 sm:$0xff]  }
  0x44   : > { %2155 = vmatpush1.bf16.msra.mxu0 %v3183_v1  ;;  %2210 = vmatprep.subr.bf16.mxu1 %v3193_v3  ;;  %v3274_v1 = vld [vmem:[%s4616_s1 + $0x8a0] ss:$24 sps:$4 sm:$0xff]   ;;  %v3282_v3 = vld [vmem:[%s4616_s1 + $0x8d4] ss:$24 sps:$4 sm:$0xff]  }
  0x45   : > { %2167 = vmatprep.subr.bf16.mxu0 %v3190_v2  ;;  %v3277_v2 = vld [vmem:[%s4616_s1 + $0x2a8] ss:$24 sps:$4 sm:$0xff]  }
  0x46   : > { %2114 = vmatmul.mubr.bf16.vlgmr.msra.gmra.mrb[0].mxu1 %v3809_v6 }
  0x47   : > { %2157 = vmatmul.mubr.bf16.vlgmr.msra.gmra.mrb[0].mxu0 %v3812_v7  ;;  %2211 = vmatpush1.bf16.msra.mxu1 %v3191_v5  ;;  %v3280_v5 = vld [vmem:[%s4616_s1 + $0x8d0] ss:$24 sps:$4 sm:$0xff]  }
  0x48   : > { %2168 = vmatpush1.bf16.msra.mxu0 %v3188_v4  ;;  %2212 = vmatprep.subr.bf16.mxu1 %v3201_v9  ;;  %v3285_v4 = vld [vmem:[%s4616_s1 + $0x2dc] ss:$24 sps:$4 sm:$0xff]   ;;  %v3291_v9 = vld [vmem:[%s4616_s1 + $0x30c] ss:$24 sps:$4 sm:$0xff]  }
  0x49   : > { %2169 = vmatprep.subr.bf16.mxu0 %v3198_v8  ;;  %2242 = vmatprep.mubr.bf16.mxu1 %v3741_v48  ;;  %v3283_v8 = vld [vmem:[%s4616_s1 + $0x2d8] ss:$24 sps:$4 sm:$0xff]  }
  0x4a   : > { %2199 = vmatprep.mubr.bf16.mxu0 %v3896_v34 }
  0x4b   : > { %2213 = vmatpush1.bf16.msra.mxu1 %v3199_v11  ;;  %v4008_v11 = vld [vmem:[%s3729_s28 + $0x10] ss:$24 sps:$4 sm:$0xff]  }
  0x4c   : > { %2170 = vmatpush1.bf16.msra.mxu0 %v3196_v10  ;;  %2214 = vmatprep.subr.bf16.mxu1 %v3207_v13  ;;  %v3294_v10 = vld [vmem:[%s4616_s1 + $0x14] ss:$24 sps:$4 sm:$0xff]   ;;  %v3292_v13 = vld [vmem:[%s4616_s1 + $0x10] ss:$24 sps:$4 sm:$0xff]  }
  0x4d   : > { %2171 = vmatprep.subr.bf16.mxu0 %v3204_v12  ;;  %v3289_v12 = vld [vmem:[%s4616_s1 + $0x308] ss:$24 sps:$4 sm:$0xff]  }
  0x4f   : > { %2215 = vmatpush1.bf16.msra.mxu1 %v3205_v15  ;;  %v3300_v15 = vld [vmem:[%s4616_s1 + $0x44] ss:$24 sps:$4 sm:$0xff]  }
  0x50   : > { %2172 = vmatpush1.bf16.msra.mxu0 %v3202_v14  ;;  %2216 = vmatprep.subr.bf16.mxu1 %v3213_v17  ;;  %v3297_v14 = vld [vmem:[%s4616_s1 + $0x33c] ss:$24 sps:$4 sm:$0xff]   ;;  %v3298_v17 = vld [vmem:[%s4616_s1 + $0x40] ss:$24 sps:$4 sm:$0xff]  }
  0x51   : > { %2173 = vmatprep.subr.bf16.mxu0 %v3210_v16  ;;  %v3295_v16 = vld [vmem:[%s4616_s1 + $0x338] ss:$24 sps:$4 sm:$0xff]  }
  0x53   : > { %2217 = vmatpush1.bf16.msra.mxu1 %v3211_v19  ;;  %v3306_v19 = vld [vmem:[%s4616_s1 + $0x74] ss:$24 sps:$4 sm:$0xff]  }
  0x54   : > { %2174 = vmatpush1.bf16.msra.mxu0 %v3208_v18  ;;  %2218 = vmatprep.subr.bf16.mxu1 %v3219_v21  ;;  %v3303_v18 = vld [vmem:[%s4616_s1 + $0x36c] ss:$24 sps:$4 sm:$0xff]   ;;  %v3304_v21 = vld [vmem:[%s4616_s1 + $0x70] ss:$24 sps:$4 sm:$0xff]  }
  0x55   : > { %2175 = vmatprep.subr.bf16.mxu0 %v3216_v20  ;;  %v3301_v20 = vld [vmem:[%s4616_s1 + $0x368] ss:$24 sps:$4 sm:$0xff]  }
  0x57   : > { %2219 = vmatpush1.bf16.msra.mxu1 %v3217_v23  ;;  %v3310_v23 = vld [vmem:[%s4616_s1 + $0xa0] ss:$24 sps:$4 sm:$0xff]  }
  0x58   : > { %2176 = vmatpush1.bf16.msra.mxu0 %v3214_v22  ;;  %2220 = vmatprep.subr.bf16.mxu1 %v3225_v25  ;;  %v3309_v22 = vld [vmem:[%s4616_s1 + $0x39c] ss:$24 sps:$4 sm:$0xff]  }
  0x59   : > { %2177 = vmatprep.subr.bf16.mxu0 %v3222_v24  ;;  %v3315_v24 = vld [vmem:[%s4616_s1 + $0x3cc] ss:$24 sps:$4 sm:$0xff]  }
  0x5a   : > { %v3318_v25 = vld [vmem:[%s4616_s1 + $0xd4] ss:$24 sps:$4 sm:$0xff]  }
  0x5b   : > { %2221 = vmatpush1.bf16.msra.mxu1 %v3223_v27  ;;  %v3316_v27 = vld [vmem:[%s4616_s1 + $0xd0] ss:$24 sps:$4 sm:$0xff]  }
  0x5c   : > { %2178 = vmatpush1.bf16.msra.mxu0 %v3220_v26  ;;  %2222 = vmatprep.subr.bf16.mxu1 %v3231_v29  ;;  %v3313_v26 = vld [vmem:[%s4616_s1 + $0x3c8] ss:$24 sps:$4 sm:$0xff]   ;;  %v3324_v29 = vld [vmem:[%s4616_s1 + $0x104] ss:$24 sps:$4 sm:$0xff]  }
  0x5d   : > { %2179 = vmatprep.subr.bf16.mxu0 %v3228_v28  ;;  %v3321_v28 = vld [vmem:[%s4616_s1 + $0x3fc] ss:$24 sps:$4 sm:$0xff]  }
  0x5f   : > { %2223 = vmatpush1.bf16.msra.mxu1 %v3229_v31  ;;  %v3322_v31 = vld [vmem:[%s4616_s1 + $0x100] ss:$24 sps:$4 sm:$0xff]  }
  0x60   : > { %2180 = vmatpush1.bf16.msra.mxu0 %v3226_v30  ;;  %2224 = vmatprep.subr.bf16.mxu1 %v3237_v33  ;;  %v3319_v30 = vld [vmem:[%s4616_s1 + $0x3f8] ss:$24 sps:$4 sm:$0xff]   ;;  %v3330_v33 = vld [vmem:[%s4616_s1 + $0x134] ss:$24 sps:$4 sm:$0xff]  }
  0x61   : > { %2181 = vmatprep.subr.bf16.mxu0 %v3234_v32  ;;  %v3327_v32 = vld [vmem:[%s4616_s1 + $0x42c] ss:$24 sps:$4 sm:$0xff]  }
  0x63   : > { %2225 = vmatpush1.bf16.msra.mxu1 %v3235_v36  ;;  %v3328_v36 = vld [vmem:[%s4616_s1 + $0x130] ss:$24 sps:$4 sm:$0xff]  }
  0x64   : > { %2182 = vmatpush1.bf16.msra.mxu0 %v3232_v35  ;;  %2226 = vmatprep.subr.bf16.mxu1 %v3243_v38  ;;  %v3325_v35 = vld [vmem:[%s4616_s1 + $0x428] ss:$24 sps:$4 sm:$0xff]   ;;  %v3336_v38 = vld [vmem:[%s4616_s1 + $0x164] ss:$24 sps:$4 sm:$0xff]  }
  0x65   : > { %2183 = vmatprep.subr.bf16.mxu0 %v3240_v37  ;;  %v3333_v37 = vld [vmem:[%s4616_s1 + $0x45c] ss:$24 sps:$4 sm:$0xff]  }
  0x67   : > { %2227 = vmatpush1.bf16.msra.mxu1 %v3241_v40  ;;  %v3334_v40 = vld [vmem:[%s4616_s1 + $0x160] ss:$24 sps:$4 sm:$0xff]  }
  0x68   : > { %2184 = vmatpush1.bf16.msra.mxu0 %v3238_v39  ;;  %2228 = vmatprep.subr.bf16.mxu1 %v3249_v42  ;;  %v3331_v39 = vld [vmem:[%s4616_s1 + $0x458] ss:$24 sps:$4 sm:$0xff]   ;;  %v3342_v42 = vld [vmem:[%s4616_s1 + $0x194] ss:$24 sps:$4 sm:$0xff]  }
  0x69   : > { %2185 = vmatprep.subr.bf16.mxu0 %v3246_v41  ;;  %v3339_v41 = vld [vmem:[%s4616_s1 + $0x48c] ss:$24 sps:$4 sm:$0xff]  }
  0x6b   : > { %2229 = vmatpush1.bf16.msra.mxu1 %v3247_v44  ;;  %v3340_v44 = vld [vmem:[%s4616_s1 + $0x190] ss:$24 sps:$4 sm:$0xff]  }
  0x6c   : > { %2186 = vmatpush1.bf16.msra.mxu0 %v3244_v43  ;;  %2230 = vmatprep.subr.bf16.mxu1 %v3255_v46  ;;  %v3337_v43 = vld [vmem:[%s4616_s1 + $0x488] ss:$24 sps:$4 sm:$0xff]   ;;  %v3348_v46 = vld [vmem:[%s4616_s1 + $0x1c4] ss:$24 sps:$4 sm:$0xff]  }
  0x6d   : > { %2187 = vmatprep.subr.bf16.mxu0 %v3252_v45  ;;  %v3345_v45 = vld [vmem:[%s4616_s1 + $0x4bc] ss:$24 sps:$4 sm:$0xff]  }
  0x6f   : > { %2231 = vmatpush1.bf16.msra.mxu1 %v3253_v50  ;;  %v3346_v50 = vld [vmem:[%s4616_s1 + $0x1c0] ss:$24 sps:$4 sm:$0xff]  }
  0x70   : > { %2188 = vmatpush1.bf16.msra.mxu0 %v3250_v47  ;;  %2232 = vmatprep.subr.bf16.mxu1 %v3261_v52  ;;  %v3343_v47 = vld [vmem:[%s4616_s1 + $0x4b8] ss:$24 sps:$4 sm:$0xff]   ;;  %v3354_v52 = vld [vmem:[%s4616_s1 + $0x1f4] ss:$24 sps:$4 sm:$0xff]  }
  0x71   : > { %2189 = vmatprep.subr.bf16.mxu0 %v3258_v51  ;;  %v3351_v51 = vld [vmem:[%s4616_s1 + $0x4ec] ss:$24 sps:$4 sm:$0xff]  }
  0x73   : > { %2233 = vmatpush1.bf16.msra.mxu1 %v3259_v54  ;;  %v3352_v54 = vld [vmem:[%s4616_s1 + $0x1f0] ss:$24 sps:$4 sm:$0xff]  }
  0x74   : > { %2190 = vmatpush1.bf16.msra.mxu0 %v3256_v53  ;;  %2234 = vmatprep.subr.bf16.mxu1 %v3267_v56  ;;  %v3349_v53 = vld [vmem:[%s4616_s1 + $0x4e8] ss:$24 sps:$4 sm:$0xff]   ;;  %v3360_v56 = vld [vmem:[%s4616_s1 + $0x224] ss:$24 sps:$4 sm:$0xff]  }
  0x75   : > { %2191 = vmatprep.subr.bf16.mxu0 %v3264_v55  ;;  %v3357_v55 = vld [vmem:[%s4616_s1 + $0x51c] ss:$24 sps:$4 sm:$0xff]  }
  0x77   : > { %2235 = vmatpush1.bf16.msra.mxu1 %v3265_v58  ;;  %v3358_v58 = vld [vmem:[%s4616_s1 + $0x220] ss:$24 sps:$4 sm:$0xff]  }
  0x78   : > { %2192 = vmatpush1.bf16.msra.mxu0 %v3262_v57  ;;  %2236 = vmatprep.subr.bf16.mxu1 %v3273_v60  ;;  %v3355_v57 = vld [vmem:[%s4616_s1 + $0x518] ss:$24 sps:$4 sm:$0xff]   ;;  %v3366_v60 = vld [vmem:[%s4616_s1 + $0x254] ss:$24 sps:$4 sm:$0xff]  }
  0x79   : > { %2193 = vmatprep.subr.bf16.mxu0 %v3270_v59  ;;  %v3363_v59 = vld [vmem:[%s4616_s1 + $0x54c] ss:$24 sps:$4 sm:$0xff]  }
  0x7b   : > { %2237 = vmatpush1.bf16.msra.mxu1 %v3271_v62  ;;  %v3364_v62 = vld [vmem:[%s4616_s1 + $0x250] ss:$24 sps:$4 sm:$0xff]  }
  0x7c   : > { %2194 = vmatpush1.bf16.msra.mxu0 %v3268_v61  ;;  %2238 = vmatprep.subr.bf16.mxu1 %v3279_v0  ;;  %v3361_v61 = vld [vmem:[%s4616_s1 + $0x548] ss:$24 sps:$4 sm:$0xff]   ;;  %v3372_v0 = vld [vmem:[%s4616_s1 + $0x284] ss:$24 sps:$4 sm:$0xff]  }
  0x7d   : > { %2195 = vmatprep.subr.bf16.mxu0 %v3276_v63  ;;  %v3369_v63 = vld [vmem:[%s4616_s1 + $0x57c] ss:$24 sps:$4 sm:$0xff]  }
  0x7f   : > { %2239 = vmatpush1.bf16.msra.mxu1 %v3277_v2  ;;  %v3370_v2 = vld [vmem:[%s4616_s1 + $0x280] ss:$24 sps:$4 sm:$0xff]  }
  0x80   : > { %2196 = vmatpush1.bf16.msra.mxu0 %v3274_v1  ;;  %2240 = vmatprep.subr.bf16.mxu1 %v3285_v4  ;;  %v3367_v1 = vld [vmem:[%s4616_s1 + $0x578] ss:$24 sps:$4 sm:$0xff]   ;;  %v3378_v4 = vld [vmem:[%s4616_s1 + $0x2b4] ss:$24 sps:$4 sm:$0xff]  }
  0x81   : > { %2197 = vmatprep.subr.bf16.mxu0 %v3282_v3  ;;  %v3375_v3 = vld [vmem:[%s4616_s1 + $0x5ac] ss:$24 sps:$4 sm:$0xff]  }
  0x83   : > { %2241 = vmatpush1.bf16.msra.mxu1 %v3283_v8  ;;  %v3376_v8 = vld [vmem:[%s4616_s1 + $0x2b0] ss:$24 sps:$4 sm:$0xff]  }
  0x84   : > { %2198 = vmatpush1.bf16.msra.mxu0 %v3280_v5  ;;  %2253 = vmatprep.subr.bf16.mxu1 %v3291_v9  ;;  %v3373_v5 = vld [vmem:[%s4616_s1 + $0x5a8] ss:$24 sps:$4 sm:$0xff]   ;;  %v3381_v9 = vld [vmem:[%s4616_s1 + $0x5dc] ss:$24 sps:$4 sm:$0xff]  }
  0x85   : > { %2339 = vmatprep.subr.bf16.mxu0 %v3294_v10  ;;  %v3384_v10 = vld [vmem:[%s4616_s1 + $0x2e4] ss:$24 sps:$4 sm:$0xff]  }
  0x86   : > { %2243 = vmatmul.mubr.bf16.vlgmr.msra.gmra.mrb[4].mxu1 %v3809_v6 }
  0x87   : > { %2200 = vmatmul.mubr.bf16.vlgmr.msra.gmra.mrb[0].mxu0 %v4008_v11  ;;  %2254 = vmatpush1.bf16.msra.mxu1 %v3289_v12  ;;  %v3379_v12 = vld [vmem:[%s4616_s1 + $0x5d8] ss:$24 sps:$4 sm:$0xff]  }
  0x88   : > { %2340 = vmatpush1.bf16.msra.mxu0 %v3292_v13  ;;  %2255 = vmatprep.subr.bf16.mxu1 %v3297_v14  ;;  %v3382_v13 = vld [vmem:[%s4616_s1 + $0x2e0] ss:$24 sps:$4 sm:$0xff]   ;;  %v3387_v14 = vld [vmem:[%s4616_s1 + $0x60c] ss:$24 sps:$4 sm:$0xff]  }
  0x89   : > { %2341 = vmatprep.subr.bf16.mxu0 %v3300_v15  ;;  %2285 = vmatprep.mubr.bf16.mxu1 %v3744_v49  ;;  %v3307_v49 = vld [vmem:[%s4616_s1 + $0x398] ss:$24 sps:$4 sm:$0xff]   ;;  %v3390_v15 = vld [vmem:[%s4616_s1 + $0x314] ss:$24 sps:$4 sm:$0xff]  }
  0x8a   : > { %2371 = vmatprep.mubr.bf16.mxu0 %v3741_v48  ;;  %v3312_v48 = vld [vmem:[%s4616_s1 + $0xa4] ss:$24 sps:$4 sm:$0xff]  }
  0x8b   : > { %2256 = vmatpush1.bf16.msra.mxu1 %v3295_v16  ;;  %v3385_v16 = vld [vmem:[%s4616_s1 + $0x608] ss:$24 sps:$4 sm:$0xff]  }
  0x8c   : > { %2342 = vmatpush1.bf16.msra.mxu0 %v3298_v17  ;;  %2257 = vmatprep.subr.bf16.mxu1 %v3303_v18  ;;  %v3388_v17 = vld [vmem:[%s4616_s1 + $0x310] ss:$24 sps:$4 sm:$0xff]   ;;  %v3393_v18 = vld [vmem:[%s4616_s1 + $0x63c] ss:$24 sps:$4 sm:$0xff]  }
  0x8d   : > { %2343 = vmatprep.subr.bf16.mxu0 %v3306_v19  ;;  %v3396_v19 = vld [vmem:[%s4616_s1 + $0x344] ss:$24 sps:$4 sm:$0xff]  }
  0x8f   : > { %2258 = vmatpush1.bf16.msra.mxu1 %v3301_v20  ;;  %v3391_v20 = vld [vmem:[%s4616_s1 + $0x638] ss:$24 sps:$4 sm:$0xff]  }
  0x90   : > { %2344 = vmatpush1.bf16.msra.mxu0 %v3304_v21  ;;  %2259 = vmatprep.subr.bf16.mxu1 %v3309_v22  ;;  %v3394_v21 = vld [vmem:[%s4616_s1 + $0x340] ss:$24 sps:$4 sm:$0xff]   ;;  %v3399_v22 = vld [vmem:[%s4616_s1 + $0x66c] ss:$24 sps:$4 sm:$0xff]  }
  0x91   : > { %2345 = vmatprep.subr.bf16.mxu0 %v3312_v48  ;;  %v3397_v48 = vld [vmem:[%s4616_s1 + $0x668] ss:$24 sps:$4 sm:$0xff]  }
  0x93   : > { %2260 = vmatpush1.bf16.msra.mxu1 %v3307_v49  ;;  %v3400_v49 = vld [vmem:[%s4616_s1 + $0x370] ss:$24 sps:$4 sm:$0xff]  }
  0x94   : > { %2346 = vmatpush1.bf16.msra.mxu0 %v3310_v23  ;;  %2261 = vmatprep.subr.bf16.mxu1 %v3315_v24  ;;  %v3405_v23 = vld [vmem:[%s4616_s1 + $0x69c] ss:$24 sps:$4 sm:$0xff]  }
  0x95   : > { %2347 = vmatprep.subr.bf16.mxu0 %v3318_v25  ;;  %v3408_v24 = vld [vmem:[%s4616_s1 + $0x3a4] ss:$24 sps:$4 sm:$0xff]   ;;  %v3403_v25 = vld [vmem:[%s4616_s1 + $0x698] ss:$24 sps:$4 sm:$0xff]  }
  0x97   : > { %2262 = vmatpush1.bf16.msra.mxu1 %v3313_v26  ;;  %v3406_v26 = vld [vmem:[%s4616_s1 + $0x3a0] ss:$24 sps:$4 sm:$0xff]  }
  0x98   : > { %2348 = vmatpush1.bf16.msra.mxu0 %v3316_v27  ;;  %2263 = vmatprep.subr.bf16.mxu1 %v3321_v28  ;;  %v3411_v27 = vld [vmem:[%s4616_s1 + $0x6cc] ss:$24 sps:$4 sm:$0xff]  }
  0x99   : > { %2349 = vmatprep.subr.bf16.mxu0 %v3324_v29  ;;  %v3414_v28 = vld [vmem:[%s4616_s1 + $0x3d4] ss:$24 sps:$4 sm:$0xff]   ;;  %v3409_v29 = vld [vmem:[%s4616_s1 + $0x6c8] ss:$24 sps:$4 sm:$0xff]  }
  0x9b   : > { %2264 = vmatpush1.bf16.msra.mxu1 %v3319_v30  ;;  %v3412_v30 = vld [vmem:[%s4616_s1 + $0x3d0] ss:$24 sps:$4 sm:$0xff]  }
  0x9c   : > { %2350 = vmatpush1.bf16.msra.mxu0 %v3322_v31  ;;  %2265 = vmatprep.subr.bf16.mxu1 %v3327_v32  ;;  %v3417_v31 = vld [vmem:[%s4616_s1 + $0x6fc] ss:$24 sps:$4 sm:$0xff]  }
  0x9d   : > { %2351 = vmatprep.subr.bf16.mxu0 %v3330_v33  ;;  %v3420_v32 = vld [vmem:[%s4616_s1 + $0x404] ss:$24 sps:$4 sm:$0xff]   ;;  %v3415_v33 = vld [vmem:[%s4616_s1 + $0x6f8] ss:$24 sps:$4 sm:$0xff]  }
  0x9f   : > { %2266 = vmatpush1.bf16.msra.mxu1 %v3325_v35  ;;  %v3418_v35 = vld [vmem:[%s4616_s1 + $0x400] ss:$24 sps:$4 sm:$0xff]  }
  0xa0   : > { %2352 = vmatpush1.bf16.msra.mxu0 %v3328_v36  ;;  %2267 = vmatprep.subr.bf16.mxu1 %v3333_v37  ;;  %v3423_v36 = vld [vmem:[%s4616_s1 + $0x72c] ss:$24 sps:$4 sm:$0xff]  }
  0xa1   : > { %2353 = vmatprep.subr.bf16.mxu0 %v3336_v38  ;;  %v3426_v37 = vld [vmem:[%s4616_s1 + $0x434] ss:$24 sps:$4 sm:$0xff]   ;;  %v3421_v38 = vld [vmem:[%s4616_s1 + $0x728] ss:$24 sps:$4 sm:$0xff]  }
  0xa3   : > { %2268 = vmatpush1.bf16.msra.mxu1 %v3331_v39  ;;  %v3424_v39 = vld [vmem:[%s4616_s1 + $0x430] ss:$24 sps:$4 sm:$0xff]  }
  0xa4   : > { %2354 = vmatpush1.bf16.msra.mxu0 %v3334_v40  ;;  %2269 = vmatprep.subr.bf16.mxu1 %v3339_v41  ;;  %v3429_v40 = vld [vmem:[%s4616_s1 + $0x75c] ss:$24 sps:$4 sm:$0xff]  }
  0xa5   : > { %2355 = vmatprep.subr.bf16.mxu0 %v3342_v42  ;;  %v3432_v41 = vld [vmem:[%s4616_s1 + $0x464] ss:$24 sps:$4 sm:$0xff]   ;;  %v3427_v42 = vld [vmem:[%s4616_s1 + $0x758] ss:$24 sps:$4 sm:$0xff]  }
  0xa7   : > { %2270 = vmatpush1.bf16.msra.mxu1 %v3337_v43  ;;  %v3430_v43 = vld [vmem:[%s4616_s1 + $0x460] ss:$24 sps:$4 sm:$0xff]  }
  0xa8   : > { %2356 = vmatpush1.bf16.msra.mxu0 %v3340_v44  ;;  %2271 = vmatprep.subr.bf16.mxu1 %v3345_v45  ;;  %v3435_v44 = vld [vmem:[%s4616_s1 + $0x78c] ss:$24 sps:$4 sm:$0xff]  }
  0xa9   : > { %2357 = vmatprep.subr.bf16.mxu0 %v3348_v46  ;;  %v3438_v45 = vld [vmem:[%s4616_s1 + $0x494] ss:$24 sps:$4 sm:$0xff]   ;;  %v3433_v46 = vld [vmem:[%s4616_s1 + $0x788] ss:$24 sps:$4 sm:$0xff]  }
  0xab   : > { %2272 = vmatpush1.bf16.msra.mxu1 %v3343_v47  ;;  %v3436_v47 = vld [vmem:[%s4616_s1 + $0x490] ss:$24 sps:$4 sm:$0xff]  }
  0xac   : > { %2358 = vmatpush1.bf16.msra.mxu0 %v3346_v50  ;;  %2273 = vmatprep.subr.bf16.mxu1 %v3351_v51  ;;  %v3441_v50 = vld [vmem:[%s4616_s1 + $0x7bc] ss:$24 sps:$4 sm:$0xff]  }
  0xad   : > { %2359 = vmatprep.subr.bf16.mxu0 %v3354_v52  ;;  %v3444_v51 = vld [vmem:[%s4616_s1 + $0x4c4] ss:$24 sps:$4 sm:$0xff]   ;;  %v3439_v52 = vld [vmem:[%s4616_s1 + $0x7b8] ss:$24 sps:$4 sm:$0xff]  }
  0xaf   : > { %2274 = vmatpush1.bf16.msra.mxu1 %v3349_v53  ;;  %v3442_v53 = vld [vmem:[%s4616_s1 + $0x4c0] ss:$24 sps:$4 sm:$0xff]  }
  0xb0   : > { %2360 = vmatpush1.bf16.msra.mxu0 %v3352_v54  ;;  %2275 = vmatprep.subr.bf16.mxu1 %v3357_v55  ;;  %v3447_v54 = vld [vmem:[%s4616_s1 + $0x7ec] ss:$24 sps:$4 sm:$0xff]  }
  0xb1   : > { %2361 = vmatprep.subr.bf16.mxu0 %v3360_v56  ;;  %v3450_v55 = vld [vmem:[%s4616_s1 + $0x4f4] ss:$24 sps:$4 sm:$0xff]   ;;  %v3445_v56 = vld [vmem:[%s4616_s1 + $0x7e8] ss:$24 sps:$4 sm:$0xff]  }
  0xb3   : > { %2276 = vmatpush1.bf16.msra.mxu1 %v3355_v57  ;;  %v3448_v57 = vld [vmem:[%s4616_s1 + $0x4f0] ss:$24 sps:$4 sm:$0xff]  }
  0xb4   : > { %2362 = vmatpush1.bf16.msra.mxu0 %v3358_v58  ;;  %2277 = vmatprep.subr.bf16.mxu1 %v3363_v59  ;;  %v3453_v58 = vld [vmem:[%s4616_s1 + $0x81c] ss:$24 sps:$4 sm:$0xff]  }
  0xb5   : > { %2363 = vmatprep.subr.bf16.mxu0 %v3366_v60  ;;  %v3456_v59 = vld [vmem:[%s4616_s1 + $0x524] ss:$24 sps:$4 sm:$0xff]   ;;  %v3451_v60 = vld [vmem:[%s4616_s1 + $0x818] ss:$24 sps:$4 sm:$0xff]  }
  0xb7   : > { %2278 = vmatpush1.bf16.msra.mxu1 %v3361_v61  ;;  %v3454_v61 = vld [vmem:[%s4616_s1 + $0x520] ss:$24 sps:$4 sm:$0xff]  }
  0xb8   : > { %2364 = vmatpush1.bf16.msra.mxu0 %v3364_v62  ;;  %2279 = vmatprep.subr.bf16.mxu1 %v3369_v63  ;;  %v3459_v62 = vld [vmem:[%s4616_s1 + $0x84c] ss:$24 sps:$4 sm:$0xff]  }
  0xb9   : > { %2365 = vmatprep.subr.bf16.mxu0 %v3372_v0  ;;  %v3462_v63 = vld [vmem:[%s4616_s1 + $0x554] ss:$24 sps:$4 sm:$0xff]   ;;  %v3457_v0 = vld [vmem:[%s4616_s1 + $0x848] ss:$24 sps:$4 sm:$0xff]  }
  0xbb   : > { %2280 = vmatpush1.bf16.msra.mxu1 %v3367_v1  ;;  %v3460_v1 = vld [vmem:[%s4616_s1 + $0x550] ss:$24 sps:$4 sm:$0xff]  }
  0xbc   : > { %2366 = vmatpush1.bf16.msra.mxu0 %v3370_v2  ;;  %2281 = vmatprep.subr.bf16.mxu1 %v3375_v3  ;;  %v3465_v2 = vld [vmem:[%s4616_s1 + $0x87c] ss:$24 sps:$4 sm:$0xff]  }
  0xbd   : > { %2367 = vmatprep.subr.bf16.mxu0 %v3378_v4  ;;  %v3468_v3 = vld [vmem:[%s4616_s1 + $0x584] ss:$24 sps:$4 sm:$0xff]   ;;  %v3463_v4 = vld [vmem:[%s4616_s1 + $0x878] ss:$24 sps:$4 sm:$0xff]  }
  0xbf   : > { %2282 = vmatpush1.bf16.msra.mxu1 %v3373_v5  ;;  %v3466_v5 = vld [vmem:[%s4616_s1 + $0x580] ss:$24 sps:$4 sm:$0xff]  }
  0xc0   : > { %2368 = vmatpush1.bf16.msra.mxu0 %v3376_v8  ;;  %2283 = vmatprep.subr.bf16.mxu1 %v3381_v9  ;;  %v3471_v8 = vld [vmem:[%s4616_s1 + $0x8ac] ss:$24 sps:$4 sm:$0xff]  }
  0xc1   : > { %2369 = vmatprep.subr.bf16.mxu0 %v3384_v10  ;;  %v3474_v9 = vld [vmem:[%s4616_s1 + $0x5b4] ss:$24 sps:$4 sm:$0xff]   ;;  %v3469_v10 = vld [vmem:[%s4616_s1 + $0x8a8] ss:$24 sps:$4 sm:$0xff]  }
  0xc3   : > { %2284 = vmatpush1.bf16.msra.mxu1 %v3379_v12  ;;  %v3472_v12 = vld [vmem:[%s4616_s1 + $0x5b0] ss:$24 sps:$4 sm:$0xff]  }
  0xc4   : > { %2370 = vmatpush1.bf16.msra.mxu0 %v3382_v13  ;;  %2296 = vmatprep.subr.bf16.mxu1 %v3387_v14  ;;  %v3477_v13 = vld [vmem:[%s4616_s1 + $0x8dc] ss:$24 sps:$4 sm:$0xff]  }
  0xc5   : > { %2382 = vmatprep.subr.bf16.mxu0 %v3390_v15  ;;  %v3480_v14 = vld [vmem:[%s4616_s1 + $0x5e4] ss:$24 sps:$4 sm:$0xff]   ;;  %v3475_v15 = vld [vmem:[%s4616_s1 + $0x8d8] ss:$24 sps:$4 sm:$0xff]  }
  0xc6   : > { %2286 = vmatmul.mubr.bf16.vlgmr.msra.gmra.mrb[4].mxu1 %v3812_v7  ;;  %v3533_v7 = vld [vmem:[%s3729_s28 + $0xc] ss:$24 sps:$4 sm:$0xff]  }
  0xc7   : > { %2372 = vmatmul.mubr.bf16.vlgmr.msra.gmra.mrb[4].mxu0 %v3809_v6  ;;  %2297 = vmatpush1.bf16.msra.mxu1 %v3385_v16  ;;  %v3402_v6 = vld [vmem:[%s4616_s1 + $0x374] ss:$24 sps:$4 sm:$0xff]   ;;  %v3478_v16 = vld [vmem:[%s4616_s1 + $0x5e0] ss:$24 sps:$4 sm:$0xff]  }
  0xc8   : > { %2383 = vmatpush1.bf16.msra.mxu0 %v3388_v17  ;;  %2298 = vmatprep.subr.bf16.mxu1 %v3393_v18  ;;  %v3483_v17 = vld [vmem:[%s4616_s1 + $0x614] ss:$24 sps:$4 sm:$0xff]   ;;  %v3481_v18 = vld [vmem:[%s4616_s1 + $0x610] ss:$24 sps:$4 sm:$0xff]  }
  0xc9   : > { %2384 = vmatprep.subr.bf16.mxu0 %v3396_v19  ;;  %2328 = vmatprep.mubr.bf16.mxu1 %v3896_v34  ;;  %v3486_v19 = vld [vmem:[%s4616_s1 + $0x644] ss:$24 sps:$4 sm:$0xff]  }
  0xca   : > { %2414 = vmatprep.mubr.bf16.mxu0 %v3533_v7  ;;  %v3492_v7 = vld [vmem:[%s4616_s1 + $0x6a4] ss:$24 sps:$4 sm:$0xff]  }
  0xcb   : > { %2299 = vmatpush1.bf16.msra.mxu1 %v3391_v20  ;;  %v3534_v20 = vld [vmem:[%s3729_s28 + $0x8] ss:$24 sps:$4 sm:$0xff]  }
  0xcc   : > { %2385 = vmatpush1.bf16.msra.mxu0 %v3394_v21  ;;  %2300 = vmatprep.subr.bf16.mxu1 %v3399_v22  ;;  %v3484_v21 = vld [vmem:[%s4616_s1 + $0x640] ss:$24 sps:$4 sm:$0xff]   ;;  %v3489_v22 = vld [vmem:[%s4616_s1 + $0x674] ss:$24 sps:$4 sm:$0xff]  }
  0xcd   : > { %2386 = vmatprep.subr.bf16.mxu0 %v3402_v6  ;;  %v3487_v6 = vld [vmem:[%s4616_s1 + $0x670] ss:$24 sps:$4 sm:$0xff]  }
  0xcf   : > { %2301 = vmatpush1.bf16.msra.mxu1 %v3397_v48  ;;  %v3495_v48 = vld [vmem:[%s4616_s1 + $0x6d4] ss:$24 sps:$4 sm:$0xff]  }
  0xd0   : > { %2387 = vmatpush1.bf16.msra.mxu0 %v3400_v49  ;;  %2302 = vmatprep.subr.bf16.mxu1 %v3405_v23  ;;  %v3493_v49 = vld [vmem:[%s4616_s1 + $0x6d0] ss:$24 sps:$4 sm:$0xff]   ;;  %v3498_v23 = vld [vmem:[%s4616_s1 + $0x704] ss:$24 sps:$4 sm:$0xff]  }
  0xd1   : > { %2388 = vmatprep.subr.bf16.mxu0 %v3408_v24  ;;  %v3496_v24 = vld [vmem:[%s4616_s1 + $0x700] ss:$24 sps:$4 sm:$0xff]  }
  0xd3   : > { %2303 = vmatpush1.bf16.msra.mxu1 %v3403_v25  ;;  %v3501_v25 = vld [vmem:[%s4616_s1 + $0x734] ss:$24 sps:$4 sm:$0xff]  }
  0xd4   : > { %2389 = vmatpush1.bf16.msra.mxu0 %v3406_v26  ;;  %2304 = vmatprep.subr.bf16.mxu1 %v3411_v27 }
  0xd5   : > { %2390 = vmatprep.subr.bf16.mxu0 %v3414_v28  ;;  %v3499_v28 = vld [vmem:[%s4616_s1 + $0x730] ss:$24 sps:$4 sm:$0xff]  }
  0xd7   : > { %2305 = vmatpush1.bf16.msra.mxu1 %v3409_v29 }
  0xd8   : > { %2391 = vmatpush1.bf16.msra.mxu0 %v3412_v30  ;;  %2306 = vmatprep.subr.bf16.mxu1 %v3417_v31  ;;  %v3504_v30 = vld [vmem:[%s4616_s1 + $0x764] ss:$24 sps:$4 sm:$0xff]  }
  0xd9   : > { %2392 = vmatprep.subr.bf16.mxu0 %v3420_v32  ;;  %v3502_v32 = vld [vmem:[%s4616_s1 + $0x760] ss:$24 sps:$4 sm:$0xff]  }
  0xdb   : > { %2307 = vmatpush1.bf16.msra.mxu1 %v3415_v33  ;;  %v3507_v33 = vld [vmem:[%s4616_s1 + $0x794] ss:$24 sps:$4 sm:$0xff]  }
  0xdc   : > { %2393 = vmatpush1.bf16.msra.mxu0 %v3418_v35  ;;  %2308 = vmatprep.subr.bf16.mxu1 %v3423_v36  ;;  %v3505_v35 = vld [vmem:[%s4616_s1 + $0x790] ss:$24 sps:$4 sm:$0xff]   ;;  %v3510_v36 = vld [vmem:[%s4616_s1 + $0x7c4] ss:$24 sps:$4 sm:$0xff]  }
  0xdd   : > { %2394 = vmatprep.subr.bf16.mxu0 %v3426_v37  ;;  %v3508_v37 = vld [vmem:[%s4616_s1 + $0x7c0] ss:$24 sps:$4 sm:$0xff]  }
  0xdf   : > { %2309 = vmatpush1.bf16.msra.mxu1 %v3421_v38  ;;  %v3513_v38 = vld [vmem:[%s4616_s1 + $0x7f4] ss:$24 sps:$4 sm:$0xff]  }
  0xe0   : > { %2395 = vmatpush1.bf16.msra.mxu0 %v3424_v39  ;;  %2310 = vmatprep.subr.bf16.mxu1 %v3429_v40  ;;  %v3511_v39 = vld [vmem:[%s4616_s1 + $0x7f0] ss:$24 sps:$4 sm:$0xff]   ;;  %v3516_v40 = vld [vmem:[%s4616_s1 + $0x824] ss:$24 sps:$4 sm:$0xff]  }
  0xe1   : > { %2396 = vmatprep.subr.bf16.mxu0 %v3432_v41  ;;  %v3514_v41 = vld [vmem:[%s4616_s1 + $0x820] ss:$24 sps:$4 sm:$0xff]  }
  0xe3   : > { %2311 = vmatpush1.bf16.msra.mxu1 %v3427_v42  ;;  %v3519_v42 = vld [vmem:[%s4616_s1 + $0x854] ss:$24 sps:$4 sm:$0xff]  }
  0xe4   : > { %2397 = vmatpush1.bf16.msra.mxu0 %v3430_v43  ;;  %2312 = vmatprep.subr.bf16.mxu1 %v3435_v44  ;;  %v3517_v43 = vld [vmem:[%s4616_s1 + $0x850] ss:$24 sps:$4 sm:$0xff]   ;;  %v3522_v44 = vld [vmem:[%s4616_s1 + $0x884] ss:$24 sps:$4 sm:$0xff]  }
  0xe5   : > { %2398 = vmatprep.subr.bf16.mxu0 %v3438_v45  ;;  %v3520_v45 = vld [vmem:[%s4616_s1 + $0x880] ss:$24 sps:$4 sm:$0xff]  }
  0xe7   : > { %2313 = vmatpush1.bf16.msra.mxu1 %v3433_v46  ;;  %v3525_v46 = vld [vmem:[%s4616_s1 + $0x8b4] ss:$24 sps:$4 sm:$0xff]  }
  0xe8   : > { %2399 = vmatpush1.bf16.msra.mxu0 %v3436_v47  ;;  %2314 = vmatprep.subr.bf16.mxu1 %v3441_v50  ;;  %v3523_v47 = vld [vmem:[%s4616_s1 + $0x8b0] ss:$24 sps:$4 sm:$0xff]   ;;  %v3528_v50 = vld [vmem:[%s4616_s1 + $0x8e4] ss:$24 sps:$4 sm:$0xff]  }
  0xe9   : > { %2400 = vmatprep.subr.bf16.mxu0 %v3444_v51  ;;  %v3526_v51 = vld [vmem:[%s4616_s1 + $0x8e0] ss:$24 sps:$4 sm:$0xff]  }
  0xeb   : > { %2315 = vmatpush1.bf16.msra.mxu1 %v3439_v52  ;;  %v581_v52 = vlaneseq }
  0xec   : > { %2401 = vmatpush1.bf16.msra.mxu0 %v3442_v53  ;;  %2316 = vmatprep.subr.bf16.mxu1 %v3447_v54 }
  0xed   : > { %2402 = vmatprep.subr.bf16.mxu0 %v3450_v55  ;;  %v582_v53 = vshrl.u32 %v581_v52, 7  ;;  %v579_v55 = vld [vmem:[%s4617_s2] sm:$0x3f] }
  0xef   : > { %2317 = vmatpush1.bf16.msra.mxu1 %v3445_v56  ;;  %v4496_v54 = vsub.s32 0, %v582_v53  ;;  %v4501_v56 = vsub.s32 1, %v582_v53 }
  0xf0   : > { %2403 = vmatpush1.bf16.msra.mxu0 %v3448_v57  ;;  %2318 = vmatprep.subr.bf16.mxu1 %v3453_v58 }
  0xf1   : > { %2404 = vmatprep.subr.bf16.mxu0 %v3456_v59  ;;  %v584_v57 = vrot.slane %v579_v55, %v4496_v54  ;;  %v588_v58 = vrot.slane %v579_v55, %v4501_v56 }
  0xf3   : > { %2319 = vmatpush1.bf16.msra.mxu1 %v3451_v60 }
  0xf4   : > { %2405 = vmatpush1.bf16.msra.mxu0 %v3454_v61  ;;  %2320 = vmatprep.subr.bf16.mxu1 %v3459_v62  ;;  %v2468_v61 = vld [vmem:[%s4511_s10] sm:$0xff] }
  0xf5   : > { %2406 = vmatprep.subr.bf16.mxu0 %v3462_v63 }
  0xf7   : > { %2321 = vmatpush1.bf16.msra.mxu1 %v3457_v0 }
  0xf8   : > { %2407 = vmatpush1.bf16.msra.mxu0 %v3460_v1  ;;  %2322 = vmatprep.subr.bf16.mxu1 %v3465_v2  ;;  %v2469_v1 = vld [vmem:[%s4511_s10 + $0x8] sm:$0xff] }
  0xf9   : > { %2408 = vmatprep.subr.bf16.mxu0 %v3468_v3 }
  0xfb   : > { %2323 = vmatpush1.bf16.msra.mxu1 %v3463_v4 }
  0xfc   : > { %2409 = vmatpush1.bf16.msra.mxu0 %v3466_v5  ;;  %2324 = vmatprep.subr.bf16.mxu1 %v3471_v8  ;;  %v2474_v5 = vld [vmem:[%s4511_s10 + $0x30] sm:$0xff] }
  0xfd   : > { %2410 = vmatprep.subr.bf16.mxu0 %v3474_v9 }
  0xff   : > { %2325 = vmatpush1.bf16.msra.mxu1 %v3469_v10 }
 0x100   : > { %2411 = vmatpush1.bf16.msra.mxu0 %v3472_v12  ;;  %2326 = vmatprep.subr.bf16.mxu1 %v3477_v13  ;;  %v2475_v12 = vld [vmem:[%s4511_s10 + $0x38] sm:$0xff] }
 0x101   : > { %2412 = vmatprep.subr.bf16.mxu0 %v3480_v14 }
 0x103   : > { %2327 = vmatpush1.bf16.msra.mxu1 %v3475_v15 }
 0x104   : > { %2413 = vmatpush1.bf16.msra.mxu0 %v3478_v16 }
 0x105   : > { %2425 = vmatprep.subr.bf16.mxu0 %v3483_v17  ;;  %v4521_v17 = vsub.s32 2, %v582_v53 }
 0x106   : > { %2329 = vmatmul.mubr.bf16.vlgmr.msra.gmra.mrb[4].mxu1 %v4008_v11 }
 0x107   : > { %2415 = vmatmul.mubr.bf16.vlgmr.msra.gmra.mrb[4].mxu0 %v3534_v20 }
 0x108   : > { %2426 = vmatpush1.bf16.msra.mxu0 %v3481_v18  ;;  %2457 = vmatprep.mubr.bf16.mxu0 %v3896_v34  ;;  %v3490_v34 = vld [vmem:[%s4616_s1 + $0x6a0] ss:$24 sps:$4 sm:$0xff]   ;;  %v4523_v18 = vsub.s32 3, %v582_v53 }
 0x109   : > { %2427 = vmatprep.subr.bf16.mxu0 %v3486_v19  ;;  %v592_v19 = vrot.slane %v579_v55, %v4521_v17 }
 0x10a   : > { %v596_v20 = vrot.slane %v579_v55, %v4523_v18 }
 0x10c   : > { %2428 = vmatpush1.bf16.msra.mxu0 %v3484_v21 }
 0x10d   : > { %2429 = vmatprep.subr.bf16.mxu0 %v3489_v22  ;;  %v2470_v22 = vld [vmem:[%s4511_s10 + $0x10] sm:$0xff] }
 0x110   : > { %2430 = vmatpush1.bf16.msra.mxu0 %v3487_v6 }
 0x111   : > { %2431 = vmatprep.subr.bf16.mxu0 %v3492_v7 }
 0x114   : > { %2432 = vmatpush1.bf16.msra.mxu0 %v3490_v34  ;;  %v2471_v34 = vld [vmem:[%s4511_s10 + $0x18] sm:$0xff] }
 0x115   : > { %2433 = vmatprep.subr.bf16.mxu0 %v3495_v48 }
 0x118   : > { %2434 = vmatpush1.bf16.msra.mxu0 %v3493_v49 }
 0x119   : > { %2435 = vmatprep.subr.bf16.mxu0 %v3498_v23  ;;  %v2115_v26 = vpop.f32.mrb[0].mxu1  ;;  %v2476_v23 = vld [vmem:[%s4511_s10 + $0x40] sm:$0xff] }
 0x11a   : > { %v2117_v27 = vpop.f32.mrb[1].mxu1 }
 0x11b   : > { %v2119_v29 = vpop.f32.mrb[2].mxu1  ;;  %v2118_v59 = vadd.f32 %v2117_v27, %v588_v58  ;;  %v2477_v27 = vld [vmem:[%s4511_s10 + $0x48] sm:$0xff] }
 0x11c   : > { %2436 = vmatpush1.bf16.msra.mxu0 %v3496_v24  ;;  %v2121_v31 = vpop.f32.mrb[3].mxu1  ;;  %v2120_v62 = vadd.f32 %v2119_v29, %v584_v57 }
 0x11d   : > { %2437 = vmatprep.subr.bf16.mxu0 %v3501_v25  ;;  %v2122_v2 = vadd.f32 %v2121_v31, %v588_v58 }
 0x120   : > { %2438 = vmatpush1.bf16.msra.mxu0 %v3499_v28 }
 0x121   : > { %2439 = vmatprep.subr.bf16.mxu0 %v3504_v30 }
 0x124   : > { %2440 = vmatpush1.bf16.msra.mxu0 %v3502_v32  ;;  %v4531_v32 = vsub.s32 4, %v582_v53 }
 0x125   : > { %2441 = vmatprep.subr.bf16.mxu0 %v3507_v33  ;;  %v4533_v33 = vsub.s32 5, %v582_v53 }
 0x128   : > { %2442 = vmatpush1.bf16.msra.mxu0 %v3505_v35 }
 0x129   : > { %2443 = vmatprep.subr.bf16.mxu0 %v3510_v36  ;;  %v600_v36 = vrot.slane %v579_v55, %v4531_v32 }
 0x12c   : > { %2444 = vmatpush1.bf16.msra.mxu0 %v3508_v37  ;;  %v604_v37 = vrot.slane %v579_v55, %v4533_v33 }
 0x12d   : > { %2445 = vmatprep.subr.bf16.mxu0 %v3513_v38 }
 0x130   : > { %2446 = vmatpush1.bf16.msra.mxu0 %v3511_v39 }
 0x131   : > { %2447 = vmatprep.subr.bf16.mxu0 %v3516_v40 }
 0x134   : > { %2448 = vmatpush1.bf16.msra.mxu0 %v3514_v41  ;;  %v2472_v41 = vld [vmem:[%s4511_s10 + $0x20] sm:$0xff] }
 0x135   : > { %2449 = vmatprep.subr.bf16.mxu0 %v3519_v42 }
 0x138   : > { %2450 = vmatpush1.bf16.msra.mxu0 %v3517_v43 }
 0x139   : > { %2451 = vmatprep.subr.bf16.mxu0 %v3522_v44 }
 0x13c   : > { %2452 = vmatpush1.bf16.msra.mxu0 %v3520_v45  ;;  %v2473_v45 = vld [vmem:[%s4511_s10 + $0x28] sm:$0xff] }
 0x13d   : > { %2453 = vmatprep.subr.bf16.mxu0 %v3525_v46 }
 0x140   : > { %2454 = vmatpush1.bf16.msra.mxu0 %v3523_v47 }
 0x141   : > { %2455 = vmatprep.subr.bf16.mxu0 %v3528_v50  ;;  %v2478_v50 = vld [vmem:[%s4511_s10 + $0x50] sm:$0xff] }
 0x144   : > { %2456 = vmatpush1.bf16.msra.mxu0 %v3526_v51 }
 0x147   : > { %2458 = vmatmul.mubr.bf16.vlgmr.msra.gmra.mrb[4].mxu0 %v4008_v11  ;;  %v2116_v11 = vadd.f32 %v2115_v26, %v584_v57  ;;  %v2479_v57 = vld [vmem:[%s4511_s10 + $0x58] sm:$0xff] }
 0x15a   : > { %v2201_v60 = vpop.f32.mrb[0].mxu0 }
 0x15b   : > { %v3043_v63 = vadd.f32 %v2201_v60, %v2116_v11  ;;  %v2203_v0 = vpop.f32.mrb[1].mxu0 }
 0x15c   : > { %v3045_v3 = vadd.f32 %v2203_v0, %v2118_v59  ;;  %v2205_v4 = vpop.f32.mrb[2].mxu0 }
 0x15d   : > { %v2480_v8 = vadd.f32 %v3043_v63, %v2468_v61  ;;  %v3047_v9 = vadd.f32 %v2205_v4, %v2120_v62  ;;  %v2207_v10 = vpop.f32.mrb[3].mxu0 }
 0x15e   : > { %v2481_v13 = vadd.f32 %v3045_v3, %v2469_v1  ;;  %v3049_v14 = vadd.f32 %v2207_v10, %v2122_v2 }
 0x15f   : > { %v4517_v15 = vadd.f32 %v3047_v9, %v2474_v5 }
 0x160   : > { %v4519_v16 = vadd.f32 %v3049_v14, %v2475_v12  ;;  %v2494_v35 = vadd.f32 %v2481_v13, %v2480_v8 }
 0x162   : > { %v2501_v38 = vadd.f32 %v4519_v16, %v4517_v15 }
 0x1d9   : > { %v2330_v21 = vpop.f32.mrb[4].mxu1 }
 0x1da   : > { %v3050_v6 = vadd.f32 %v2330_v21, %v592_v19  ;;  %v2332_v7 = vpop.f32.mrb[5].mxu1 }
 0x1db   : > { %v3051_v48 = vadd.f32 %v2332_v7, %v596_v20  ;;  %v2334_v49 = vpop.f32.mrb[6].mxu1 }
 0x1dc   : > { %v2482_v24 = vadd.f32 %v3050_v6, %v2470_v22  ;;  %v3052_v25 = vadd.f32 %v2334_v49, %v592_v19  ;;  %v2336_v26 = vpop.f32.mrb[7].mxu1 }
 0x1dd   : > { %v2483_v28 = vadd.f32 %v3051_v48, %v2471_v34  ;;  %v3053_v29 = vadd.f32 %v2336_v26, %v596_v20 }
 0x1de   : > { %v2488_v30 = vadd.f32 %v3052_v25, %v2476_v23  ;;  %v2495_v39 = vadd.f32 %v2494_v35, %v2482_v24 }
 0x1df   : > { %v2489_v31 = vadd.f32 %v3053_v29, %v2477_v27 }
 0x1e0   : > { %v2502_v42 = vadd.f32 %v2501_v38, %v2488_v30  ;;  %v2496_v58 = vadd.f32 %v2495_v39, %v2483_v28 }
 0x1e2   : > { %v2503_v59 = vadd.f32 %v2502_v42, %v2489_v31 }
 0x21a   : > { %v2459_v40 = vpop.f32.mrb[4].mxu0 }
 0x21b   : > { %v3054_v43 = vadd.f32 %v2459_v40, %v600_v36  ;;  %v2461_v44 = vpop.f32.mrb[5].mxu0 }
 0x21c   : > { %v3055_v46 = vadd.f32 %v2461_v44, %v604_v37  ;;  %v2463_v47 = vpop.f32.mrb[6].mxu0 }
 0x21d   : > { %v2484_v51 = vadd.f32 %v3054_v43, %v2472_v41  ;;  %v3056_v52 = vadd.f32 %v2463_v47, %v600_v36  ;;  %v2465_v53 = vpop.f32.mrb[7].mxu0 }
 0x21e   : > { %v3057_v11 = vadd.f32 %v2465_v53, %v604_v37  ;;  %v2485_v55 = vadd.f32 %v3055_v46, %v2473_v45 }
 0x21f   : > { %v2490_v60 = vadd.f32 %v3056_v52, %v2478_v50  ;;  %v2497_v61 = vadd.f32 %v2496_v58, %v2484_v51  ;;  %v2493_v52 = vld [vmem:[%s4620_s5] sm:$0x3f] }
 0x220   : > { %v2491_v62 = vadd.f32 %v3057_v11, %v2479_v57  ;;  %v2614_v57 = vrot.slane %v2493_v52, %v4496_v54  ;;  %v2618_v11 = vrot.slane %v2493_v52, %v4501_v56 }
 0x221   : > { %v2498_v63 = vadd.f32 %v2497_v61, %v2485_v55  ;;  %v2504_v0 = vadd.f32 %v2503_v59, %v2490_v60  ;;  %v2622_v61 = vrot.slane %v2493_v52, %v4521_v17 }
 0x223   : > { %2499 = vadd.xlane.f32.xlu0 %v2498_v63  ;;  %v2505_v1 = vadd.f32 %v2504_v0, %v2491_v62 }
 0x227   : > { %2506 = vadd.xlane.f32.xlu0 %v2505_v1 }
 0x2b0   : > { %v2500_v2 = vpop.xlane.xlu0 %2499 }
 0x2b1   : > { %v2509_v3 = vmul.f32 0.0013020834, %v2500_v2 }
 0x2b3   : > { %v2511_v4 = vsub.f32 %v2480_v8, %v2509_v3  ;;  %v2512_v5 = vsub.f32 %v2481_v13, %v2509_v3  ;;  %v2513_v9 = vsub.f32 %v2482_v24, %v2509_v3  ;;  %v2514_v12 = vsub.f32 %v2483_v28, %v2509_v3 }
 0x2b4   : > { %v2507_v10 = vpop.xlane.xlu0 %2506  ;;  %v2515_v21 = vsub.f32 %v2484_v51, %v2509_v3  ;;  %v2516_v49 = vsub.f32 %v2485_v55, %v2509_v3  ;;  %v2492_v51 = vld [vmem:[%s4619_s4] sm:$0x3f] }
 0x2b5   : > { %v2510_v14 = vmul.f32 0.0013020834, %v2507_v10  ;;  %v2523_v19 = vmul.f32 %v2511_v4, %v2511_v4  ;;  %v2524_v20 = vmul.f32 %v2512_v5, %v2512_v5  ;;  %v2525_v22 = vmul.f32 %v2513_v9, %v2513_v9 }
 0x2b6   : > { %v2526_v8 = vmul.f32 %v2514_v12, %v2514_v12  ;;  %v2527_v26 = vmul.f32 %v2515_v21, %v2515_v21  ;;  %v2528_v29 = vmul.f32 %v2516_v49, %v2516_v49  ;;  %v2571_v53 = vrot.slane %v2492_v51, %v4496_v54 }
 0x2b7   : > { %v2535_v6 = vadd.f32 %v2524_v20, %v2523_v19  ;;  %v4544_v7 = vsub.f32 %v4517_v15, %v2510_v14  ;;  %v4547_v34 = vsub.f32 %v4519_v16, %v2510_v14  ;;  %v4549_v48 = vsub.f32 %v2488_v30, %v2510_v14 }
 0x2b8   : > { %v4551_v23 = vsub.f32 %v2489_v31, %v2510_v14  ;;  %v4557_v15 = vsub.f32 %v2490_v60, %v2510_v14  ;;  %v4561_v35 = vsub.f32 %v2491_v62, %v2510_v14  ;;  %v2575_v58 = vrot.slane %v2492_v51, %v4501_v56 }
 0x2b9   : > { %v2536_v13 = vadd.f32 %v2535_v6, %v2525_v22  ;;  %v2529_v24 = vmul.f32 %v4544_v7, %v4544_v7  ;;  %v2530_v25 = vmul.f32 %v4547_v34, %v4547_v34  ;;  %v2531_v16 = vmul.f32 %v4549_v48, %v4549_v48 }
 0x2ba   : > { %v2532_v31 = vmul.f32 %v4551_v23, %v4551_v23  ;;  %v2533_v38 = vmul.f32 %v4557_v15, %v4557_v15  ;;  %v2534_v40 = vmul.f32 %v4561_v35, %v4561_v35  ;;  %v2579_v55 = vrot.slane %v2492_v51, %v4521_v17 }
 0x2bb   : > { %v2537_v27 = vadd.f32 %v2536_v13, %v2526_v8  ;;  %v2542_v28 = vadd.f32 %v2530_v25, %v2529_v24  ;;  %v2583_v59 = vrot.slane %v2492_v51, %v4523_v18  ;;  %v2626_v62 = vrot.slane %v2493_v52, %v4523_v18 }
 0x2bc   : > { %v2587_v63 = vrot.slane %v2492_v51, %v4531_v32  ;;  %v2591_v0 = vrot.slane %v2492_v51, %v4533_v33  ;;  %v2630_v56 = vrot.slane %v2493_v52, %v4531_v32  ;;  %v2634_v10 = vrot.slane %v2493_v52, %v4533_v33 }
 0x2bd   : > { %v2538_v30 = vadd.f32 %v2537_v27, %v2527_v26  ;;  %v2543_v36 = vadd.f32 %v2542_v28, %v2531_v16 }
 0x2bf   : > { %v2539_v37 = vadd.f32 %v2538_v30, %v2528_v29  ;;  %v2544_v39 = vadd.f32 %v2543_v36, %v2532_v31 }
 0x2c1   : > { %2540 = vadd.xlane.f32.xlu1 %v2539_v37  ;;  %v2545_v41 = vadd.f32 %v2544_v39, %v2533_v38 }
 0x2c3   : > { %v2546_v42 = vadd.f32 %v2545_v41, %v2534_v40 }
 0x2c5   : > { %2547 = vadd.xlane.f32.xlu1 %v2546_v42 }
 0x34e   : > { %v2541_v43 = vpop.xlane.xlu1 %2540 }
 0x34f   : > { %v2549_v44 = vmul.f32 0.0013020834, %v2541_v43 }
 0x351   : > { %v2551_v45 = vadd.f32 1e-12, %v2549_v44 }
 0x352   : > { %v2548_v46 = vpop.xlane.xlu1 %2547 }
 0x353   : > { %3529 = vrsqrt.f32 %v2551_v45  ;;  %v2550_v47 = vmul.f32 0.0013020834, %v2548_v46 }
 0x355   : > { %v2552_v50 = vadd.f32 1e-12, %v2550_v47 }
 0x357   : > { %3531 = vrsqrt.f32 %v2552_v50 }
 0x35d   : > { %v3530_v60 = vpop.eup %3529 }
 0x35e   : > { %v2555_v1 = vmul.f32 %v3530_v60, %v2511_v4  ;;  %v2556_v54 = vmul.f32 %v3530_v60, %v2512_v5  ;;  %v2557_v2 = vmul.f32 %v3530_v60, %v2513_v9  ;;  %v2558_v3 = vmul.f32 %v3530_v60, %v2514_v12 }
 0x35f   : > { %v2559_v14 = vmul.f32 %v3530_v60, %v2515_v21  ;;  %v2560_v19 = vmul.f32 %v3530_v60, %v2516_v49 }
 0x360   : > { %v2598_v20 = vmul.f32 %v2571_v53, %v2555_v1  ;;  %v2599_v22 = vmul.f32 %v2575_v58, %v2556_v54  ;;  %v2600_v17 = vmul.f32 %v2579_v55, %v2557_v2  ;;  %v2601_v6 = vmul.f32 %v2583_v59, %v2558_v3 }
 0x361   : > { %v3532_v18 = vpop.eup %3531  ;;  %v2602_v32 = vmul.f32 %v2587_v63, %v2559_v14  ;;  %v2603_v4 = vmul.f32 %v2591_v0, %v2560_v19 }
 0x362   : > { %v2641_v33 = vadd.f32 %v2614_v57, %v2598_v20  ;;  %v2642_v5 = vadd.f32 %v2618_v11, %v2599_v22  ;;  %v2643_v9 = vadd.f32 %v2622_v61, %v2600_v17  ;;  %v2644_v12 = vadd.f32 %v2626_v62, %v2601_v6 }
 0x363   : > { %v2645_v21 = vadd.f32 %v2630_v56, %v2602_v32  ;;  %v2646_v49 = vadd.f32 %v2634_v10, %v2603_v4  ;;  %v2561_v8 = vmul.f32 %v3532_v18, %v4544_v7  ;;  %v2562_v13 = vmul.f32 %v3532_v18, %v4547_v34 }
 0x364   : > { %2653 = vst [vmem:[%s4592_s18] sm:$0xff] %v2641_v33  ;;  %2654 = vst [vmem:[%s4592_s18 + $0x8] sm:$0xff] %v2642_v5  ;;  %v2563_v24 = vmul.f32 %v3532_v18, %v4549_v48  ;;  %v2564_v25 = vmul.f32 %v3532_v18, %v4551_v23  ;;  %v2565_v26 = vmul.f32 %v3532_v18, %v4557_v15 }
 0x365   : > { %2655 = vst [vmem:[%s4592_s18 + $0x10] sm:$0xff] %v2643_v9  ;;  %2656 = vst [vmem:[%s4592_s18 + $0x18] sm:$0xff] %v2644_v12  ;;  %v2566_v27 = vmul.f32 %v3532_v18, %v4561_v35  ;;  %v2604_v7 = vmul.f32 %v2571_v53, %v2561_v8  ;;  %v2605_v34 = vmul.f32 %v2575_v58, %v2562_v13 }
 0x366   : > { %2657 = vst [vmem:[%s4592_s18 + $0x20] sm:$0xff] %v2645_v21  ;;  %2658 = vst [vmem:[%s4592_s18 + $0x28] sm:$0xff] %v2646_v49  ;;  %v2606_v16 = vmul.f32 %v2579_v55, %v2563_v24  ;;  %v2607_v28 = vmul.f32 %v2583_v59, %v2564_v25  ;;  %v2608_v29 = vmul.f32 %v2587_v63, %v2565_v26 }
 0x367   : > { %v2609_v48 = vmul.f32 %v2591_v0, %v2566_v27  ;;  %v2647_v30 = vadd.f32 %v2614_v57, %v2604_v7  ;;  %v2648_v23 = vadd.f32 %v2618_v11, %v2605_v34 }
 0x368   : > { %v2649_v31 = vadd.f32 %v2622_v61, %v2606_v16  ;;  %v2650_v15 = vadd.f32 %v2626_v62, %v2607_v28  ;;  %v2651_v36 = vadd.f32 %v2630_v56, %v2608_v29 }
 0x369   : > { %v2652_v37 = vadd.f32 %v2634_v10, %v2609_v48  ;;  %2659 = vst [vmem:[%s4592_s18 + $0x30] sm:$0xff] %v2647_v30  ;;  %2660 = vst [vmem:[%s4592_s18 + $0x38] sm:$0xff] %v2648_v23 }
 0x36a   : > { %2661 = vst [vmem:[%s4592_s18 + $0x40] sm:$0xff] %v2649_v31  ;;  %2662 = vst [vmem:[%s4592_s18 + $0x48] sm:$0xff] %v2650_v15 }
 0x36b   : > { %2663 = vst [vmem:[%s4592_s18 + $0x50] sm:$0xff] %v2651_v36  ;;  %2664 = vst [vmem:[%s4592_s18 + $0x58] sm:$0xff] %v2652_v37 }
 0x36c PF: > { %s16_s21 = sadd.s32 1, %s3541_s21  }
 0x36d   : > { %p13_p4 = scmp.ge.s32.totalorder %s16_s21, 4  }
 0x36f   :  { %15 = sbr.rel (!%p13_p4) target bundleno = 1 (0x1), region = 77 }

// kernel: bert_classifier_forward.14
= control target key start
LH: loop header
LB: loop body
LE: loop exit
PB: predicated region body
PF: predicated region fallthrough
CT: control target
= control target key end

     0   :  { %s6442_s0 = inlined_call_operand.vmem [shape: f32[32,768], index: 0, kind: input, shape index: {}, may-alias: {0,5}]   ;;  %s6443_s1 = inlined_call_operand.vmem [shape: bf16[768,3072], index: 1, kind: input, shape index: {}]   ;;  %s6444_s2 = inlined_call_operand.vmem [shape: f32[1,3072], index: 2, kind: input, shape index: {}]   ;;  %s6445_s3 = inlined_call_operand.vmem [shape: bf16[3072,768], index: 3, kind: input, shape index: {}]   ;;  %s6446_s4 = inlined_call_operand.vmem [shape: f32[1,768], index: 4, kind: input, shape index: {}, may-alias: {4,7}]   ;;  %s6447_s5 = inlined_call_operand.vmem [shape: f32[32,768], index: 5, kind: input, shape index: {}, may-alias: {0,5}]   ;;  %s6448_s6 = inlined_call_operand.vmem [shape: f32[1,768], index: 6, kind: input, shape index: {}]   ;;  %s6449_s7 = inlined_call_operand.vmem [shape: f32[1,768], index: 7, kind: input, shape index: {}, may-alias: {4,7}]   ;;  %s6450_s8 = inlined_call_operand.vmem [shape: f32[32,768], index: 8, kind: output, shape index: {}]  }
   0x1   :  { %6453 = sst [smem:[#allocation7_spill]] %s6443_s1 }
   0x2   :  { %s5384_s27 = smov 0   ;;  %s5386_s28 = smov 0  }
   0x3   :  { %s5388_s29 = smov 0   ;;  %s5390_s30 = smov 0  }
   0x4   :  { %s5392_s9 = smov 0   ;;  %s5394_s10 = smov 0  }
   0x5   :  { %s5396_s11 = smov 0  }
   0x6 LB: > { %6454 = sst [smem:[#allocation4_spill]] %s5332_s10  ;;  %s27_s12 = sadd.s32 1, %s5328_s9  ;;  %s5336_s11 = sphi %s5396_s11, %s18_s11   ;;  %s5332_s10 = sphi %s5394_s10, %s6460_s10   ;;  %s5328_s9 = sphi %s5392_s9, %s6464_s9   ;;  %s5324_s30 = sphi %s5390_s30, %s6458_s30   ;;  %s5320_s29 = sphi %s5388_s29, %s6463_s29   ;;  %s5316_s28 = sphi %s5386_s28, %s6462_s28   ;;  %s5312_s27 = sphi %s5384_s27, %s6461_s27  }
   0x7   : > { %s30_s13 = sadd.s32 1, %s5332_s10  ;;  %p28_p0 = scmp.ge.s32.totalorder %s27_s12, 6 }
   0x8   : > { %s63_s14 = sadd.s32 1, %s5316_s28  ;;  %p70_p1 = scmp.ne.s32.totalorder %s5316_s28, %s5312_s27 }
   0x9   : > { %p71_p2 = scmp.eq.s32.totalorder %s5336_s11, 0  ;;  %s6466_s12 = smov (%p28_p0, %s27_s12), 0 }
   0xa   : > { %6455 = sst [smem:[#allocation5_spill]] %s6466_s12  ;;  %s6468_s13 = smov (!%p28_p0, %s30_s13), %s5332_s10 }
   0xb   : > { %s60_s15 = ssub.s32 %s5328_s9, %s6466_s12  ;;  %p72_p3 = por %p71_p2, %p70_p1 }
   0xc   : > { %p32_p4 = scmp.ge.s32.totalorder %s6468_s13, 2  ;;  %p61_p5 = scmp.eq.s32.totalorder %s60_s15, 0 }
   0xd   : > { %p4187_p6 = scmp.ge.s32.totalorder %s5336_s11, 12 }
   0xe   : > { %s6470_s13 = smov (%p32_p4, %s6468_s13), 0 }
   0xf   : > { %6456 = sst [smem:[#allocation6_spill]] %s6470_s13  ;;  %272 = sbr.rel (%p4187_p6) target bundleno = 128 (0x80), region = 28 }
  0x10   : > { %s5433_s16 = scalar_select %p61_p5, %s5316_s28, %s63_s14  }
  0x16   : > { %285 = sbr.rel (!%p72_p3) target bundleno = 128 (0x80), region = 36  ;;  %s287_s17 = sand.u32 (%p72_p3), 1, %s5316_s28  }
  0x17   : > { %s4588_s18 = sshll.u32 (%p72_p3), %s5328_s9, 4  ;;  %s4625_s19 = smul.u32 (%p72_p3), 1536, %s287_s17 }
  0x18   : > { %s6457_s1 = sld [smem:[#allocation7_spill]] (%p72_p3) }
  0x19   : > { %s5449_s23 = scalar_lea.vmem (%p72_p3), [#allocation3], %s4625_s19 }
  0x1e   : > { %s5441_s22 = scalar_lea.vmem %s6457_s1, %s4588_s18 }
  0x1f   : > { %v305_v0 = vld [vmem:[%s5441_s22] sm:$0xff]  ;;  %v307_v1 = vld [vmem:[%s5441_s22 + $0x8] sm:$0xff] }
  0x20   : > { %v309_v2 = vld [vmem:[%s5441_s22 + $0x60] sm:$0xff]  ;;  %v311_v3 = vld [vmem:[%s5441_s22 + $0x68] sm:$0xff]  ;;  %306 = vst [vmem:[%s5449_s23] sm:$0xff] %v305_v0  ;;  %308 = vst [vmem:[%s5449_s23 + $0x8] sm:$0xff] %v307_v1 }
  0x21   : > { %v313_v4 = vld [vmem:[%s5441_s22 + $0xc0] sm:$0xff]  ;;  %v315_v5 = vld [vmem:[%s5441_s22 + $0xc8] sm:$0xff]  ;;  %310 = vst [vmem:[%s5449_s23 + $0x10] sm:$0xff] %v309_v2  ;;  %312 = vst [vmem:[%s5449_s23 + $0x18] sm:$0xff] %v311_v3 }
  0x22   : > { %314 = vst [vmem:[%s5449_s23 + $0x20] sm:$0xff] %v313_v4  ;;  %316 = vst [vmem:[%s5449_s23 + $0x28] sm:$0xff] %v315_v5  ;;  %v317_v6 = vld [vmem:[%s5441_s22 + $0x120] sm:$0xff]  ;;  %v319_v7 = vld [vmem:[%s5441_s22 + $0x128] sm:$0xff] }
  0x23   : > { %v321_v8 = vld [vmem:[%s5441_s22 + $0x180] sm:$0xff]  ;;  %318 = vst [vmem:[%s5449_s23 + $0x30] sm:$0xff] %v317_v6  ;;  %320 = vst [vmem:[%s5449_s23 + $0x38] sm:$0xff] %v319_v7  ;;  %v323_v9 = vld [vmem:[%s5441_s22 + $0x188] sm:$0xff] }
  0x24   : > { %322 = vst [vmem:[%s5449_s23 + $0x40] sm:$0xff] %v321_v8  ;;  %v325_v10 = vld [vmem:[%s5441_s22 + $0x1e0] sm:$0xff]  ;;  %v327_v11 = vld [vmem:[%s5441_s22 + $0x1e8] sm:$0xff]  ;;  %324 = vst [vmem:[%s5449_s23 + $0x48] sm:$0xff] %v323_v9 }
  0x25   : > { %326 = vst [vmem:[%s5449_s23 + $0x50] sm:$0xff] %v325_v10  ;;  %328 = vst [vmem:[%s5449_s23 + $0x58] sm:$0xff] %v327_v11  ;;  %v329_v12 = vld [vmem:[%s5441_s22 + $0x240] sm:$0xff]  ;;  %v331_v13 = vld [vmem:[%s5441_s22 + $0x248] sm:$0xff] }
  0x26   : > { %v333_v14 = vld [vmem:[%s5441_s22 + $0x2a0] sm:$0xff]  ;;  %330 = vst [vmem:[%s5449_s23 + $0x60] sm:$0xff] %v329_v12  ;;  %332 = vst [vmem:[%s5449_s23 + $0x68] sm:$0xff] %v331_v13  ;;  %v335_v15 = vld [vmem:[%s5441_s22 + $0x2a8] sm:$0xff] }
  0x27   : > { %334 = vst [vmem:[%s5449_s23 + $0x70] sm:$0xff] %v333_v14  ;;  %v337_v16 = vld [vmem:[%s5441_s22 + $0x300] sm:$0xff]  ;;  %v339_v17 = vld [vmem:[%s5441_s22 + $0x308] sm:$0xff]  ;;  %336 = vst [vmem:[%s5449_s23 + $0x78] sm:$0xff] %v335_v15 }
  0x28   : > { %338 = vst [vmem:[%s5449_s23 + $0x80] sm:$0xff] %v337_v16  ;;  %340 = vst [vmem:[%s5449_s23 + $0x88] sm:$0xff] %v339_v17  ;;  %v341_v18 = vld [vmem:[%s5441_s22 + $0x360] sm:$0xff]  ;;  %v343_v19 = vld [vmem:[%s5441_s22 + $0x368] sm:$0xff] }
  0x29   : > { %v345_v20 = vld [vmem:[%s5441_s22 + $0x3c0] sm:$0xff]  ;;  %342 = vst [vmem:[%s5449_s23 + $0x90] sm:$0xff] %v341_v18  ;;  %344 = vst [vmem:[%s5449_s23 + $0x98] sm:$0xff] %v343_v19  ;;  %v347_v21 = vld [vmem:[%s5441_s22 + $0x3c8] sm:$0xff] }
  0x2a   : > { %346 = vst [vmem:[%s5449_s23 + $0xa0] sm:$0xff] %v345_v20  ;;  %v349_v22 = vld [vmem:[%s5441_s22 + $0x420] sm:$0xff]  ;;  %v351_v23 = vld [vmem:[%s5441_s22 + $0x428] sm:$0xff]  ;;  %348 = vst [vmem:[%s5449_s23 + $0xa8] sm:$0xff] %v347_v21 }
  0x2b   : > { %350 = vst [vmem:[%s5449_s23 + $0xb0] sm:$0xff] %v349_v22  ;;  %352 = vst [vmem:[%s5449_s23 + $0xb8] sm:$0xff] %v351_v23  ;;  %v353_v24 = vld [vmem:[%s5441_s22 + $0x480] sm:$0xff]  ;;  %v355_v25 = vld [vmem:[%s5441_s22 + $0x488] sm:$0xff] }
  0x2c   : > { %v357_v26 = vld [vmem:[%s5441_s22 + $0x4e0] sm:$0xff]  ;;  %354 = vst [vmem:[%s5449_s23 + $0xc0] sm:$0xff] %v353_v24  ;;  %356 = vst [vmem:[%s5449_s23 + $0xc8] sm:$0xff] %v355_v25  ;;  %v359_v27 = vld [vmem:[%s5441_s22 + $0x4e8] sm:$0xff] }
  0x2d   : > { %358 = vst [vmem:[%s5449_s23 + $0xd0] sm:$0xff] %v357_v26  ;;  %v361_v28 = vld [vmem:[%s5441_s22 + $0x540] sm:$0xff]  ;;  %v363_v29 = vld [vmem:[%s5441_s22 + $0x548] sm:$0xff]  ;;  %360 = vst [vmem:[%s5449_s23 + $0xd8] sm:$0xff] %v359_v27 }
  0x2e   : > { %362 = vst [vmem:[%s5449_s23 + $0xe0] sm:$0xff] %v361_v28  ;;  %364 = vst [vmem:[%s5449_s23 + $0xe8] sm:$0xff] %v363_v29  ;;  %v365_v30 = vld [vmem:[%s5441_s22 + $0x5a0] sm:$0xff]  ;;  %v367_v31 = vld [vmem:[%s5441_s22 + $0x5a8] sm:$0xff] }
  0x2f   : > { %v369_v32 = vld [vmem:[%s5441_s22 + $0x600] sm:$0xff]  ;;  %366 = vst [vmem:[%s5449_s23 + $0xf0] sm:$0xff] %v365_v30  ;;  %368 = vst [vmem:[%s5449_s23 + $0xf8] sm:$0xff] %v367_v31  ;;  %v371_v33 = vld [vmem:[%s5441_s22 + $0x608] sm:$0xff] }
  0x30   : > { %370 = vst [vmem:[%s5449_s23 + $0x100] sm:$0xff] %v369_v32  ;;  %v373_v34 = vld [vmem:[%s5441_s22 + $0x660] sm:$0xff]  ;;  %v375_v35 = vld [vmem:[%s5441_s22 + $0x668] sm:$0xff]  ;;  %372 = vst [vmem:[%s5449_s23 + $0x108] sm:$0xff] %v371_v33 }
  0x31   : > { %374 = vst [vmem:[%s5449_s23 + $0x110] sm:$0xff] %v373_v34  ;;  %376 = vst [vmem:[%s5449_s23 + $0x118] sm:$0xff] %v375_v35  ;;  %v377_v36 = vld [vmem:[%s5441_s22 + $0x6c0] sm:$0xff]  ;;  %v379_v37 = vld [vmem:[%s5441_s22 + $0x6c8] sm:$0xff] }
  0x32   : > { %v381_v38 = vld [vmem:[%s5441_s22 + $0x720] sm:$0xff]  ;;  %378 = vst [vmem:[%s5449_s23 + $0x120] sm:$0xff] %v377_v36  ;;  %380 = vst [vmem:[%s5449_s23 + $0x128] sm:$0xff] %v379_v37  ;;  %v383_v39 = vld [vmem:[%s5441_s22 + $0x728] sm:$0xff] }
  0x33   : > { %382 = vst [vmem:[%s5449_s23 + $0x130] sm:$0xff] %v381_v38  ;;  %v385_v40 = vld [vmem:[%s5441_s22 + $0x780] sm:$0xff]  ;;  %v387_v41 = vld [vmem:[%s5441_s22 + $0x788] sm:$0xff]  ;;  %384 = vst [vmem:[%s5449_s23 + $0x138] sm:$0xff] %v383_v39 }
  0x34   : > { %386 = vst [vmem:[%s5449_s23 + $0x140] sm:$0xff] %v385_v40  ;;  %388 = vst [vmem:[%s5449_s23 + $0x148] sm:$0xff] %v387_v41  ;;  %v389_v42 = vld [vmem:[%s5441_s22 + $0x7e0] sm:$0xff]  ;;  %v391_v43 = vld [vmem:[%s5441_s22 + $0x7e8] sm:$0xff] }
  0x35   : > { %v393_v44 = vld [vmem:[%s5441_s22 + $0x840] sm:$0xff]  ;;  %390 = vst [vmem:[%s5449_s23 + $0x150] sm:$0xff] %v389_v42  ;;  %392 = vst [vmem:[%s5449_s23 + $0x158] sm:$0xff] %v391_v43  ;;  %v395_v45 = vld [vmem:[%s5441_s22 + $0x848] sm:$0xff] }
  0x36   : > { %394 = vst [vmem:[%s5449_s23 + $0x160] sm:$0xff] %v393_v44  ;;  %v397_v46 = vld [vmem:[%s5441_s22 + $0x8a0] sm:$0xff]  ;;  %v399_v47 = vld [vmem:[%s5441_s22 + $0x8a8] sm:$0xff]  ;;  %396 = vst [vmem:[%s5449_s23 + $0x168] sm:$0xff] %v395_v45 }
  0x37   : > { %398 = vst [vmem:[%s5449_s23 + $0x170] sm:$0xff] %v397_v46  ;;  %400 = vst [vmem:[%s5449_s23 + $0x178] sm:$0xff] %v399_v47  ;;  %v401_v48 = vld [vmem:[%s5441_s22 + $0x900] sm:$0xff]  ;;  %v403_v49 = vld [vmem:[%s5441_s22 + $0x908] sm:$0xff] }
  0x38   : > { %v405_v50 = vld [vmem:[%s5441_s22 + $0x960] sm:$0xff]  ;;  %402 = vst [vmem:[%s5449_s23 + $0x180] sm:$0xff] %v401_v48  ;;  %404 = vst [vmem:[%s5449_s23 + $0x188] sm:$0xff] %v403_v49  ;;  %v407_v51 = vld [vmem:[%s5441_s22 + $0x968] sm:$0xff] }
  0x39   : > { %406 = vst [vmem:[%s5449_s23 + $0x190] sm:$0xff] %v405_v50  ;;  %v409_v52 = vld [vmem:[%s5441_s22 + $0x9c0] sm:$0xff]  ;;  %v411_v53 = vld [vmem:[%s5441_s22 + $0x9c8] sm:$0xff]  ;;  %408 = vst [vmem:[%s5449_s23 + $0x198] sm:$0xff] %v407_v51 }
  0x3a   : > { %410 = vst [vmem:[%s5449_s23 + $0x1a0] sm:$0xff] %v409_v52  ;;  %412 = vst [vmem:[%s5449_s23 + $0x1a8] sm:$0xff] %v411_v53  ;;  %v413_v54 = vld [vmem:[%s5441_s22 + $0xa20] sm:$0xff]  ;;  %v415_v55 = vld [vmem:[%s5441_s22 + $0xa28] sm:$0xff] }
  0x3b   : > { %v417_v56 = vld [vmem:[%s5441_s22 + $0xa80] sm:$0xff]  ;;  %414 = vst [vmem:[%s5449_s23 + $0x1b0] sm:$0xff] %v413_v54  ;;  %416 = vst [vmem:[%s5449_s23 + $0x1b8] sm:$0xff] %v415_v55  ;;  %v419_v57 = vld [vmem:[%s5441_s22 + $0xa88] sm:$0xff] }
  0x3c   : > { %418 = vst [vmem:[%s5449_s23 + $0x1c0] sm:$0xff] %v417_v56  ;;  %v421_v58 = vld [vmem:[%s5441_s22 + $0xae0] sm:$0xff]  ;;  %v423_v59 = vld [vmem:[%s5441_s22 + $0xae8] sm:$0xff]  ;;  %420 = vst [vmem:[%s5449_s23 + $0x1c8] sm:$0xff] %v419_v57 }
  0x3d   : > { %422 = vst [vmem:[%s5449_s23 + $0x1d0] sm:$0xff] %v421_v58  ;;  %424 = vst [vmem:[%s5449_s23 + $0x1d8] sm:$0xff] %v423_v59  ;;  %v425_v60 = vld [vmem:[%s5441_s22 + $0xb40] sm:$0xff]  ;;  %v427_v61 = vld [vmem:[%s5441_s22 + $0xb48] sm:$0xff] }
  0x3e   : > { %v429_v62 = vld [vmem:[%s5441_s22 + $0xba0] sm:$0xff]  ;;  %426 = vst [vmem:[%s5449_s23 + $0x1e0] sm:$0xff] %v425_v60  ;;  %428 = vst [vmem:[%s5449_s23 + $0x1e8] sm:$0xff] %v427_v61  ;;  %v431_v63 = vld [vmem:[%s5441_s22 + $0xba8] sm:$0xff] }
  0x3f   : > { %430 = vst [vmem:[%s5449_s23 + $0x1f0] sm:$0xff] %v429_v62  ;;  %v433_v0 = vld [vmem:[%s5441_s22 + $0xc00] sm:$0xff]  ;;  %v435_v1 = vld [vmem:[%s5441_s22 + $0xc08] sm:$0xff]  ;;  %432 = vst [vmem:[%s5449_s23 + $0x1f8] sm:$0xff] %v431_v63 }
  0x40   : > { %434 = vst [vmem:[%s5449_s23 + $0x200] sm:$0xff] %v433_v0  ;;  %436 = vst [vmem:[%s5449_s23 + $0x208] sm:$0xff] %v435_v1  ;;  %v437_v2 = vld [vmem:[%s5441_s22 + $0xc60] sm:$0xff]  ;;  %v439_v3 = vld [vmem:[%s5441_s22 + $0xc68] sm:$0xff] }
  0x41   : > { %v441_v4 = vld [vmem:[%s5441_s22 + $0xcc0] sm:$0xff]  ;;  %438 = vst [vmem:[%s5449_s23 + $0x210] sm:$0xff] %v437_v2  ;;  %440 = vst [vmem:[%s5449_s23 + $0x218] sm:$0xff] %v439_v3  ;;  %v443_v5 = vld [vmem:[%s5441_s22 + $0xcc8] sm:$0xff] }
  0x42   : > { %442 = vst [vmem:[%s5449_s23 + $0x220] sm:$0xff] %v441_v4  ;;  %v445_v6 = vld [vmem:[%s5441_s22 + $0xd20] sm:$0xff]  ;;  %v447_v7 = vld [vmem:[%s5441_s22 + $0xd28] sm:$0xff]  ;;  %444 = vst [vmem:[%s5449_s23 + $0x228] sm:$0xff] %v443_v5 }
  0x43   : > { %446 = vst [vmem:[%s5449_s23 + $0x230] sm:$0xff] %v445_v6  ;;  %448 = vst [vmem:[%s5449_s23 + $0x238] sm:$0xff] %v447_v7  ;;  %v449_v8 = vld [vmem:[%s5441_s22 + $0xd80] sm:$0xff]  ;;  %v451_v9 = vld [vmem:[%s5441_s22 + $0xd88] sm:$0xff] }
  0x44   : > { %v453_v10 = vld [vmem:[%s5441_s22 + $0xde0] sm:$0xff]  ;;  %450 = vst [vmem:[%s5449_s23 + $0x240] sm:$0xff] %v449_v8  ;;  %452 = vst [vmem:[%s5449_s23 + $0x248] sm:$0xff] %v451_v9  ;;  %v455_v11 = vld [vmem:[%s5441_s22 + $0xde8] sm:$0xff] }
  0x45   : > { %454 = vst [vmem:[%s5449_s23 + $0x250] sm:$0xff] %v453_v10  ;;  %v457_v12 = vld [vmem:[%s5441_s22 + $0xe40] sm:$0xff]  ;;  %v459_v13 = vld [vmem:[%s5441_s22 + $0xe48] sm:$0xff]  ;;  %456 = vst [vmem:[%s5449_s23 + $0x258] sm:$0xff] %v455_v11 }
  0x46   : > { %458 = vst [vmem:[%s5449_s23 + $0x260] sm:$0xff] %v457_v12  ;;  %460 = vst [vmem:[%s5449_s23 + $0x268] sm:$0xff] %v459_v13  ;;  %v461_v14 = vld [vmem:[%s5441_s22 + $0xea0] sm:$0xff]  ;;  %v463_v15 = vld [vmem:[%s5441_s22 + $0xea8] sm:$0xff] }
  0x47   : > { %v465_v16 = vld [vmem:[%s5441_s22 + $0xf00] sm:$0xff]  ;;  %462 = vst [vmem:[%s5449_s23 + $0x270] sm:$0xff] %v461_v14  ;;  %464 = vst [vmem:[%s5449_s23 + $0x278] sm:$0xff] %v463_v15  ;;  %v467_v17 = vld [vmem:[%s5441_s22 + $0xf08] sm:$0xff] }
  0x48   : > { %466 = vst [vmem:[%s5449_s23 + $0x280] sm:$0xff] %v465_v16  ;;  %v469_v18 = vld [vmem:[%s5441_s22 + $0xf60] sm:$0xff]  ;;  %v471_v19 = vld [vmem:[%s5441_s22 + $0xf68] sm:$0xff]  ;;  %468 = vst [vmem:[%s5449_s23 + $0x288] sm:$0xff] %v467_v17 }
  0x49   : > { %470 = vst [vmem:[%s5449_s23 + $0x290] sm:$0xff] %v469_v18  ;;  %472 = vst [vmem:[%s5449_s23 + $0x298] sm:$0xff] %v471_v19  ;;  %v473_v20 = vld [vmem:[%s5441_s22 + $0xfc0] sm:$0xff]  ;;  %v475_v21 = vld [vmem:[%s5441_s22 + $0xfc8] sm:$0xff] }
  0x4a   : > { %v477_v22 = vld [vmem:[%s5441_s22 + $0x1020] sm:$0xff]  ;;  %474 = vst [vmem:[%s5449_s23 + $0x2a0] sm:$0xff] %v473_v20  ;;  %476 = vst [vmem:[%s5449_s23 + $0x2a8] sm:$0xff] %v475_v21  ;;  %v479_v23 = vld [vmem:[%s5441_s22 + $0x1028] sm:$0xff] }
  0x4b   : > { %478 = vst [vmem:[%s5449_s23 + $0x2b0] sm:$0xff] %v477_v22  ;;  %v481_v24 = vld [vmem:[%s5441_s22 + $0x1080] sm:$0xff]  ;;  %v483_v25 = vld [vmem:[%s5441_s22 + $0x1088] sm:$0xff]  ;;  %480 = vst [vmem:[%s5449_s23 + $0x2b8] sm:$0xff] %v479_v23 }
  0x4c   : > { %482 = vst [vmem:[%s5449_s23 + $0x2c0] sm:$0xff] %v481_v24  ;;  %484 = vst [vmem:[%s5449_s23 + $0x2c8] sm:$0xff] %v483_v25  ;;  %v485_v26 = vld [vmem:[%s5441_s22 + $0x10e0] sm:$0xff]  ;;  %v487_v27 = vld [vmem:[%s5441_s22 + $0x10e8] sm:$0xff] }
  0x4d   : > { %v489_v28 = vld [vmem:[%s5441_s22 + $0x1140] sm:$0xff]  ;;  %486 = vst [vmem:[%s5449_s23 + $0x2d0] sm:$0xff] %v485_v26  ;;  %488 = vst [vmem:[%s5449_s23 + $0x2d8] sm:$0xff] %v487_v27  ;;  %v491_v29 = vld [vmem:[%s5441_s22 + $0x1148] sm:$0xff] }
  0x4e   : > { %490 = vst [vmem:[%s5449_s23 + $0x2e0] sm:$0xff] %v489_v28  ;;  %v493_v30 = vld [vmem:[%s5441_s22 + $0x11a0] sm:$0xff]  ;;  %v495_v31 = vld [vmem:[%s5441_s22 + $0x11a8] sm:$0xff]  ;;  %492 = vst [vmem:[%s5449_s23 + $0x2e8] sm:$0xff] %v491_v29 }
  0x4f   : > { %494 = vst [vmem:[%s5449_s23 + $0x2f0] sm:$0xff] %v493_v30  ;;  %496 = vst [vmem:[%s5449_s23 + $0x2f8] sm:$0xff] %v495_v31  ;;  %v497_v32 = vld [vmem:[%s5441_s22 + $0x1200] sm:$0xff]  ;;  %v499_v33 = vld [vmem:[%s5441_s22 + $0x1208] sm:$0xff] }
  0x50   : > { %v501_v34 = vld [vmem:[%s5441_s22 + $0x1260] sm:$0xff]  ;;  %498 = vst [vmem:[%s5449_s23 + $0x300] sm:$0xff] %v497_v32  ;;  %500 = vst [vmem:[%s5449_s23 + $0x308] sm:$0xff] %v499_v33  ;;  %v503_v35 = vld [vmem:[%s5441_s22 + $0x1268] sm:$0xff] }
  0x51   : > { %502 = vst [vmem:[%s5449_s23 + $0x310] sm:$0xff] %v501_v34  ;;  %v505_v36 = vld [vmem:[%s5441_s22 + $0x12c0] sm:$0xff]  ;;  %v507_v37 = vld [vmem:[%s5441_s22 + $0x12c8] sm:$0xff]  ;;  %504 = vst [vmem:[%s5449_s23 + $0x318] sm:$0xff] %v503_v35 }
  0x52   : > { %506 = vst [vmem:[%s5449_s23 + $0x320] sm:$0xff] %v505_v36  ;;  %508 = vst [vmem:[%s5449_s23 + $0x328] sm:$0xff] %v507_v37  ;;  %v509_v38 = vld [vmem:[%s5441_s22 + $0x1320] sm:$0xff]  ;;  %v511_v39 = vld [vmem:[%s5441_s22 + $0x1328] sm:$0xff] }
  0x53   : > { %v513_v40 = vld [vmem:[%s5441_s22 + $0x1380] sm:$0xff]  ;;  %510 = vst [vmem:[%s5449_s23 + $0x330] sm:$0xff] %v509_v38  ;;  %512 = vst [vmem:[%s5449_s23 + $0x338] sm:$0xff] %v511_v39  ;;  %v515_v41 = vld [vmem:[%s5441_s22 + $0x1388] sm:$0xff] }
  0x54   : > { %514 = vst [vmem:[%s5449_s23 + $0x340] sm:$0xff] %v513_v40  ;;  %v517_v42 = vld [vmem:[%s5441_s22 + $0x13e0] sm:$0xff]  ;;  %v519_v43 = vld [vmem:[%s5441_s22 + $0x13e8] sm:$0xff]  ;;  %516 = vst [vmem:[%s5449_s23 + $0x348] sm:$0xff] %v515_v41 }
  0x55   : > { %518 = vst [vmem:[%s5449_s23 + $0x350] sm:$0xff] %v517_v42  ;;  %520 = vst [vmem:[%s5449_s23 + $0x358] sm:$0xff] %v519_v43  ;;  %v521_v44 = vld [vmem:[%s5441_s22 + $0x1440] sm:$0xff]  ;;  %v523_v45 = vld [vmem:[%s5441_s22 + $0x1448] sm:$0xff] }
  0x56   : > { %v525_v46 = vld [vmem:[%s5441_s22 + $0x14a0] sm:$0xff]  ;;  %522 = vst [vmem:[%s5449_s23 + $0x360] sm:$0xff] %v521_v44  ;;  %524 = vst [vmem:[%s5449_s23 + $0x368] sm:$0xff] %v523_v45  ;;  %v527_v47 = vld [vmem:[%s5441_s22 + $0x14a8] sm:$0xff] }
  0x57   : > { %526 = vst [vmem:[%s5449_s23 + $0x370] sm:$0xff] %v525_v46  ;;  %v529_v48 = vld [vmem:[%s5441_s22 + $0x1500] sm:$0xff]  ;;  %v531_v49 = vld [vmem:[%s5441_s22 + $0x1508] sm:$0xff]  ;;  %528 = vst [vmem:[%s5449_s23 + $0x378] sm:$0xff] %v527_v47 }
  0x58   : > { %530 = vst [vmem:[%s5449_s23 + $0x380] sm:$0xff] %v529_v48  ;;  %532 = vst [vmem:[%s5449_s23 + $0x388] sm:$0xff] %v531_v49  ;;  %v533_v50 = vld [vmem:[%s5441_s22 + $0x1560] sm:$0xff]  ;;  %v535_v51 = vld [vmem:[%s5441_s22 + $0x1568] sm:$0xff] }
  0x59   : > { %v537_v52 = vld [vmem:[%s5441_s22 + $0x15c0] sm:$0xff]  ;;  %534 = vst [vmem:[%s5449_s23 + $0x390] sm:$0xff] %v533_v50  ;;  %536 = vst [vmem:[%s5449_s23 + $0x398] sm:$0xff] %v535_v51  ;;  %v539_v53 = vld [vmem:[%s5441_s22 + $0x15c8] sm:$0xff] }
  0x5a   : > { %538 = vst [vmem:[%s5449_s23 + $0x3a0] sm:$0xff] %v537_v52  ;;  %v541_v54 = vld [vmem:[%s5441_s22 + $0x1620] sm:$0xff]  ;;  %v543_v55 = vld [vmem:[%s5441_s22 + $0x1628] sm:$0xff]  ;;  %540 = vst [vmem:[%s5449_s23 + $0x3a8] sm:$0xff] %v539_v53 }
  0x5b   : > { %542 = vst [vmem:[%s5449_s23 + $0x3b0] sm:$0xff] %v541_v54  ;;  %544 = vst [vmem:[%s5449_s23 + $0x3b8] sm:$0xff] %v543_v55  ;;  %v545_v56 = vld [vmem:[%s5441_s22 + $0x1680] sm:$0xff]  ;;  %v547_v57 = vld [vmem:[%s5441_s22 + $0x1688] sm:$0xff] }
  0x5c   : > { %v549_v58 = vld [vmem:[%s5441_s22 + $0x16e0] sm:$0xff]  ;;  %546 = vst [vmem:[%s5449_s23 + $0x3c0] sm:$0xff] %v545_v56  ;;  %548 = vst [vmem:[%s5449_s23 + $0x3c8] sm:$0xff] %v547_v57  ;;  %v551_v59 = vld [vmem:[%s5441_s22 + $0x16e8] sm:$0xff] }
  0x5d   : > { %550 = vst [vmem:[%s5449_s23 + $0x3d0] sm:$0xff] %v549_v58  ;;  %v553_v60 = vld [vmem:[%s5441_s22 + $0x1740] sm:$0xff]  ;;  %v555_v61 = vld [vmem:[%s5441_s22 + $0x1748] sm:$0xff]  ;;  %552 = vst [vmem:[%s5449_s23 + $0x3d8] sm:$0xff] %v551_v59 }
  0x5e   : > { %554 = vst [vmem:[%s5449_s23 + $0x3e0] sm:$0xff] %v553_v60  ;;  %556 = vst [vmem:[%s5449_s23 + $0x3e8] sm:$0xff] %v555_v61  ;;  %v557_v62 = vld [vmem:[%s5441_s22 + $0x17a0] sm:$0xff]  ;;  %v559_v63 = vld [vmem:[%s5441_s22 + $0x17a8] sm:$0xff] }
  0x5f   : > { %v561_v0 = vld [vmem:[%s5441_s22 + $0x1800] sm:$0xff]  ;;  %558 = vst [vmem:[%s5449_s23 + $0x3f0] sm:$0xff] %v557_v62  ;;  %560 = vst [vmem:[%s5449_s23 + $0x3f8] sm:$0xff] %v559_v63  ;;  %v563_v1 = vld [vmem:[%s5441_s22 + $0x1808] sm:$0xff] }
  0x60   : > { %562 = vst [vmem:[%s5449_s23 + $0x400] sm:$0xff] %v561_v0  ;;  %v565_v2 = vld [vmem:[%s5441_s22 + $0x1860] sm:$0xff]  ;;  %v567_v3 = vld [vmem:[%s5441_s22 + $0x1868] sm:$0xff]  ;;  %564 = vst [vmem:[%s5449_s23 + $0x408] sm:$0xff] %v563_v1 }
  0x61   : > { %566 = vst [vmem:[%s5449_s23 + $0x410] sm:$0xff] %v565_v2  ;;  %568 = vst [vmem:[%s5449_s23 + $0x418] sm:$0xff] %v567_v3  ;;  %v569_v4 = vld [vmem:[%s5441_s22 + $0x18c0] sm:$0xff]  ;;  %v571_v5 = vld [vmem:[%s5441_s22 + $0x18c8] sm:$0xff] }
  0x62   : > { %v573_v6 = vld [vmem:[%s5441_s22 + $0x1920] sm:$0xff]  ;;  %570 = vst [vmem:[%s5449_s23 + $0x420] sm:$0xff] %v569_v4  ;;  %572 = vst [vmem:[%s5449_s23 + $0x428] sm:$0xff] %v571_v5  ;;  %v575_v7 = vld [vmem:[%s5441_s22 + $0x1928] sm:$0xff] }
  0x63   : > { %574 = vst [vmem:[%s5449_s23 + $0x430] sm:$0xff] %v573_v6  ;;  %v577_v8 = vld [vmem:[%s5441_s22 + $0x1980] sm:$0xff]  ;;  %v579_v9 = vld [vmem:[%s5441_s22 + $0x1988] sm:$0xff]  ;;  %576 = vst [vmem:[%s5449_s23 + $0x438] sm:$0xff] %v575_v7 }
  0x64   : > { %578 = vst [vmem:[%s5449_s23 + $0x440] sm:$0xff] %v577_v8  ;;  %580 = vst [vmem:[%s5449_s23 + $0x448] sm:$0xff] %v579_v9  ;;  %v581_v10 = vld [vmem:[%s5441_s22 + $0x19e0] sm:$0xff]  ;;  %v583_v11 = vld [vmem:[%s5441_s22 + $0x19e8] sm:$0xff] }
  0x65   : > { %v585_v12 = vld [vmem:[%s5441_s22 + $0x1a40] sm:$0xff]  ;;  %582 = vst [vmem:[%s5449_s23 + $0x450] sm:$0xff] %v581_v10  ;;  %584 = vst [vmem:[%s5449_s23 + $0x458] sm:$0xff] %v583_v11  ;;  %v587_v13 = vld [vmem:[%s5441_s22 + $0x1a48] sm:$0xff] }
  0x66   : > { %586 = vst [vmem:[%s5449_s23 + $0x460] sm:$0xff] %v585_v12  ;;  %v589_v14 = vld [vmem:[%s5441_s22 + $0x1aa0] sm:$0xff]  ;;  %v591_v15 = vld [vmem:[%s5441_s22 + $0x1aa8] sm:$0xff]  ;;  %588 = vst [vmem:[%s5449_s23 + $0x468] sm:$0xff] %v587_v13 }
  0x67   : > { %590 = vst [vmem:[%s5449_s23 + $0x470] sm:$0xff] %v589_v14  ;;  %592 = vst [vmem:[%s5449_s23 + $0x478] sm:$0xff] %v591_v15  ;;  %v593_v16 = vld [vmem:[%s5441_s22 + $0x1b00] sm:$0xff]  ;;  %v595_v17 = vld [vmem:[%s5441_s22 + $0x1b08] sm:$0xff] }
  0x68   : > { %v597_v18 = vld [vmem:[%s5441_s22 + $0x1b60] sm:$0xff]  ;;  %594 = vst [vmem:[%s5449_s23 + $0x480] sm:$0xff] %v593_v16  ;;  %596 = vst [vmem:[%s5449_s23 + $0x488] sm:$0xff] %v595_v17  ;;  %v599_v19 = vld [vmem:[%s5441_s22 + $0x1b68] sm:$0xff] }
  0x69   : > { %598 = vst [vmem:[%s5449_s23 + $0x490] sm:$0xff] %v597_v18  ;;  %v601_v20 = vld [vmem:[%s5441_s22 + $0x1bc0] sm:$0xff]  ;;  %v603_v21 = vld [vmem:[%s5441_s22 + $0x1bc8] sm:$0xff]  ;;  %600 = vst [vmem:[%s5449_s23 + $0x498] sm:$0xff] %v599_v19 }
  0x6a   : > { %602 = vst [vmem:[%s5449_s23 + $0x4a0] sm:$0xff] %v601_v20  ;;  %604 = vst [vmem:[%s5449_s23 + $0x4a8] sm:$0xff] %v603_v21  ;;  %v605_v22 = vld [vmem:[%s5441_s22 + $0x1c20] sm:$0xff]  ;;  %v607_v23 = vld [vmem:[%s5441_s22 + $0x1c28] sm:$0xff] }
  0x6b   : > { %v609_v24 = vld [vmem:[%s5441_s22 + $0x1c80] sm:$0xff]  ;;  %606 = vst [vmem:[%s5449_s23 + $0x4b0] sm:$0xff] %v605_v22  ;;  %608 = vst [vmem:[%s5449_s23 + $0x4b8] sm:$0xff] %v607_v23  ;;  %v611_v25 = vld [vmem:[%s5441_s22 + $0x1c88] sm:$0xff] }
  0x6c   : > { %610 = vst [vmem:[%s5449_s23 + $0x4c0] sm:$0xff] %v609_v24  ;;  %v613_v26 = vld [vmem:[%s5441_s22 + $0x1ce0] sm:$0xff]  ;;  %v615_v27 = vld [vmem:[%s5441_s22 + $0x1ce8] sm:$0xff]  ;;  %612 = vst [vmem:[%s5449_s23 + $0x4c8] sm:$0xff] %v611_v25 }
  0x6d   : > { %614 = vst [vmem:[%s5449_s23 + $0x4d0] sm:$0xff] %v613_v26  ;;  %616 = vst [vmem:[%s5449_s23 + $0x4d8] sm:$0xff] %v615_v27  ;;  %v617_v28 = vld [vmem:[%s5441_s22 + $0x1d40] sm:$0xff]  ;;  %v619_v29 = vld [vmem:[%s5441_s22 + $0x1d48] sm:$0xff] }
  0x6e   : > { %v621_v30 = vld [vmem:[%s5441_s22 + $0x1da0] sm:$0xff]  ;;  %618 = vst [vmem:[%s5449_s23 + $0x4e0] sm:$0xff] %v617_v28  ;;  %620 = vst [vmem:[%s5449_s23 + $0x4e8] sm:$0xff] %v619_v29  ;;  %v623_v31 = vld [vmem:[%s5441_s22 + $0x1da8] sm:$0xff] }
  0x6f   : > { %622 = vst [vmem:[%s5449_s23 + $0x4f0] sm:$0xff] %v621_v30  ;;  %v625_v32 = vld [vmem:[%s5441_s22 + $0x1e00] sm:$0xff]  ;;  %v627_v33 = vld [vmem:[%s5441_s22 + $0x1e08] sm:$0xff]  ;;  %624 = vst [vmem:[%s5449_s23 + $0x4f8] sm:$0xff] %v623_v31 }
  0x70   : > { %626 = vst [vmem:[%s5449_s23 + $0x500] sm:$0xff] %v625_v32  ;;  %628 = vst [vmem:[%s5449_s23 + $0x508] sm:$0xff] %v627_v33  ;;  %v629_v34 = vld [vmem:[%s5441_s22 + $0x1e60] sm:$0xff]  ;;  %v631_v35 = vld [vmem:[%s5441_s22 + $0x1e68] sm:$0xff] }
  0x71   : > { %v633_v36 = vld [vmem:[%s5441_s22 + $0x1ec0] sm:$0xff]  ;;  %630 = vst [vmem:[%s5449_s23 + $0x510] sm:$0xff] %v629_v34  ;;  %632 = vst [vmem:[%s5449_s23 + $0x518] sm:$0xff] %v631_v35  ;;  %v635_v37 = vld [vmem:[%s5441_s22 + $0x1ec8] sm:$0xff] }
  0x72   : > { %634 = vst [vmem:[%s5449_s23 + $0x520] sm:$0xff] %v633_v36  ;;  %v637_v38 = vld [vmem:[%s5441_s22 + $0x1f20] sm:$0xff]  ;;  %v639_v39 = vld [vmem:[%s5441_s22 + $0x1f28] sm:$0xff]  ;;  %636 = vst [vmem:[%s5449_s23 + $0x528] sm:$0xff] %v635_v37 }
  0x73   : > { %638 = vst [vmem:[%s5449_s23 + $0x530] sm:$0xff] %v637_v38  ;;  %640 = vst [vmem:[%s5449_s23 + $0x538] sm:$0xff] %v639_v39  ;;  %v641_v40 = vld [vmem:[%s5441_s22 + $0x1f80] sm:$0xff]  ;;  %v643_v41 = vld [vmem:[%s5441_s22 + $0x1f88] sm:$0xff] }
  0x74   : > { %v645_v42 = vld [vmem:[%s5441_s22 + $0x1fe0] sm:$0xff]  ;;  %642 = vst [vmem:[%s5449_s23 + $0x540] sm:$0xff] %v641_v40  ;;  %644 = vst [vmem:[%s5449_s23 + $0x548] sm:$0xff] %v643_v41  ;;  %v647_v43 = vld [vmem:[%s5441_s22 + $0x1fe8] sm:$0xff] }
  0x75   : > { %646 = vst [vmem:[%s5449_s23 + $0x550] sm:$0xff] %v645_v42  ;;  %v649_v44 = vld [vmem:[%s5441_s22 + $0x2040] sm:$0xff]  ;;  %v651_v45 = vld [vmem:[%s5441_s22 + $0x2048] sm:$0xff]  ;;  %648 = vst [vmem:[%s5449_s23 + $0x558] sm:$0xff] %v647_v43 }
  0x76   : > { %650 = vst [vmem:[%s5449_s23 + $0x560] sm:$0xff] %v649_v44  ;;  %652 = vst [vmem:[%s5449_s23 + $0x568] sm:$0xff] %v651_v45  ;;  %v653_v46 = vld [vmem:[%s5441_s22 + $0x20a0] sm:$0xff]  ;;  %v655_v47 = vld [vmem:[%s5441_s22 + $0x20a8] sm:$0xff] }
  0x77   : > { %v657_v48 = vld [vmem:[%s5441_s22 + $0x2100] sm:$0xff]  ;;  %654 = vst [vmem:[%s5449_s23 + $0x570] sm:$0xff] %v653_v46  ;;  %656 = vst [vmem:[%s5449_s23 + $0x578] sm:$0xff] %v655_v47  ;;  %v659_v49 = vld [vmem:[%s5441_s22 + $0x2108] sm:$0xff] }
  0x78   : > { %658 = vst [vmem:[%s5449_s23 + $0x580] sm:$0xff] %v657_v48  ;;  %v661_v50 = vld [vmem:[%s5441_s22 + $0x2160] sm:$0xff]  ;;  %v663_v51 = vld [vmem:[%s5441_s22 + $0x2168] sm:$0xff]  ;;  %660 = vst [vmem:[%s5449_s23 + $0x588] sm:$0xff] %v659_v49 }
  0x79   : > { %662 = vst [vmem:[%s5449_s23 + $0x590] sm:$0xff] %v661_v50  ;;  %664 = vst [vmem:[%s5449_s23 + $0x598] sm:$0xff] %v663_v51  ;;  %v665_v52 = vld [vmem:[%s5441_s22 + $0x21c0] sm:$0xff]  ;;  %v667_v53 = vld [vmem:[%s5441_s22 + $0x21c8] sm:$0xff] }
  0x7a   : > { %v669_v54 = vld [vmem:[%s5441_s22 + $0x2220] sm:$0xff]  ;;  %666 = vst [vmem:[%s5449_s23 + $0x5a0] sm:$0xff] %v665_v52  ;;  %668 = vst [vmem:[%s5449_s23 + $0x5a8] sm:$0xff] %v667_v53  ;;  %v671_v55 = vld [vmem:[%s5441_s22 + $0x2228] sm:$0xff] }
  0x7b   : > { %670 = vst [vmem:[%s5449_s23 + $0x5b0] sm:$0xff] %v669_v54  ;;  %v673_v56 = vld [vmem:[%s5441_s22 + $0x2280] sm:$0xff]  ;;  %v675_v57 = vld [vmem:[%s5441_s22 + $0x2288] sm:$0xff]  ;;  %672 = vst [vmem:[%s5449_s23 + $0x5b8] sm:$0xff] %v671_v55 }
  0x7c   : > { %674 = vst [vmem:[%s5449_s23 + $0x5c0] sm:$0xff] %v673_v56  ;;  %676 = vst [vmem:[%s5449_s23 + $0x5c8] sm:$0xff] %v675_v57  ;;  %v677_v58 = vld [vmem:[%s5441_s22 + $0x22e0] sm:$0xff]  ;;  %v679_v59 = vld [vmem:[%s5441_s22 + $0x22e8] sm:$0xff] }
  0x7d   : > { %v681_v60 = vld [vmem:[%s5441_s22 + $0x2340] sm:$0xff]  ;;  %678 = vst [vmem:[%s5449_s23 + $0x5d0] sm:$0xff] %v677_v58  ;;  %680 = vst [vmem:[%s5449_s23 + $0x5d8] sm:$0xff] %v679_v59  ;;  %v683_v61 = vld [vmem:[%s5441_s22 + $0x2348] sm:$0xff] }
  0x7e   : > { %682 = vst [vmem:[%s5449_s23 + $0x5e0] sm:$0xff] %v681_v60  ;;  %v685_v62 = vld [vmem:[%s5441_s22 + $0x23a0] sm:$0xff]  ;;  %v687_v63 = vld [vmem:[%s5441_s22 + $0x23a8] sm:$0xff]  ;;  %684 = vst [vmem:[%s5449_s23 + $0x5e8] sm:$0xff] %v683_v61 }
  0x7f   : > { %686 = vst [vmem:[%s5449_s23 + $0x5f0] sm:$0xff] %v685_v62  ;;  %688 = vst [vmem:[%s5449_s23 + $0x5f8] sm:$0xff] %v687_v63 }
  0x80 PF: > { %p4190_p7 = scmp.ge.s32.totalorder %s5336_s11, 1  ;;  %p721_p8 = scmp.lt.s32.totalorder %s5336_s11, 13 }
  0x82   : > { %p722_p9 = pnand %p4190_p7, %p721_p8 }
  0x83   : > { %s728_s24 = sand.u32 (!%p722_p9), 1, %s5312_s27   ;;  %s4191_s25 = sshll.u32 (!%p722_p9), %s5324_s30, 1 }
  0x84   : > { %725 = sbr.rel (%p722_p9) target bundleno = 1337 (0x539), region = 71  ;;  %p785_p10 = scmp.lt.s32.totalorder (!%p722_p9), %s4191_s25, 3 }
  0x85   : > { %s4626_s26 = smul.u32 (!%p722_p9), 1536, %s728_s24  ;;  %s4193_s14 = sshll.u32 (!%p722_p9), %s5320_s29, 2 }
  0x86   : > { %s4194_s15 = sshll.u32 (!%p722_p9), %s5320_s29, 6  ;;  %p793_p11 = scmp.lt.s32.totalorder (!%p722_p9), %s4193_s14, 23 }
  0x87   : > { %p798_p12 = scmp.lt.s32.totalorder (!%p722_p9), %s4194_s15, 383  ;;  %s5861_s21 = scalar_lea.vmem (!%p722_p9), [#allocation3], %s4626_s26 }
  0x88   : > { %p4200_p13 = scmp.ne.s32.totalorder (!%p722_p9), %s5320_s29, 0 }
  0x8b   : > { %s6472_s25 = smov (!%p785_p10, %s4191_s25), 3  ;;  %s6474_s14 = smov (!%p793_p11, %s4193_s14), 23 }
  0x8c   : > { %s4627_s17 = smul.u32 48, %s6472_s25  ;;  %s795_s20 = scalar_lea.vmem %s6444_s2, %s6474_s14  ;;  %v5338_v0 = vmov (!%p4200_p13), 0.0  }
  0x8d   : > { %s6476_s15 = smov (!%p798_p12, %s4194_s15), 383  ;;  %821 = sbr.rel (%p4200_p13) target bundleno = 148 (0x94), region = 79 }
  0x8e   : > { %s5844_s27 = scalar_lea.vmem %s6442_s0, %s4627_s17  ;;  %s5849_s24 = scalar_lea.vmem %s6447_s5, %s4627_s17  ;;  %822 = vst [vmem:[#allocation2] sm:$0xff] (!%p4200_p13), %v5338_v0  ;;  %823 = vst [vmem:[#allocation2 + $0x8] sm:$0xff] (!%p4200_p13), %v5338_v0 }
  0x8f   : > { %s5854_s25 = scalar_lea.vmem %s6450_s8, %s4627_s17  ;;  %s4628_s12 = smul.u32 24, %s6476_s15  ;;  %824 = vst [vmem:[#allocation2 + $0x10] sm:$0xff] (!%p4200_p13), %v5338_v0  ;;  %825 = vst [vmem:[#allocation2 + $0x18] sm:$0xff] (!%p4200_p13), %v5338_v0 }
  0x90   : > { %826 = vst [vmem:[#allocation2 + $0x20] sm:$0xff] (!%p4200_p13), %v5338_v0  ;;  %827 = vst [vmem:[#allocation2 + $0x28] sm:$0xff] (!%p4200_p13), %v5338_v0 }
  0x91   : > { %s5859_s19 = scalar_lea.vmem %s6445_s3, %s4628_s12  ;;  %828 = vst [vmem:[#allocation2 + $0x30] sm:$0xff] (!%p4200_p13), %v5338_v0  ;;  %829 = vst [vmem:[#allocation2 + $0x38] sm:$0xff] (!%p4200_p13), %v5338_v0 }
  0x92   : > { %830 = vst [vmem:[#allocation2 + $0x40] sm:$0xff] (!%p4200_p13), %v5338_v0  ;;  %831 = vst [vmem:[#allocation2 + $0x48] sm:$0xff] (!%p4200_p13), %v5338_v0 }
  0x93   : > { %832 = vst [vmem:[#allocation2 + $0x50] sm:$0xff] (!%p4200_p13), %v5338_v0  ;;  %833 = vst [vmem:[#allocation2 + $0x58] sm:$0xff] (!%p4200_p13), %v5338_v0 }
  0x94 PF: > { %v4686_v1 = vld [vmem:[%s5861_s21 + $0x4] ss:$16 sps:$4 sm:$0xff]   ;;  %v4690_v3 = vld [vmem:[%s5861_s21] ss:$16 sps:$4 sm:$0xff]   ;;  %v835_v47 = vld [vmem:[%s5844_s27 + $0x8] sm:$0xff]  ;;  %p4585_p0 = scmp.ne.s32.totalorder %s5320_s29, 5 }
  0x95   : > { %v4688_v2 = vld [vmem:[%s5861_s21 + $0x204] ss:$16 sps:$4 sm:$0xff]   ;;  %2026 = vmatprep.subr.bf16.mxu1 %v4686_v1  ;;  %v4691_v4 = vld [vmem:[%s5861_s21 + $0x200] ss:$16 sps:$4 sm:$0xff]   ;;  %v841_v50 = vld [vmem:[%s5844_s27 + $0x38] sm:$0xff] }
  0x96   : > { %2069 = vmatprep.subr.bf16.mxu0 %v4688_v2  ;;  %v4692_v5 = vld [vmem:[%s5861_s21 + $0x24] ss:$16 sps:$4 sm:$0xff]   ;;  %2027 = vmatpush1.bf16.msra.mxu1 %v4690_v3  ;;  %v4696_v7 = vld [vmem:[%s5861_s21 + $0x20] ss:$16 sps:$4 sm:$0xff]   ;;  %v5914_v51 = vpack.c.bf16 %v841_v50, %v835_v47  ;;  %v837_v52 = vld [vmem:[%s5844_s27 + $0x18] sm:$0xff] }
  0x97   : > { %2070 = vmatpush1.bf16.msra.mxu0 %v4691_v4  ;;  %v4694_v6 = vld [vmem:[%s5861_s21 + $0x224] ss:$16 sps:$4 sm:$0xff]   ;;  %2028 = vmatprep.subr.bf16.mxu1 %v4692_v5  ;;  %v4697_v8 = vld [vmem:[%s5861_s21 + $0x220] ss:$16 sps:$4 sm:$0xff]   ;;  %v843_v53 = vld [vmem:[%s5844_s27 + $0x48] sm:$0xff] }
  0x98   : > { %2071 = vmatprep.subr.bf16.mxu0 %v4694_v6  ;;  %v4698_v9 = vld [vmem:[%s5861_s21 + $0x44] ss:$16 sps:$4 sm:$0xff]   ;;  %v4702_v11 = vld [vmem:[%s5861_s21 + $0x40] ss:$16 sps:$4 sm:$0xff]   ;;  %v5920_v56 = vpack.c.bf16 %v843_v53, %v837_v52  ;;  %2058 = vmatprep.mubr.bf16.mxu1 %v5914_v51  ;;  %v4827_v47 = vld [vmem:[%s5861_s21 + $0xe8] ss:$16 sps:$4 sm:$0xff]  }
  0x99   : > { %v4700_v10 = vld [vmem:[%s5861_s21 + $0x244] ss:$16 sps:$4 sm:$0xff]   ;;  %v4703_v12 = vld [vmem:[%s5861_s21 + $0x240] ss:$16 sps:$4 sm:$0xff]   ;;  %v4841_v53 = vld [vmem:[%s5861_s21 + $0x12c] ss:$16 sps:$4 sm:$0xff]  }
  0x9a   : > { %2029 = vmatpush1.bf16.msra.mxu1 %v4696_v7  ;;  %v4704_v13 = vld [vmem:[%s5861_s21 + $0x64] ss:$16 sps:$4 sm:$0xff]   ;;  %v4708_v15 = vld [vmem:[%s5861_s21 + $0x60] ss:$16 sps:$4 sm:$0xff]   ;;  %2101 = vmatprep.mubr.bf16.mxu0 %v5920_v56 }
  0x9b   : > { %2072 = vmatpush1.bf16.msra.mxu0 %v4697_v8  ;;  %2030 = vmatprep.subr.bf16.mxu1 %v4698_v9  ;;  %v4706_v14 = vld [vmem:[%s5861_s21 + $0x264] ss:$16 sps:$4 sm:$0xff]   ;;  %v4709_v16 = vld [vmem:[%s5861_s21 + $0x260] ss:$16 sps:$4 sm:$0xff]  }
  0x9c   : > { %2073 = vmatprep.subr.bf16.mxu0 %v4700_v10  ;;  %v4710_v17 = vld [vmem:[%s5861_s21 + $0x84] ss:$16 sps:$4 sm:$0xff]   ;;  %v4714_v19 = vld [vmem:[%s5861_s21 + $0x80] ss:$16 sps:$4 sm:$0xff]  }
  0x9d   : > { %v4712_v18 = vld [vmem:[%s5861_s21 + $0x284] ss:$16 sps:$4 sm:$0xff]   ;;  %v4715_v20 = vld [vmem:[%s5861_s21 + $0x280] ss:$16 sps:$4 sm:$0xff]  }
  0x9e   : > { %2031 = vmatpush1.bf16.msra.mxu1 %v4702_v11  ;;  %v4716_v21 = vld [vmem:[%s5861_s21 + $0xa4] ss:$16 sps:$4 sm:$0xff]   ;;  %v4720_v23 = vld [vmem:[%s5861_s21 + $0xa0] ss:$16 sps:$4 sm:$0xff]  }
  0x9f   : > { %2074 = vmatpush1.bf16.msra.mxu0 %v4703_v12  ;;  %2032 = vmatprep.subr.bf16.mxu1 %v4704_v13  ;;  %v4718_v22 = vld [vmem:[%s5861_s21 + $0x2a4] ss:$16 sps:$4 sm:$0xff]   ;;  %v4721_v24 = vld [vmem:[%s5861_s21 + $0x2a0] ss:$16 sps:$4 sm:$0xff]   ;;  %v4787_v12 = vld [vmem:[%s5861_s21 + $0xc] ss:$16 sps:$4 sm:$0xff]  }
  0xa0   : > { %2075 = vmatprep.subr.bf16.mxu0 %v4706_v14  ;;  %v4722_v25 = vld [vmem:[%s5861_s21 + $0xc4] ss:$16 sps:$4 sm:$0xff]   ;;  %v4726_v27 = vld [vmem:[%s5861_s21 + $0xc0] ss:$16 sps:$4 sm:$0xff]  }
  0xa1   : > { %v4724_v26 = vld [vmem:[%s5861_s21 + $0x2c4] ss:$16 sps:$4 sm:$0xff]   ;;  %v4727_v28 = vld [vmem:[%s5861_s21 + $0x2c0] ss:$16 sps:$4 sm:$0xff]  }
  0xa2   : > { %2033 = vmatpush1.bf16.msra.mxu1 %v4708_v15  ;;  %v4728_v29 = vld [vmem:[%s5861_s21 + $0xe4] ss:$16 sps:$4 sm:$0xff]   ;;  %v4732_v31 = vld [vmem:[%s5861_s21 + $0xe0] ss:$16 sps:$4 sm:$0xff]   ;;  %v4785_v15 = vld [vmem:[%s5861_s21 + $0x8] ss:$16 sps:$4 sm:$0xff]  }
  0xa3   : > { %2076 = vmatpush1.bf16.msra.mxu0 %v4709_v16  ;;  %2034 = vmatprep.subr.bf16.mxu1 %v4710_v17  ;;  %v4730_v30 = vld [vmem:[%s5861_s21 + $0x2e4] ss:$16 sps:$4 sm:$0xff]   ;;  %v4733_v32 = vld [vmem:[%s5861_s21 + $0x2e0] ss:$16 sps:$4 sm:$0xff]  }
  0xa4   : > { %2077 = vmatprep.subr.bf16.mxu0 %v4712_v18  ;;  %v4734_v33 = vld [vmem:[%s5861_s21 + $0x104] ss:$16 sps:$4 sm:$0xff]   ;;  %v4738_v35 = vld [vmem:[%s5861_s21 + $0x100] ss:$16 sps:$4 sm:$0xff]   ;;  %v4793_v18 = vld [vmem:[%s5861_s21 + $0x2c] ss:$16 sps:$4 sm:$0xff]  }
  0xa5   : > { %v4736_v34 = vld [vmem:[%s5861_s21 + $0x304] ss:$16 sps:$4 sm:$0xff]   ;;  %v4739_v36 = vld [vmem:[%s5861_s21 + $0x300] ss:$16 sps:$4 sm:$0xff]  }
  0xa6   : > { %2035 = vmatpush1.bf16.msra.mxu1 %v4714_v19  ;;  %v4740_v37 = vld [vmem:[%s5861_s21 + $0x124] ss:$16 sps:$4 sm:$0xff]   ;;  %v4744_v39 = vld [vmem:[%s5861_s21 + $0x120] ss:$16 sps:$4 sm:$0xff]  }
  0xa7   : > { %2078 = vmatpush1.bf16.msra.mxu0 %v4715_v20  ;;  %2036 = vmatprep.subr.bf16.mxu1 %v4716_v21  ;;  %v4742_v38 = vld [vmem:[%s5861_s21 + $0x324] ss:$16 sps:$4 sm:$0xff]   ;;  %v4745_v40 = vld [vmem:[%s5861_s21 + $0x320] ss:$16 sps:$4 sm:$0xff]   ;;  %v4791_v20 = vld [vmem:[%s5861_s21 + $0x28] ss:$16 sps:$4 sm:$0xff]  }
  0xa8   : > { %2079 = vmatprep.subr.bf16.mxu0 %v4718_v22  ;;  %v4746_v41 = vld [vmem:[%s5861_s21 + $0x144] ss:$16 sps:$4 sm:$0xff]   ;;  %v4750_v43 = vld [vmem:[%s5861_s21 + $0x140] ss:$16 sps:$4 sm:$0xff]   ;;  %v4799_v22 = vld [vmem:[%s5861_s21 + $0x4c] ss:$16 sps:$4 sm:$0xff]  }
  0xa9   : > { %v4748_v42 = vld [vmem:[%s5861_s21 + $0x344] ss:$16 sps:$4 sm:$0xff]   ;;  %v4751_v44 = vld [vmem:[%s5861_s21 + $0x340] ss:$16 sps:$4 sm:$0xff]  }
  0xaa   : > { %2037 = vmatpush1.bf16.msra.mxu1 %v4720_v23  ;;  %v4752_v45 = vld [vmem:[%s5861_s21 + $0x164] ss:$16 sps:$4 sm:$0xff]   ;;  %v4756_v48 = vld [vmem:[%s5861_s21 + $0x160] ss:$16 sps:$4 sm:$0xff]  }
  0xab   : > { %2080 = vmatpush1.bf16.msra.mxu0 %v4721_v24  ;;  %2038 = vmatprep.subr.bf16.mxu1 %v4722_v25  ;;  %v4754_v46 = vld [vmem:[%s5861_s21 + $0x364] ss:$16 sps:$4 sm:$0xff]   ;;  %v4757_v49 = vld [vmem:[%s5861_s21 + $0x360] ss:$16 sps:$4 sm:$0xff]   ;;  %v4797_v24 = vld [vmem:[%s5861_s21 + $0x48] ss:$16 sps:$4 sm:$0xff]  }
  0xac   : > { %2081 = vmatprep.subr.bf16.mxu0 %v4724_v26  ;;  %v4758_v54 = vld [vmem:[%s5861_s21 + $0x184] ss:$16 sps:$4 sm:$0xff]   ;;  %v4762_v57 = vld [vmem:[%s5861_s21 + $0x180] ss:$16 sps:$4 sm:$0xff]   ;;  %v4805_v26 = vld [vmem:[%s5861_s21 + $0x6c] ss:$16 sps:$4 sm:$0xff]  }
  0xad   : > { %v4760_v55 = vld [vmem:[%s5861_s21 + $0x384] ss:$16 sps:$4 sm:$0xff]   ;;  %v4763_v58 = vld [vmem:[%s5861_s21 + $0x380] ss:$16 sps:$4 sm:$0xff]  }
  0xae   : > { %2039 = vmatpush1.bf16.msra.mxu1 %v4726_v27  ;;  %v4764_v59 = vld [vmem:[%s5861_s21 + $0x1a4] ss:$16 sps:$4 sm:$0xff]   ;;  %v4768_v61 = vld [vmem:[%s5861_s21 + $0x1a0] ss:$16 sps:$4 sm:$0xff]  }
  0xaf   : > { %2082 = vmatpush1.bf16.msra.mxu0 %v4727_v28  ;;  %2040 = vmatprep.subr.bf16.mxu1 %v4728_v29  ;;  %v4766_v60 = vld [vmem:[%s5861_s21 + $0x3a4] ss:$16 sps:$4 sm:$0xff]   ;;  %v4769_v62 = vld [vmem:[%s5861_s21 + $0x3a0] ss:$16 sps:$4 sm:$0xff]   ;;  %v4803_v28 = vld [vmem:[%s5861_s21 + $0x68] ss:$16 sps:$4 sm:$0xff]  }
  0xb0   : > { %2083 = vmatprep.subr.bf16.mxu0 %v4730_v30  ;;  %v4770_v63 = vld [vmem:[%s5861_s21 + $0x1c4] ss:$16 sps:$4 sm:$0xff]   ;;  %v4774_v1 = vld [vmem:[%s5861_s21 + $0x1c0] ss:$16 sps:$4 sm:$0xff]   ;;  %v4811_v30 = vld [vmem:[%s5861_s21 + $0x8c] ss:$16 sps:$4 sm:$0xff]  }
  0xb1   : > { %v4772_v0 = vld [vmem:[%s5861_s21 + $0x3c4] ss:$16 sps:$4 sm:$0xff]   ;;  %v4775_v2 = vld [vmem:[%s5861_s21 + $0x3c0] ss:$16 sps:$4 sm:$0xff]  }
  0xb2   : > { %2041 = vmatpush1.bf16.msra.mxu1 %v4732_v31  ;;  %v4776_v3 = vld [vmem:[%s5861_s21 + $0x1e4] ss:$16 sps:$4 sm:$0xff]   ;;  %v4780_v5 = vld [vmem:[%s5861_s21 + $0x1e0] ss:$16 sps:$4 sm:$0xff]  }
  0xb3   : > { %2084 = vmatpush1.bf16.msra.mxu0 %v4733_v32  ;;  %2042 = vmatprep.subr.bf16.mxu1 %v4734_v33  ;;  %v4778_v4 = vld [vmem:[%s5861_s21 + $0x3e4] ss:$16 sps:$4 sm:$0xff]   ;;  %v4781_v6 = vld [vmem:[%s5861_s21 + $0x3e0] ss:$16 sps:$4 sm:$0xff]   ;;  %v4809_v32 = vld [vmem:[%s5861_s21 + $0x88] ss:$16 sps:$4 sm:$0xff]  }
  0xb4   : > { %2085 = vmatprep.subr.bf16.mxu0 %v4736_v34  ;;  %v834_v7 = vld [vmem:[%s5844_s27] sm:$0xff]  ;;  %v840_v8 = vld [vmem:[%s5844_s27 + $0x30] sm:$0xff]  ;;  %v4817_v34 = vld [vmem:[%s5861_s21 + $0xac] ss:$16 sps:$4 sm:$0xff]  }
  0xb5   : > { %v4784_v9 = vld [vmem:[%s5861_s21 + $0x404] ss:$16 sps:$4 sm:$0xff]   ;;  %v5944_v13 = vpack.c.bf16 %v840_v8, %v834_v7  ;;  %v4782_v14 = vld [vmem:[%s5861_s21 + $0x400] ss:$16 sps:$4 sm:$0xff]   ;;  %v4863_v8 = vld [vmem:[%s5861_s21 + $0x1a8] ss:$16 sps:$4 sm:$0xff]  }
  0xb6   : > { %2043 = vmatpush1.bf16.msra.mxu1 %v4738_v35  ;;  %v836_v10 = vld [vmem:[%s5844_s27 + $0x10] sm:$0xff]  ;;  %v842_v11 = vld [vmem:[%s5844_s27 + $0x40] sm:$0xff] }
  0xb7   : > { %2086 = vmatpush1.bf16.msra.mxu0 %v4739_v36  ;;  %2044 = vmatprep.subr.bf16.mxu1 %v4740_v37  ;;  %v5948_v16 = vpack.c.bf16 %v842_v11, %v836_v10  ;;  %v4790_v17 = vld [vmem:[%s5861_s21 + $0x424] ss:$16 sps:$4 sm:$0xff]   ;;  %v4788_v19 = vld [vmem:[%s5861_s21 + $0x420] ss:$16 sps:$4 sm:$0xff]   ;;  %v4815_v36 = vld [vmem:[%s5861_s21 + $0xa8] ss:$16 sps:$4 sm:$0xff]  }
  0xb8   : > { %2087 = vmatprep.subr.bf16.mxu0 %v4742_v38  ;;  %v4796_v21 = vld [vmem:[%s5861_s21 + $0x444] ss:$16 sps:$4 sm:$0xff]   ;;  %v4794_v23 = vld [vmem:[%s5861_s21 + $0x440] ss:$16 sps:$4 sm:$0xff]   ;;  %v4823_v38 = vld [vmem:[%s5861_s21 + $0xcc] ss:$16 sps:$4 sm:$0xff]  }
  0xb9   : > { %v4802_v25 = vld [vmem:[%s5861_s21 + $0x464] ss:$16 sps:$4 sm:$0xff]   ;;  %v4800_v27 = vld [vmem:[%s5861_s21 + $0x460] ss:$16 sps:$4 sm:$0xff]   ;;  %v4871_v10 = vld [vmem:[%s5861_s21 + $0x1cc] ss:$16 sps:$4 sm:$0xff]  }
  0xba   : > { %2045 = vmatpush1.bf16.msra.mxu1 %v4744_v39  ;;  %v4808_v29 = vld [vmem:[%s5861_s21 + $0x484] ss:$16 sps:$4 sm:$0xff]   ;;  %v4806_v31 = vld [vmem:[%s5861_s21 + $0x480] ss:$16 sps:$4 sm:$0xff]  }
  0xbb   : > { %2088 = vmatpush1.bf16.msra.mxu0 %v4745_v40  ;;  %2046 = vmatprep.subr.bf16.mxu1 %v4746_v41  ;;  %v4814_v33 = vld [vmem:[%s5861_s21 + $0x4a4] ss:$16 sps:$4 sm:$0xff]   ;;  %v4812_v35 = vld [vmem:[%s5861_s21 + $0x4a0] ss:$16 sps:$4 sm:$0xff]   ;;  %v4821_v40 = vld [vmem:[%s5861_s21 + $0xc8] ss:$16 sps:$4 sm:$0xff]  }
  0xbc   : > { %2089 = vmatprep.subr.bf16.mxu0 %v4748_v42  ;;  %v4820_v37 = vld [vmem:[%s5861_s21 + $0x4c4] ss:$16 sps:$4 sm:$0xff]   ;;  %v4818_v39 = vld [vmem:[%s5861_s21 + $0x4c0] ss:$16 sps:$4 sm:$0xff]   ;;  %v839_v42 = vld [vmem:[%s5844_s27 + $0x28] sm:$0xff] }
  0xbd   : > { %v4826_v41 = vld [vmem:[%s5861_s21 + $0x4e4] ss:$16 sps:$4 sm:$0xff]   ;;  %v4830_v50 = vld [vmem:[%s5861_s21 + $0x500] ss:$16 sps:$4 sm:$0xff]  }
  0xbe   : > { %2047 = vmatpush1.bf16.msra.mxu1 %v4750_v43  ;;  %v845_v43 = vld [vmem:[%s5844_s27 + $0x58] sm:$0xff]  ;;  %v4838_v52 = vld [vmem:[%s5861_s21 + $0x524] ss:$16 sps:$4 sm:$0xff]   ;;  %v4860_v7 = vld [vmem:[%s5861_s21 + $0x5a0] ss:$16 sps:$4 sm:$0xff]  }
  0xbf   : > { %2090 = vmatpush1.bf16.msra.mxu0 %v4751_v44  ;;  %2048 = vmatprep.subr.bf16.mxu1 %v4752_v45  ;;  %v4829_v44 = vld [vmem:[%s5861_s21 + $0xec] ss:$16 sps:$4 sm:$0xff]   ;;  %v5981_v45 = vpack.c.bf16 %v845_v43, %v839_v42  ;;  %v4866_v11 = vld [vmem:[%s5861_s21 + $0x5c0] ss:$16 sps:$4 sm:$0xff]   ;;  %v4902_v42 = vld [vmem:[%s5861_s21 + $0x308] ss:$16 sps:$4 sm:$0xff]  }
  0xc0   : > { %2091 = vmatprep.subr.bf16.mxu0 %v4754_v46  ;;  %v4824_v46 = vld [vmem:[%s5861_s21 + $0x4e0] ss:$16 sps:$4 sm:$0xff]   ;;  %v4907_v43 = vld [vmem:[%s5861_s21 + $0x32c] ss:$16 sps:$4 sm:$0xff]  }
  0xc2   : > { %2049 = vmatpush1.bf16.msra.mxu1 %v4756_v48  ;;  %v4832_v48 = vld [vmem:[%s5861_s21 + $0x504] ss:$16 sps:$4 sm:$0xff]  }
  0xc3   : > { %2092 = vmatpush1.bf16.msra.mxu0 %v4757_v49  ;;  %2050 = vmatprep.subr.bf16.mxu1 %v4758_v54  ;;  %v4835_v49 = vld [vmem:[%s5861_s21 + $0x10c] ss:$16 sps:$4 sm:$0xff]   ;;  %v4836_v54 = vld [vmem:[%s5861_s21 + $0x520] ss:$16 sps:$4 sm:$0xff]  }
  0xc4   : > { %2093 = vmatprep.subr.bf16.mxu0 %v4760_v55  ;;  %v4839_v55 = vld [vmem:[%s5861_s21 + $0x128] ss:$16 sps:$4 sm:$0xff]  }
  0xc6   : > { %2051 = vmatpush1.bf16.msra.mxu1 %v4762_v57  ;;  %v4844_v57 = vld [vmem:[%s5861_s21 + $0x544] ss:$16 sps:$4 sm:$0xff]  }
  0xc7   : > { %2094 = vmatpush1.bf16.msra.mxu0 %v4763_v58  ;;  %2052 = vmatprep.subr.bf16.mxu1 %v4764_v59  ;;  %v4847_v58 = vld [vmem:[%s5861_s21 + $0x14c] ss:$16 sps:$4 sm:$0xff]   ;;  %v4842_v59 = vld [vmem:[%s5861_s21 + $0x540] ss:$16 sps:$4 sm:$0xff]  }
  0xc8   : > { %2095 = vmatprep.subr.bf16.mxu0 %v4766_v60  ;;  %v4845_v60 = vld [vmem:[%s5861_s21 + $0x148] ss:$16 sps:$4 sm:$0xff]  }
  0xca   : > { %2053 = vmatpush1.bf16.msra.mxu1 %v4768_v61  ;;  %v4850_v61 = vld [vmem:[%s5861_s21 + $0x564] ss:$16 sps:$4 sm:$0xff]  }
  0xcb   : > { %2096 = vmatpush1.bf16.msra.mxu0 %v4769_v62  ;;  %2054 = vmatprep.subr.bf16.mxu1 %v4770_v63  ;;  %v4853_v62 = vld [vmem:[%s5861_s21 + $0x16c] ss:$16 sps:$4 sm:$0xff]   ;;  %v4848_v63 = vld [vmem:[%s5861_s21 + $0x560] ss:$16 sps:$4 sm:$0xff]  }
  0xcc   : > { %2097 = vmatprep.subr.bf16.mxu0 %v4772_v0  ;;  %v4851_v0 = vld [vmem:[%s5861_s21 + $0x168] ss:$16 sps:$4 sm:$0xff]  }
  0xce   : > { %2055 = vmatpush1.bf16.msra.mxu1 %v4774_v1  ;;  %v4856_v1 = vld [vmem:[%s5861_s21 + $0x584] ss:$16 sps:$4 sm:$0xff]  }
  0xcf   : > { %2098 = vmatpush1.bf16.msra.mxu0 %v4775_v2  ;;  %2056 = vmatprep.subr.bf16.mxu1 %v4776_v3  ;;  %v4859_v2 = vld [vmem:[%s5861_s21 + $0x18c] ss:$16 sps:$4 sm:$0xff]   ;;  %v4854_v3 = vld [vmem:[%s5861_s21 + $0x580] ss:$16 sps:$4 sm:$0xff]  }
  0xd0   : > { %2099 = vmatprep.subr.bf16.mxu0 %v4778_v4  ;;  %v4857_v4 = vld [vmem:[%s5861_s21 + $0x188] ss:$16 sps:$4 sm:$0xff]  }
  0xd2   : > { %2057 = vmatpush1.bf16.msra.mxu1 %v4780_v5  ;;  %v4862_v5 = vld [vmem:[%s5861_s21 + $0x5a4] ss:$16 sps:$4 sm:$0xff]  }
  0xd3   : > { %2100 = vmatpush1.bf16.msra.mxu0 %v4781_v6  ;;  %2155 = vmatprep.subr.bf16.mxu1 %v4787_v12  ;;  %v4865_v6 = vld [vmem:[%s5861_s21 + $0x1ac] ss:$16 sps:$4 sm:$0xff]   ;;  %v4869_v12 = vld [vmem:[%s5861_s21 + $0x1c8] ss:$16 sps:$4 sm:$0xff]  }
  0xd4   : > { %2112 = vmatprep.subr.bf16.mxu0 %v4784_v9  ;;  %v4868_v9 = vld [vmem:[%s5861_s21 + $0x5c4] ss:$16 sps:$4 sm:$0xff]  }
  0xd5   : > { %2059 = vmatmul.mubr.bf16.vlgmr.msra.gmra.mrb[0].mxu1 %v5944_v13 }
  0xd6   : > { %2102 = vmatmul.mubr.bf16.vlgmr.msra.gmra.mrb[0].mxu0 %v5948_v16  ;;  %2156 = vmatpush1.bf16.msra.mxu1 %v4785_v15  ;;  %v4877_v15 = vld [vmem:[%s5861_s21 + $0x1ec] ss:$16 sps:$4 sm:$0xff]  }
  0xd7   : > { %2113 = vmatpush1.bf16.msra.mxu0 %v4782_v14  ;;  %2157 = vmatprep.subr.bf16.mxu1 %v4793_v18  ;;  %v4874_v14 = vld [vmem:[%s5861_s21 + $0x5e4] ss:$16 sps:$4 sm:$0xff]   ;;  %v4875_v18 = vld [vmem:[%s5861_s21 + $0x1e8] ss:$16 sps:$4 sm:$0xff]  }
  0xd8   : > { %2114 = vmatprep.subr.bf16.mxu0 %v4790_v17  ;;  %2187 = vmatprep.mubr.bf16.mxu1 %v5914_v51  ;;  %v4833_v51 = vld [vmem:[%s5861_s21 + $0x108] ss:$16 sps:$4 sm:$0xff]   ;;  %v4872_v17 = vld [vmem:[%s5861_s21 + $0x5e0] ss:$16 sps:$4 sm:$0xff]  }
  0xd9   : > { %2144 = vmatprep.mubr.bf16.mxu0 %v5981_v45 }
  0xda   : > { %2158 = vmatpush1.bf16.msra.mxu1 %v4791_v20  ;;  %v844_v20 = vld [vmem:[%s5844_s27 + $0x50] sm:$0xff] }
  0xdb   : > { %2115 = vmatpush1.bf16.msra.mxu0 %v4788_v19  ;;  %2159 = vmatprep.subr.bf16.mxu1 %v4799_v22  ;;  %v838_v19 = vld [vmem:[%s5844_s27 + $0x20] sm:$0xff] }
  0xdc   : > { %2116 = vmatprep.subr.bf16.mxu0 %v4796_v21  ;;  %v4880_v21 = vld [vmem:[%s5861_s21 + $0x20c] ss:$16 sps:$4 sm:$0xff]   ;;  %v6021_v22 = vpack.c.bf16 %v844_v20, %v838_v19  ;;  %v5022_v20 = vld [vmem:[%s5859_s19 + $0x180] ss:$24 sps:$4 sm:$0xff]  }
  0xdd   : > { %v5024_v19 = vld [vmem:[%s5859_s19 + $0x184] ss:$24 sps:$4 sm:$0xff]  }
  0xde   : > { %2160 = vmatpush1.bf16.msra.mxu1 %v4797_v24  ;;  %v4883_v24 = vld [vmem:[%s5861_s21 + $0x22c] ss:$16 sps:$4 sm:$0xff]  }
  0xdf   : > { %2117 = vmatpush1.bf16.msra.mxu0 %v4794_v23  ;;  %2161 = vmatprep.subr.bf16.mxu1 %v4805_v26  ;;  %v4878_v23 = vld [vmem:[%s5861_s21 + $0x208] ss:$16 sps:$4 sm:$0xff]   ;;  %v4886_v26 = vld [vmem:[%s5861_s21 + $0x24c] ss:$16 sps:$4 sm:$0xff]  }
  0xe0   : > { %2118 = vmatprep.subr.bf16.mxu0 %v4802_v25  ;;  %v4881_v25 = vld [vmem:[%s5861_s21 + $0x228] ss:$16 sps:$4 sm:$0xff]  }
  0xe2   : > { %2162 = vmatpush1.bf16.msra.mxu1 %v4803_v28  ;;  %v4889_v28 = vld [vmem:[%s5861_s21 + $0x26c] ss:$16 sps:$4 sm:$0xff]  }
  0xe3   : > { %2119 = vmatpush1.bf16.msra.mxu0 %v4800_v27  ;;  %2163 = vmatprep.subr.bf16.mxu1 %v4811_v30  ;;  %v4884_v27 = vld [vmem:[%s5861_s21 + $0x248] ss:$16 sps:$4 sm:$0xff]   ;;  %v4892_v30 = vld [vmem:[%s5861_s21 + $0x28c] ss:$16 sps:$4 sm:$0xff]  }
  0xe4   : > { %2120 = vmatprep.subr.bf16.mxu0 %v4808_v29  ;;  %v4887_v29 = vld [vmem:[%s5861_s21 + $0x268] ss:$16 sps:$4 sm:$0xff]  }
  0xe6   : > { %2164 = vmatpush1.bf16.msra.mxu1 %v4809_v32  ;;  %v4898_v32 = vld [vmem:[%s5861_s21 + $0x2cc] ss:$16 sps:$4 sm:$0xff]  }
  0xe7   : > { %2121 = vmatpush1.bf16.msra.mxu0 %v4806_v31  ;;  %2165 = vmatprep.subr.bf16.mxu1 %v4817_v34  ;;  %v4895_v31 = vld [vmem:[%s5861_s21 + $0x2ac] ss:$16 sps:$4 sm:$0xff]  }
  0xe8   : > { %2122 = vmatprep.subr.bf16.mxu0 %v4814_v33  ;;  %v4896_v33 = vld [vmem:[%s5861_s21 + $0x2c8] ss:$16 sps:$4 sm:$0xff]   ;;  %v4901_v34 = vld [vmem:[%s5861_s21 + $0x2ec] ss:$16 sps:$4 sm:$0xff]  }
  0xea   : > { %2166 = vmatpush1.bf16.msra.mxu1 %v4815_v36  ;;  %v4976_v36 = vld [vmem:[%s5859_s19 + $0x4] ss:$24 sps:$4 sm:$0xff]  }
  0xeb   : > { %2123 = vmatpush1.bf16.msra.mxu0 %v4812_v35  ;;  %2167 = vmatprep.subr.bf16.mxu1 %v4823_v38  ;;  %v4974_v35 = vld [vmem:[%s5859_s19] ss:$24 sps:$4 sm:$0xff]  }
  0xec   : > { %2124 = vmatprep.subr.bf16.mxu0 %v4820_v37  ;;  %v4982_v37 = vld [vmem:[%s5859_s19 + $0x34] ss:$24 sps:$4 sm:$0xff]   ;;  %v4899_v38 = vld [vmem:[%s5861_s21 + $0x2e8] ss:$16 sps:$4 sm:$0xff]  }
  0xee   : > { %2168 = vmatpush1.bf16.msra.mxu1 %v4821_v40  ;;  %v4980_v40 = vld [vmem:[%s5859_s19 + $0x30] ss:$24 sps:$4 sm:$0xff]  }
  0xef   : > { %2125 = vmatpush1.bf16.msra.mxu0 %v4818_v39  ;;  %2169 = vmatprep.subr.bf16.mxu1 %v4829_v44  ;;  %v4904_v39 = vld [vmem:[%s5861_s21 + $0x30c] ss:$16 sps:$4 sm:$0xff]   ;;  %v4986_v44 = vld [vmem:[%s5859_s19 + $0x60] ss:$24 sps:$4 sm:$0xff]  }
  0xf0   : > { %2126 = vmatprep.subr.bf16.mxu0 %v4826_v41  ;;  %v4988_v41 = vld [vmem:[%s5859_s19 + $0x64] ss:$24 sps:$4 sm:$0xff]  }
  0xf2   : > { %2170 = vmatpush1.bf16.msra.mxu1 %v4827_v47  ;;  %v4905_v47 = vld [vmem:[%s5861_s21 + $0x328] ss:$16 sps:$4 sm:$0xff]  }
  0xf3   : > { %2127 = vmatpush1.bf16.msra.mxu0 %v4824_v46  ;;  %2171 = vmatprep.subr.bf16.mxu1 %v4835_v49  ;;  %v4994_v46 = vld [vmem:[%s5859_s19 + $0x94] ss:$24 sps:$4 sm:$0xff]   ;;  %v4992_v49 = vld [vmem:[%s5859_s19 + $0x90] ss:$24 sps:$4 sm:$0xff]  }
  0xf4   : > { %2128 = vmatprep.subr.bf16.mxu0 %v4832_v48  ;;  %v4910_v48 = vld [vmem:[%s5861_s21 + $0x34c] ss:$16 sps:$4 sm:$0xff]  }
  0xf6   : > { %2172 = vmatpush1.bf16.msra.mxu1 %v4833_v51  ;;  %v4908_v51 = vld [vmem:[%s5861_s21 + $0x348] ss:$16 sps:$4 sm:$0xff]  }
  0xf7   : > { %2129 = vmatpush1.bf16.msra.mxu0 %v4830_v50  ;;  %2173 = vmatprep.subr.bf16.mxu1 %v4841_v53  ;;  %v5000_v50 = vld [vmem:[%s5859_s19 + $0xc4] ss:$24 sps:$4 sm:$0xff]   ;;  %v4998_v53 = vld [vmem:[%s5859_s19 + $0xc0] ss:$24 sps:$4 sm:$0xff]  }
  0xf8   : > { %2130 = vmatprep.subr.bf16.mxu0 %v4838_v52  ;;  %v4913_v52 = vld [vmem:[%s5861_s21 + $0x36c] ss:$16 sps:$4 sm:$0xff]  }
  0xfa   : > { %2174 = vmatpush1.bf16.msra.mxu1 %v4839_v55  ;;  %v4911_v55 = vld [vmem:[%s5861_s21 + $0x368] ss:$16 sps:$4 sm:$0xff]  }
  0xfb   : > { %2131 = vmatpush1.bf16.msra.mxu0 %v4836_v54  ;;  %2175 = vmatprep.subr.bf16.mxu1 %v4847_v58  ;;  %v5006_v54 = vld [vmem:[%s5859_s19 + $0xf4] ss:$24 sps:$4 sm:$0xff]   ;;  %v5004_v58 = vld [vmem:[%s5859_s19 + $0xf0] ss:$24 sps:$4 sm:$0xff]  }
  0xfc   : > { %2132 = vmatprep.subr.bf16.mxu0 %v4844_v57  ;;  %v4916_v57 = vld [vmem:[%s5861_s21 + $0x38c] ss:$16 sps:$4 sm:$0xff]  }
  0xfe   : > { %2176 = vmatpush1.bf16.msra.mxu1 %v4845_v60  ;;  %v4914_v60 = vld [vmem:[%s5861_s21 + $0x388] ss:$16 sps:$4 sm:$0xff]  }
  0xff   : > { %2133 = vmatpush1.bf16.msra.mxu0 %v4842_v59  ;;  %2177 = vmatprep.subr.bf16.mxu1 %v4853_v62  ;;  %v5012_v59 = vld [vmem:[%s5859_s19 + $0x124] ss:$24 sps:$4 sm:$0xff]   ;;  %v5010_v62 = vld [vmem:[%s5859_s19 + $0x120] ss:$24 sps:$4 sm:$0xff]  }
 0x100   : > { %2134 = vmatprep.subr.bf16.mxu0 %v4850_v61  ;;  %v4919_v61 = vld [vmem:[%s5861_s21 + $0x3ac] ss:$16 sps:$4 sm:$0xff]  }
 0x102   : > { %2178 = vmatpush1.bf16.msra.mxu1 %v4851_v0  ;;  %v4917_v0 = vld [vmem:[%s5861_s21 + $0x3a8] ss:$16 sps:$4 sm:$0xff]  }
 0x103   : > { %2135 = vmatpush1.bf16.msra.mxu0 %v4848_v63  ;;  %2179 = vmatprep.subr.bf16.mxu1 %v4859_v2  ;;  %v5018_v63 = vld [vmem:[%s5859_s19 + $0x154] ss:$24 sps:$4 sm:$0xff]   ;;  %v5016_v2 = vld [vmem:[%s5859_s19 + $0x150] ss:$24 sps:$4 sm:$0xff]  }
 0x104   : > { %2136 = vmatprep.subr.bf16.mxu0 %v4856_v1  ;;  %v4922_v1 = vld [vmem:[%s5861_s21 + $0x3cc] ss:$16 sps:$4 sm:$0xff]  }
 0x106   : > { %2180 = vmatpush1.bf16.msra.mxu1 %v4857_v4  ;;  %v4925_v4 = vld [vmem:[%s5861_s21 + $0x3ec] ss:$16 sps:$4 sm:$0xff]  }
 0x107   : > { %2137 = vmatpush1.bf16.msra.mxu0 %v4854_v3  ;;  %2181 = vmatprep.subr.bf16.mxu1 %v4865_v6  ;;  %v4920_v3 = vld [vmem:[%s5861_s21 + $0x3c8] ss:$16 sps:$4 sm:$0xff]   ;;  %v4928_v6 = vld [vmem:[%s5861_s21 + $0x40c] ss:$16 sps:$4 sm:$0xff]  }
 0x108   : > { %2138 = vmatprep.subr.bf16.mxu0 %v4862_v5  ;;  %v4923_v5 = vld [vmem:[%s5861_s21 + $0x3e8] ss:$16 sps:$4 sm:$0xff]  }
 0x10a   : > { %2182 = vmatpush1.bf16.msra.mxu1 %v4863_v8  ;;  %v4931_v8 = vld [vmem:[%s5861_s21 + $0x42c] ss:$16 sps:$4 sm:$0xff]  }
 0x10b   : > { %2139 = vmatpush1.bf16.msra.mxu0 %v4860_v7  ;;  %2183 = vmatprep.subr.bf16.mxu1 %v4871_v10  ;;  %v4926_v7 = vld [vmem:[%s5861_s21 + $0x408] ss:$16 sps:$4 sm:$0xff]   ;;  %v4934_v10 = vld [vmem:[%s5861_s21 + $0x44c] ss:$16 sps:$4 sm:$0xff]  }
 0x10c   : > { %2140 = vmatprep.subr.bf16.mxu0 %v4868_v9  ;;  %v4929_v9 = vld [vmem:[%s5861_s21 + $0x428] ss:$16 sps:$4 sm:$0xff]  }
 0x10e   : > { %2184 = vmatpush1.bf16.msra.mxu1 %v4869_v12  ;;  %v4937_v12 = vld [vmem:[%s5861_s21 + $0x46c] ss:$16 sps:$4 sm:$0xff]  }
 0x10f   : > { %2141 = vmatpush1.bf16.msra.mxu0 %v4866_v11  ;;  %2185 = vmatprep.subr.bf16.mxu1 %v4877_v15  ;;  %v4932_v11 = vld [vmem:[%s5861_s21 + $0x448] ss:$16 sps:$4 sm:$0xff]   ;;  %v4940_v15 = vld [vmem:[%s5861_s21 + $0x48c] ss:$16 sps:$4 sm:$0xff]  }
 0x110   : > { %2142 = vmatprep.subr.bf16.mxu0 %v4874_v14  ;;  %v4935_v14 = vld [vmem:[%s5861_s21 + $0x468] ss:$16 sps:$4 sm:$0xff]  }
 0x112   : > { %2186 = vmatpush1.bf16.msra.mxu1 %v4875_v18  ;;  %v4946_v18 = vld [vmem:[%s5861_s21 + $0x4cc] ss:$16 sps:$4 sm:$0xff]  }
 0x113   : > { %2143 = vmatpush1.bf16.msra.mxu0 %v4872_v17  ;;  %2198 = vmatprep.subr.bf16.mxu1 %v4880_v21  ;;  %v4941_v17 = vld [vmem:[%s5861_s21 + $0x4a8] ss:$16 sps:$4 sm:$0xff]  }
 0x114   : > { %3524 = vmatprep.subr.bf16.mxu0 %v4976_v36  ;;  %v4944_v21 = vld [vmem:[%s5861_s21 + $0x4c8] ss:$16 sps:$4 sm:$0xff]   ;;  %v5054_v36 = vld [vmem:[%s5859_s19 + $0x274] ss:$24 sps:$4 sm:$0xff]  }
 0x115   : > { %2188 = vmatmul.mubr.bf16.vlgmr.msra.gmra.mrb[4].mxu1 %v5944_v13  ;;  %v4890_v13 = vld [vmem:[%s5861_s21 + $0x288] ss:$16 sps:$4 sm:$0xff]  }
 0x116   : > { %2145 = vmatmul.mubr.bf16.vlgmr.msra.gmra.mrb[0].mxu0 %v6021_v22  ;;  %2199 = vmatpush1.bf16.msra.mxu1 %v4878_v23  ;;  %v4949_v23 = vld [vmem:[%s5861_s21 + $0x4ec] ss:$16 sps:$4 sm:$0xff]  }
 0x117   : > { %2230 = vmatprep.mubr.bf16.mxu1 %v5920_v56  ;;  %2200 = vmatprep.subr.bf16.mxu1 %v4883_v24  ;;  %v4893_v56 = vld [vmem:[%s5861_s21 + $0x2a8] ss:$16 sps:$4 sm:$0xff]   ;;  %v5030_v24 = vld [vmem:[%s5859_s19 + $0x1b4] ss:$24 sps:$4 sm:$0xff]  }
 0x118   : > { %3525 = vmatpush1.bf16.msra.mxu0 %v4974_v35  ;;  %v5048_v35 = vld [vmem:[%s5859_s19 + $0x244] ss:$24 sps:$4 sm:$0xff]  }
 0x119   : > { %3526 = vmatprep.subr.bf16.mxu0 %v4982_v37  ;;  %v4956_v37 = vld [vmem:[%s5861_s21 + $0x548] ss:$16 sps:$4 sm:$0xff]  }
 0x11a   : > { %2201 = vmatpush1.bf16.msra.mxu1 %v4881_v25  ;;  %v5028_v25 = vld [vmem:[%s5859_s19 + $0x1b0] ss:$24 sps:$4 sm:$0xff]  }
 0x11b   : > { %2202 = vmatprep.subr.bf16.mxu1 %v4886_v26  ;;  %v4947_v26 = vld [vmem:[%s5861_s21 + $0x4e8] ss:$16 sps:$4 sm:$0xff]  }
 0x11c   : > { %3527 = vmatpush1.bf16.msra.mxu0 %v4980_v40  ;;  %v5060_v40 = vld [vmem:[%s5859_s19 + $0x2a4] ss:$24 sps:$4 sm:$0xff]  }
 0x11d   : > { %3528 = vmatprep.subr.bf16.mxu0 %v4988_v41  ;;  %v4959_v41 = vld [vmem:[%s5861_s21 + $0x568] ss:$16 sps:$4 sm:$0xff]  }
 0x11e   : > { %2203 = vmatpush1.bf16.msra.mxu1 %v4884_v27  ;;  %v4952_v27 = vld [vmem:[%s5861_s21 + $0x50c] ss:$16 sps:$4 sm:$0xff]  }
 0x11f   : > { %2204 = vmatprep.subr.bf16.mxu1 %v4889_v28  ;;  %v5036_v28 = vld [vmem:[%s5859_s19 + $0x1e4] ss:$24 sps:$4 sm:$0xff]  }
 0x120   : > { %3529 = vmatpush1.bf16.msra.mxu0 %v4986_v44  ;;  %v5066_v44 = vld [vmem:[%s5859_s19 + $0x2d4] ss:$24 sps:$4 sm:$0xff]  }
 0x121   : > { %3530 = vmatprep.subr.bf16.mxu0 %v4994_v46  ;;  %v4962_v46 = vld [vmem:[%s5861_s21 + $0x588] ss:$16 sps:$4 sm:$0xff]  }
 0x122   : > { %2205 = vmatpush1.bf16.msra.mxu1 %v4887_v29  ;;  %v5034_v29 = vld [vmem:[%s5859_s19 + $0x1e0] ss:$24 sps:$4 sm:$0xff]  }
 0x123   : > { %2206 = vmatprep.subr.bf16.mxu1 %v4892_v30  ;;  %v4950_v30 = vld [vmem:[%s5861_s21 + $0x508] ss:$16 sps:$4 sm:$0xff]  }
 0x124   : > { %3531 = vmatpush1.bf16.msra.mxu0 %v4992_v49  ;;  %v4965_v49 = vld [vmem:[%s5861_s21 + $0x5a8] ss:$16 sps:$4 sm:$0xff]  }
 0x125   : > { %3532 = vmatprep.subr.bf16.mxu0 %v5000_v50  ;;  %v4970_v50 = vld [vmem:[%s5861_s21 + $0x5cc] ss:$16 sps:$4 sm:$0xff]  }
 0x126   : > { %2207 = vmatpush1.bf16.msra.mxu1 %v4890_v13  ;;  %v4955_v13 = vld [vmem:[%s5861_s21 + $0x52c] ss:$16 sps:$4 sm:$0xff]  }
 0x127   : > { %2208 = vmatprep.subr.bf16.mxu1 %v4895_v31  ;;  %v5042_v31 = vld [vmem:[%s5859_s19 + $0x214] ss:$24 sps:$4 sm:$0xff]  }
 0x128   : > { %3533 = vmatpush1.bf16.msra.mxu0 %v4998_v53  ;;  %v4973_v53 = vld [vmem:[%s5861_s21 + $0x5ec] ss:$16 sps:$4 sm:$0xff]  }
 0x129   : > { %3534 = vmatprep.subr.bf16.mxu0 %v5006_v54  ;;  %v4971_v54 = vld [vmem:[%s5861_s21 + $0x5e8] ss:$16 sps:$4 sm:$0xff]  }
 0x12a   : > { %2209 = vmatpush1.bf16.msra.mxu1 %v4893_v56  ;;  %v5040_v56 = vld [vmem:[%s5859_s19 + $0x210] ss:$24 sps:$4 sm:$0xff]  }
 0x12b   : > { %2210 = vmatprep.subr.bf16.mxu1 %v4898_v32  ;;  %v4953_v32 = vld [vmem:[%s5861_s21 + $0x528] ss:$16 sps:$4 sm:$0xff]  }
 0x12c   : > { %3535 = vmatpush1.bf16.msra.mxu0 %v5004_v58  ;;  %v4985_v58 = vld [vmem:[%s5859_s19 + $0x3c] ss:$24 sps:$4 sm:$0xff]  }
 0x12d   : > { %3536 = vmatprep.subr.bf16.mxu0 %v5012_v59  ;;  %v4983_v59 = vld [vmem:[%s5859_s19 + $0x38] ss:$24 sps:$4 sm:$0xff]  }
 0x12e   : > { %2211 = vmatpush1.bf16.msra.mxu1 %v4896_v33  ;;  %v4958_v33 = vld [vmem:[%s5861_s21 + $0x54c] ss:$16 sps:$4 sm:$0xff]  }
 0x12f   : > { %2212 = vmatprep.subr.bf16.mxu1 %v4901_v34  ;;  %v5046_v34 = vld [vmem:[%s5859_s19 + $0x240] ss:$24 sps:$4 sm:$0xff]  }
 0x130   : > { %3537 = vmatpush1.bf16.msra.mxu0 %v5010_v62  ;;  %v4997_v62 = vld [vmem:[%s5859_s19 + $0x9c] ss:$24 sps:$4 sm:$0xff]  }
 0x131   : > { %3538 = vmatprep.subr.bf16.mxu0 %v5018_v63  ;;  %v4995_v63 = vld [vmem:[%s5859_s19 + $0x98] ss:$24 sps:$4 sm:$0xff]  }
 0x132   : > { %2213 = vmatpush1.bf16.msra.mxu1 %v4899_v38  ;;  %v4961_v38 = vld [vmem:[%s5861_s21 + $0x56c] ss:$16 sps:$4 sm:$0xff]  }
 0x133   : > { %2214 = vmatprep.subr.bf16.mxu1 %v4904_v39  ;;  %v5052_v39 = vld [vmem:[%s5859_s19 + $0x270] ss:$24 sps:$4 sm:$0xff]  }
 0x134   : > { %3539 = vmatpush1.bf16.msra.mxu0 %v5016_v2  ;;  %v5007_v2 = vld [vmem:[%s5859_s19 + $0xf8] ss:$24 sps:$4 sm:$0xff]  }
 0x135   : > { %3540 = vmatprep.subr.bf16.mxu0 %v5024_v19  ;;  %v5051_v19 = vld [vmem:[%s5859_s19 + $0x24c] ss:$24 sps:$4 sm:$0xff]  }
 0x136   : > { %2215 = vmatpush1.bf16.msra.mxu1 %v4902_v42  ;;  %v4964_v42 = vld [vmem:[%s5861_s21 + $0x58c] ss:$16 sps:$4 sm:$0xff]  }
 0x137   : > { %2216 = vmatprep.subr.bf16.mxu1 %v4907_v43  ;;  %v5058_v43 = vld [vmem:[%s5859_s19 + $0x2a0] ss:$24 sps:$4 sm:$0xff]  }
 0x138   : > { %3541 = vmatpush1.bf16.msra.mxu0 %v5022_v20  ;;  %v5049_v20 = vld [vmem:[%s5859_s19 + $0x248] ss:$24 sps:$4 sm:$0xff]  }
 0x139   : > { %3542 = vmatprep.subr.bf16.mxu0 %v5030_v24  ;;  %v5063_v24 = vld [vmem:[%s5859_s19 + $0x2ac] ss:$24 sps:$4 sm:$0xff]  }
 0x13a   : > { %2217 = vmatpush1.bf16.msra.mxu1 %v4905_v47  ;;  %v4967_v47 = vld [vmem:[%s5861_s21 + $0x5ac] ss:$16 sps:$4 sm:$0xff]  }
 0x13b   : > { %2218 = vmatprep.subr.bf16.mxu1 %v4910_v48  ;;  %v5064_v48 = vld [vmem:[%s5859_s19 + $0x2d0] ss:$24 sps:$4 sm:$0xff]  }
 0x13c   : > { %3543 = vmatpush1.bf16.msra.mxu0 %v5028_v25  ;;  %v5061_v25 = vld [vmem:[%s5859_s19 + $0x2a8] ss:$24 sps:$4 sm:$0xff]  }
 0x13d   : > { %3544 = vmatprep.subr.bf16.mxu0 %v5036_v28  ;;  %v5075_v28 = vld [vmem:[%s5859_s19 + $0x30c] ss:$24 sps:$4 sm:$0xff]  }
 0x13e   : > { %2219 = vmatpush1.bf16.msra.mxu1 %v4908_v51  ;;  %v4968_v51 = vld [vmem:[%s5861_s21 + $0x5c8] ss:$16 sps:$4 sm:$0xff]  }
 0x13f   : > { %2220 = vmatprep.subr.bf16.mxu1 %v4913_v52  ;;  %v5072_v52 = vld [vmem:[%s5859_s19 + $0x304] ss:$24 sps:$4 sm:$0xff]  }
 0x140   : > { %3545 = vmatpush1.bf16.msra.mxu0 %v5034_v29  ;;  %v1046_v29 = vlaneseq }
 0x141   : > { %3546 = vmatprep.subr.bf16.mxu0 %v5042_v31  ;;  %v6168_v31 = vld [vmem:[%s795_s20] sm:$0xf] }
 0x142   : > { %2221 = vmatpush1.bf16.msra.mxu1 %v4911_v55  ;;  %v4979_v55 = vld [vmem:[%s5859_s19 + $0xc] ss:$24 sps:$4 sm:$0xff]  }
 0x143   : > { %2222 = vmatprep.subr.bf16.mxu1 %v4916_v57  ;;  %v4977_v57 = vld [vmem:[%s5859_s19 + $0x8] ss:$24 sps:$4 sm:$0xff]  }
 0x144   : > { %3547 = vmatpush1.bf16.msra.mxu0 %v5040_v56 }
 0x145   : > { %3548 = vmatprep.subr.bf16.mxu0 %v5048_v35 }
 0x146   : > { %2223 = vmatpush1.bf16.msra.mxu1 %v4914_v60  ;;  %v4991_v60 = vld [vmem:[%s5859_s19 + $0x6c] ss:$24 sps:$4 sm:$0xff]  }
 0x147   : > { %2224 = vmatprep.subr.bf16.mxu1 %v4919_v61  ;;  %v4989_v61 = vld [vmem:[%s5859_s19 + $0x68] ss:$24 sps:$4 sm:$0xff]  }
 0x148   : > { %3549 = vmatpush1.bf16.msra.mxu0 %v5046_v34 }
 0x149   : > { %3550 = vmatprep.subr.bf16.mxu0 %v5054_v36 }
 0x14a   : > { %2225 = vmatpush1.bf16.msra.mxu1 %v4917_v0  ;;  %v5003_v0 = vld [vmem:[%s5859_s19 + $0xcc] ss:$24 sps:$4 sm:$0xff]  }
 0x14b   : > { %2226 = vmatprep.subr.bf16.mxu1 %v4922_v1  ;;  %v5001_v1 = vld [vmem:[%s5859_s19 + $0xc8] ss:$24 sps:$4 sm:$0xff]  }
 0x14c   : > { %3551 = vmatpush1.bf16.msra.mxu0 %v5052_v39 }
 0x14d   : > { %3552 = vmatprep.subr.bf16.mxu0 %v5060_v40 }
 0x14e   : > { %2227 = vmatpush1.bf16.msra.mxu1 %v4920_v3  ;;  %v5015_v3 = vld [vmem:[%s5859_s19 + $0x12c] ss:$24 sps:$4 sm:$0xff]  }
 0x14f   : > { %2228 = vmatprep.subr.bf16.mxu1 %v4925_v4 }
 0x150   : > { %3553 = vmatpush1.bf16.msra.mxu0 %v5058_v43 }
 0x151   : > { %3554 = vmatprep.subr.bf16.mxu0 %v5066_v44 }
 0x152   : > { %2229 = vmatpush1.bf16.msra.mxu1 %v4923_v5 }
 0x153   : > { %2241 = vmatprep.subr.bf16.mxu1 %v4928_v6 }
 0x154   : > { %3555 = vmatpush1.bf16.msra.mxu0 %v5064_v48 }
 0x155   : > { %2231 = vmatmul.mubr.bf16.vlgmr.msra.gmra.mrb[4].mxu1 %v5948_v16  ;;  %v4938_v16 = vld [vmem:[%s5861_s21 + $0x488] ss:$16 sps:$4 sm:$0xff]   ;;  %3567 = vmatprep.subr.bf16.mxu0 %v5072_v52 }
 0x156   : > { %2242 = vmatpush1.bf16.msra.mxu1 %v4926_v7  ;;  %2273 = vmatprep.mubr.bf16.mxu1 %v5981_v45  ;;  %v4943_v45 = vld [vmem:[%s5861_s21 + $0x4ac] ss:$16 sps:$4 sm:$0xff]   ;;  %v5013_v7 = vld [vmem:[%s5859_s19 + $0x128] ss:$24 sps:$4 sm:$0xff]  }
 0x157   : > { %2243 = vmatprep.subr.bf16.mxu1 %v4931_v8 }
 0x15a   : > { %2244 = vmatpush1.bf16.msra.mxu1 %v4929_v9  ;;  %v5021_v9 = vld [vmem:[%s5859_s19 + $0x15c] ss:$24 sps:$4 sm:$0xff]  }
 0x15b   : > { %2245 = vmatprep.subr.bf16.mxu1 %v4934_v10  ;;  %v5019_v10 = vld [vmem:[%s5859_s19 + $0x158] ss:$24 sps:$4 sm:$0xff]  }
 0x15e   : > { %2246 = vmatpush1.bf16.msra.mxu1 %v4932_v11  ;;  %v5027_v11 = vld [vmem:[%s5859_s19 + $0x18c] ss:$24 sps:$4 sm:$0xff]  }
 0x15f   : > { %2247 = vmatprep.subr.bf16.mxu1 %v4937_v12  ;;  %v5025_v12 = vld [vmem:[%s5859_s19 + $0x188] ss:$24 sps:$4 sm:$0xff]  }
 0x162   : > { %2248 = vmatpush1.bf16.msra.mxu1 %v4935_v14  ;;  %v5033_v14 = vld [vmem:[%s5859_s19 + $0x1bc] ss:$24 sps:$4 sm:$0xff]  }
 0x163   : > { %2249 = vmatprep.subr.bf16.mxu1 %v4940_v15  ;;  %v5031_v15 = vld [vmem:[%s5859_s19 + $0x1b8] ss:$24 sps:$4 sm:$0xff]  }
 0x166   : > { %2250 = vmatpush1.bf16.msra.mxu1 %v4938_v16  ;;  %v5039_v16 = vld [vmem:[%s5859_s19 + $0x1ec] ss:$24 sps:$4 sm:$0xff]  }
 0x167   : > { %2251 = vmatprep.subr.bf16.mxu1 %v4943_v45  ;;  %v5037_v45 = vld [vmem:[%s5859_s19 + $0x1e8] ss:$24 sps:$4 sm:$0xff]  }
 0x16a   : > { %2252 = vmatpush1.bf16.msra.mxu1 %v4941_v17  ;;  %v5045_v17 = vld [vmem:[%s5859_s19 + $0x21c] ss:$24 sps:$4 sm:$0xff]  }
 0x16b   : > { %2253 = vmatprep.subr.bf16.mxu1 %v4946_v18  ;;  %v5043_v18 = vld [vmem:[%s5859_s19 + $0x218] ss:$24 sps:$4 sm:$0xff]  }
 0x16e   : > { %2254 = vmatpush1.bf16.msra.mxu1 %v4944_v21  ;;  %v5057_v21 = vld [vmem:[%s5859_s19 + $0x27c] ss:$24 sps:$4 sm:$0xff]  }
 0x16f   : > { %2255 = vmatprep.subr.bf16.mxu1 %v4949_v23  ;;  %v5055_v23 = vld [vmem:[%s5859_s19 + $0x278] ss:$24 sps:$4 sm:$0xff]  }
 0x172   : > { %2256 = vmatpush1.bf16.msra.mxu1 %v4947_v26  ;;  %v5069_v26 = vld [vmem:[%s5859_s19 + $0x2dc] ss:$24 sps:$4 sm:$0xff]  }
 0x173   : > { %2257 = vmatprep.subr.bf16.mxu1 %v4952_v27  ;;  %v5067_v27 = vld [vmem:[%s5859_s19 + $0x2d8] ss:$24 sps:$4 sm:$0xff]  }
 0x176   : > { %2258 = vmatpush1.bf16.msra.mxu1 %v4950_v30  ;;  %v6158_v30 = vshrl.u32 %v1046_v29, 7  ;;  %v5087_v29 = vld [vmem:[%s5859_s19 + $0x36c] ss:$24 sps:$4 sm:$0xff]  }
 0x177   : > { %2259 = vmatprep.subr.bf16.mxu1 %v4955_v13 }
 0x178   : > { %v6161_v13 = vsub.s32 0, %v6158_v30  ;;  %v6171_v56 = vsub.s32 1, %v6158_v30 }
 0x17a   : > { %2260 = vmatpush1.bf16.msra.mxu1 %v4953_v32  ;;  %v1049_v32 = vrot.slane %v6168_v31, %v6161_v13 }
 0x17b   : > { %2261 = vmatprep.subr.bf16.mxu1 %v4958_v33  ;;  %v1053_v33 = vrot.slane %v6168_v31, %v6171_v56 }
 0x17e   : > { %2262 = vmatpush1.bf16.msra.mxu1 %v4956_v37 }
 0x17f   : > { %2263 = vmatprep.subr.bf16.mxu1 %v4961_v38 }
 0x182   : > { %2264 = vmatpush1.bf16.msra.mxu1 %v4959_v41 }
 0x183   : > { %2265 = vmatprep.subr.bf16.mxu1 %v4964_v42 }
 0x186   : > { %2266 = vmatpush1.bf16.msra.mxu1 %v4962_v46 }
 0x187   : > { %2267 = vmatprep.subr.bf16.mxu1 %v4967_v47 }
 0x18a   : > { %2268 = vmatpush1.bf16.msra.mxu1 %v4965_v49 }
 0x18b   : > { %2269 = vmatprep.subr.bf16.mxu1 %v4970_v50 }
 0x18e   : > { %2270 = vmatpush1.bf16.msra.mxu1 %v4968_v51 }
 0x18f   : > { %2271 = vmatprep.subr.bf16.mxu1 %v4973_v53 }
 0x192   : > { %2272 = vmatpush1.bf16.msra.mxu1 %v4971_v54 }
 0x193   : > { %3610 = vmatprep.subr.bf16.mxu1 %v4979_v55 }
 0x195   : > { %2274 = vmatmul.mubr.bf16.vlgmr.msra.gmra.mrb[4].mxu1 %v6021_v22  ;;  %v5009_v22 = vld [vmem:[%s5859_s19 + $0xfc] ss:$24 sps:$4 sm:$0xff]  }
 0x196   : > { %3611 = vmatpush1.bf16.msra.mxu1 %v4977_v57 }
 0x197   : > { %3612 = vmatprep.subr.bf16.mxu1 %v4985_v58 }
 0x19a   : > { %3613 = vmatpush1.bf16.msra.mxu1 %v4983_v59 }
 0x19b   : > { %3614 = vmatprep.subr.bf16.mxu1 %v4991_v60 }
 0x19e   : > { %3615 = vmatpush1.bf16.msra.mxu1 %v4989_v61 }
 0x19f   : > { %3616 = vmatprep.subr.bf16.mxu1 %v4997_v62 }
 0x1a2   : > { %3617 = vmatpush1.bf16.msra.mxu1 %v4995_v63 }
 0x1a3   : > { %3618 = vmatprep.subr.bf16.mxu1 %v5003_v0 }
 0x1a6   : > { %3619 = vmatpush1.bf16.msra.mxu1 %v5001_v1 }
 0x1a7   : > { %3620 = vmatprep.subr.bf16.mxu1 %v5009_v22 }
 0x1a8   : > { %v2060_v4 = vpop.f32.mrb[0].mxu1 }
 0x1a9   : > { %v2062_v5 = vpop.f32.mrb[1].mxu1  ;;  %v2061_v34 = vadd.f32 %v2060_v4, %v1049_v32 }
 0x1aa   : > { %v2064_v6 = vpop.f32.mrb[2].mxu1  ;;  %3621 = vmatpush1.bf16.msra.mxu1 %v5007_v2  ;;  %v2063_v35 = vadd.f32 %v2062_v5, %v1053_v33 }
 0x1ab   : > { %v2066_v8 = vpop.f32.mrb[3].mxu1  ;;  %3622 = vmatprep.subr.bf16.mxu1 %v5015_v3  ;;  %v2065_v37 = vadd.f32 %v2064_v6, %v1049_v32  ;;  %v5082_v32 = vld [vmem:[%s5859_s19 + $0x360] ss:$24 sps:$4 sm:$0xff]  }
 0x1ac   : > { %v2067_v40 = vadd.f32 %v2066_v8, %v1053_v33  ;;  %v5085_v33 = vld [vmem:[%s5859_s19 + $0x368] ss:$24 sps:$4 sm:$0xff]  }
 0x1ae   : > { %3623 = vmatpush1.bf16.msra.mxu1 %v5013_v7 }
 0x1af   : > { %3624 = vmatprep.subr.bf16.mxu1 %v5021_v9 }
 0x1b2   : > { %3625 = vmatpush1.bf16.msra.mxu1 %v5019_v10 }
 0x1b3   : > { %3626 = vmatprep.subr.bf16.mxu1 %v5027_v11 }
 0x1b6   : > { %3627 = vmatpush1.bf16.msra.mxu1 %v5025_v12 }
 0x1b7   : > { %3628 = vmatprep.subr.bf16.mxu1 %v5033_v14 }
 0x1ba   : > { %3629 = vmatpush1.bf16.msra.mxu1 %v5031_v15 }
 0x1bb   : > { %3630 = vmatprep.subr.bf16.mxu1 %v5039_v16 }
 0x1be   : > { %3631 = vmatpush1.bf16.msra.mxu1 %v5037_v45 }
 0x1bf   : > { %3632 = vmatprep.subr.bf16.mxu1 %v5045_v17 }
 0x1c2   : > { %3633 = vmatpush1.bf16.msra.mxu1 %v5043_v18 }
 0x1c3   : > { %3634 = vmatprep.subr.bf16.mxu1 %v5051_v19 }
 0x1c6   : > { %3635 = vmatpush1.bf16.msra.mxu1 %v5049_v20 }
 0x1c7   : > { %3636 = vmatprep.subr.bf16.mxu1 %v5057_v21  ;;  %v5070_v21 = vld [vmem:[%s5859_s19 + $0x300] ss:$24 sps:$4 sm:$0xff]  }
 0x1ca   : > { %3637 = vmatpush1.bf16.msra.mxu1 %v5055_v23  ;;  %v5073_v23 = vld [vmem:[%s5859_s19 + $0x308] ss:$24 sps:$4 sm:$0xff]  }
 0x1cb   : > { %3638 = vmatprep.subr.bf16.mxu1 %v5063_v24  ;;  %v5078_v24 = vld [vmem:[%s5859_s19 + $0x334] ss:$24 sps:$4 sm:$0xff]  }
 0x1ce   : > { %3639 = vmatpush1.bf16.msra.mxu1 %v5061_v25  ;;  %v5081_v25 = vld [vmem:[%s5859_s19 + $0x33c] ss:$24 sps:$4 sm:$0xff]  }
 0x1cf   : > { %3640 = vmatprep.subr.bf16.mxu1 %v5069_v26  ;;  %v5076_v26 = vld [vmem:[%s5859_s19 + $0x330] ss:$24 sps:$4 sm:$0xff]  }
 0x1d2   : > { %3641 = vmatpush1.bf16.msra.mxu1 %v5067_v27  ;;  %v5079_v27 = vld [vmem:[%s5859_s19 + $0x338] ss:$24 sps:$4 sm:$0xff]  }
 0x1d3   : > { %3653 = vmatprep.subr.bf16.mxu1 %v5075_v28  ;;  %v5084_v28 = vld [vmem:[%s5859_s19 + $0x364] ss:$24 sps:$4 sm:$0xff]  }
 0x1e9   : > { %v2146_v36 = vpop.f32.mrb[0].mxu0 }
 0x1ea   : > { %v4590_v38 = vadd.f32 %v2146_v36, %v2061_v34  ;;  %v2148_v39 = vpop.f32.mrb[1].mxu0  ;;  %v5090_v34 = vld [vmem:[%s5859_s19 + $0x394] ss:$24 sps:$4 sm:$0xff]   ;;  %v5088_v36 = vld [vmem:[%s5859_s19 + $0x390] ss:$24 sps:$4 sm:$0xff]  }
 0x1eb   : > { %v4592_v41 = vadd.f32 %v2148_v39, %v2063_v35  ;;  %v2150_v42 = vpop.f32.mrb[2].mxu0  ;;  %v5093_v35 = vld [vmem:[%s5859_s19 + $0x39c] ss:$24 sps:$4 sm:$0xff]   ;;  %v5099_v39 = vld [vmem:[%s5859_s19 + $0x3cc] ss:$24 sps:$4 sm:$0xff]  }
 0x1ec   : > { %v2292_v43 = vmul.f32 0.044715, %v4590_v38  ;;  %v4594_v44 = vadd.f32 %v2150_v42, %v2065_v37  ;;  %v2152_v46 = vpop.f32.mrb[3].mxu0  ;;  %v2284_v9 = vmul.f32 0.5, %v4590_v38  ;;  %v5091_v37 = vld [vmem:[%s5859_s19 + $0x398] ss:$24 sps:$4 sm:$0xff]  }
 0x1ed   : > { %v2293_v47 = vmul.f32 0.044715, %v4592_v41  ;;  %v4596_v48 = vadd.f32 %v2152_v46, %v2067_v40  ;;  %v2285_v12 = vmul.f32 0.5, %v4592_v41  ;;  %v5094_v40 = vld [vmem:[%s5859_s19 + $0x3c0] ss:$24 sps:$4 sm:$0xff]  }
 0x1ee   : > { %v2300_v49 = vmul.f32 %v4590_v38, %v2292_v43  ;;  %v2296_v50 = vmul.f32 0.044715, %v4594_v44  ;;  %v2288_v10 = vmul.f32 0.5, %v4594_v44  ;;  %v5102_v42 = vld [vmem:[%s5859_s19 + $0x3f4] ss:$24 sps:$4 sm:$0xff]  }
 0x1ef   : > { %v2301_v51 = vmul.f32 %v4592_v41, %v2293_v47  ;;  %v2297_v52 = vmul.f32 0.044715, %v4596_v48  ;;  %v2289_v14 = vmul.f32 0.5, %v4596_v48  ;;  %v5105_v43 = vld [vmem:[%s5859_s19 + $0x3fc] ss:$24 sps:$4 sm:$0xff]  }
 0x1f0   : > { %v2308_v53 = vmul.f32 %v4590_v38, %v2300_v49  ;;  %v2304_v54 = vmul.f32 %v4594_v44, %v2296_v50  ;;  %v5103_v46 = vld [vmem:[%s5859_s19 + $0x3f8] ss:$24 sps:$4 sm:$0xff]   ;;  %v5108_v47 = vld [vmem:[%s5859_s19 + $0x424] ss:$24 sps:$4 sm:$0xff]   ;;  %v5109_v50 = vld [vmem:[%s5859_s19 + $0x428] ss:$24 sps:$4 sm:$0xff]  }
 0x1f1   : > { %v2309_v55 = vmul.f32 %v4592_v41, %v2301_v51  ;;  %v2305_v57 = vmul.f32 %v4596_v48, %v2297_v52  ;;  %v5106_v49 = vld [vmem:[%s5859_s19 + $0x420] ss:$24 sps:$4 sm:$0xff]   ;;  %v5114_v51 = vld [vmem:[%s5859_s19 + $0x454] ss:$24 sps:$4 sm:$0xff]  }
 0x1f2   : > { %v2316_v58 = vadd.f32 %v4590_v38, %v2308_v53  ;;  %v2312_v59 = vmul.f32 %v4594_v44, %v2304_v54  ;;  %v5096_v38 = vld [vmem:[%s5859_s19 + $0x3c4] ss:$24 sps:$4 sm:$0xff]   ;;  %v5112_v53 = vld [vmem:[%s5859_s19 + $0x450] ss:$24 sps:$4 sm:$0xff]  }
 0x1f3   : > { %v2313_v60 = vmul.f32 %v4596_v48, %v2305_v57  ;;  %v2317_v61 = vadd.f32 %v4592_v41, %v2309_v55  ;;  %v5097_v41 = vld [vmem:[%s5859_s19 + $0x3c8] ss:$24 sps:$4 sm:$0xff]   ;;  %v5117_v52 = vld [vmem:[%s5859_s19 + $0x45c] ss:$24 sps:$4 sm:$0xff]   ;;  %v5115_v54 = vld [vmem:[%s5859_s19 + $0x458] ss:$24 sps:$4 sm:$0xff]  }
 0x1f4   : > { %v2324_v62 = vmul.f32 0.7978846, %v2316_v58  ;;  %v2320_v63 = vadd.f32 %v4594_v44, %v2312_v59  ;;  %v5100_v44 = vld [vmem:[%s5859_s19 + $0x3f0] ss:$24 sps:$4 sm:$0xff]   ;;  %v5120_v55 = vld [vmem:[%s5859_s19 + $0x484] ss:$24 sps:$4 sm:$0xff]  }
 0x1f5   : > { %v2321_v0 = vadd.f32 %v4596_v48, %v2313_v60  ;;  %v2325_v1 = vmul.f32 0.7978846, %v2317_v61  ;;  %v5111_v48 = vld [vmem:[%s5859_s19 + $0x42c] ss:$24 sps:$4 sm:$0xff]   ;;  %v5118_v58 = vld [vmem:[%s5859_s19 + $0x480] ss:$24 sps:$4 sm:$0xff]  }
 0x1f6   : > { %5262 = vtanh.f32 %v2324_v62  ;;  %v2328_v22 = vmul.f32 0.7978846, %v2320_v63  ;;  %v5123_v57 = vld [vmem:[%s5859_s19 + $0x48c] ss:$24 sps:$4 sm:$0xff]   ;;  %v5121_v59 = vld [vmem:[%s5859_s19 + $0x488] ss:$24 sps:$4 sm:$0xff]  }
 0x1f7   : > { %v2329_v2 = vmul.f32 0.7978846, %v2321_v0  ;;  %5264 = vtanh.f32 %v2325_v1  ;;  %v5126_v60 = vld [vmem:[%s5859_s19 + $0x4b4] ss:$24 sps:$4 sm:$0xff]   ;;  %v5124_v62 = vld [vmem:[%s5859_s19 + $0x4b0] ss:$24 sps:$4 sm:$0xff]  }
 0x1f8   : > { %5266 = vtanh.f32 %v2328_v22  ;;  %v5129_v61 = vld [vmem:[%s5859_s19 + $0x4bc] ss:$24 sps:$4 sm:$0xff]   ;;  %v5127_v63 = vld [vmem:[%s5859_s19 + $0x4b8] ss:$24 sps:$4 sm:$0xff]   ;;  %v5135_v1 = vld [vmem:[%s5859_s19 + $0x4ec] ss:$24 sps:$4 sm:$0xff]  }
 0x1f9   : > { %5268 = vtanh.f32 %v2329_v2  ;;  %v5132_v0 = vld [vmem:[%s5859_s19 + $0x4e4] ss:$24 sps:$4 sm:$0xff]   ;;  %v5130_v22 = vld [vmem:[%s5859_s19 + $0x4e0] ss:$24 sps:$4 sm:$0xff]  }
 0x1fa   : > { %v5133_v2 = vld [vmem:[%s5859_s19 + $0x4e8] ss:$24 sps:$4 sm:$0xff]  }
 0x200   : > { %v5263_v3 = vpop.eup %5262 }
 0x201   : > { %v5265_v4 = vpop.eup %5264  ;;  %v2340_v5 = vadd.f32 1.0, %v5263_v3  ;;  %v5138_v3 = vld [vmem:[%s5859_s19 + $0x514] ss:$24 sps:$4 sm:$0xff]  }
 0x202   : > { %v5267_v6 = vpop.eup %5266  ;;  %v2341_v7 = vadd.f32 1.0, %v5265_v4  ;;  %v5141_v4 = vld [vmem:[%s5859_s19 + $0x51c] ss:$24 sps:$4 sm:$0xff]  }
 0x203   : > { %v5269_v8 = vpop.eup %5268  ;;  %v2344_v11 = vadd.f32 1.0, %v5267_v6  ;;  %v2348_v16 = vmul.f32 %v2340_v5, %v2284_v9  ;;  %v5136_v5 = vld [vmem:[%s5859_s19 + $0x510] ss:$24 sps:$4 sm:$0xff]   ;;  %v5142_v9 = vld [vmem:[%s5859_s19 + $0x540] ss:$24 sps:$4 sm:$0xff]  }
 0x204   : > { %v2345_v15 = vadd.f32 1.0, %v5269_v8  ;;  %v2349_v17 = vmul.f32 %v2341_v7, %v2285_v12  ;;  %v5139_v6 = vld [vmem:[%s5859_s19 + $0x518] ss:$24 sps:$4 sm:$0xff]   ;;  %v5144_v7 = vld [vmem:[%s5859_s19 + $0x544] ss:$24 sps:$4 sm:$0xff]  }
 0x205   : > { %v2352_v45 = vmul.f32 %v2344_v11, %v2288_v10  ;;  %v5147_v8 = vld [vmem:[%s5859_s19 + $0x54c] ss:$24 sps:$4 sm:$0xff]   ;;  %v5145_v10 = vld [vmem:[%s5859_s19 + $0x548] ss:$24 sps:$4 sm:$0xff]   ;;  %v5153_v12 = vld [vmem:[%s5859_s19 + $0x57c] ss:$24 sps:$4 sm:$0xff]  }
 0x206   : > { %v2353_v18 = vmul.f32 %v2345_v15, %v2289_v14  ;;  %v5150_v11 = vld [vmem:[%s5859_s19 + $0x574] ss:$24 sps:$4 sm:$0xff]   ;;  %v5148_v14 = vld [vmem:[%s5859_s19 + $0x570] ss:$24 sps:$4 sm:$0xff]  }
 0x207   : > { %v6177_v19 = vpack.c.bf16 %v2352_v45, %v2348_v16  ;;  %v5151_v15 = vld [vmem:[%s5859_s19 + $0x578] ss:$24 sps:$4 sm:$0xff]   ;;  %v5156_v16 = vld [vmem:[%s5859_s19 + $0x5a4] ss:$24 sps:$4 sm:$0xff]  }
 0x208   : > { %v6179_v20 = vpack.c.bf16 %v2353_v18, %v2349_v17  ;;  %v5159_v45 = vld [vmem:[%s5859_s19 + $0x5ac] ss:$24 sps:$4 sm:$0xff]   ;;  %v5154_v17 = vld [vmem:[%s5859_s19 + $0x5a0] ss:$24 sps:$4 sm:$0xff]  }
 0x209   : > { %v5157_v18 = vld [vmem:[%s5859_s19 + $0x5a8] ss:$24 sps:$4 sm:$0xff]  }
 0x20a   : > { %3556 = vmatprep.mubr.bf16.mxu0 %v6179_v20  ;;  %3642 = vmatprep.mubr.bf16.mxu1 %v6179_v20 }
 0x20b   : > { %3557 = vmatmul.mubr.bf16.vlgmr.msra.gmra.mrb[4].mxu0 %v6177_v19  ;;  %3643 = vmatmul.mubr.bf16.vlgmr.msra.gmra.mrb[8].mxu1 %v6177_v19 }
 0x20c   : > { %3568 = vmatpush1.bf16.msra.mxu0 %v5070_v21  ;;  %3654 = vmatpush1.bf16.msra.mxu1 %v5073_v23  ;;  %v5162_v21 = vld [vmem:[%s5859_s19 + $0x5d4] ss:$24 sps:$4 sm:$0xff]  }
 0x20d   : > { %3569 = vmatprep.subr.bf16.mxu0 %v5078_v24  ;;  %3655 = vmatprep.subr.bf16.mxu1 %v5081_v25  ;;  %v5165_v23 = vld [vmem:[%s5859_s19 + $0x5dc] ss:$24 sps:$4 sm:$0xff]   ;;  %v5160_v24 = vld [vmem:[%s5859_s19 + $0x5d0] ss:$24 sps:$4 sm:$0xff]  }
 0x20e   : > { %v5163_v25 = vld [vmem:[%s5859_s19 + $0x5d8] ss:$24 sps:$4 sm:$0xff]  }
 0x210   : > { %3570 = vmatpush1.bf16.msra.mxu0 %v5076_v26  ;;  %3656 = vmatpush1.bf16.msra.mxu1 %v5079_v27  ;;  %v5168_v26 = vld [vmem:[%s5859_s19 + $0x14] ss:$24 sps:$4 sm:$0xff]   ;;  %v6249_v27 = vsub.s32 2, %v6158_v30 }
 0x211   : > { %3571 = vmatprep.subr.bf16.mxu0 %v5084_v28  ;;  %3657 = vmatprep.subr.bf16.mxu1 %v5087_v29  ;;  %v6252_v28 = vsub.s32 3, %v6158_v30 }
 0x212   : > { %v1057_v29 = vrot.slane %v6168_v31, %v6249_v27 }
 0x214   : > { %3572 = vmatpush1.bf16.msra.mxu0 %v5082_v32  ;;  %3658 = vmatpush1.bf16.msra.mxu1 %v5085_v33  ;;  %v1061_v32 = vrot.slane %v6168_v31, %v6252_v28 }
 0x215   : > { %3573 = vmatprep.subr.bf16.mxu0 %v5090_v34  ;;  %3659 = vmatprep.subr.bf16.mxu1 %v5093_v35 }
 0x218   : > { %3574 = vmatpush1.bf16.msra.mxu0 %v5088_v36  ;;  %3660 = vmatpush1.bf16.msra.mxu1 %v5091_v37 }
 0x219   : > { %3575 = vmatprep.subr.bf16.mxu0 %v5096_v38  ;;  %3661 = vmatprep.subr.bf16.mxu1 %v5099_v39 }
 0x21c   : > { %3576 = vmatpush1.bf16.msra.mxu0 %v5094_v40  ;;  %3662 = vmatpush1.bf16.msra.mxu1 %v5097_v41 }
 0x21d   : > { %3577 = vmatprep.subr.bf16.mxu0 %v5102_v42  ;;  %3663 = vmatprep.subr.bf16.mxu1 %v5105_v43 }
 0x220   : > { %3578 = vmatpush1.bf16.msra.mxu0 %v5100_v44  ;;  %3664 = vmatpush1.bf16.msra.mxu1 %v5103_v46 }
 0x221   : > { %3579 = vmatprep.subr.bf16.mxu0 %v5108_v47  ;;  %3665 = vmatprep.subr.bf16.mxu1 %v5111_v48 }
 0x224   : > { %3580 = vmatpush1.bf16.msra.mxu0 %v5106_v49  ;;  %3666 = vmatpush1.bf16.msra.mxu1 %v5109_v50 }
 0x225   : > { %3581 = vmatprep.subr.bf16.mxu0 %v5114_v51  ;;  %3667 = vmatprep.subr.bf16.mxu1 %v5117_v52 }
 0x228   : > { %3582 = vmatpush1.bf16.msra.mxu0 %v5112_v53  ;;  %3668 = vmatpush1.bf16.msra.mxu1 %v5115_v54 }
 0x229   : > { %3583 = vmatprep.subr.bf16.mxu0 %v5120_v55  ;;  %3669 = vmatprep.subr.bf16.mxu1 %v5123_v57 }
 0x22c   : > { %3584 = vmatpush1.bf16.msra.mxu0 %v5118_v58  ;;  %3670 = vmatpush1.bf16.msra.mxu1 %v5121_v59 }
 0x22d   : > { %3585 = vmatprep.subr.bf16.mxu0 %v5126_v60  ;;  %3671 = vmatprep.subr.bf16.mxu1 %v5129_v61 }
 0x230   : > { %3586 = vmatpush1.bf16.msra.mxu0 %v5124_v62  ;;  %3672 = vmatpush1.bf16.msra.mxu1 %v5127_v63 }
 0x231   : > { %3587 = vmatprep.subr.bf16.mxu0 %v5132_v0  ;;  %3673 = vmatprep.subr.bf16.mxu1 %v5135_v1 }
 0x234   : > { %3588 = vmatpush1.bf16.msra.mxu0 %v5130_v22  ;;  %3674 = vmatpush1.bf16.msra.mxu1 %v5133_v2 }
 0x235   : > { %3589 = vmatprep.subr.bf16.mxu0 %v5138_v3  ;;  %3675 = vmatprep.subr.bf16.mxu1 %v5141_v4 }
 0x238   : > { %3590 = vmatpush1.bf16.msra.mxu0 %v5136_v5  ;;  %3676 = vmatpush1.bf16.msra.mxu1 %v5139_v6 }
 0x239   : > { %3591 = vmatprep.subr.bf16.mxu0 %v5144_v7  ;;  %3677 = vmatprep.subr.bf16.mxu1 %v5147_v8 }
 0x23c   : > { %3592 = vmatpush1.bf16.msra.mxu0 %v5142_v9  ;;  %3678 = vmatpush1.bf16.msra.mxu1 %v5145_v10 }
 0x23d   : > { %3593 = vmatprep.subr.bf16.mxu0 %v5150_v11  ;;  %3679 = vmatprep.subr.bf16.mxu1 %v5153_v12 }
 0x240   : > { %3594 = vmatpush1.bf16.msra.mxu0 %v5148_v14  ;;  %3680 = vmatpush1.bf16.msra.mxu1 %v5151_v15 }
 0x241   : > { %3595 = vmatprep.subr.bf16.mxu0 %v5156_v16  ;;  %3681 = vmatprep.subr.bf16.mxu1 %v5159_v45  ;;  %v5166_v16 = vld [vmem:[%s5859_s19 + $0x10] ss:$24 sps:$4 sm:$0xff]   ;;  %v5171_v45 = vld [vmem:[%s5859_s19 + $0x44] ss:$24 sps:$4 sm:$0xff]  }
 0x244   : > { %3596 = vmatpush1.bf16.msra.mxu0 %v5154_v17  ;;  %3682 = vmatpush1.bf16.msra.mxu1 %v5157_v18  ;;  %v5169_v17 = vld [vmem:[%s5859_s19 + $0x40] ss:$24 sps:$4 sm:$0xff]   ;;  %v5174_v18 = vld [vmem:[%s5859_s19 + $0x74] ss:$24 sps:$4 sm:$0xff]  }
 0x245   : > { %3597 = vmatprep.subr.bf16.mxu0 %v5162_v21  ;;  %3683 = vmatprep.subr.bf16.mxu1 %v5165_v23  ;;  %v5172_v21 = vld [vmem:[%s5859_s19 + $0x70] ss:$24 sps:$4 sm:$0xff]   ;;  %v5177_v23 = vld [vmem:[%s5859_s19 + $0xa4] ss:$24 sps:$4 sm:$0xff]  }
 0x248   : > { %3598 = vmatpush1.bf16.msra.mxu0 %v5160_v24  ;;  %3684 = vmatpush1.bf16.msra.mxu1 %v5163_v25  ;;  %v5175_v24 = vld [vmem:[%s5859_s19 + $0xa0] ss:$24 sps:$4 sm:$0xff]   ;;  %v5180_v25 = vld [vmem:[%s5859_s19 + $0xd4] ss:$24 sps:$4 sm:$0xff]  }
 0x249   : > { %3696 = vmatprep.subr.bf16.mxu0 %v5168_v26  ;;  %v5178_v26 = vld [vmem:[%s5859_s19 + $0xd0] ss:$24 sps:$4 sm:$0xff]  }
 0x268   : > { %v2275_v33 = vpop.f32.mrb[4].mxu1 }
 0x269   : > { %v4597_v34 = vadd.f32 %v2275_v33, %v1057_v29  ;;  %v2277_v35 = vpop.f32.mrb[5].mxu1  ;;  %v5184_v33 = vld [vmem:[%s5859_s19 + $0x130] ss:$24 sps:$4 sm:$0xff]  }
 0x26a   : > { %v4598_v36 = vadd.f32 %v2277_v35, %v1061_v32  ;;  %v2279_v37 = vpop.f32.mrb[6].mxu1  ;;  %v5187_v35 = vld [vmem:[%s5859_s19 + $0x160] ss:$24 sps:$4 sm:$0xff]  }
 0x26b   : > { %v2294_v38 = vmul.f32 0.044715, %v4597_v34  ;;  %v4599_v39 = vadd.f32 %v2279_v37, %v1057_v29  ;;  %v2281_v40 = vpop.f32.mrb[7].mxu1  ;;  %v2286_v3 = vmul.f32 0.5, %v4597_v34  ;;  %v5181_v29 = vld [vmem:[%s5859_s19 + $0x100] ss:$24 sps:$4 sm:$0xff]  }
 0x26c   : > { %v2295_v41 = vmul.f32 0.044715, %v4598_v36  ;;  %v4600_v42 = vadd.f32 %v2281_v40, %v1061_v32  ;;  %v2287_v6 = vmul.f32 0.5, %v4598_v36  ;;  %v5186_v32 = vld [vmem:[%s5859_s19 + $0x134] ss:$24 sps:$4 sm:$0xff]  }
 0x26d   : > { %v2302_v43 = vmul.f32 %v4597_v34, %v2294_v38  ;;  %v2298_v44 = vmul.f32 0.044715, %v4599_v39  ;;  %v2290_v4 = vmul.f32 0.5, %v4599_v39  ;;  %v5190_v37 = vld [vmem:[%s5859_s19 + $0x190] ss:$24 sps:$4 sm:$0xff]  }
 0x26e   : > { %v2303_v46 = vmul.f32 %v4598_v36, %v2295_v41  ;;  %v2299_v47 = vmul.f32 0.044715, %v4600_v42  ;;  %v2291_v7 = vmul.f32 0.5, %v4600_v42  ;;  %v5195_v38 = vld [vmem:[%s5859_s19 + $0x1c4] ss:$24 sps:$4 sm:$0xff]  }
 0x26f   : > { %v2310_v48 = vmul.f32 %v4597_v34, %v2302_v43  ;;  %v2306_v49 = vmul.f32 %v4599_v39, %v2298_v44  ;;  %v5198_v40 = vld [vmem:[%s5859_s19 + $0x1f4] ss:$24 sps:$4 sm:$0xff]   ;;  %v5196_v41 = vld [vmem:[%s5859_s19 + $0x1f0] ss:$24 sps:$4 sm:$0xff]   ;;  %v5199_v43 = vld [vmem:[%s5859_s19 + $0x220] ss:$24 sps:$4 sm:$0xff]  }
 0x270   : > { %v2311_v50 = vmul.f32 %v4598_v36, %v2303_v46  ;;  %v2307_v51 = vmul.f32 %v4600_v42, %v2299_v47  ;;  %v5204_v44 = vld [vmem:[%s5859_s19 + $0x254] ss:$24 sps:$4 sm:$0xff]   ;;  %v5202_v46 = vld [vmem:[%s5859_s19 + $0x250] ss:$24 sps:$4 sm:$0xff]   ;;  %v5207_v47 = vld [vmem:[%s5859_s19 + $0x284] ss:$24 sps:$4 sm:$0xff]  }
 0x271   : > { %v2318_v52 = vadd.f32 %v4597_v34, %v2310_v48  ;;  %v2314_v31 = vmul.f32 %v4599_v39, %v2306_v49  ;;  %v5189_v34 = vld [vmem:[%s5859_s19 + $0x164] ss:$24 sps:$4 sm:$0xff]   ;;  %v5205_v48 = vld [vmem:[%s5859_s19 + $0x280] ss:$24 sps:$4 sm:$0xff]   ;;  %v5210_v49 = vld [vmem:[%s5859_s19 + $0x2b4] ss:$24 sps:$4 sm:$0xff]  }
 0x272   : > { %v2315_v53 = vmul.f32 %v4600_v42, %v2307_v51  ;;  %v2319_v54 = vadd.f32 %v4598_v36, %v2311_v50  ;;  %v5192_v36 = vld [vmem:[%s5859_s19 + $0x194] ss:$24 sps:$4 sm:$0xff]   ;;  %v5208_v50 = vld [vmem:[%s5859_s19 + $0x2b0] ss:$24 sps:$4 sm:$0xff]   ;;  %v5213_v51 = vld [vmem:[%s5859_s19 + $0x2e4] ss:$24 sps:$4 sm:$0xff]  }
 0x273   : > { %v2326_v55 = vmul.f32 0.7978846, %v2318_v52  ;;  %v2322_v57 = vadd.f32 %v4599_v39, %v2314_v31  ;;  %v5193_v39 = vld [vmem:[%s5859_s19 + $0x1c0] ss:$24 sps:$4 sm:$0xff]   ;;  %v5216_v31 = vld [vmem:[%s5859_s19 + $0x314] ss:$24 sps:$4 sm:$0xff]  }
 0x274   : > { %v2323_v58 = vadd.f32 %v4600_v42, %v2315_v53  ;;  %v2327_v59 = vmul.f32 0.7978846, %v2319_v54  ;;  %v5201_v42 = vld [vmem:[%s5859_s19 + $0x224] ss:$24 sps:$4 sm:$0xff]   ;;  %v5211_v52 = vld [vmem:[%s5859_s19 + $0x2e0] ss:$24 sps:$4 sm:$0xff]  }
 0x275   : > { %5270 = vtanh.f32 %v2326_v55  ;;  %v2330_v60 = vmul.f32 0.7978846, %v2322_v57  ;;  %v5214_v53 = vld [vmem:[%s5859_s19 + $0x310] ss:$24 sps:$4 sm:$0xff]   ;;  %v5219_v54 = vld [vmem:[%s5859_s19 + $0x344] ss:$24 sps:$4 sm:$0xff]  }
 0x276   : > { %v2331_v61 = vmul.f32 0.7978846, %v2323_v58  ;;  %5272 = vtanh.f32 %v2327_v59  ;;  %v5217_v55 = vld [vmem:[%s5859_s19 + $0x340] ss:$24 sps:$4 sm:$0xff]   ;;  %v5222_v57 = vld [vmem:[%s5859_s19 + $0x374] ss:$24 sps:$4 sm:$0xff]  }
 0x277   : > { %5274 = vtanh.f32 %v2330_v60  ;;  %v5220_v58 = vld [vmem:[%s5859_s19 + $0x370] ss:$24 sps:$4 sm:$0xff]   ;;  %v5225_v59 = vld [vmem:[%s5859_s19 + $0x3a4] ss:$24 sps:$4 sm:$0xff]   ;;  %v5223_v60 = vld [vmem:[%s5859_s19 + $0x3a0] ss:$24 sps:$4 sm:$0xff]  }
 0x278   : > { %5276 = vtanh.f32 %v2331_v61  ;;  %v5226_v61 = vld [vmem:[%s5859_s19 + $0x3d0] ss:$24 sps:$4 sm:$0xff]  }
 0x27f   : > { %v5271_v62 = vpop.eup %5270 }
 0x280   : > { %v5273_v63 = vpop.eup %5272  ;;  %v2342_v0 = vadd.f32 1.0, %v5271_v62  ;;  %v5231_v62 = vld [vmem:[%s5859_s19 + $0x404] ss:$24 sps:$4 sm:$0xff]  }
 0x281   : > { %v5275_v1 = vpop.eup %5274  ;;  %v2343_v22 = vadd.f32 1.0, %v5273_v63  ;;  %v5229_v63 = vld [vmem:[%s5859_s19 + $0x400] ss:$24 sps:$4 sm:$0xff]  }
 0x282   : > { %v5277_v2 = vpop.eup %5276  ;;  %v2346_v5 = vadd.f32 1.0, %v5275_v1  ;;  %v2350_v9 = vmul.f32 %v2342_v0, %v2286_v3  ;;  %v5234_v0 = vld [vmem:[%s5859_s19 + $0x434] ss:$24 sps:$4 sm:$0xff]   ;;  %v5232_v1 = vld [vmem:[%s5859_s19 + $0x430] ss:$24 sps:$4 sm:$0xff]  }
 0x283   : > { %v2347_v8 = vadd.f32 1.0, %v5277_v2  ;;  %v2351_v11 = vmul.f32 %v2343_v22, %v2287_v6  ;;  %v5237_v22 = vld [vmem:[%s5859_s19 + $0x464] ss:$24 sps:$4 sm:$0xff]   ;;  %v5235_v2 = vld [vmem:[%s5859_s19 + $0x460] ss:$24 sps:$4 sm:$0xff]  }
 0x284   : > { %v2354_v10 = vmul.f32 %v2346_v5, %v2290_v4  ;;  %v5240_v3 = vld [vmem:[%s5859_s19 + $0x494] ss:$24 sps:$4 sm:$0xff]   ;;  %v5238_v4 = vld [vmem:[%s5859_s19 + $0x490] ss:$24 sps:$4 sm:$0xff]   ;;  %v5243_v5 = vld [vmem:[%s5859_s19 + $0x4c4] ss:$24 sps:$4 sm:$0xff]  }
 0x285   : > { %v2355_v12 = vmul.f32 %v2347_v8, %v2291_v7  ;;  %v5241_v6 = vld [vmem:[%s5859_s19 + $0x4c0] ss:$24 sps:$4 sm:$0xff]   ;;  %v5246_v7 = vld [vmem:[%s5859_s19 + $0x4f4] ss:$24 sps:$4 sm:$0xff]   ;;  %v5244_v8 = vld [vmem:[%s5859_s19 + $0x4f0] ss:$24 sps:$4 sm:$0xff]  }
 0x286   : > { %v6258_v14 = vpack.c.bf16 %v2354_v10, %v2350_v9  ;;  %v5249_v9 = vld [vmem:[%s5859_s19 + $0x524] ss:$24 sps:$4 sm:$0xff]   ;;  %v5247_v10 = vld [vmem:[%s5859_s19 + $0x520] ss:$24 sps:$4 sm:$0xff]  }
 0x287   : > { %v6260_v15 = vpack.c.bf16 %v2355_v12, %v2351_v11  ;;  %v5252_v11 = vld [vmem:[%s5859_s19 + $0x554] ss:$24 sps:$4 sm:$0xff]   ;;  %v5250_v12 = vld [vmem:[%s5859_s19 + $0x550] ss:$24 sps:$4 sm:$0xff]  }
 0x289   : > { %3599 = vmatprep.mubr.bf16.mxu0 %v6260_v15  ;;  %3685 = vmatprep.mubr.bf16.mxu1 %v6260_v15 }
 0x28a   : > { %3600 = vmatmul.mubr.bf16.vlgmr.msra.gmra.mrb[4].mxu0 %v6258_v14  ;;  %3686 = vmatmul.mubr.bf16.vlgmr.msra.gmra.mrb[8].mxu1 %v6258_v14 }
 0x28b   : > { %3697 = vmatpush1.bf16.msra.mxu0 %v5166_v16  ;;  %3728 = vmatprep.mubr.bf16.mxu0 %v6179_v20  ;;  %v5183_v20 = vld [vmem:[%s5859_s19 + $0x104] ss:$24 sps:$4 sm:$0xff]   ;;  %v5253_v16 = vld [vmem:[%s5859_s19 + $0x580] ss:$24 sps:$4 sm:$0xff]  }
 0x28c   : > { %3698 = vmatprep.subr.bf16.mxu0 %v5171_v45  ;;  %v5258_v45 = vld [vmem:[%s5859_s19 + $0x5b4] ss:$24 sps:$4 sm:$0xff]  }
 0x28f   : > { %3699 = vmatpush1.bf16.msra.mxu0 %v5169_v17  ;;  %v5256_v17 = vld [vmem:[%s5859_s19 + $0x5b0] ss:$24 sps:$4 sm:$0xff]  }
 0x290   : > { %3700 = vmatprep.subr.bf16.mxu0 %v5174_v18  ;;  %v5261_v18 = vld [vmem:[%s5859_s19 + $0x5e4] ss:$24 sps:$4 sm:$0xff]  }
 0x293   : > { %3701 = vmatpush1.bf16.msra.mxu0 %v5172_v21  ;;  %v5259_v21 = vld [vmem:[%s5859_s19 + $0x5e0] ss:$24 sps:$4 sm:$0xff]  }
 0x294   : > { %3702 = vmatprep.subr.bf16.mxu0 %v5177_v23  ;;  %v2356_v23 = vld [vmem:[#allocation2] sm:$0xff] }
 0x297   : > { %3703 = vmatpush1.bf16.msra.mxu0 %v5175_v24  ;;  %v2358_v24 = vld [vmem:[#allocation2 + $0x10] sm:$0xff] }
 0x298   : > { %3704 = vmatprep.subr.bf16.mxu0 %v5180_v25  ;;  %v2357_v25 = vld [vmem:[#allocation2 + $0x8] sm:$0xff] }
 0x29b   : > { %3705 = vmatpush1.bf16.msra.mxu0 %v5178_v26  ;;  %v2359_v26 = vld [vmem:[#allocation2 + $0x18] sm:$0xff] }
 0x29c   : > { %3706 = vmatprep.subr.bf16.mxu0 %v5183_v20 }
 0x29f   : > { %3707 = vmatpush1.bf16.msra.mxu0 %v5181_v29 }
 0x2a0   : > { %3708 = vmatprep.subr.bf16.mxu0 %v5186_v32  ;;  %v2362_v32 = vld [vmem:[#allocation2 + $0x30] sm:$0xff] }
 0x2a3   : > { %3709 = vmatpush1.bf16.msra.mxu0 %v5184_v33  ;;  %v2364_v33 = vld [vmem:[#allocation2 + $0x40] sm:$0xff] }
 0x2a4   : > { %3710 = vmatprep.subr.bf16.mxu0 %v5189_v34 }
 0x2a7   : > { %3711 = vmatpush1.bf16.msra.mxu0 %v5187_v35 }
 0x2a8   : > { %3712 = vmatprep.subr.bf16.mxu0 %v5192_v36 }
 0x2ab   : > { %3713 = vmatpush1.bf16.msra.mxu0 %v5190_v37 }
 0x2ac   : > { %3714 = vmatprep.subr.bf16.mxu0 %v5195_v38  ;;  %v2363_v38 = vld [vmem:[#allocation2 + $0x38] sm:$0xff] }
 0x2af   : > { %3715 = vmatpush1.bf16.msra.mxu0 %v5193_v39  ;;  %v2365_v39 = vld [vmem:[#allocation2 + $0x48] sm:$0xff] }
 0x2b0   : > { %3716 = vmatprep.subr.bf16.mxu0 %v5198_v40 }
 0x2b3   : > { %3717 = vmatpush1.bf16.msra.mxu0 %v5196_v41 }
 0x2b4   : > { %3718 = vmatprep.subr.bf16.mxu0 %v5201_v42 }
 0x2b7   : > { %3719 = vmatpush1.bf16.msra.mxu0 %v5199_v43 }
 0x2b8   : > { %3720 = vmatprep.subr.bf16.mxu0 %v5204_v44 }
 0x2bb   : > { %3721 = vmatpush1.bf16.msra.mxu0 %v5202_v46 }
 0x2bc   : > { %3722 = vmatprep.subr.bf16.mxu0 %v5207_v47 }
 0x2bf   : > { %3723 = vmatpush1.bf16.msra.mxu0 %v5205_v48 }
 0x2c0   : > { %3724 = vmatprep.subr.bf16.mxu0 %v5210_v49 }
 0x2c3   : > { %3725 = vmatpush1.bf16.msra.mxu0 %v5208_v50  ;;  %v2360_v50 = vld [vmem:[#allocation2 + $0x20] sm:$0xff] }
 0x2c4   : > { %3726 = vmatprep.subr.bf16.mxu0 %v5213_v51  ;;  %v2361_v51 = vld [vmem:[#allocation2 + $0x28] sm:$0xff] }
 0x2c7   : > { %3727 = vmatpush1.bf16.msra.mxu0 %v5211_v52 }
 0x2c8   : > { %3739 = vmatprep.subr.bf16.mxu0 %v5216_v31  ;;  %v2366_v31 = vld [vmem:[#allocation2 + $0x50] sm:$0xff] }
 0x2ca   : > { %3729 = vmatmul.mubr.bf16.vlgmr.msra.gmra.mrb[8].mxu0 %v6177_v19  ;;  %v5228_v19 = vld [vmem:[%s5859_s19 + $0x3d4] ss:$24 sps:$4 sm:$0xff]  }
 0x2cb   : > { %3740 = vmatpush1.bf16.msra.mxu0 %v5214_v53  ;;  %3771 = vmatprep.mubr.bf16.mxu0 %v6260_v15  ;;  %v5255_v15 = vld [vmem:[%s5859_s19 + $0x584] ss:$24 sps:$4 sm:$0xff]  }
 0x2cc   : > { %3741 = vmatprep.subr.bf16.mxu0 %v5219_v54 }
 0x2cf   : > { %3742 = vmatpush1.bf16.msra.mxu0 %v5217_v55  ;;  %v2367_v55 = vld [vmem:[#allocation2 + $0x58] sm:$0xff] }
 0x2d0   : > { %3743 = vmatprep.subr.bf16.mxu0 %v5222_v57 }
 0x2d3   : > { %3744 = vmatpush1.bf16.msra.mxu0 %v5220_v58 }
 0x2d4   : > { %3745 = vmatprep.subr.bf16.mxu0 %v5225_v59 }
 0x2d7   : > { %3746 = vmatpush1.bf16.msra.mxu0 %v5223_v60 }
 0x2d8   : > { %3747 = vmatprep.subr.bf16.mxu0 %v5228_v19 }
 0x2db   : > { %3748 = vmatpush1.bf16.msra.mxu0 %v5226_v61  ;;  %v6335_v61 = vsub.s32 (!%p4585_p0), 4, %v6158_v30 }
 0x2dc   : > { %3749 = vmatprep.subr.bf16.mxu0 %v5231_v62  ;;  %v6338_v62 = vsub.s32 (!%p4585_p0), 5, %v6158_v30 }
 0x2df   : > { %3750 = vmatpush1.bf16.msra.mxu0 %v5229_v63 }
 0x2e0   : > { %3751 = vmatprep.subr.bf16.mxu0 %v5234_v0 }
 0x2e3   : > { %3752 = vmatpush1.bf16.msra.mxu0 %v5232_v1 }
 0x2e4   : > { %3753 = vmatprep.subr.bf16.mxu0 %v5237_v22 }
 0x2e7   : > { %3754 = vmatpush1.bf16.msra.mxu0 %v5235_v2  ;;  %v3822_v2 = vld [vmem:[%s6446_s4] sm:$0x3f] (!%p4585_p0) }
 0x2e8   : > { %3755 = vmatprep.subr.bf16.mxu0 %v5240_v3  ;;  %v3843_v30 = vrot.slane (!%p4585_p0), %v3822_v2, %v6335_v61 }
 0x2eb   : > { %3756 = vmatpush1.bf16.msra.mxu0 %v5238_v4  ;;  %v3827_v4 = vrot.slane (!%p4585_p0), %v3822_v2, %v6161_v13 }
 0x2ec   : > { %3757 = vmatprep.subr.bf16.mxu0 %v5243_v5  ;;  %v3831_v5 = vrot.slane (!%p4585_p0), %v3822_v2, %v6171_v56 }
 0x2ef   : > { %3758 = vmatpush1.bf16.msra.mxu0 %v5241_v6  ;;  %v3835_v6 = vrot.slane (!%p4585_p0), %v3822_v2, %v6249_v27 }
 0x2f0   : > { %3759 = vmatprep.subr.bf16.mxu0 %v5246_v7  ;;  %v3839_v7 = vrot.slane (!%p4585_p0), %v3822_v2, %v6252_v28 }
 0x2f3   : > { %3760 = vmatpush1.bf16.msra.mxu0 %v5244_v8  ;;  %v3847_v8 = vrot.slane (!%p4585_p0), %v3822_v2, %v6338_v62 }
 0x2f4   : > { %3761 = vmatprep.subr.bf16.mxu0 %v5249_v9  ;;  %v3866_v9 = vld [vmem:[%s5849_s24] sm:$0xff] (!%p4585_p0) }
 0x2f7   : > { %3762 = vmatpush1.bf16.msra.mxu0 %v5247_v10  ;;  %v3867_v10 = vld [vmem:[%s5849_s24 + $0x8] sm:$0xff] (!%p4585_p0) }
 0x2f8   : > { %3763 = vmatprep.subr.bf16.mxu0 %v5252_v11  ;;  %v3868_v11 = vld [vmem:[%s5849_s24 + $0x10] sm:$0xff] (!%p4585_p0) }
 0x2fb   : > { %3764 = vmatpush1.bf16.msra.mxu0 %v5250_v12 }
 0x2fc   : > { %3765 = vmatprep.subr.bf16.mxu0 %v5255_v15 }
 0x2ff   : > { %3766 = vmatpush1.bf16.msra.mxu0 %v5253_v16 }
 0x300   : > { %3767 = vmatprep.subr.bf16.mxu0 %v5258_v45 }
 0x303   : > { %3768 = vmatpush1.bf16.msra.mxu0 %v5256_v17 }
 0x304   : > { %3769 = vmatprep.subr.bf16.mxu0 %v5261_v18  ;;  %v3869_v18 = vld [vmem:[%s5849_s24 + $0x18] sm:$0xff] (!%p4585_p0) }
 0x307   : > { %3770 = vmatpush1.bf16.msra.mxu0 %v5259_v21 }
 0x30a   : > { %3772 = vmatmul.mubr.bf16.vlgmr.msra.gmra.mrb[8].mxu0 %v6258_v14 }
 0x35d   : > { %v3601_v20 = vpop.f32.mrb[4].mxu0  ;;  %v3687_v29 = vpop.f32.mrb[8].mxu1 }
 0x35e   : > { %v3782_v34 = vadd.f32 %v3601_v20, %v2356_v23  ;;  %v3784_v35 = vadd.f32 %v3687_v29, %v2358_v24  ;;  %v3603_v36 = vpop.f32.mrb[5].mxu0  ;;  %v3689_v37 = vpop.f32.mrb[9].mxu1  ;;  %v3870_v20 = vld [vmem:[%s5849_s24 + $0x20] sm:$0xff] (!%p4585_p0) }
 0x35f   : > { %v3783_v40 = vadd.f32 %v3603_v36, %v2357_v25  ;;  %v3785_v41 = vadd.f32 %v3689_v37, %v2359_v26  ;;  %v3605_v42 = vpop.f32.mrb[6].mxu0  ;;  %v3691_v43 = vpop.f32.mrb[10].mxu1 }
 0x360   : > { %3794 = vst [vmem:[#allocation2] sm:$0xff] %v3782_v34  ;;  %3796 = vst [vmem:[#allocation2 + $0x10] sm:$0xff] %v3784_v35  ;;  %v3788_v14 = vadd.f32 %v3605_v42, %v2362_v32  ;;  %v3790_v44 = vadd.f32 %v3691_v43, %v2364_v33  ;;  %v3607_v46 = vpop.f32.mrb[7].mxu0  ;;  %v3693_v47 = vpop.f32.mrb[11].mxu1  ;;  %v3871_v33 = vld [vmem:[%s5849_s24 + $0x28] sm:$0xff] (!%p4585_p0) }
 0x361   : > { %3795 = vst [vmem:[#allocation2 + $0x8] sm:$0xff] %v3783_v40  ;;  %3797 = vst [vmem:[#allocation2 + $0x18] sm:$0xff] %v3785_v41  ;;  %v3789_v48 = vadd.f32 %v3607_v46, %v2363_v38  ;;  %v3791_v49 = vadd.f32 %v3693_v47, %v2365_v39  ;;  %v3872_v39 = vld [vmem:[%s5849_s24 + $0x30] sm:$0xff] (!%p4585_p0)  ;;  %v3873_v40 = vld [vmem:[%s5849_s24 + $0x38] sm:$0xff] (!%p4585_p0) }
 0x362   : > { %3800 = vst [vmem:[#allocation2 + $0x30] sm:$0xff] %v3788_v14  ;;  %3802 = vst [vmem:[#allocation2 + $0x40] sm:$0xff] %v3790_v44  ;;  %v3874_v44 = vld [vmem:[%s5849_s24 + $0x40] sm:$0xff] (!%p4585_p0) }
 0x363   : > { %3801 = vst [vmem:[#allocation2 + $0x38] sm:$0xff] %v3789_v48  ;;  %3803 = vst [vmem:[#allocation2 + $0x48] sm:$0xff] %v3791_v49 }
 0x367   : > { %v3810_v63 = vld [vmem:[#allocation2] sm:$0xff] (!%p4585_p0)  ;;  %v3812_v1 = vld [vmem:[#allocation2 + $0x10] sm:$0xff] (!%p4585_p0) }
 0x368   : > { %v3811_v0 = vld [vmem:[#allocation2 + $0x8] sm:$0xff] (!%p4585_p0)  ;;  %v3813_v22 = vld [vmem:[#allocation2 + $0x18] sm:$0xff] (!%p4585_p0)  ;;  %v3854_v15 = vadd.f32 (!%p4585_p0), %v3827_v4, %v3810_v63  ;;  %v3856_v45 = vadd.f32 (!%p4585_p0), %v3835_v6, %v3812_v1 }
 0x369   : > { %v3855_v16 = vadd.f32 (!%p4585_p0), %v3831_v5, %v3811_v0  ;;  %v3857_v17 = vadd.f32 (!%p4585_p0), %v3839_v7, %v3813_v22  ;;  %v3816_v29 = vld [vmem:[#allocation2 + $0x30] sm:$0xff] (!%p4585_p0)  ;;  %v3818_v36 = vld [vmem:[#allocation2 + $0x40] sm:$0xff] (!%p4585_p0) }
 0x36a   : > { %v3878_v23 = vadd.f32 (!%p4585_p0), %v3866_v9, %v3854_v15  ;;  %v3880_v25 = vadd.f32 (!%p4585_p0), %v3868_v11, %v3856_v45  ;;  %v3817_v32 = vld [vmem:[#allocation2 + $0x38] sm:$0xff] (!%p4585_p0)  ;;  %v3819_v37 = vld [vmem:[#allocation2 + $0x48] sm:$0xff] (!%p4585_p0)  ;;  %v3860_v43 = vadd.f32 (!%p4585_p0), %v3827_v4, %v3816_v29  ;;  %v3862_v48 = vadd.f32 (!%p4585_p0), %v3835_v6, %v3818_v36 }
 0x36b   : > { %v3879_v24 = vadd.f32 (!%p4585_p0), %v3867_v10, %v3855_v16  ;;  %v3881_v34 = vadd.f32 (!%p4585_p0), %v3869_v18, %v3857_v17  ;;  %v3861_v14 = vadd.f32 (!%p4585_p0), %v3831_v5, %v3817_v32  ;;  %v3863_v49 = vadd.f32 (!%p4585_p0), %v3839_v7, %v3819_v37 }
 0x36d   : > { %v3892_v35 = vadd.f32 (!%p4585_p0), %v3879_v24, %v3878_v23 }
 0x36f   : > { %v3893_v42 = vadd.f32 (!%p4585_p0), %v3892_v35, %v3880_v25 }
 0x3dd   : > { %v3773_v52 = vpop.f32.mrb[8].mxu0  ;;  %3809 = sbr.rel (%p4585_p0) target bundleno = 1337 (0x539), region = 83 }
 0x3de   : > { %v3786_v53 = vadd.f32 %v3773_v52, %v2360_v50  ;;  %v3775_v54 = vpop.f32.mrb[9].mxu0  ;;  %v3875_v50 = vld [vmem:[%s5849_s24 + $0x48] sm:$0xff] (!%p4585_p0) }
 0x3df   : > { %v3787_v57 = vadd.f32 %v3775_v54, %v2361_v51  ;;  %v3777_v58 = vpop.f32.mrb[10].mxu0  ;;  %v3894_v51 = vadd.f32 (!%p4585_p0), %v3893_v42, %v3881_v34  ;;  %v3876_v54 = vld [vmem:[%s5849_s24 + $0x50] sm:$0xff] (!%p4585_p0) }
 0x3e0   : > { %3798 = vst [vmem:[#allocation2 + $0x20] sm:$0xff] %v3786_v53  ;;  %v3792_v59 = vadd.f32 %v3777_v58, %v2366_v31  ;;  %v3779_v60 = vpop.f32.mrb[11].mxu0  ;;  %v3884_v31 = vadd.f32 (!%p4585_p0), %v3872_v39, %v3860_v43  ;;  %v3885_v53 = vadd.f32 (!%p4585_p0), %v3873_v40, %v3861_v14 }
 0x3e1   : > { %3799 = vst [vmem:[#allocation2 + $0x28] sm:$0xff] %v3787_v57  ;;  %v3793_v19 = vadd.f32 %v3779_v60, %v2367_v55  ;;  %v3886_v55 = vadd.f32 (!%p4585_p0), %v3874_v44, %v3862_v48 }
 0x3e2   : > { %3804 = vst [vmem:[#allocation2 + $0x50] sm:$0xff] %v3792_v59  ;;  %v3887_v59 = vadd.f32 (!%p4585_p0), %v3875_v50, %v3863_v49  ;;  %v3899_v60 = vadd.f32 (!%p4585_p0), %v3885_v53, %v3884_v31 }
 0x3e3   : > { %3805 = vst [vmem:[#allocation2 + $0x58] sm:$0xff] %v3793_v19  ;;  %v3877_v19 = vld [vmem:[%s5849_s24 + $0x58] sm:$0xff] (!%p4585_p0) }
 0x3e4   : > { %v3900_v1 = vadd.f32 %v3899_v60, %v3886_v55 }
 0x3e6   : > { %v3901_v2 = vadd.f32 %v3900_v1, %v3887_v59 }
 0x3e7   : > { %v3814_v3 = vld [vmem:[#allocation2 + $0x20] sm:$0xff] }
 0x3e8   : > { %v3815_v12 = vld [vmem:[#allocation2 + $0x28] sm:$0xff]  ;;  %v3858_v21 = vadd.f32 %v3843_v30, %v3814_v3 }
 0x3e9   : > { %v3859_v26 = vadd.f32 %v3847_v8, %v3815_v12  ;;  %v3820_v38 = vld [vmem:[#allocation2 + $0x50] sm:$0xff] }
 0x3ea   : > { %v3882_v41 = vadd.f32 %v3870_v20, %v3858_v21  ;;  %v3821_v47 = vld [vmem:[#allocation2 + $0x58] sm:$0xff]  ;;  %v3864_v52 = vadd.f32 %v3843_v30, %v3820_v38 }
 0x3eb   : > { %v3883_v46 = vadd.f32 %v3871_v33, %v3859_v26  ;;  %v3865_v58 = vadd.f32 %v3847_v8, %v3821_v47 }
 0x3ec   : > { %v3895_v57 = vadd.f32 %v3894_v51, %v3882_v41  ;;  %v3888_v0 = vadd.f32 %v3876_v54, %v3864_v52  ;;  %v3890_v54 = vld [vmem:[%s6448_s6] sm:$0x3f] }
 0x3ed   : > { %v3889_v22 = vadd.f32 %v3877_v19, %v3865_v58  ;;  %v3973_v58 = vrot.slane %v3890_v54, %v6171_v56  ;;  %v3981_v60 = vrot.slane %v3890_v54, %v6252_v28  ;;  %v3985_v19 = vrot.slane %v3890_v54, %v6335_v61 }
 0x3ee   : > { %v3896_v63 = vadd.f32 %v3895_v57, %v3883_v46  ;;  %v3902_v3 = vadd.f32 %v3901_v2, %v3888_v0  ;;  %v3969_v57 = vrot.slane %v3890_v54, %v6161_v13 }
 0x3f0   : > { %3897 = vadd.xlane.f32.xlu0 %v3896_v63  ;;  %v3903_v4 = vadd.f32 %v3902_v3, %v3889_v22  ;;  %v3989_v63 = vrot.slane %v3890_v54, %v6338_v62 }
 0x3f4   : > { %3904 = vadd.xlane.f32.xlu0 %v3903_v4 }
 0x47d   : > { %v3898_v5 = vpop.xlane.xlu0 %3897 }
 0x47e   : > { %v3907_v6 = vmul.f32 0.0013020834, %v3898_v5 }
 0x480   : > { %v3909_v7 = vsub.f32 %v3878_v23, %v3907_v6  ;;  %v3910_v30 = vsub.f32 %v3879_v24, %v3907_v6  ;;  %v3911_v9 = vsub.f32 %v3880_v25, %v3907_v6  ;;  %v3912_v10 = vsub.f32 %v3881_v34, %v3907_v6 }
 0x481   : > { %v3905_v12 = vpop.xlane.xlu0 %3904  ;;  %v3913_v15 = vsub.f32 %v3882_v41, %v3907_v6  ;;  %v3914_v18 = vsub.f32 %v3883_v46, %v3907_v6 }
 0x482   : > { %v3921_v11 = vmul.f32 %v3909_v7, %v3909_v7  ;;  %v3922_v8 = vmul.f32 %v3910_v30, %v3910_v30  ;;  %v3908_v16 = vmul.f32 0.0013020834, %v3905_v12  ;;  %v3923_v45 = vmul.f32 %v3911_v9, %v3911_v9 }
 0x483   : > { %v3924_v21 = vmul.f32 %v3912_v10, %v3912_v10  ;;  %v3925_v23 = vmul.f32 %v3913_v15, %v3913_v15  ;;  %v3926_v35 = vmul.f32 %v3914_v18, %v3914_v18 }
 0x484   : > { %v3933_v17 = vadd.f32 %v3922_v8, %v3921_v11  ;;  %v6361_v20 = vsub.f32 %v3884_v31, %v3908_v16  ;;  %v6363_v29 = vsub.f32 %v3885_v53, %v3908_v16  ;;  %v6365_v32 = vsub.f32 %v3886_v55, %v3908_v16  ;;  %v3891_v55 = vld [vmem:[%s6449_s7] sm:$0x3f] }
 0x485   : > { %v6367_v25 = vsub.f32 %v3887_v59, %v3908_v16  ;;  %v6373_v37 = vsub.f32 %v3888_v0, %v3908_v16  ;;  %v6377_v41 = vsub.f32 %v3889_v22, %v3908_v16  ;;  %v3977_v59 = vrot.slane %v3890_v54, %v6249_v27 }
 0x486   : > { %v3934_v26 = vadd.f32 %v3933_v17, %v3923_v45  ;;  %v3927_v33 = vmul.f32 %v6361_v20, %v6361_v20  ;;  %v3928_v34 = vmul.f32 %v6363_v29, %v6363_v29  ;;  %v3929_v38 = vmul.f32 %v6365_v32, %v6365_v32 }
 0x487   : > { %v3930_v42 = vmul.f32 %v6367_v25, %v6367_v25  ;;  %v3931_v14 = vmul.f32 %v6373_v37, %v6373_v37  ;;  %v3932_v46 = vmul.f32 %v6377_v41, %v6377_v41  ;;  %v4012_v1 = vrot.slane %v3891_v55, %v6161_v13 }
 0x488   : > { %v3935_v24 = vadd.f32 %v3934_v26, %v3924_v21  ;;  %v3940_v39 = vadd.f32 %v3928_v34, %v3927_v33  ;;  %v4016_v22 = vrot.slane %v3891_v55, %v6171_v56  ;;  %v4020_v2 = vrot.slane %v3891_v55, %v6249_v27 }
 0x489   : > { %v4024_v3 = vrot.slane %v3891_v55, %v6252_v28  ;;  %v4028_v8 = vrot.slane %v3891_v55, %v6335_v61  ;;  %v4032_v12 = vrot.slane %v3891_v55, %v6338_v62 }
 0x48a   : > { %v3936_v36 = vadd.f32 %v3935_v24, %v3925_v23  ;;  %v3941_v43 = vadd.f32 %v3940_v39, %v3929_v38 }
 0x48c   : > { %v3937_v40 = vadd.f32 %v3936_v36, %v3926_v35  ;;  %v3942_v44 = vadd.f32 %v3941_v43, %v3930_v42 }
 0x48e   : > { %3938 = vadd.xlane.f32.xlu1 %v3937_v40  ;;  %v3943_v47 = vadd.f32 %v3942_v44, %v3931_v14 }
 0x490   : > { %v3944_v48 = vadd.f32 %v3943_v47, %v3932_v46 }
 0x492   : > { %3945 = vadd.xlane.f32.xlu1 %v3944_v48 }
 0x51b   : > { %v3939_v49 = vpop.xlane.xlu1 %3938 }
 0x51c   : > { %v3947_v50 = vmul.f32 0.0013020834, %v3939_v49 }
 0x51e   : > { %v3949_v51 = vadd.f32 1e-12, %v3947_v50 }
 0x51f   : > { %v3946_v52 = vpop.xlane.xlu1 %3945 }
 0x520   : > { %5278 = vrsqrt.f32 %v3949_v51  ;;  %v3948_v31 = vmul.f32 0.0013020834, %v3946_v52 }
 0x522   : > { %v3950_v53 = vadd.f32 1e-12, %v3948_v31 }
 0x524   : > { %5280 = vrsqrt.f32 %v3950_v53 }
 0x52a   : > { %v5279_v0 = vpop.eup %5278 }
 0x52b   : > { %v3953_v4 = vmul.f32 %v5279_v0, %v3909_v7  ;;  %v3954_v5 = vmul.f32 %v5279_v0, %v3910_v30  ;;  %v3955_v6 = vmul.f32 %v5279_v0, %v3911_v9  ;;  %v3956_v11 = vmul.f32 %v5279_v0, %v3912_v10 }
 0x52c   : > { %v3957_v16 = vmul.f32 %v5279_v0, %v3913_v15  ;;  %v3958_v45 = vmul.f32 %v5279_v0, %v3914_v18 }
 0x52d   : > { %v3996_v13 = vmul.f32 %v3969_v57, %v3953_v4  ;;  %v3997_v56 = vmul.f32 %v3973_v58, %v3954_v5  ;;  %v3998_v17 = vmul.f32 %v3977_v59, %v3955_v6  ;;  %v3999_v27 = vmul.f32 %v3981_v60, %v3956_v11 }
 0x52e   : > { %v4000_v21 = vmul.f32 %v3985_v19, %v3957_v16  ;;  %v4001_v28 = vmul.f32 %v3989_v63, %v3958_v45  ;;  %v5281_v10 = vpop.eup %5280 }
 0x52f   : > { %v4039_v7 = vadd.f32 %v4012_v1, %v3996_v13  ;;  %v4040_v30 = vadd.f32 %v4016_v22, %v3997_v56  ;;  %v4041_v9 = vadd.f32 %v4020_v2, %v3998_v17  ;;  %v4042_v61 = vadd.f32 %v4024_v3, %v3999_v27 }
 0x530   : > { %v4043_v62 = vadd.f32 %v4028_v8, %v4000_v21  ;;  %v4044_v26 = vadd.f32 %v4032_v12, %v4001_v28  ;;  %v3959_v15 = vmul.f32 %v5281_v10, %v6361_v20  ;;  %v3960_v18 = vmul.f32 %v5281_v10, %v6363_v29 }
 0x531   : > { %4051 = vst [vmem:[%s5854_s25] sm:$0xff] %v4039_v7  ;;  %4052 = vst [vmem:[%s5854_s25 + $0x8] sm:$0xff] %v4040_v30  ;;  %v3961_v23 = vmul.f32 %v5281_v10, %v6365_v32  ;;  %v3962_v24 = vmul.f32 %v5281_v10, %v6367_v25  ;;  %v3963_v33 = vmul.f32 %v5281_v10, %v6373_v37 }
 0x532   : > { %4053 = vst [vmem:[%s5854_s25 + $0x10] sm:$0xff] %v4041_v9  ;;  %4054 = vst [vmem:[%s5854_s25 + $0x18] sm:$0xff] %v4042_v61  ;;  %v3964_v34 = vmul.f32 %v5281_v10, %v6377_v41  ;;  %v4002_v35 = vmul.f32 %v3969_v57, %v3959_v15  ;;  %v4003_v36 = vmul.f32 %v3973_v58, %v3960_v18 }
 0x533   : > { %4055 = vst [vmem:[%s5854_s25 + $0x20] sm:$0xff] %v4043_v62  ;;  %4056 = vst [vmem:[%s5854_s25 + $0x28] sm:$0xff] %v4044_v26  ;;  %v4004_v20 = vmul.f32 %v3977_v59, %v3961_v23  ;;  %v4005_v29 = vmul.f32 %v3981_v60, %v3962_v24  ;;  %v4006_v38 = vmul.f32 %v3985_v19, %v3963_v33 }
 0x534   : > { %v4007_v32 = vmul.f32 %v3989_v63, %v3964_v34  ;;  %v4045_v39 = vadd.f32 %v4012_v1, %v4002_v35  ;;  %v4046_v25 = vadd.f32 %v4016_v22, %v4003_v36 }
 0x535   : > { %v4047_v40 = vadd.f32 %v4020_v2, %v4004_v20  ;;  %v4048_v42 = vadd.f32 %v4024_v3, %v4005_v29  ;;  %v4049_v43 = vadd.f32 %v4028_v8, %v4006_v38 }
 0x536   : > { %v4050_v14 = vadd.f32 %v4032_v12, %v4007_v32  ;;  %4057 = vst [vmem:[%s5854_s25 + $0x30] sm:$0xff] %v4045_v39  ;;  %4058 = vst [vmem:[%s5854_s25 + $0x38] sm:$0xff] %v4046_v25 }
 0x537   : > { %4059 = vst [vmem:[%s5854_s25 + $0x40] sm:$0xff] %v4047_v40  ;;  %4060 = vst [vmem:[%s5854_s25 + $0x48] sm:$0xff] %v4048_v42 }
 0x538   : > { %4061 = vst [vmem:[%s5854_s25 + $0x50] sm:$0xff] %v4049_v43  ;;  %4062 = vst [vmem:[%s5854_s25 + $0x58] sm:$0xff] %v4050_v14 }
 0x539 PF: > { %s18_s11 = sadd.s32 1, %s5336_s11   ;;  %s6458_s30 = sld [smem:[#allocation4_spill]] }
 0x53a   : > { %p15_p1 = scmp.ge.s32.totalorder %s18_s11, 14   ;;  %s6459_s17 = sld [smem:[#allocation5_spill]] }
 0x53b   : > { %s6460_s10 = sld [smem:[#allocation6_spill]]  ;;  %s6461_s27 = smov %s5316_s28 }
 0x53c   : > { %s6462_s28 = smov %s5433_s16  ;;  %s6463_s29 = smov %s5328_s9 }
 0x53d   :  { %17 = sbr.rel (!%p15_p1) target bundleno = 6 (0x6), region = 130 }
 0x540   : > { %s6464_s9 = smov %s6459_s17 }

// kernel: bert_classifier_forward.19
= control target key start
LH: loop header
LB: loop body
LE: loop exit
PB: predicated region body
PF: predicated region fallthrough
CT: control target
= control target key end

     0   :  { %v3682_v36 = vmov 1983009808   ;;  %v30_v38 = vlaneseq  ;;  %s4799_s0 = inlined_call_operand.vmem [shape: f32[2,768], index: 0, kind: input, shape index: {}]   ;;  %s4800_s1 = inlined_call_operand.vmem [shape: bf16[768,768], index: 1, kind: input, shape index: {}]   ;;  %s4801_s2 = inlined_call_operand.vmem [shape: f32[1,768], index: 2, kind: input, shape index: {}]   ;;  %s4802_s3 = inlined_call_operand.vmem [shape: bf16[768,128], index: 3, kind: input, shape index: {}]   ;;  %s4803_s4 = inlined_call_operand.vmem [shape: f32[1,128], index: 4, kind: input, shape index: {}]   ;;  %s4804_s5 = inlined_call_operand.hbm [shape: f32[2,128], index: 5, kind: output, shape index: {}]  }
   0x1   :  { %v3165_v0 = vld [vmem:[%s4800_s1 + $0x4] ss:$24 sps:$4 sm:$0xff]   ;;  %v3169_v2 = vld [vmem:[%s4800_s1] ss:$24 sps:$4 sm:$0xff]   ;;  %v3171_v4 = vld [vmem:[%s4800_s1 + $0x34] ss:$24 sps:$4 sm:$0xff]   ;;  %v28_v37 = vunpack.c.l.s4 %v3682_v36 }
   0x2   :  { %v3167_v1 = vld [vmem:[%s4800_s1 + $0x304] ss:$24 sps:$4 sm:$0xff]   ;;  %1823 = vmatprep.subr.bf16.mxu1 %v3165_v0  ;;  %v3170_v3 = vld [vmem:[%s4800_s1 + $0x300] ss:$24 sps:$4 sm:$0xff]   ;;  %v3173_v5 = vld [vmem:[%s4800_s1 + $0x334] ss:$24 sps:$4 sm:$0xff]  }
   0x3   :  { %1864 = vmatprep.subr.bf16.mxu0 %v3167_v1  ;;  %1824 = vmatpush1.bf16.msra.mxu1 %v3169_v2  ;;  %v3175_v6 = vld [vmem:[%s4800_s1 + $0x30] ss:$24 sps:$4 sm:$0xff]   ;;  %v3177_v8 = vld [vmem:[%s4800_s1 + $0x64] ss:$24 sps:$4 sm:$0xff]   ;;  %v3181_v10 = vld [vmem:[%s4800_s1 + $0x60] ss:$24 sps:$4 sm:$0xff]   ;;  %v29_v42 = vunpack.c.0.s8 %v28_v37 }
   0x4   :  { %1865 = vmatpush1.bf16.msra.mxu0 %v3170_v3  ;;  %1825 = vmatprep.subr.bf16.mxu1 %v3171_v4  ;;  %v3176_v7 = vld [vmem:[%s4800_s1 + $0x330] ss:$24 sps:$4 sm:$0xff]   ;;  %v3179_v9 = vld [vmem:[%s4800_s1 + $0x364] ss:$24 sps:$4 sm:$0xff]   ;;  %v3182_v11 = vld [vmem:[%s4800_s1 + $0x360] ss:$24 sps:$4 sm:$0xff]  }
   0x5   :  { %1866 = vmatprep.subr.bf16.mxu0 %v3173_v5  ;;  %v3183_v12 = vld [vmem:[%s4800_s1 + $0x94] ss:$24 sps:$4 sm:$0xff]   ;;  %v3187_v14 = vld [vmem:[%s4800_s1 + $0x90] ss:$24 sps:$4 sm:$0xff]   ;;  %v3189_v16 = vld [vmem:[%s4800_s1 + $0xc4] ss:$24 sps:$4 sm:$0xff]  }
   0x6   :  { %v3185_v13 = vld [vmem:[%s4800_s1 + $0x394] ss:$24 sps:$4 sm:$0xff]   ;;  %v3188_v15 = vld [vmem:[%s4800_s1 + $0x390] ss:$24 sps:$4 sm:$0xff]   ;;  %v3191_v17 = vld [vmem:[%s4800_s1 + $0x3c4] ss:$24 sps:$4 sm:$0xff]  }
   0x7   :  { %1826 = vmatpush1.bf16.msra.mxu1 %v3175_v6  ;;  %v3193_v18 = vld [vmem:[%s4800_s1 + $0xc0] ss:$24 sps:$4 sm:$0xff]   ;;  %v3195_v20 = vld [vmem:[%s4800_s1 + $0xf4] ss:$24 sps:$4 sm:$0xff]   ;;  %v3199_v22 = vld [vmem:[%s4800_s1 + $0xf0] ss:$24 sps:$4 sm:$0xff]  }
   0x8   :  { %1867 = vmatpush1.bf16.msra.mxu0 %v3176_v7  ;;  %1827 = vmatprep.subr.bf16.mxu1 %v3177_v8  ;;  %v3194_v19 = vld [vmem:[%s4800_s1 + $0x3c0] ss:$24 sps:$4 sm:$0xff]   ;;  %v3197_v21 = vld [vmem:[%s4800_s1 + $0x3f4] ss:$24 sps:$4 sm:$0xff]   ;;  %v3200_v23 = vld [vmem:[%s4800_s1 + $0x3f0] ss:$24 sps:$4 sm:$0xff]  }
   0x9   :  { %1868 = vmatprep.subr.bf16.mxu0 %v3179_v9  ;;  %v3201_v24 = vld [vmem:[%s4800_s1 + $0x124] ss:$24 sps:$4 sm:$0xff]   ;;  %v3205_v26 = vld [vmem:[%s4800_s1 + $0x120] ss:$24 sps:$4 sm:$0xff]   ;;  %v3207_v28 = vld [vmem:[%s4800_s1 + $0x154] ss:$24 sps:$4 sm:$0xff]  }
   0xa   :  { %v3203_v25 = vld [vmem:[%s4800_s1 + $0x424] ss:$24 sps:$4 sm:$0xff]   ;;  %v3206_v27 = vld [vmem:[%s4800_s1 + $0x420] ss:$24 sps:$4 sm:$0xff]   ;;  %v3209_v29 = vld [vmem:[%s4800_s1 + $0x454] ss:$24 sps:$4 sm:$0xff]  }
   0xb   :  { %1828 = vmatpush1.bf16.msra.mxu1 %v3181_v10  ;;  %v3211_v30 = vld [vmem:[%s4800_s1 + $0x150] ss:$24 sps:$4 sm:$0xff]   ;;  %v3213_v32 = vld [vmem:[%s4800_s1 + $0x184] ss:$24 sps:$4 sm:$0xff]   ;;  %v3217_v34 = vld [vmem:[%s4800_s1 + $0x180] ss:$24 sps:$4 sm:$0xff]  }
   0xc   :  { %1869 = vmatpush1.bf16.msra.mxu0 %v3182_v11  ;;  %1829 = vmatprep.subr.bf16.mxu1 %v3183_v12  ;;  %v3212_v31 = vld [vmem:[%s4800_s1 + $0x450] ss:$24 sps:$4 sm:$0xff]   ;;  %v3215_v33 = vld [vmem:[%s4800_s1 + $0x484] ss:$24 sps:$4 sm:$0xff]   ;;  %v3218_v35 = vld [vmem:[%s4800_s1 + $0x480] ss:$24 sps:$4 sm:$0xff]  }
   0xd   :  { %1870 = vmatprep.subr.bf16.mxu0 %v3185_v13  ;;  %v3219_v39 = vld [vmem:[%s4800_s1 + $0x1b4] ss:$24 sps:$4 sm:$0xff]   ;;  %v3223_v41 = vld [vmem:[%s4800_s1 + $0x1b0] ss:$24 sps:$4 sm:$0xff]   ;;  %v3831_v43 = vshrl.u32 %v30_v38, 7  ;;  %v22_v52 = vld [vmem:[%s4799_s0] sm:$0xff] }
   0xe   :  { %v3221_v40 = vld [vmem:[%s4800_s1 + $0x4b4] ss:$24 sps:$4 sm:$0xff]   ;;  %v3224_v44 = vld [vmem:[%s4800_s1 + $0x4b0] ss:$24 sps:$4 sm:$0xff]   ;;  %v3225_v45 = vld [vmem:[%s4800_s1 + $0x1e4] ss:$24 sps:$4 sm:$0xff]   ;;  %v26_v55 = vcombine.high %v22_v52, %v22_v52 }
   0xf   :  { %1830 = vmatpush1.bf16.msra.mxu1 %v3187_v14  ;;  %v3227_v46 = vld [vmem:[%s4800_s1 + $0x4e4] ss:$24 sps:$4 sm:$0xff]   ;;  %v3229_v47 = vld [vmem:[%s4800_s1 + $0x1e0] ss:$24 sps:$4 sm:$0xff]   ;;  %v32_v49 = vsub.s32 %v29_v42, %v3831_v43  ;;  %v3231_v50 = vld [vmem:[%s4800_s1 + $0x214] ss:$24 sps:$4 sm:$0xff]  }
  0x10   :  { %1871 = vmatpush1.bf16.msra.mxu0 %v3188_v15  ;;  %1831 = vmatprep.subr.bf16.mxu1 %v3189_v16  ;;  %v3230_v48 = vld [vmem:[%s4800_s1 + $0x4e0] ss:$24 sps:$4 sm:$0xff]   ;;  %v3233_v51 = vld [vmem:[%s4800_s1 + $0x514] ss:$24 sps:$4 sm:$0xff]   ;;  %v3235_v53 = vld [vmem:[%s4800_s1 + $0x210] ss:$24 sps:$4 sm:$0xff]  }
  0x11   :  { %1872 = vmatprep.subr.bf16.mxu0 %v3191_v17  ;;  %v33_v54 = vrot.slane %v22_v52, %v32_v49  ;;  %v3236_v56 = vld [vmem:[%s4800_s1 + $0x510] ss:$24 sps:$4 sm:$0xff]   ;;  %v3237_v57 = vld [vmem:[%s4800_s1 + $0x244] ss:$24 sps:$4 sm:$0xff]   ;;  %v40_v60 = vrot.slane %v26_v55, %v32_v49  ;;  %v3241_v61 = vld [vmem:[%s4800_s1 + $0x240] ss:$24 sps:$4 sm:$0xff]  }
  0x12   :  { %v3239_v58 = vld [vmem:[%s4800_s1 + $0x544] ss:$24 sps:$4 sm:$0xff]   ;;  %v3242_v0 = vld [vmem:[%s4800_s1 + $0x540] ss:$24 sps:$4 sm:$0xff]   ;;  %v3243_v1 = vld [vmem:[%s4800_s1 + $0x274] ss:$24 sps:$4 sm:$0xff]  }
  0x13   :  { %1832 = vmatpush1.bf16.msra.mxu1 %v3193_v18  ;;  %v41_v59 = vcombine.high %v33_v54, %v33_v54  ;;  %v42_v63 = vcombine.high %v40_v60, %v40_v60  ;;  %v3245_v2 = vld [vmem:[%s4800_s1 + $0x574] ss:$24 sps:$4 sm:$0xff]   ;;  %v3247_v4 = vld [vmem:[%s4800_s1 + $0x270] ss:$24 sps:$4 sm:$0xff]   ;;  %v3249_v6 = vld [vmem:[%s4800_s1 + $0x2a4] ss:$24 sps:$4 sm:$0xff]   ;;  %v3927_v17 = vpack.c.bf16 %v33_v54, %v33_v54  ;;  %v3929_v18 = vpack.c.bf16 %v40_v60, %v40_v60 }
  0x14   :  { %1873 = vmatpush1.bf16.msra.mxu0 %v3194_v19  ;;  %1833 = vmatprep.subr.bf16.mxu1 %v3195_v20  ;;  %v3248_v5 = vld [vmem:[%s4800_s1 + $0x570] ss:$24 sps:$4 sm:$0xff]   ;;  %v3251_v7 = vld [vmem:[%s4800_s1 + $0x5a4] ss:$24 sps:$4 sm:$0xff]   ;;  %v3253_v8 = vld [vmem:[%s4800_s1 + $0x2a0] ss:$24 sps:$4 sm:$0xff]  }
  0x15   :  { %1874 = vmatprep.subr.bf16.mxu0 %v3197_v21  ;;  %v3873_v62 = vpack.c.bf16 %v41_v59, %v41_v59  ;;  %v3884_v3 = vpack.c.bf16 %v42_v63, %v42_v63  ;;  %v3254_v9 = vld [vmem:[%s4800_s1 + $0x5a0] ss:$24 sps:$4 sm:$0xff]   ;;  %v3255_v10 = vld [vmem:[%s4800_s1 + $0x2d4] ss:$24 sps:$4 sm:$0xff]   ;;  %v3259_v12 = vld [vmem:[%s4800_s1 + $0x2d0] ss:$24 sps:$4 sm:$0xff]  }
  0x16   :  { %v3257_v11 = vld [vmem:[%s4800_s1 + $0x5d4] ss:$24 sps:$4 sm:$0xff]   ;;  %v3260_v13 = vld [vmem:[%s4800_s1 + $0x5d0] ss:$24 sps:$4 sm:$0xff]   ;;  %v3264_v14 = vld [vmem:[%s4800_s1 + $0x604] ss:$24 sps:$4 sm:$0xff]  }
  0x17   :  { %1834 = vmatpush1.bf16.msra.mxu1 %v3199_v22  ;;  %1855 = vmatprep.mubr.bf16.mxu1 %v3873_v62  ;;  %v3267_v15 = vld [vmem:[%s4800_s1 + $0xc] ss:$24 sps:$4 sm:$0xff]   ;;  %v3262_v16 = vld [vmem:[%s4800_s1 + $0x600] ss:$24 sps:$4 sm:$0xff]   ;;  %v3273_v21 = vld [vmem:[%s4800_s1 + $0x3c] ss:$24 sps:$4 sm:$0xff]  }
  0x18   :  { %1875 = vmatpush1.bf16.msra.mxu0 %v3200_v23  ;;  %1835 = vmatprep.subr.bf16.mxu1 %v3201_v24  ;;  %v3265_v19 = vld [vmem:[%s4800_s1 + $0x8] ss:$24 sps:$4 sm:$0xff]   ;;  %v3270_v20 = vld [vmem:[%s4800_s1 + $0x634] ss:$24 sps:$4 sm:$0xff]   ;;  %v3271_v23 = vld [vmem:[%s4800_s1 + $0x38] ss:$24 sps:$4 sm:$0xff]  }
  0x19   :  { %1876 = vmatprep.subr.bf16.mxu0 %v3203_v25  ;;  %1896 = vmatprep.mubr.bf16.mxu0 %v3884_v3  ;;  %v3268_v22 = vld [vmem:[%s4800_s1 + $0x630] ss:$24 sps:$4 sm:$0xff]   ;;  %v3276_v24 = vld [vmem:[%s4800_s1 + $0x664] ss:$24 sps:$4 sm:$0xff]   ;;  %v3294_v36 = vld [vmem:[%s4800_s1 + $0x6f4] ss:$24 sps:$4 sm:$0xff]  }
  0x1a   :  { %v3279_v25 = vld [vmem:[%s4800_s1 + $0x6c] ss:$24 sps:$4 sm:$0xff]   ;;  %v3297_v37 = vld [vmem:[%s4800_s1 + $0xfc] ss:$24 sps:$4 sm:$0xff]   ;;  %v3292_v38 = vld [vmem:[%s4800_s1 + $0x6f0] ss:$24 sps:$4 sm:$0xff]  }
  0x1b   :  { %1836 = vmatpush1.bf16.msra.mxu1 %v3205_v26  ;;  %v3274_v26 = vld [vmem:[%s4800_s1 + $0x660] ss:$24 sps:$4 sm:$0xff]   ;;  %v4006_v42 = vld.sshfl [vmem:[%s4799_s0 + $0x8] sm:$0x33 pattern:$0x76325410] }
  0x1c   :  { %1877 = vmatpush1.bf16.msra.mxu0 %v3206_v27  ;;  %1837 = vmatprep.subr.bf16.mxu1 %v3207_v28  ;;  %v3277_v27 = vld [vmem:[%s4800_s1 + $0x68] ss:$24 sps:$4 sm:$0xff]   ;;  %v3282_v28 = vld [vmem:[%s4800_s1 + $0x694] ss:$24 sps:$4 sm:$0xff]   ;;  %v3312_v52 = vld [vmem:[%s4800_s1 + $0x784] ss:$24 sps:$4 sm:$0xff]  }
  0x1d   :  { %1878 = vmatprep.subr.bf16.mxu0 %v3209_v29  ;;  %v3285_v29 = vld [vmem:[%s4800_s1 + $0x9c] ss:$24 sps:$4 sm:$0xff]   ;;  %v3310_v54 = vld [vmem:[%s4800_s1 + $0x780] ss:$24 sps:$4 sm:$0xff]  }
  0x1e   :  { %v3313_v55 = vld [vmem:[%s4800_s1 + $0x188] ss:$24 sps:$4 sm:$0xff]   ;;  %v3319_v59 = vld [vmem:[%s4800_s1 + $0x1b8] ss:$24 sps:$4 sm:$0xff]   ;;  %v3324_v60 = vld [vmem:[%s4800_s1 + $0x7e4] ss:$24 sps:$4 sm:$0xff]  }
  0x1f   :  { %1838 = vmatpush1.bf16.msra.mxu1 %v3211_v30  ;;  %v3280_v30 = vld [vmem:[%s4800_s1 + $0x690] ss:$24 sps:$4 sm:$0xff]   ;;  %v3322_v63 = vld [vmem:[%s4800_s1 + $0x7e0] ss:$24 sps:$4 sm:$0xff]  }
  0x20   :  { %1879 = vmatpush1.bf16.msra.mxu0 %v3212_v31  ;;  %1839 = vmatprep.subr.bf16.mxu1 %v3213_v32  ;;  %v3283_v31 = vld [vmem:[%s4800_s1 + $0x98] ss:$24 sps:$4 sm:$0xff]   ;;  %v3288_v32 = vld [vmem:[%s4800_s1 + $0x6c4] ss:$24 sps:$4 sm:$0xff]  }
  0x21   :  { %1880 = vmatprep.subr.bf16.mxu0 %v3215_v33  ;;  %v3291_v33 = vld [vmem:[%s4800_s1 + $0xcc] ss:$24 sps:$4 sm:$0xff]  }
  0x23   :  { %1840 = vmatpush1.bf16.msra.mxu1 %v3217_v34  ;;  %v3286_v34 = vld [vmem:[%s4800_s1 + $0x6c0] ss:$24 sps:$4 sm:$0xff]  }
  0x24   :  { %1881 = vmatpush1.bf16.msra.mxu0 %v3218_v35  ;;  %1841 = vmatprep.subr.bf16.mxu1 %v3219_v39  ;;  %v3289_v35 = vld [vmem:[%s4800_s1 + $0xc8] ss:$24 sps:$4 sm:$0xff]   ;;  %v3295_v39 = vld [vmem:[%s4800_s1 + $0xf8] ss:$24 sps:$4 sm:$0xff]  }
  0x25   :  { %1882 = vmatprep.subr.bf16.mxu0 %v3221_v40  ;;  %v3300_v40 = vld [vmem:[%s4800_s1 + $0x724] ss:$24 sps:$4 sm:$0xff]  }
  0x27   :  { %1842 = vmatpush1.bf16.msra.mxu1 %v3223_v41  ;;  %v3303_v41 = vld [vmem:[%s4800_s1 + $0x12c] ss:$24 sps:$4 sm:$0xff]  }
  0x28   :  { %1883 = vmatpush1.bf16.msra.mxu0 %v3224_v44  ;;  %1843 = vmatprep.subr.bf16.mxu1 %v3225_v45  ;;  %v50_v44 = vcombine.high %v4006_v42, %v4006_v42  ;;  %v3298_v45 = vld [vmem:[%s4800_s1 + $0x720] ss:$24 sps:$4 sm:$0xff]  }
  0x29   :  { %1884 = vmatprep.subr.bf16.mxu0 %v3227_v46  ;;  %v3301_v46 = vld [vmem:[%s4800_s1 + $0x128] ss:$24 sps:$4 sm:$0xff]  }
  0x2a   :  { %v4022_v49 = vpack.c.bf16 %v50_v44, %v50_v44  ;;  %v3385_v44 = vld [vmem:[%s4800_s1 + $0xd0] ss:$24 sps:$4 sm:$0xff]  }
  0x2b   :  { %1844 = vmatpush1.bf16.msra.mxu1 %v3229_v47  ;;  %v3306_v47 = vld [vmem:[%s4800_s1 + $0x754] ss:$24 sps:$4 sm:$0xff]  }
  0x2c   :  { %1885 = vmatpush1.bf16.msra.mxu0 %v3230_v48  ;;  %1845 = vmatprep.subr.bf16.mxu1 %v3231_v50  ;;  %v3309_v48 = vld [vmem:[%s4800_s1 + $0x15c] ss:$24 sps:$4 sm:$0xff]   ;;  %v3304_v50 = vld [vmem:[%s4800_s1 + $0x750] ss:$24 sps:$4 sm:$0xff]  }
  0x2d   :  { %1886 = vmatprep.subr.bf16.mxu0 %v3233_v51  ;;  %v3307_v51 = vld [vmem:[%s4800_s1 + $0x158] ss:$24 sps:$4 sm:$0xff]  }
  0x2f   :  { %1846 = vmatpush1.bf16.msra.mxu1 %v3235_v53  ;;  %v3315_v53 = vld [vmem:[%s4800_s1 + $0x18c] ss:$24 sps:$4 sm:$0xff]  }
  0x30   :  { %1887 = vmatpush1.bf16.msra.mxu0 %v3236_v56  ;;  %1847 = vmatprep.subr.bf16.mxu1 %v3237_v57  ;;  %v3318_v56 = vld [vmem:[%s4800_s1 + $0x7b4] ss:$24 sps:$4 sm:$0xff]  }
  0x31   :  { %1888 = vmatprep.subr.bf16.mxu0 %v3239_v58  ;;  %v3321_v57 = vld [vmem:[%s4800_s1 + $0x1bc] ss:$24 sps:$4 sm:$0xff]   ;;  %v3316_v58 = vld [vmem:[%s4800_s1 + $0x7b0] ss:$24 sps:$4 sm:$0xff]  }
  0x33   :  { %1848 = vmatpush1.bf16.msra.mxu1 %v3241_v61  ;;  %v3327_v61 = vld [vmem:[%s4800_s1 + $0x1ec] ss:$24 sps:$4 sm:$0xff]  }
  0x34   :  { %1889 = vmatpush1.bf16.msra.mxu0 %v3242_v0  ;;  %1849 = vmatprep.subr.bf16.mxu1 %v3243_v1  ;;  %v3325_v0 = vld [vmem:[%s4800_s1 + $0x1e8] ss:$24 sps:$4 sm:$0xff]   ;;  %v3330_v1 = vld [vmem:[%s4800_s1 + $0x814] ss:$24 sps:$4 sm:$0xff]  }
  0x35   :  { %1890 = vmatprep.subr.bf16.mxu0 %v3245_v2  ;;  %v3333_v2 = vld [vmem:[%s4800_s1 + $0x21c] ss:$24 sps:$4 sm:$0xff]  }
  0x37   :  { %1850 = vmatpush1.bf16.msra.mxu1 %v3247_v4  ;;  %v3328_v4 = vld [vmem:[%s4800_s1 + $0x810] ss:$24 sps:$4 sm:$0xff]  }
  0x38   :  { %1891 = vmatpush1.bf16.msra.mxu0 %v3248_v5  ;;  %1851 = vmatprep.subr.bf16.mxu1 %v3249_v6  ;;  %v3331_v5 = vld [vmem:[%s4800_s1 + $0x218] ss:$24 sps:$4 sm:$0xff]   ;;  %v3336_v6 = vld [vmem:[%s4800_s1 + $0x844] ss:$24 sps:$4 sm:$0xff]  }
  0x39   :  { %1892 = vmatprep.subr.bf16.mxu0 %v3251_v7  ;;  %v3339_v7 = vld [vmem:[%s4800_s1 + $0x24c] ss:$24 sps:$4 sm:$0xff]  }
  0x3b   :  { %1852 = vmatpush1.bf16.msra.mxu1 %v3253_v8  ;;  %v3334_v8 = vld [vmem:[%s4800_s1 + $0x840] ss:$24 sps:$4 sm:$0xff]  }
  0x3c   :  { %1893 = vmatpush1.bf16.msra.mxu0 %v3254_v9  ;;  %1853 = vmatprep.subr.bf16.mxu1 %v3255_v10  ;;  %v3337_v9 = vld [vmem:[%s4800_s1 + $0x248] ss:$24 sps:$4 sm:$0xff]   ;;  %v3342_v10 = vld [vmem:[%s4800_s1 + $0x874] ss:$24 sps:$4 sm:$0xff]  }
  0x3d   :  { %1894 = vmatprep.subr.bf16.mxu0 %v3257_v11  ;;  %v3345_v11 = vld [vmem:[%s4800_s1 + $0x27c] ss:$24 sps:$4 sm:$0xff]  }
  0x3f   :  { %1854 = vmatpush1.bf16.msra.mxu1 %v3259_v12  ;;  %v3340_v12 = vld [vmem:[%s4800_s1 + $0x870] ss:$24 sps:$4 sm:$0xff]  }
  0x40   :  { %1895 = vmatpush1.bf16.msra.mxu0 %v3260_v13  ;;  %1946 = vmatprep.subr.bf16.mxu1 %v3267_v15  ;;  %v3343_v13 = vld [vmem:[%s4800_s1 + $0x278] ss:$24 sps:$4 sm:$0xff]   ;;  %v3351_v15 = vld [vmem:[%s4800_s1 + $0x2ac] ss:$24 sps:$4 sm:$0xff]  }
  0x41   :  { %1905 = vmatprep.subr.bf16.mxu0 %v3264_v14  ;;  %v3348_v14 = vld [vmem:[%s4800_s1 + $0x8a4] ss:$24 sps:$4 sm:$0xff]  }
  0x42   :  { %1856 = vmatmul.mubr.bf16.vlgmr.msra.gmra.mrb[0].mxu1 %v3927_v17 }
  0x43   :  { %1897 = vmatmul.mubr.bf16.vlgmr.msra.gmra.mrb[0].mxu0 %v3929_v18  ;;  %1947 = vmatpush1.bf16.msra.mxu1 %v3265_v19  ;;  %v3349_v19 = vld [vmem:[%s4800_s1 + $0x2a8] ss:$24 sps:$4 sm:$0xff]  }
  0x44   :  { %1906 = vmatpush1.bf16.msra.mxu0 %v3262_v16  ;;  %1948 = vmatprep.subr.bf16.mxu1 %v3273_v21  ;;  %v3346_v16 = vld [vmem:[%s4800_s1 + $0x8a0] ss:$24 sps:$4 sm:$0xff]   ;;  %v3357_v21 = vld [vmem:[%s4800_s1 + $0x2dc] ss:$24 sps:$4 sm:$0xff]  }
  0x45   :  { %1907 = vmatprep.subr.bf16.mxu0 %v3270_v20  ;;  %1978 = vmatprep.mubr.bf16.mxu1 %v3873_v62  ;;  %v3354_v20 = vld [vmem:[%s4800_s1 + $0x8d4] ss:$24 sps:$4 sm:$0xff]  }
  0x46   :  { %1937 = vmatprep.mubr.bf16.mxu0 %v4022_v49 }
  0x47   :  { %1949 = vmatpush1.bf16.msra.mxu1 %v3271_v23  ;;  %v3355_v23 = vld [vmem:[%s4800_s1 + $0x2d8] ss:$24 sps:$4 sm:$0xff]  }
  0x48   :  { %1908 = vmatpush1.bf16.msra.mxu0 %v3268_v22  ;;  %1950 = vmatprep.subr.bf16.mxu1 %v3279_v25  ;;  %v3352_v22 = vld [vmem:[%s4800_s1 + $0x8d0] ss:$24 sps:$4 sm:$0xff]   ;;  %v3363_v25 = vld [vmem:[%s4800_s1 + $0x14] ss:$24 sps:$4 sm:$0xff]  }
  0x49   :  { %1909 = vmatprep.subr.bf16.mxu0 %v3276_v24  ;;  %v3360_v24 = vld [vmem:[%s4800_s1 + $0x30c] ss:$24 sps:$4 sm:$0xff]  }
  0x4b   :  { %1951 = vmatpush1.bf16.msra.mxu1 %v3277_v27  ;;  %v3358_v27 = vld [vmem:[%s4800_s1 + $0x308] ss:$24 sps:$4 sm:$0xff]  }
  0x4c   :  { %1910 = vmatpush1.bf16.msra.mxu0 %v3274_v26  ;;  %1952 = vmatprep.subr.bf16.mxu1 %v3285_v29  ;;  %v4135_v26 = vpack.c.bf16 %v4006_v42, %v4006_v42  ;;  %v3366_v29 = vld [vmem:[%s4800_s1 + $0x33c] ss:$24 sps:$4 sm:$0xff]   ;;  %v3382_v42 = vld [vmem:[%s4800_s1 + $0x3c8] ss:$24 sps:$4 sm:$0xff]  }
  0x4d   :  { %1911 = vmatprep.subr.bf16.mxu0 %v3282_v28  ;;  %v3361_v28 = vld [vmem:[%s4800_s1 + $0x10] ss:$24 sps:$4 sm:$0xff]  }
  0x4f   :  { %1953 = vmatpush1.bf16.msra.mxu1 %v3283_v31  ;;  %v3364_v31 = vld [vmem:[%s4800_s1 + $0x338] ss:$24 sps:$4 sm:$0xff]  }
  0x50   :  { %1912 = vmatpush1.bf16.msra.mxu0 %v3280_v30  ;;  %1954 = vmatprep.subr.bf16.mxu1 %v3291_v33  ;;  %v3369_v30 = vld [vmem:[%s4800_s1 + $0x44] ss:$24 sps:$4 sm:$0xff]  }
  0x51   :  { %1913 = vmatprep.subr.bf16.mxu0 %v3288_v32  ;;  %v3367_v32 = vld [vmem:[%s4800_s1 + $0x40] ss:$24 sps:$4 sm:$0xff]   ;;  %v3372_v33 = vld [vmem:[%s4800_s1 + $0x36c] ss:$24 sps:$4 sm:$0xff]  }
  0x53   :  { %1955 = vmatpush1.bf16.msra.mxu1 %v3289_v35  ;;  %v3370_v35 = vld [vmem:[%s4800_s1 + $0x368] ss:$24 sps:$4 sm:$0xff]  }
  0x54   :  { %1914 = vmatpush1.bf16.msra.mxu0 %v3286_v34  ;;  %1956 = vmatprep.subr.bf16.mxu1 %v3297_v37  ;;  %v3375_v34 = vld [vmem:[%s4800_s1 + $0x74] ss:$24 sps:$4 sm:$0xff]  }
  0x55   :  { %1915 = vmatprep.subr.bf16.mxu0 %v3294_v36  ;;  %v3373_v36 = vld [vmem:[%s4800_s1 + $0x70] ss:$24 sps:$4 sm:$0xff]   ;;  %v3378_v37 = vld [vmem:[%s4800_s1 + $0x39c] ss:$24 sps:$4 sm:$0xff]  }
  0x57   :  { %1957 = vmatpush1.bf16.msra.mxu1 %v3295_v39  ;;  %v3379_v39 = vld [vmem:[%s4800_s1 + $0xa0] ss:$24 sps:$4 sm:$0xff]  }
  0x58   :  { %1916 = vmatpush1.bf16.msra.mxu0 %v3292_v38  ;;  %1958 = vmatprep.subr.bf16.mxu1 %v3303_v41  ;;  %v3376_v38 = vld [vmem:[%s4800_s1 + $0x398] ss:$24 sps:$4 sm:$0xff]   ;;  %v3387_v41 = vld [vmem:[%s4800_s1 + $0xd4] ss:$24 sps:$4 sm:$0xff]  }
  0x59   :  { %1917 = vmatprep.subr.bf16.mxu0 %v3300_v40  ;;  %v3384_v40 = vld [vmem:[%s4800_s1 + $0x3cc] ss:$24 sps:$4 sm:$0xff]  }
  0x5b   :  { %1959 = vmatpush1.bf16.msra.mxu1 %v3301_v46  ;;  %v3393_v46 = vld [vmem:[%s4800_s1 + $0x104] ss:$24 sps:$4 sm:$0xff]  }
  0x5c   :  { %1918 = vmatpush1.bf16.msra.mxu0 %v3298_v45  ;;  %1960 = vmatprep.subr.bf16.mxu1 %v3309_v48  ;;  %v3390_v45 = vld [vmem:[%s4800_s1 + $0x3fc] ss:$24 sps:$4 sm:$0xff]   ;;  %v3391_v48 = vld [vmem:[%s4800_s1 + $0x100] ss:$24 sps:$4 sm:$0xff]  }
  0x5d   :  { %1919 = vmatprep.subr.bf16.mxu0 %v3306_v47  ;;  %v3388_v47 = vld [vmem:[%s4800_s1 + $0x3f8] ss:$24 sps:$4 sm:$0xff]  }
  0x5f   :  { %1961 = vmatpush1.bf16.msra.mxu1 %v3307_v51  ;;  %v3399_v51 = vld [vmem:[%s4800_s1 + $0x134] ss:$24 sps:$4 sm:$0xff]  }
  0x60   :  { %1920 = vmatpush1.bf16.msra.mxu0 %v3304_v50  ;;  %1962 = vmatprep.subr.bf16.mxu1 %v3315_v53  ;;  %v3396_v50 = vld [vmem:[%s4800_s1 + $0x42c] ss:$24 sps:$4 sm:$0xff]   ;;  %v3397_v53 = vld [vmem:[%s4800_s1 + $0x130] ss:$24 sps:$4 sm:$0xff]  }
  0x61   :  { %1921 = vmatprep.subr.bf16.mxu0 %v3312_v52  ;;  %v3394_v52 = vld [vmem:[%s4800_s1 + $0x428] ss:$24 sps:$4 sm:$0xff]  }
  0x63   :  { %1963 = vmatpush1.bf16.msra.mxu1 %v3313_v55  ;;  %v3405_v55 = vld [vmem:[%s4800_s1 + $0x164] ss:$24 sps:$4 sm:$0xff]  }
  0x64   :  { %1922 = vmatpush1.bf16.msra.mxu0 %v3310_v54  ;;  %1964 = vmatprep.subr.bf16.mxu1 %v3321_v57  ;;  %v3402_v54 = vld [vmem:[%s4800_s1 + $0x45c] ss:$24 sps:$4 sm:$0xff]   ;;  %v3403_v57 = vld [vmem:[%s4800_s1 + $0x160] ss:$24 sps:$4 sm:$0xff]  }
  0x65   :  { %1923 = vmatprep.subr.bf16.mxu0 %v3318_v56  ;;  %v3400_v56 = vld [vmem:[%s4800_s1 + $0x458] ss:$24 sps:$4 sm:$0xff]  }
  0x67   :  { %1965 = vmatpush1.bf16.msra.mxu1 %v3319_v59  ;;  %v3411_v59 = vld [vmem:[%s4800_s1 + $0x194] ss:$24 sps:$4 sm:$0xff]  }
  0x68   :  { %1924 = vmatpush1.bf16.msra.mxu0 %v3316_v58  ;;  %1966 = vmatprep.subr.bf16.mxu1 %v3327_v61  ;;  %v3408_v58 = vld [vmem:[%s4800_s1 + $0x48c] ss:$24 sps:$4 sm:$0xff]   ;;  %v3409_v61 = vld [vmem:[%s4800_s1 + $0x190] ss:$24 sps:$4 sm:$0xff]  }
  0x69   :  { %1925 = vmatprep.subr.bf16.mxu0 %v3324_v60  ;;  %v3406_v60 = vld [vmem:[%s4800_s1 + $0x488] ss:$24 sps:$4 sm:$0xff]  }
  0x6b   :  { %1967 = vmatpush1.bf16.msra.mxu1 %v3325_v0  ;;  %v3417_v0 = vld [vmem:[%s4800_s1 + $0x1c4] ss:$24 sps:$4 sm:$0xff]  }
  0x6c   :  { %1926 = vmatpush1.bf16.msra.mxu0 %v3322_v63  ;;  %1968 = vmatprep.subr.bf16.mxu1 %v3333_v2  ;;  %v3414_v63 = vld [vmem:[%s4800_s1 + $0x4bc] ss:$24 sps:$4 sm:$0xff]   ;;  %v3415_v2 = vld [vmem:[%s4800_s1 + $0x1c0] ss:$24 sps:$4 sm:$0xff]  }
  0x6d   :  { %1927 = vmatprep.subr.bf16.mxu0 %v3330_v1  ;;  %v3412_v1 = vld [vmem:[%s4800_s1 + $0x4b8] ss:$24 sps:$4 sm:$0xff]  }
  0x6f   :  { %1969 = vmatpush1.bf16.msra.mxu1 %v3331_v5  ;;  %v3423_v5 = vld [vmem:[%s4800_s1 + $0x1f4] ss:$24 sps:$4 sm:$0xff]  }
  0x70   :  { %1928 = vmatpush1.bf16.msra.mxu0 %v3328_v4  ;;  %1970 = vmatprep.subr.bf16.mxu1 %v3339_v7  ;;  %v3420_v4 = vld [vmem:[%s4800_s1 + $0x4ec] ss:$24 sps:$4 sm:$0xff]   ;;  %v3421_v7 = vld [vmem:[%s4800_s1 + $0x1f0] ss:$24 sps:$4 sm:$0xff]  }
  0x71   :  { %1929 = vmatprep.subr.bf16.mxu0 %v3336_v6  ;;  %v3418_v6 = vld [vmem:[%s4800_s1 + $0x4e8] ss:$24 sps:$4 sm:$0xff]  }
  0x73   :  { %1971 = vmatpush1.bf16.msra.mxu1 %v3337_v9  ;;  %v3429_v9 = vld [vmem:[%s4800_s1 + $0x224] ss:$24 sps:$4 sm:$0xff]  }
  0x74   :  { %1930 = vmatpush1.bf16.msra.mxu0 %v3334_v8  ;;  %1972 = vmatprep.subr.bf16.mxu1 %v3345_v11  ;;  %v3426_v8 = vld [vmem:[%s4800_s1 + $0x51c] ss:$24 sps:$4 sm:$0xff]   ;;  %v3427_v11 = vld [vmem:[%s4800_s1 + $0x220] ss:$24 sps:$4 sm:$0xff]  }
  0x75   :  { %1931 = vmatprep.subr.bf16.mxu0 %v3342_v10  ;;  %v3424_v10 = vld [vmem:[%s4800_s1 + $0x518] ss:$24 sps:$4 sm:$0xff]  }
  0x77   :  { %1973 = vmatpush1.bf16.msra.mxu1 %v3343_v13  ;;  %v3435_v13 = vld [vmem:[%s4800_s1 + $0x254] ss:$24 sps:$4 sm:$0xff]  }
  0x78   :  { %1932 = vmatpush1.bf16.msra.mxu0 %v3340_v12  ;;  %1974 = vmatprep.subr.bf16.mxu1 %v3351_v15  ;;  %v3432_v12 = vld [vmem:[%s4800_s1 + $0x54c] ss:$24 sps:$4 sm:$0xff]   ;;  %v3433_v15 = vld [vmem:[%s4800_s1 + $0x250] ss:$24 sps:$4 sm:$0xff]  }
  0x79   :  { %1933 = vmatprep.subr.bf16.mxu0 %v3348_v14  ;;  %v3430_v14 = vld [vmem:[%s4800_s1 + $0x548] ss:$24 sps:$4 sm:$0xff]  }
  0x7b   :  { %1975 = vmatpush1.bf16.msra.mxu1 %v3349_v19  ;;  %v3441_v19 = vld [vmem:[%s4800_s1 + $0x284] ss:$24 sps:$4 sm:$0xff]  }
  0x7c   :  { %1934 = vmatpush1.bf16.msra.mxu0 %v3346_v16  ;;  %1976 = vmatprep.subr.bf16.mxu1 %v3357_v21  ;;  %v3438_v16 = vld [vmem:[%s4800_s1 + $0x57c] ss:$24 sps:$4 sm:$0xff]   ;;  %v3439_v21 = vld [vmem:[%s4800_s1 + $0x280] ss:$24 sps:$4 sm:$0xff]  }
  0x7d   :  { %1935 = vmatprep.subr.bf16.mxu0 %v3354_v20  ;;  %v3436_v20 = vld [vmem:[%s4800_s1 + $0x578] ss:$24 sps:$4 sm:$0xff]  }
  0x7f   :  { %1977 = vmatpush1.bf16.msra.mxu1 %v3355_v23  ;;  %v3447_v23 = vld [vmem:[%s4800_s1 + $0x2b4] ss:$24 sps:$4 sm:$0xff]  }
  0x80   :  { %1936 = vmatpush1.bf16.msra.mxu0 %v3352_v22  ;;  %1987 = vmatprep.subr.bf16.mxu1 %v3360_v24  ;;  %v3444_v22 = vld [vmem:[%s4800_s1 + $0x5ac] ss:$24 sps:$4 sm:$0xff]   ;;  %v3442_v24 = vld [vmem:[%s4800_s1 + $0x5a8] ss:$24 sps:$4 sm:$0xff]  }
  0x81   :  { %2069 = vmatprep.subr.bf16.mxu0 %v3363_v25  ;;  %v3445_v25 = vld [vmem:[%s4800_s1 + $0x2b0] ss:$24 sps:$4 sm:$0xff]  }
  0x82   :  { %1979 = vmatmul.mubr.bf16.vlgmr.msra.gmra.mrb[4].mxu1 %v3927_v17 }
  0x83   :  { %1938 = vmatmul.mubr.bf16.vlgmr.msra.gmra.mrb[0].mxu0 %v4135_v26  ;;  %1988 = vmatpush1.bf16.msra.mxu1 %v3358_v27  ;;  %v3450_v27 = vld [vmem:[%s4800_s1 + $0x5dc] ss:$24 sps:$4 sm:$0xff]  }
  0x84   :  { %2070 = vmatpush1.bf16.msra.mxu0 %v3361_v28  ;;  %1989 = vmatprep.subr.bf16.mxu1 %v3366_v29  ;;  %v3453_v28 = vld [vmem:[%s4800_s1 + $0x2e4] ss:$24 sps:$4 sm:$0xff]   ;;  %v3448_v29 = vld [vmem:[%s4800_s1 + $0x5d8] ss:$24 sps:$4 sm:$0xff]  }
  0x85   :  { %2071 = vmatprep.subr.bf16.mxu0 %v3369_v30  ;;  %2019 = vmatprep.mubr.bf16.mxu1 %v3884_v3  ;;  %v3451_v30 = vld [vmem:[%s4800_s1 + $0x2e0] ss:$24 sps:$4 sm:$0xff]  }
  0x86   :  { %2101 = vmatprep.mubr.bf16.mxu0 %v3873_v62  ;;  %v3381_v62 = vld [vmem:[%s4800_s1 + $0xa4] ss:$24 sps:$4 sm:$0xff]  }
  0x87   :  { %1990 = vmatpush1.bf16.msra.mxu1 %v3364_v31  ;;  %v3456_v31 = vld [vmem:[%s4800_s1 + $0x60c] ss:$24 sps:$4 sm:$0xff]  }
  0x88   :  { %2072 = vmatpush1.bf16.msra.mxu0 %v3367_v32  ;;  %1991 = vmatprep.subr.bf16.mxu1 %v3372_v33  ;;  %v3459_v32 = vld [vmem:[%s4800_s1 + $0x314] ss:$24 sps:$4 sm:$0xff]   ;;  %v3454_v33 = vld [vmem:[%s4800_s1 + $0x608] ss:$24 sps:$4 sm:$0xff]  }
  0x89   :  { %2073 = vmatprep.subr.bf16.mxu0 %v3375_v34  ;;  %v3457_v34 = vld [vmem:[%s4800_s1 + $0x310] ss:$24 sps:$4 sm:$0xff]  }
  0x8b   :  { %1992 = vmatpush1.bf16.msra.mxu1 %v3370_v35  ;;  %v3462_v35 = vld [vmem:[%s4800_s1 + $0x63c] ss:$24 sps:$4 sm:$0xff]  }
  0x8c   :  { %2074 = vmatpush1.bf16.msra.mxu0 %v3373_v36  ;;  %1993 = vmatprep.subr.bf16.mxu1 %v3378_v37  ;;  %v3465_v36 = vld [vmem:[%s4800_s1 + $0x344] ss:$24 sps:$4 sm:$0xff]   ;;  %v3460_v37 = vld [vmem:[%s4800_s1 + $0x638] ss:$24 sps:$4 sm:$0xff]  }
  0x8d   :  { %2075 = vmatprep.subr.bf16.mxu0 %v3381_v62  ;;  %v3463_v62 = vld [vmem:[%s4800_s1 + $0x340] ss:$24 sps:$4 sm:$0xff]  }
  0x8f   :  { %1994 = vmatpush1.bf16.msra.mxu1 %v3376_v38  ;;  %v3468_v38 = vld [vmem:[%s4800_s1 + $0x66c] ss:$24 sps:$4 sm:$0xff]  }
  0x90   :  { %2076 = vmatpush1.bf16.msra.mxu0 %v3379_v39  ;;  %1995 = vmatprep.subr.bf16.mxu1 %v3384_v40  ;;  %v3466_v39 = vld [vmem:[%s4800_s1 + $0x668] ss:$24 sps:$4 sm:$0xff]  }
  0x91   :  { %2077 = vmatprep.subr.bf16.mxu0 %v3387_v41  ;;  %v3469_v40 = vld [vmem:[%s4800_s1 + $0x370] ss:$24 sps:$4 sm:$0xff]   ;;  %v3474_v41 = vld [vmem:[%s4800_s1 + $0x69c] ss:$24 sps:$4 sm:$0xff]  }
  0x93   :  { %1996 = vmatpush1.bf16.msra.mxu1 %v3382_v42  ;;  %v3477_v42 = vld [vmem:[%s4800_s1 + $0x3a4] ss:$24 sps:$4 sm:$0xff]  }
  0x94   :  { %2078 = vmatpush1.bf16.msra.mxu0 %v3385_v44  ;;  %1997 = vmatprep.subr.bf16.mxu1 %v3390_v45  ;;  %v3472_v44 = vld [vmem:[%s4800_s1 + $0x698] ss:$24 sps:$4 sm:$0xff]   ;;  %v3480_v45 = vld [vmem:[%s4800_s1 + $0x6cc] ss:$24 sps:$4 sm:$0xff]  }
  0x95   :  { %2079 = vmatprep.subr.bf16.mxu0 %v3393_v46  ;;  %v3483_v46 = vld [vmem:[%s4800_s1 + $0x3d4] ss:$24 sps:$4 sm:$0xff]  }
  0x97   :  { %1998 = vmatpush1.bf16.msra.mxu1 %v3388_v47  ;;  %v3478_v47 = vld [vmem:[%s4800_s1 + $0x6c8] ss:$24 sps:$4 sm:$0xff]  }
  0x98   :  { %2080 = vmatpush1.bf16.msra.mxu0 %v3391_v48  ;;  %1999 = vmatprep.subr.bf16.mxu1 %v3396_v50  ;;  %v3481_v48 = vld [vmem:[%s4800_s1 + $0x3d0] ss:$24 sps:$4 sm:$0xff]   ;;  %v3486_v50 = vld [vmem:[%s4800_s1 + $0x6fc] ss:$24 sps:$4 sm:$0xff]  }
  0x99   :  { %2081 = vmatprep.subr.bf16.mxu0 %v3399_v51  ;;  %v3489_v51 = vld [vmem:[%s4800_s1 + $0x404] ss:$24 sps:$4 sm:$0xff]  }
  0x9b   :  { %2000 = vmatpush1.bf16.msra.mxu1 %v3394_v52  ;;  %v3484_v52 = vld [vmem:[%s4800_s1 + $0x6f8] ss:$24 sps:$4 sm:$0xff]  }
  0x9c   :  { %2082 = vmatpush1.bf16.msra.mxu0 %v3397_v53  ;;  %2001 = vmatprep.subr.bf16.mxu1 %v3402_v54  ;;  %v3487_v53 = vld [vmem:[%s4800_s1 + $0x400] ss:$24 sps:$4 sm:$0xff]   ;;  %v3492_v54 = vld [vmem:[%s4800_s1 + $0x72c] ss:$24 sps:$4 sm:$0xff]  }
  0x9d   :  { %2083 = vmatprep.subr.bf16.mxu0 %v3405_v55  ;;  %v3495_v55 = vld [vmem:[%s4800_s1 + $0x434] ss:$24 sps:$4 sm:$0xff]  }
  0x9f   :  { %2002 = vmatpush1.bf16.msra.mxu1 %v3400_v56  ;;  %v3490_v56 = vld [vmem:[%s4800_s1 + $0x728] ss:$24 sps:$4 sm:$0xff]  }
  0xa0   :  { %2084 = vmatpush1.bf16.msra.mxu0 %v3403_v57  ;;  %2003 = vmatprep.subr.bf16.mxu1 %v3408_v58  ;;  %v3493_v57 = vld [vmem:[%s4800_s1 + $0x430] ss:$24 sps:$4 sm:$0xff]   ;;  %v3498_v58 = vld [vmem:[%s4800_s1 + $0x75c] ss:$24 sps:$4 sm:$0xff]  }
  0xa1   :  { %2085 = vmatprep.subr.bf16.mxu0 %v3411_v59  ;;  %v3501_v59 = vld [vmem:[%s4800_s1 + $0x464] ss:$24 sps:$4 sm:$0xff]  }
  0xa3   :  { %2004 = vmatpush1.bf16.msra.mxu1 %v3406_v60  ;;  %v3496_v60 = vld [vmem:[%s4800_s1 + $0x758] ss:$24 sps:$4 sm:$0xff]  }
  0xa4   :  { %2086 = vmatpush1.bf16.msra.mxu0 %v3409_v61  ;;  %2005 = vmatprep.subr.bf16.mxu1 %v3414_v63  ;;  %v3499_v61 = vld [vmem:[%s4800_s1 + $0x460] ss:$24 sps:$4 sm:$0xff]   ;;  %v3504_v63 = vld [vmem:[%s4800_s1 + $0x78c] ss:$24 sps:$4 sm:$0xff]  }
  0xa5   :  { %2087 = vmatprep.subr.bf16.mxu0 %v3417_v0  ;;  %v3507_v0 = vld [vmem:[%s4800_s1 + $0x494] ss:$24 sps:$4 sm:$0xff]  }
  0xa7   :  { %2006 = vmatpush1.bf16.msra.mxu1 %v3412_v1  ;;  %v3502_v1 = vld [vmem:[%s4800_s1 + $0x788] ss:$24 sps:$4 sm:$0xff]  }
  0xa8   :  { %2088 = vmatpush1.bf16.msra.mxu0 %v3415_v2  ;;  %2007 = vmatprep.subr.bf16.mxu1 %v3420_v4  ;;  %v3505_v2 = vld [vmem:[%s4800_s1 + $0x490] ss:$24 sps:$4 sm:$0xff]   ;;  %v3510_v4 = vld [vmem:[%s4800_s1 + $0x7bc] ss:$24 sps:$4 sm:$0xff]  }
  0xa9   :  { %2089 = vmatprep.subr.bf16.mxu0 %v3423_v5  ;;  %v3513_v5 = vld [vmem:[%s4800_s1 + $0x4c4] ss:$24 sps:$4 sm:$0xff]  }
  0xab   :  { %2008 = vmatpush1.bf16.msra.mxu1 %v3418_v6  ;;  %v3508_v6 = vld [vmem:[%s4800_s1 + $0x7b8] ss:$24 sps:$4 sm:$0xff]  }
  0xac   :  { %2090 = vmatpush1.bf16.msra.mxu0 %v3421_v7  ;;  %2009 = vmatprep.subr.bf16.mxu1 %v3426_v8  ;;  %v3511_v7 = vld [vmem:[%s4800_s1 + $0x4c0] ss:$24 sps:$4 sm:$0xff]   ;;  %v3516_v8 = vld [vmem:[%s4800_s1 + $0x7ec] ss:$24 sps:$4 sm:$0xff]  }
  0xad   :  { %2091 = vmatprep.subr.bf16.mxu0 %v3429_v9  ;;  %v3519_v9 = vld [vmem:[%s4800_s1 + $0x4f4] ss:$24 sps:$4 sm:$0xff]  }
  0xaf   :  { %2010 = vmatpush1.bf16.msra.mxu1 %v3424_v10 }
  0xb0   :  { %2092 = vmatpush1.bf16.msra.mxu0 %v3427_v11  ;;  %2011 = vmatprep.subr.bf16.mxu1 %v3432_v12 }
  0xb1   :  { %2093 = vmatprep.subr.bf16.mxu0 %v3435_v13 }
  0xb3   :  { %2012 = vmatpush1.bf16.msra.mxu1 %v3430_v14 }
  0xb4   :  { %2094 = vmatpush1.bf16.msra.mxu0 %v3433_v15  ;;  %2013 = vmatprep.subr.bf16.mxu1 %v3438_v16 }
  0xb5   :  { %2095 = vmatprep.subr.bf16.mxu0 %v3441_v19 }
  0xb7   :  { %2014 = vmatpush1.bf16.msra.mxu1 %v3436_v20 }
  0xb8   :  { %2096 = vmatpush1.bf16.msra.mxu0 %v3439_v21  ;;  %2015 = vmatprep.subr.bf16.mxu1 %v3444_v22 }
  0xb9   :  { %2097 = vmatprep.subr.bf16.mxu0 %v3447_v23 }
  0xbb   :  { %2016 = vmatpush1.bf16.msra.mxu1 %v3442_v24 }
  0xbc   :  { %2098 = vmatpush1.bf16.msra.mxu0 %v3445_v25  ;;  %2017 = vmatprep.subr.bf16.mxu1 %v3450_v27 }
  0xbd   :  { %2099 = vmatprep.subr.bf16.mxu0 %v3453_v28 }
  0xbf   :  { %2018 = vmatpush1.bf16.msra.mxu1 %v3448_v29 }
  0xc0   :  { %2100 = vmatpush1.bf16.msra.mxu0 %v3451_v30  ;;  %2028 = vmatprep.subr.bf16.mxu1 %v3456_v31 }
  0xc1   :  { %2110 = vmatprep.subr.bf16.mxu0 %v3459_v32 }
  0xc2   :  { %2020 = vmatmul.mubr.bf16.vlgmr.msra.gmra.mrb[4].mxu1 %v3929_v18 }
  0xc3   :  { %2102 = vmatmul.mubr.bf16.vlgmr.msra.gmra.mrb[4].mxu0 %v3927_v17  ;;  %2029 = vmatpush1.bf16.msra.mxu1 %v3454_v33  ;;  %v3471_v17 = vld [vmem:[%s4800_s1 + $0x374] ss:$24 sps:$4 sm:$0xff]  }
  0xc4   :  { %2111 = vmatpush1.bf16.msra.mxu0 %v3457_v34  ;;  %2030 = vmatprep.subr.bf16.mxu1 %v3462_v35 }
  0xc5   :  { %2112 = vmatprep.subr.bf16.mxu0 %v3465_v36  ;;  %2060 = vmatprep.mubr.bf16.mxu1 %v4022_v49 }
  0xc6   :  { %2142 = vmatprep.mubr.bf16.mxu0 %v3884_v3  ;;  %v3475_v3 = vld [vmem:[%s4800_s1 + $0x3a0] ss:$24 sps:$4 sm:$0xff]  }
  0xc7   :  { %2031 = vmatpush1.bf16.msra.mxu1 %v3460_v37 }
  0xc8   :  { %2113 = vmatpush1.bf16.msra.mxu0 %v3463_v62  ;;  %2032 = vmatprep.subr.bf16.mxu1 %v3468_v38 }
  0xc9   :  { %2114 = vmatprep.subr.bf16.mxu0 %v3471_v17 }
  0xcb   :  { %2033 = vmatpush1.bf16.msra.mxu1 %v3466_v39 }
  0xcc   :  { %2115 = vmatpush1.bf16.msra.mxu0 %v3469_v40  ;;  %2034 = vmatprep.subr.bf16.mxu1 %v3474_v41 }
  0xcd   :  { %2116 = vmatprep.subr.bf16.mxu0 %v3477_v42 }
  0xcf   :  { %2035 = vmatpush1.bf16.msra.mxu1 %v3472_v44 }
  0xd0   :  { %2117 = vmatpush1.bf16.msra.mxu0 %v3475_v3  ;;  %2036 = vmatprep.subr.bf16.mxu1 %v3480_v45 }
  0xd1   :  { %2118 = vmatprep.subr.bf16.mxu0 %v3483_v46 }
  0xd3   :  { %2037 = vmatpush1.bf16.msra.mxu1 %v3478_v47 }
  0xd4   :  { %2119 = vmatpush1.bf16.msra.mxu0 %v3481_v48  ;;  %2038 = vmatprep.subr.bf16.mxu1 %v3486_v50 }
  0xd5   :  { %2120 = vmatprep.subr.bf16.mxu0 %v3489_v51 }
  0xd7   :  { %2039 = vmatpush1.bf16.msra.mxu1 %v3484_v52 }
  0xd8   :  { %2121 = vmatpush1.bf16.msra.mxu0 %v3487_v53  ;;  %2040 = vmatprep.subr.bf16.mxu1 %v3492_v54 }
  0xd9   :  { %2122 = vmatprep.subr.bf16.mxu0 %v3495_v55 }
  0xdb   :  { %2041 = vmatpush1.bf16.msra.mxu1 %v3490_v56 }
  0xdc   :  { %2123 = vmatpush1.bf16.msra.mxu0 %v3493_v57  ;;  %2042 = vmatprep.subr.bf16.mxu1 %v3498_v58 }
  0xdd   :  { %2124 = vmatprep.subr.bf16.mxu0 %v3501_v59 }
  0xdf   :  { %2043 = vmatpush1.bf16.msra.mxu1 %v3496_v60 }
  0xe0   :  { %2125 = vmatpush1.bf16.msra.mxu0 %v3499_v61  ;;  %2044 = vmatprep.subr.bf16.mxu1 %v3504_v63 }
  0xe1   :  { %2126 = vmatprep.subr.bf16.mxu0 %v3507_v0 }
  0xe3   :  { %2045 = vmatpush1.bf16.msra.mxu1 %v3502_v1 }
  0xe4   :  { %2127 = vmatpush1.bf16.msra.mxu0 %v3505_v2  ;;  %2046 = vmatprep.subr.bf16.mxu1 %v3510_v4 }
  0xe5   :  { %2128 = vmatprep.subr.bf16.mxu0 %v3513_v5 }
  0xe6   :  { %10 = vsyncpa [#allocation3], 0  ;;  %v3514_v10 = vld [vmem:[%s4800_s1 + $0x7e8] ss:$24 sps:$4 sm:$0xff]   ;;  %v3522_v12 = vld [vmem:[%s4800_s1 + $0x81c] ss:$24 sps:$4 sm:$0xff]  }
  0xe7   :  { %2047 = vmatpush1.bf16.msra.mxu1 %v3508_v6  ;;  %v3517_v11 = vld [vmem:[%s4800_s1 + $0x4f0] ss:$24 sps:$4 sm:$0xff]   ;;  %v3525_v13 = vld [vmem:[%s4800_s1 + $0x524] ss:$24 sps:$4 sm:$0xff]   ;;  %v3523_v15 = vld [vmem:[%s4800_s1 + $0x520] ss:$24 sps:$4 sm:$0xff]  }
  0xe8   :  { %2129 = vmatpush1.bf16.msra.mxu0 %v3511_v7  ;;  %2048 = vmatprep.subr.bf16.mxu1 %v3516_v8  ;;  %v3520_v14 = vld [vmem:[%s4800_s1 + $0x818] ss:$24 sps:$4 sm:$0xff]   ;;  %v3528_v16 = vld [vmem:[%s4800_s1 + $0x84c] ss:$24 sps:$4 sm:$0xff]   ;;  %v3526_v20 = vld [vmem:[%s4800_s1 + $0x848] ss:$24 sps:$4 sm:$0xff]  }
  0xe9   :  { %2130 = vmatprep.subr.bf16.mxu0 %v3519_v9  ;;  %v3531_v19 = vld [vmem:[%s4800_s1 + $0x554] ss:$24 sps:$4 sm:$0xff]   ;;  %v3529_v21 = vld [vmem:[%s4800_s1 + $0x550] ss:$24 sps:$4 sm:$0xff]   ;;  %v3537_v23 = vld [vmem:[%s4800_s1 + $0x584] ss:$24 sps:$4 sm:$0xff]  }
  0xea   :  { %v3534_v22 = vld [vmem:[%s4800_s1 + $0x87c] ss:$24 sps:$4 sm:$0xff]   ;;  %v3532_v24 = vld [vmem:[%s4800_s1 + $0x878] ss:$24 sps:$4 sm:$0xff]   ;;  %v3540_v27 = vld [vmem:[%s4800_s1 + $0x8ac] ss:$24 sps:$4 sm:$0xff]  }
  0xeb   :  { %2049 = vmatpush1.bf16.msra.mxu1 %v3514_v10  ;;  %v3535_v25 = vld [vmem:[%s4800_s1 + $0x580] ss:$24 sps:$4 sm:$0xff]   ;;  %v3543_v28 = vld [vmem:[%s4800_s1 + $0x5b4] ss:$24 sps:$4 sm:$0xff]   ;;  %v3541_v30 = vld [vmem:[%s4800_s1 + $0x5b0] ss:$24 sps:$4 sm:$0xff]  }
  0xec   :  { %2131 = vmatpush1.bf16.msra.mxu0 %v3517_v11  ;;  %2050 = vmatprep.subr.bf16.mxu1 %v3522_v12  ;;  %v3538_v29 = vld [vmem:[%s4800_s1 + $0x8a8] ss:$24 sps:$4 sm:$0xff]   ;;  %v3546_v31 = vld [vmem:[%s4800_s1 + $0x8dc] ss:$24 sps:$4 sm:$0xff]   ;;  %v3544_v33 = vld [vmem:[%s4800_s1 + $0x8d8] ss:$24 sps:$4 sm:$0xff]  }
  0xed   :  { %2132 = vmatprep.subr.bf16.mxu0 %v3525_v13  ;;  %v3549_v32 = vld [vmem:[%s4800_s1 + $0x5e4] ss:$24 sps:$4 sm:$0xff]   ;;  %v3547_v34 = vld [vmem:[%s4800_s1 + $0x5e0] ss:$24 sps:$4 sm:$0xff]   ;;  %v3552_v35 = vld [vmem:[%s4800_s1 + $0x614] ss:$24 sps:$4 sm:$0xff]  }
  0xee   :  { %v3598_v36 = vld [vmem:[%s4802_s3 + $0x40] sm:$0xff]   ;;  %v3550_v37 = vld [vmem:[%s4800_s1 + $0x610] ss:$24 sps:$4 sm:$0xff]   ;;  %v3558_v40 = vld [vmem:[%s4800_s1 + $0x674] ss:$24 sps:$4 sm:$0xff]   ;;  %s3683_s22 = smov [#allocation2]  }
  0xef   :  { %2051 = vmatpush1.bf16.msra.mxu1 %v3520_v14  ;;  %v3555_v62 = vld [vmem:[%s4800_s1 + $0x644] ss:$24 sps:$4 sm:$0xff]   ;;  %v3600_v17 = vld [vmem:[%s4802_s3 + $0x48] sm:$0xff]   ;;  %v3553_v39 = vld [vmem:[%s4800_s1 + $0x640] ss:$24 sps:$4 sm:$0xff]   ;;  %s2723_s23 = sshll.u32 %s3683_s22, 4  ;;  %s2724_s23 = int_to_ptr.vmem [resolvable:$true] %s2723_s23 }
  0xf0   :  { %2133 = vmatpush1.bf16.msra.mxu0 %v3523_v15  ;;  %2052 = vmatprep.subr.bf16.mxu1 %v3528_v16  ;;  %v3599_v38 = vld [vmem:[%s4802_s3] sm:$0xff]   ;;  %v3601_v41 = vld [vmem:[%s4802_s3 + $0x8] sm:$0xff]   ;;  %v3603_v44 = vld [vmem:[%s4802_s3 + $0x10] sm:$0xff]   ;;  %s3658_s24 = scalar_lea.vmem %s2724_s23, 32  ;;  %p3663_p1 = scmp.lt.s32.totalorder %s2724_s23, %s2724_s23 }
  0xf1   :  { %2134 = vmatprep.subr.bf16.mxu0 %v3531_v19  ;;  %v3561_v42 = vld [vmem:[%s4800_s1 + $0x6a4] ss:$24 sps:$4 sm:$0xff]   ;;  %v3559_v45 = vld [vmem:[%s4800_s1 + $0x6a0] ss:$24 sps:$4 sm:$0xff]   ;;  %v3564_v46 = vld [vmem:[%s4800_s1 + $0x6d4] ss:$24 sps:$4 sm:$0xff]   ;;  %p3659_p0 = scmp.ne.s32.totalorder %s2724_s23, %s3658_s24  ;;  %p3664_p2 = scmp.lt.s32.totalorder %s3658_s24, %s3658_s24 }
  0xf2   :  { %v3604_v3 = vld [vmem:[%s4802_s3 + $0x58] sm:$0xff]   ;;  %v3606_v48 = vld [vmem:[%s4802_s3 + $0x60] sm:$0xff]   ;;  %v3562_v50 = vld [vmem:[%s4800_s1 + $0x6d0] ss:$24 sps:$4 sm:$0xff]  }
  0xf3   :  { %2053 = vmatpush1.bf16.msra.mxu1 %v3526_v20  ;;  %v3605_v47 = vld [vmem:[%s4802_s3 + $0x18] sm:$0xff]   ;;  %v3607_v52 = vld [vmem:[%s4802_s3 + $0x20] sm:$0xff]   ;;  %v3608_v53 = vld [vmem:[%s4802_s3 + $0x68] sm:$0xff]   ;;  %p3665_p3 = por %p3664_p2, %p3663_p1 }
  0xf4   :  { %2135 = vmatpush1.bf16.msra.mxu0 %v3529_v21  ;;  %2054 = vmatprep.subr.bf16.mxu1 %v3534_v22  ;;  %v3567_v51 = vld [vmem:[%s4800_s1 + $0x704] ss:$24 sps:$4 sm:$0xff]   ;;  %v3565_v54 = vld [vmem:[%s4800_s1 + $0x700] ss:$24 sps:$4 sm:$0xff]   ;;  %v3570_v55 = vld [vmem:[%s4800_s1 + $0x734] ss:$24 sps:$4 sm:$0xff]  }
  0xf5   :  { %2136 = vmatprep.subr.bf16.mxu0 %v3537_v23  ;;  %v3609_v56 = vld [vmem:[%s4802_s3 + $0x28] sm:$0xff]   ;;  %v3610_v58 = vld [vmem:[%s4802_s3 + $0x70] sm:$0xff]   ;;  %v3573_v63 = vld [vmem:[%s4800_s1 + $0x764] ss:$24 sps:$4 sm:$0xff]   ;;  %p3666_p4 = pnand %p3665_p3, %p3659_p0 }
  0xf6   :  { %v3568_v60 = vld [vmem:[%s4800_s1 + $0x730] ss:$24 sps:$4 sm:$0xff]   ;;  %v3612_v2 = vld [vmem:[%s4802_s3 + $0x78] sm:$0xff]   ;;  %v3576_v5 = vld [vmem:[%s4800_s1 + $0x794] ss:$24 sps:$4 sm:$0xff]  }
  0xf7   :  { %2055 = vmatpush1.bf16.msra.mxu1 %v3532_v24  ;;  %v3611_v1 = vld [vmem:[%s4802_s3 + $0x30] sm:$0xff]   ;;  %v3571_v4 = vld [vmem:[%s4800_s1 + $0x760] ss:$24 sps:$4 sm:$0xff]   ;;  %v3579_v9 = vld [vmem:[%s4800_s1 + $0x7c4] ss:$24 sps:$4 sm:$0xff]  }
  0xf8   :  { %2137 = vmatpush1.bf16.msra.mxu0 %v3535_v25  ;;  %2056 = vmatprep.subr.bf16.mxu1 %v3540_v27  ;;  %v3613_v6 = vld [vmem:[%s4802_s3 + $0x38] sm:$0xff]   ;;  %v3614_v7 = vld [vmem:[%s4802_s3 + $0xc0] sm:$0xff]   ;;  %v3574_v8 = vld [vmem:[%s4800_s1 + $0x790] ss:$24 sps:$4 sm:$0xff]   ;;  %v355_v25 = vsub.s32 0, %v3831_v43 }
  0xf9   :  { %2138 = vmatprep.subr.bf16.mxu0 %v3543_v28  ;;  %v3577_v10 = vld [vmem:[%s4800_s1 + $0x7c0] ss:$24 sps:$4 sm:$0xff]   ;;  %v3582_v11 = vld [vmem:[%s4800_s1 + $0x7f4] ss:$24 sps:$4 sm:$0xff]   ;;  %v3580_v12 = vld [vmem:[%s4800_s1 + $0x7f0] ss:$24 sps:$4 sm:$0xff]  }
  0xfa   :  { %v3585_v13 = vld [vmem:[%s4800_s1 + $0x824] ss:$24 sps:$4 sm:$0xff]   ;;  %v3583_v14 = vld [vmem:[%s4800_s1 + $0x820] ss:$24 sps:$4 sm:$0xff]   ;;  %v3588_v15 = vld [vmem:[%s4800_s1 + $0x854] ss:$24 sps:$4 sm:$0xff]  }
  0xfb   :  { %2057 = vmatpush1.bf16.msra.mxu1 %v3538_v29  ;;  %v3586_v16 = vld [vmem:[%s4800_s1 + $0x850] ss:$24 sps:$4 sm:$0xff]   ;;  %v3591_v19 = vld [vmem:[%s4800_s1 + $0x884] ss:$24 sps:$4 sm:$0xff]   ;;  %v3589_v20 = vld [vmem:[%s4800_s1 + $0x880] ss:$24 sps:$4 sm:$0xff]  }
  0xfc   :  { %2139 = vmatpush1.bf16.msra.mxu0 %v3541_v30  ;;  %2058 = vmatprep.subr.bf16.mxu1 %v3546_v31  ;;  %v3594_v21 = vld [vmem:[%s4800_s1 + $0x8b4] ss:$24 sps:$4 sm:$0xff]   ;;  %v3592_v22 = vld [vmem:[%s4800_s1 + $0x8b0] ss:$24 sps:$4 sm:$0xff]   ;;  %v3597_v23 = vld [vmem:[%s4800_s1 + $0x8e4] ss:$24 sps:$4 sm:$0xff]  }
  0xfd   :  { %2140 = vmatprep.subr.bf16.mxu0 %v3549_v32  ;;  %v3595_v24 = vld [vmem:[%s4800_s1 + $0x8e0] ss:$24 sps:$4 sm:$0xff]   ;;  %v359_v28 = vsub.s32 1, %v3831_v43 }
  0xfe   :  { %v4678_v27 = vld [vmem:[%s4801_s2] sm:$0x3f] }
  0xff   :  { %2059 = vmatpush1.bf16.msra.mxu1 %v3544_v33  ;;  %v356_v29 = vrot.slane %v4678_v27, %v355_v25  ;;  %v360_v30 = vrot.slane %v4678_v27, %v359_v28  ;;  %v375_v25 = vsub.s32 5, %v3831_v43 }
 0x100   :  { %2141 = vmatpush1.bf16.msra.mxu0 %v3547_v34  ;;  %3069 = vmatprep.subr.bf16.mxu1 %v3598_v36 }
 0x101   :  { %2151 = vmatprep.subr.bf16.mxu0 %v3552_v35 }
 0x102   :  { %2061 = vmatmul.mubr.bf16.vlgmr.msra.gmra.mrb[4].mxu1 %v4135_v26 }
 0x103   :  { %2143 = vmatmul.mubr.bf16.vlgmr.msra.gmra.mrb[4].mxu0 %v3929_v18  ;;  %3070 = vmatpush3.bf16.msra.mxu1 %v3599_v38  ;;  %v3602_v18 = vld [vmem:[%s4802_s3 + $0x50] sm:$0xff]  }
 0x104   :  { %2152 = vmatpush1.bf16.msra.mxu0 %v3550_v37  ;;  %2183 = vmatprep.mubr.bf16.mxu0 %v4022_v49  ;;  %v3556_v49 = vld [vmem:[%s4800_s1 + $0x670] ss:$24 sps:$4 sm:$0xff]  }
 0x105   :  { %2153 = vmatprep.subr.bf16.mxu0 %v3555_v62  ;;  %3071 = vmatprep.subr.bf16.mxu1 %v3600_v17 }
 0x107   :  { %3072 = vmatpush3.bf16.msra.mxu1 %v3601_v41  ;;  %v3616_v41 = vld [vmem:[%s4802_s3 + $0xc8] sm:$0xff]  }
 0x108   :  { %2154 = vmatpush1.bf16.msra.mxu0 %v3553_v39  ;;  %3073 = vmatprep.subr.bf16.mxu1 %v3602_v18  ;;  %v3615_v39 = vld [vmem:[%s4802_s3 + $0x80] sm:$0xff]   ;;  %v3617_v18 = vld [vmem:[%s4802_s3 + $0x88] sm:$0xff]  }
 0x109   :  { %2155 = vmatprep.subr.bf16.mxu0 %v3558_v40 }
 0x10b   :  { %3074 = vmatpush3.bf16.msra.mxu1 %v3603_v44  ;;  %v3620_v44 = vld [vmem:[%s4802_s3 + $0xd8] sm:$0xff]  }
 0x10c   :  { %2156 = vmatpush1.bf16.msra.mxu0 %v3556_v49  ;;  %3075 = vmatprep.subr.bf16.mxu1 %v3604_v3  ;;  %v3618_v49 = vld [vmem:[%s4802_s3 + $0xd0] sm:$0xff]   ;;  %v3621_v3 = vld [vmem:[%s4802_s3 + $0x98] sm:$0xff]  }
 0x10d   :  { %2157 = vmatprep.subr.bf16.mxu0 %v3561_v42  ;;  %v3619_v42 = vld [vmem:[%s4802_s3 + $0x90] sm:$0xff]  }
 0x10f   :  { %3076 = vmatpush3.bf16.msra.mxu1 %v3605_v47  ;;  %v3624_v47 = vld [vmem:[%s4802_s3 + $0xe8] sm:$0xff]  }
 0x110   :  { %2158 = vmatpush1.bf16.msra.mxu0 %v3559_v45  ;;  %3077 = vmatprep.subr.bf16.mxu1 %v3606_v48  ;;  %v3622_v45 = vld [vmem:[%s4802_s3 + $0xe0] sm:$0xff]   ;;  %v3625_v48 = vld [vmem:[%s4802_s3 + $0xa8] sm:$0xff]  }
 0x111   :  { %2159 = vmatprep.subr.bf16.mxu0 %v3564_v46  ;;  %v3623_v46 = vld [vmem:[%s4802_s3 + $0xa0] sm:$0xff]  }
 0x113   :  { %3078 = vmatpush3.bf16.msra.mxu1 %v3607_v52  ;;  %v3628_v52 = vld [vmem:[%s4802_s3 + $0xf8] sm:$0xff]  }
 0x114   :  { %2160 = vmatpush1.bf16.msra.mxu0 %v3562_v50  ;;  %3079 = vmatprep.subr.bf16.mxu1 %v3608_v53  ;;  %v3626_v50 = vld [vmem:[%s4802_s3 + $0xf0] sm:$0xff]   ;;  %v3629_v53 = vld [vmem:[%s4802_s3 + $0xb8] sm:$0xff]  }
 0x115   :  { %2161 = vmatprep.subr.bf16.mxu0 %v3567_v51  ;;  %v1857_v57 = vpop.f32.mrb[0].mxu1  ;;  %v3627_v51 = vld [vmem:[%s4802_s3 + $0xb0] sm:$0xff]  }
 0x116   :  { %v1859_v59 = vpop.f32.mrb[1].mxu1  ;;  %v1858_v31 = vadd.f32 %v1857_v57, %v356_v29  ;;  %v376_v29 = vrot.slane %v4678_v27, %v375_v25 }
 0x117   :  { %v1861_v61 = vpop.f32.mrb[2].mxu1  ;;  %3080 = vmatpush3.bf16.msra.mxu1 %v3609_v56  ;;  %v1860_v32 = vadd.f32 %v1859_v59, %v360_v30  ;;  %v367_v56 = vsub.s32 3, %v3831_v43 }
 0x118   :  { %2162 = vmatpush1.bf16.msra.mxu0 %v3565_v54  ;;  %v1862_v0 = vpop.f32.mrb[3].mxu1  ;;  %3081 = vmatprep.subr.bf16.mxu1 %v3610_v58  ;;  %v3630_v54 = vld [vmem:[%s4802_s3 + $0x140] sm:$0xff]  }
 0x119   :  { %2163 = vmatprep.subr.bf16.mxu0 %v3570_v55  ;;  %v363_v55 = vsub.s32 2, %v3831_v43  ;;  %v368_v58 = vrot.slane %v4678_v27, %v367_v56 }
 0x11b   :  { %3082 = vmatpush3.bf16.msra.mxu1 %v3611_v1  ;;  %v364_v57 = vrot.slane %v4678_v27, %v363_v55 }
 0x11c   :  { %2164 = vmatpush1.bf16.msra.mxu0 %v3568_v60  ;;  %3083 = vmatprep.subr.bf16.mxu1 %v3612_v2 }
 0x11d   :  { %2165 = vmatprep.subr.bf16.mxu0 %v3573_v63 }
 0x11f   :  { %3084 = vmatpush3.bf16.msra.mxu1 %v3613_v6  ;;  %v3631_v6 = vld [vmem:[%s4802_s3 + $0x100] sm:$0xff]  }
 0x120   :  { %2166 = vmatpush1.bf16.msra.mxu0 %v3571_v4  ;;  %3091 = vmatprep.subr.bf16.mxu1 %v3614_v7 }
 0x121   :  { %2167 = vmatprep.subr.bf16.mxu0 %v3576_v5 }
 0x124   :  { %2168 = vmatpush1.bf16.msra.mxu0 %v3574_v8  ;;  %v3632_v8 = vld [vmem:[%s4802_s3 + $0x148] sm:$0xff]  }
 0x125   :  { %2169 = vmatprep.subr.bf16.mxu0 %v3579_v9  ;;  %v3633_v9 = vld [vmem:[%s4802_s3 + $0x108] sm:$0xff]  }
 0x128   :  { %2170 = vmatpush1.bf16.msra.mxu0 %v3577_v10  ;;  %v3634_v10 = vld [vmem:[%s4802_s3 + $0x150] sm:$0xff]  }
 0x129   :  { %2171 = vmatprep.subr.bf16.mxu0 %v3582_v11  ;;  %v3635_v11 = vld [vmem:[%s4802_s3 + $0x110] sm:$0xff]  }
 0x12c   :  { %2172 = vmatpush1.bf16.msra.mxu0 %v3580_v12  ;;  %v3636_v12 = vld [vmem:[%s4802_s3 + $0x158] sm:$0xff]  }
 0x12d   :  { %2173 = vmatprep.subr.bf16.mxu0 %v3585_v13  ;;  %v3637_v13 = vld [vmem:[%s4802_s3 + $0x118] sm:$0xff]  }
 0x130   :  { %2174 = vmatpush1.bf16.msra.mxu0 %v3583_v14  ;;  %v3638_v14 = vld [vmem:[%s4802_s3 + $0x160] sm:$0xff]  }
 0x131   :  { %2175 = vmatprep.subr.bf16.mxu0 %v3588_v15  ;;  %v3639_v15 = vld [vmem:[%s4802_s3 + $0x120] sm:$0xff]  }
 0x134   :  { %2176 = vmatpush1.bf16.msra.mxu0 %v3586_v16  ;;  %v3640_v16 = vld [vmem:[%s4802_s3 + $0x168] sm:$0xff]  }
 0x135   :  { %2177 = vmatprep.subr.bf16.mxu0 %v3591_v19  ;;  %v3641_v19 = vld [vmem:[%s4802_s3 + $0x128] sm:$0xff]  }
 0x138   :  { %2178 = vmatpush1.bf16.msra.mxu0 %v3589_v20  ;;  %v3642_v20 = vld [vmem:[%s4802_s3 + $0x170] sm:$0xff]  }
 0x139   :  { %2179 = vmatprep.subr.bf16.mxu0 %v3594_v21  ;;  %v3643_v21 = vld [vmem:[%s4802_s3 + $0x130] sm:$0xff]  }
 0x13c   :  { %2180 = vmatpush1.bf16.msra.mxu0 %v3592_v22  ;;  %v3644_v22 = vld [vmem:[%s4802_s3 + $0x178] sm:$0xff]  }
 0x13d   :  { %2181 = vmatprep.subr.bf16.mxu0 %v3597_v23  ;;  %v3645_v23 = vld [vmem:[%s4802_s3 + $0x138] sm:$0xff]  }
 0x140   :  { %2182 = vmatpush1.bf16.msra.mxu0 %v3595_v24  ;;  %v371_v24 = vsub.s32 4, %v3831_v43 }
 0x142   :  { %v372_v28 = vrot.slane %v4678_v27, %v371_v24  ;;  %v3020_v27 = vld [vmem:[%s4803_s4] ss:$0 sm:$0xff] }
 0x143   :  { %2184 = vmatmul.mubr.bf16.vlgmr.msra.gmra.mrb[4].mxu0 %v4135_v26 }
 0x156   :  { %v1939_v33 = vpop.f32.mrb[0].mxu0 }
 0x157   :  { %v3136_v34 = vadd.f32 %v1939_v33, %v1858_v31  ;;  %v1941_v35 = vpop.f32.mrb[1].mxu0 }
 0x158   :  { %v3138_v36 = vadd.f32 %v1941_v35, %v1860_v32  ;;  %v1943_v26 = vpop.f32.mrb[2].mxu0 }
 0x159   :  { %3646 = vtanh.f32 %v3136_v34  ;;  %v1944_v37 = vpop.f32.mrb[3].mxu0 }
 0x15a   :  { %3648 = vtanh.f32 %v3138_v36 }
 0x163   :  { %v3647_v62 = vpop.eup %3646 }
 0x164   :  { %v3649_v38 = vpop.eup %3648  ;;  %v2198_v40 = vpack.c.bf16 %v3647_v62, %v3647_v62 }
 0x165   :  { %v2199_v17 = vpack.c.bf16 %v3649_v38, %v3649_v38 }
 0x167   :  { %2627 = vmatprep.mubr.bf16.mxu1 %v2199_v17 }
 0x168   :  { %2628 = vmatmul.mubr.bf16.vlgmr.msra.gmra.mrb[8].mxu1 %v2198_v40 }
 0x169   :  { %3092 = vmatpush3.bf16.msra.mxu1 %v3615_v39 }
 0x16a   :  { %3093 = vmatprep.subr.bf16.mxu1 %v3616_v41 }
 0x16d   :  { %3094 = vmatpush3.bf16.msra.mxu1 %v3617_v18 }
 0x16e   :  { %3095 = vmatprep.subr.bf16.mxu1 %v3618_v49 }
 0x171   :  { %3096 = vmatpush3.bf16.msra.mxu1 %v3619_v42 }
 0x172   :  { %3097 = vmatprep.subr.bf16.mxu1 %v3620_v44 }
 0x175   :  { %3098 = vmatpush3.bf16.msra.mxu1 %v3621_v3 }
 0x176   :  { %3099 = vmatprep.subr.bf16.mxu1 %v3622_v45 }
 0x179   :  { %3100 = vmatpush3.bf16.msra.mxu1 %v3623_v46 }
 0x17a   :  { %3101 = vmatprep.subr.bf16.mxu1 %v3624_v47 }
 0x17d   :  { %3102 = vmatpush3.bf16.msra.mxu1 %v3625_v48 }
 0x17e   :  { %3103 = vmatprep.subr.bf16.mxu1 %v3626_v50 }
 0x181   :  { %3104 = vmatpush3.bf16.msra.mxu1 %v3627_v51 }
 0x182   :  { %3105 = vmatprep.subr.bf16.mxu1 %v3628_v52 }
 0x185   :  { %3106 = vmatpush3.bf16.msra.mxu1 %v3629_v53 }
 0x186   :  { %3113 = vmatprep.subr.bf16.mxu1 %v3630_v54 }
 0x1d5   :  { %v2062_v59 = vpop.f32.mrb[4].mxu1 }
 0x1d6   :  { %v3139_v60 = vadd.f32 %v2062_v59, %v364_v57  ;;  %v2064_v61 = vpop.f32.mrb[5].mxu1 }
 0x1d7   :  { %v3140_v63 = vadd.f32 %v2064_v61, %v368_v58  ;;  %v2066_v0 = vpop.f32.mrb[6].mxu1 }
 0x1d8   :  { %3650 = vtanh.f32 %v3139_v60  ;;  %v2067_v1 = vpop.f32.mrb[7].mxu1 }
 0x1d9   :  { %3652 = vtanh.f32 %v3140_v63 }
 0x1e2   :  { %v3651_v2 = vpop.eup %3650 }
 0x1e3   :  { %v3653_v4 = vpop.eup %3652  ;;  %v2200_v7 = vpack.c.bf16 %v3651_v2, %v3651_v2 }
 0x1e4   :  { %v2201_v5 = vpack.c.bf16 %v3653_v4, %v3653_v4 }
 0x1e6   :  { %2667 = vmatprep.mubr.bf16.mxu1 %v2201_v5 }
 0x1e7   :  { %2668 = vmatmul.mubr.bf16.vlgmr.msra.gmra.mrb[12].mxu1 %v2200_v7 }
 0x1e8   :  { %3114 = vmatpush3.bf16.msra.mxu1 %v3631_v6 }
 0x1e9   :  { %3115 = vmatprep.subr.bf16.mxu1 %v3632_v8 }
 0x1ec   :  { %3116 = vmatpush3.bf16.msra.mxu1 %v3633_v9 }
 0x1ed   :  { %3117 = vmatprep.subr.bf16.mxu1 %v3634_v10 }
 0x1f0   :  { %3118 = vmatpush3.bf16.msra.mxu1 %v3635_v11 }
 0x1f1   :  { %3119 = vmatprep.subr.bf16.mxu1 %v3636_v12 }
 0x1f4   :  { %3120 = vmatpush3.bf16.msra.mxu1 %v3637_v13 }
 0x1f5   :  { %3121 = vmatprep.subr.bf16.mxu1 %v3638_v14 }
 0x1f8   :  { %3122 = vmatpush3.bf16.msra.mxu1 %v3639_v15 }
 0x1f9   :  { %3123 = vmatprep.subr.bf16.mxu1 %v3640_v16 }
 0x1fc   :  { %3124 = vmatpush3.bf16.msra.mxu1 %v3641_v19 }
 0x1fd   :  { %3125 = vmatprep.subr.bf16.mxu1 %v3642_v20 }
 0x200   :  { %3126 = vmatpush3.bf16.msra.mxu1 %v3643_v21 }
 0x201   :  { %3127 = vmatprep.subr.bf16.mxu1 %v3644_v22 }
 0x204   :  { %3128 = vmatpush3.bf16.msra.mxu1 %v3645_v23 }
 0x216   :  { %v2185_v30 = vpop.f32.mrb[4].mxu0 }
 0x217   :  { %v3141_v31 = vadd.f32 %v2185_v30, %v372_v28  ;;  %v2187_v32 = vpop.f32.mrb[5].mxu0 }
 0x218   :  { %v3142_v33 = vadd.f32 %v2187_v32, %v376_v29  ;;  %v2189_v34 = vpop.f32.mrb[6].mxu0 }
 0x219   :  { %3654 = vtanh.f32 %v3141_v31  ;;  %v2190_v35 = vpop.f32.mrb[7].mxu0 }
 0x21a   :  { %3656 = vtanh.f32 %v3142_v33 }
 0x223   :  { %v3655_v36 = vpop.eup %3654 }
 0x224   :  { %v3657_v26 = vpop.eup %3656  ;;  %v2202_v62 = vpack.c.bf16 %v3655_v36, %v3655_v36 }
 0x225   :  { %v2203_v37 = vpack.c.bf16 %v3657_v26, %v3657_v26 }
 0x227   :  { %2707 = vmatprep.mubr.bf16.mxu1 %v2203_v37 }
 0x228   :  { %2708 = vmatmul.mubr.bf16.vlgmr.msra.gmra.mrb[16].mxu1 %v2202_v62 }
 0x23b   :  { %v3085_v38 = vpop.f32.mrb[8].mxu1 }
 0x23c   :  { %v3086_v43 = vpop.f32.mrb[9].mxu1 }
 0x23d   :  { %v3087_v17 = vadd.f32 %v3086_v43, %v3085_v38  ;;  %v3088_v39 = vpop.f32.mrb[10].mxu1 }
 0x23e   :  { %v3089_v40 = vpop.f32.mrb[11].mxu1 }
 0x23f   :  { %v2630_v49 = vadd.f32 %v3087_v17, %v3020_v27 }
 0x2ba   :  { %v3107_v41 = vpop.f32.mrb[12].mxu1 }
 0x2bb   :  { %v3108_v18 = vpop.f32.mrb[13].mxu1 }
 0x2bc   :  { %v3109_v42 = vadd.f32 %v3108_v18, %v3107_v41  ;;  %v3110_v44 = vpop.f32.mrb[14].mxu1 }
 0x2bd   :  { %v3111_v3 = vpop.f32.mrb[15].mxu1 }
 0x2be   :  { %v2670_v45 = vadd.f32 %v3109_v42, %v2630_v49 }
 0x2fb   :  { %v3129_v46 = vpop.f32.mrb[16].mxu1 }
 0x2fc   :  { %v3130_v47 = vpop.f32.mrb[17].mxu1 }
 0x2fd   :  { %v3131_v48 = vadd.f32 %v3130_v47, %v3129_v46  ;;  %v3132_v50 = vpop.f32.mrb[18].mxu1 }
 0x2fe   :  { %v3133_v51 = vpop.f32.mrb[19].mxu1 }
 0x2ff   :  { %v2710_v52 = vadd.f32 %v3131_v48, %v2670_v45 }
 0x301   :  { %v2715_v53 = vmax.f32 %v2710_v52, 0.0 }
 0x303   :  { %2716 = vst [vmem:[#allocation2] sm:$0x3] %v2715_v53 }
 0x304   :  { %3669 = shalt.err (!%p3666_p4)
}
 0x305   :  { %s3670_s26 = scalar_lea.hbm %s4804_s5, 32 }
 0x306   :  { %p3671_p5 = scmp.ne.s32.totalorder %s4804_s5, %s3670_s26  ;;  %p3674_p6 = scmp.lt.u32.totalorder %s3670_s26, %s4804_s5 }
 0x308   :  { %p3676_p7 = pnand %p3674_p6, %p3671_p5 }
 0x30a   :  { %3679 = shalt.err (!%p3676_p7)
}
 0x30b   :  { %2726 = dma.vmem_to_hbm [thread:$0]  %s2724_s23, 32, %s4804_s5, [#allocation3]  }
 0x30c   :  { %3680 = dma.done.wait [#allocation3], 32  }
 0x30d   :  { %3681 = vsyncadd [#allocation3], 4294967264 }
 0x30e   :  { %2730 = vsyncpa [#allocation3], 1 }

</bundles_post_ra>
